<compile_context>
chip_gen: v5e
topology: v5e:2x2
jax: 0.10.0
libtpu: 0.0.40
codegen_flags: <defaults>
</compile_context>

<pallas_src>
import functools

import jax
import jax.numpy as jnp
from jax.experimental import pallas as pl
from jax.experimental.pallas import tpu as pltpu

RES = 30          # fixed by the module (fc1 expects 8 * 30 * 30 inputs)
EPS = 1e-5        # BatchNorm2d default eps


def _round_up(x, m):
    return (x + m - 1) // m * m


# ---------------------------------------------------------------------------
# Pallas kernels: fused  out = x @ w + b  (+ optional ReLU)
# ---------------------------------------------------------------------------
def _linear_kernel_1k(x_ref, w_ref, b_ref, o_ref, *, apply_relu):
    # Fast path: single K-step -> no accumulator scratch, no init/finalize.
    out = jnp.dot(x_ref[...], w_ref[...], preferred_element_type=jnp.float32)
    out = out + b_ref[...]
    if apply_relu:
        out = jnp.maximum(out, 0.0)
    o_ref[...] = out.astype(o_ref.dtype)


def _linear_kernel_acc(x_ref, w_ref, b_ref, o_ref, acc_ref, *, apply_relu):
    k = pl.program_id(2)

    @pl.when(k == 0)
    def _():
        acc_ref[...] = jnp.zeros_like(acc_ref)

    acc_ref[...] += jnp.dot(x_ref[...], w_ref[...],
                            preferred_element_type=jnp.float32)

    @pl.when(k == pl.num_programs(2) - 1)
    def _():
        out = acc_ref[...] + b_ref[...]
        if apply_relu:
            out = jnp.maximum(out, 0.0)
        o_ref[...] = out.astype(o_ref.dtype)


def pallas_linear(x, w_pad, b_pad, *, relu, n_out, tm=None, tn=None, tk=None):
    """x: [M, K] f32 (unpadded). w_pad: [Kp, Np] pre-padded. b_pad: [1, Np].
    Returns [M, n_out] f32."""
    M, K = x.shape
    Kp, Np = w_pad.shape
    assert Kp >= K and Kp % 8 == 0 and Np % 128 == 0

    tm = _round_up(M, 8) if tm is None else tm
    tn = Np if tn is None else tn
    tk = Kp if tk is None else tk
    assert tm % 8 == 0 and tn % 128 == 0
    assert Np % tn == 0 and Kp % tk == 0
    assert tk == Kp or tk % 128 == 0

    Mp = _round_up(M, tm)
    xp = x if (Mp, Kp) == (M, K) else jnp.pad(x, ((0, Mp - M), (0, Kp - K)))

    grid = (Mp // tm, Np // tn, Kp // tk)
    single_k = grid[2] == 1
    kernel = functools.partial(
        _linear_kernel_1k if single_k else _linear_kernel_acc, apply_relu=relu)
    scratch = [] if single_k else [pltpu.VMEM((tm, tn), jnp.float32)]

    out = pl.pallas_call(
        kernel,
        out_shape=jax.ShapeDtypeStruct((Mp, Np), jnp.float32),
        grid_spec=pltpu.PrefetchScalarGridSpec(
            num_scalar_prefetch=0,
            grid=grid,
            in_specs=[
                pl.BlockSpec((tm, tk), lambda i, j, k: (i, k)),
                pl.BlockSpec((tk, tn), lambda i, j, k: (k, j)),
                pl.BlockSpec((1, tn), lambda i, j, k: (0, j)),
            ],
            out_specs=pl.BlockSpec((tm, tn), lambda i, j, k: (i, j)),
            scratch_shapes=scratch,
        ),
        compiler_params=pltpu.CompilerParams(
            dimension_semantics=("parallel", "parallel", "arbitrary")),
    )(xp, w_pad, b_pad)
    return out[:M, :n_out]


# ---------------------------------------------------------------------------
# Conv3x3 (with ReflectionPad2d(1)) as im2col + Pallas matmul, ReLU fused.
# ---------------------------------------------------------------------------
def conv3x3_reflect_relu(x_nhwc, w_mat_pad, b_pad, cout):
    N, H, W, Cin = x_nhwc.shape
    xp = jnp.pad(x_nhwc, ((0, 0), (1, 1), (1, 1), (0, 0)), mode="reflect")
    cols = []
    for dh in range(3):
        for dw in range(3):
            cols.append(xp[:, dh:dh + H, dw:dw + W, :])
    patches = jnp.stack(cols, axis=3).reshape(N * H * W, 9 * Cin)  # (kh,kw,cin)
    M = N * H * W
    # 2 parallel i-blocks (megacore-friendly on v7x, ~free elsewhere), zero pad.
    tm = M // 2 if (M % 16 == 0) else None
    out = pallas_linear(patches, w_mat_pad, b_pad, relu=True, n_out=cout, tm=tm)
    return out.reshape(N, H, W, cout)


# ---------------------------------------------------------------------------
# BatchNorm2d (training mode, biased variance) — tiny reduction, kept as JAX.
# TODO(synk): could be fused into the conv-matmul epilogue of the *next* layer
# once batch stats are known, but it is negligible at these sizes.
# ---------------------------------------------------------------------------
def _bn_train(x, gamma, beta, eps=EPS):
    mean = jnp.mean(x, axis=(0, 1, 2))
    var = jnp.mean(jnp.square(x - mean), axis=(0, 1, 2))
    return (x - mean) * jax.lax.rsqrt(var + eps) * gamma + beta


def batchnorm2d_per_branch(x, gamma, beta, nb):
    # The two siamese branches are batched together, but nn.BatchNorm2d in
    # training mode computes statistics per forward_once call -> compute the
    # stats separately for each branch to match PyTorch exactly.
    return jnp.concatenate(
        [_bn_train(x[:nb], gamma, beta), _bn_train(x[nb:], gamma, beta)], axis=0)


# ---------------------------------------------------------------------------
# SiameseNetwork forward (both branches batched through the MXU kernels)
# ---------------------------------------------------------------------------
def siamese_forward_impl(input1, input2, p):
    nb = input1.shape[0]
    x = jnp.concatenate([input1, input2], axis=0)          # [2*nb, 3, 30, 30]
    x = jnp.transpose(x, (0, 2, 3, 1))                     # NCHW -> NHWC
    x = conv3x3_reflect_relu(x, p["w1"], p["b1"], 4)
    x = batchnorm2d_per_branch(x, p["g1"], p["be1"], nb)
    x = conv3x3_reflect_relu(x, p["w2"], p["b2"], 8)
    x = batchnorm2d_per_branch(x, p["g2"], p["be2"], nb)
    x = conv3x3_reflect_relu(x, p["w3"], p["b3"], 8)
    x = batchnorm2d_per_branch(x, p["g3"], p["be3"], nb)
    # PyTorch: output.view(N, -1) on an NCHW tensor -> flatten C,H,W order.
    n = x.shape[0]
    x = jnp.transpose(x, (0, 3, 1, 2)).reshape(n, -1)      # [2*nb, 7200]
    # fc1: tiny M, lane-dense tn, big tk -> grid (1, 2, 3)
    x = pallas_linear(x, p["fw1"], p["fb1"], relu=True, n_out=500,
                      tm=8, tn=256, tk=2432)
    # fc2 / fc3: single-step fast path (grid (1,1,1))
    x = pallas_linear(x, p["fw2"], p["fb2"], relu=True, n_out=500)
    x = pallas_linear(x, p["fw3"], p["fb3"], relu=False, n_out=5)
    return x[:nb], x[nb:]


siamese_forward = jax.jit(siamese_forward_impl)


# ---------------------------------------------------------------------------
# Parameters: PyTorch-layout init, then one-time padding / layout prep.
# ---------------------------------------------------------------------------
def init_params(key):
    ks = jax.random.split(key, 12)
    s = 0.1
    return {
        # conv weights in PyTorch OIHW layout
        "w1": jax.random.normal(ks[0], (4, 3, 3, 3), jnp.float32) * s,
        "b1": jax.random.normal(ks[1], (4,), jnp.float32) * s,
        "g1": jnp.ones((4,), jnp.float32), "be1": jnp.zeros((4,), jnp.float32),
        "w2": jax.random.normal(ks[2], (8, 4, 3, 3), jnp.float32) * s,
        "b2": jax.random.normal(ks[3], (8,), jnp.float32) * s,
        "g2": jnp.ones((8,), jnp.float32), "be2": jnp.zeros((8,), jnp.float32),
        "w3": jax.random.normal(ks[4], (8, 8, 3, 3), jnp.float32) * s,
        "b3": jax.random.normal(ks[5], (8,), jnp.float32) * s,
        "g3": jnp.ones((8,), jnp.float32), "be3": jnp.zeros((8,), jnp.float32),
        # fc weights stored as [in, out] (deterministic synthetic init)
        "fw1": jax.random.normal(ks[6], (8 * RES * RES, 500), jnp.float32) * 0.01,
        "fb1": jax.random.normal(ks[7], (500,), jnp.float32) * 0.01,
        "fw2": jax.random.normal(ks[8], (500, 500), jnp.float32) * 0.01,
        "fb2": jax.random.normal(ks[9], (500,), jnp.float32) * 0.01,
        "fw3": jax.random.normal(ks[10], (500, 5), jnp.float32) * 0.01,
        "fb3": jax.random.normal(ks[11], (5,), jnp.float32) * 0.01,
    }


def _pad2d(a, rows, cols):
    return jnp.pad(a, ((0, rows - a.shape[0]), (0, cols - a.shape[1])))


def _prep_conv(w_oihw, b):
    cin = w_oihw.shape[1]
    # (o,i,h,w) -> (h,w,i,o) to match im2col (kh,kw,cin) patch ordering.
    w_mat = jnp.transpose(w_oihw, (2, 3, 1, 0)).reshape(9 * cin, -1)
    return _pad2d(w_mat, 128, 128), _pad2d(b[None, :], 1, 128)


def _prep_fc(w, b, kp, np_):
    return _pad2d(w, kp, np_), _pad2d(b[None, :], 1, np_)


def prepare_params(p):
    w1, b1 = _prep_conv(p["w1"], p["b1"])
    w2, b2 = _prep_conv(p["w2"], p["b2"])
    w3, b3 = _prep_conv(p["w3"], p["b3"])
    fw1, fb1 = _prep_fc(p["fw1"], p["fb1"], 7296, 512)   # 7296 = 3 * 2432
    fw2, fb2 = _prep_fc(p["fw2"], p["fb2"], 512, 512)
    fw3, fb3 = _prep_fc(p["fw3"], p["fb3"], 512, 128)
    return {
        "w1": w1, "b1": b1, "g1": p["g1"], "be1": p["be1"],
        "w2": w2, "b2": b2, "g2": p["g2"], "be2": p["be2"],
        "w3": w3, "b3": b3, "g3": p["g3"], "be3": p["be3"],
        "fw1": fw1, "fb1": fb1, "fw2": fw2, "fb2": fb2,
        "fw3": fw3, "fb3": fb3,
    }


if __name__ == "__main__":
    key = jax.random.PRNGKey(0)
    kp, k1, k2 = jax.random.split(key, 3)
    params = prepare_params(init_params(kp))   # one-time padding, outside jit

    batch = 2
    input1 = jax.random.normal(k1, (batch, 3, RES, RES), jnp.float32)
    input2 = jax.random.normal(k2, (batch, 3, RES, RES), jnp.float32)

    out1, out2 = siamese_forward(input1, input2, params)
    jax.block_until_ready((out1, out2))
    assert out1.shape == (batch, 5) and out2.shape == (batch, 5)
    print("KERNEL_OK")
</pallas_src>

<mosaic_0001>
module attributes {stable_mosaic.version = 11 : i64} {
  func.func @_linear_kernel_1k(%arg0: i32, %arg1: i32, %arg2: i32, %arg3: memref<1800x128xf32, #tpu.memory_space<vmem>>, %arg4: memref<128x128xf32, #tpu.memory_space<vmem>>, %arg5: memref<1x128xf32, #tpu.memory_space<vmem>>, %arg6: memref<1800x128xf32, #tpu.memory_space<vmem>>) attributes {dimension_semantics = [#tpu.dimension_semantics<parallel>, #tpu.dimension_semantics<parallel>, #tpu.dimension_semantics<arbitrary>], iteration_bounds = array<i64: 2, 1, 1>, scalar_prefetch = 0 : i64, scratch_operands = 0 : i64, tpu.core_type = #tpu.core_type<tc>, window_params = [{transform_indices = @transform_0, window_bounds = array<i64: 1800, 128>}, {transform_indices = @transform_1, window_bounds = array<i64: 128, 128>}, {transform_indices = @transform_2, window_bounds = array<i64: 1, 128>}, {transform_indices = @transform_3, window_bounds = array<i64: 1800, 128>}]} {
    %c0 = arith.constant 0 : index
    %c0_0 = arith.constant 0 : index
    %0 = vector.load %arg3[%c0, %c0_0] : memref<1800x128xf32, #tpu.memory_space<vmem>>, vector<1800x128xf32>
    %c0_1 = arith.constant 0 : index
    %c0_2 = arith.constant 0 : index
    %1 = vector.load %arg4[%c0_1, %c0_2] : memref<128x128xf32, #tpu.memory_space<vmem>>, vector<128x128xf32>
    %cst = arith.constant dense<0.000000e+00> : vector<1800x128xf32>
    %2 = tpu.matmul %0, %1, %cst {dimension_numbers = #tpu.dot_dimension_numbers<[1], [0], [0], [1], [0, 0, 1, 1], [], []>} : vector<1800x128xf32>, vector<128x128xf32>, vector<1800x128xf32> -> vector<1800x128xf32>
    %c0_3 = arith.constant 0 : index
    %c0_4 = arith.constant 0 : index
    %3 = vector.load %arg5[%c0_3, %c0_4] : memref<1x128xf32, #tpu.memory_space<vmem>>, vector<1x128xf32>
    %4 = vector.broadcast %3 : vector<1x128xf32> to vector<1800x128xf32>
    %5 = arith.addf %2, %4 : vector<1800x128xf32>
    %cst_5 = arith.constant 0.000000e+00 : f32
    %6 = vector.broadcast %cst_5 : f32 to vector<1800x128xf32>
    %7 = arith.maximumf %5, %6 : vector<1800x128xf32>
    %c0_6 = arith.constant 0 : index
    %c0_7 = arith.constant 0 : index
    %8 = vector.load %arg6[%c0_6, %c0_7] : memref<1800x128xf32, #tpu.memory_space<vmem>>, vector<1800x128xf32>
    tpu.vector_store %arg6[%c0_6, %c0_7], %7 {strides = array<i32>} : memref<1800x128xf32, #tpu.memory_space<vmem>>, vector<1800x128xf32>,
    return
  }
  func.func @transform_0(%arg0: i32, %arg1: i32, %arg2: i32) -> (i32, i32) {
    %c0_i32 = arith.constant 0 : i32
    return %arg0, %arg2 : i32, i32
  }
  func.func @transform_1(%arg0: i32, %arg1: i32, %arg2: i32) -> (i32, i32) {
    %c0_i32 = arith.constant 0 : i32
    return %arg2, %arg1 : i32, i32
  }
  func.func @transform_2(%arg0: i32, %arg1: i32, %arg2: i32) -> (i32, i32) {
    %c0_i32 = arith.constant 0 : i32
    %c0_i32_0 = arith.constant 0 : i32
    return %c0_i32, %arg1 : i32, i32
  }
  func.func @transform_3(%arg0: i32, %arg1: i32, %arg2: i32) -> (i32, i32) {
    %c0_i32 = arith.constant 0 : i32
    return %arg0, %arg1 : i32, i32
  }
}

module attributes {stable_mosaic.version = 11 : i64} {
  func.func @_linear_kernel_acc(%arg0: i32, %arg1: i32, %arg2: i32, %arg3: memref<8x2432xf32, #tpu.memory_space<vmem>>, %arg4: memref<2432x256xf32, #tpu.memory_space<vmem>>, %arg5: memref<1x256xf32, #tpu.memory_space<vmem>>, %arg6: memref<8x256xf32, #tpu.memory_space<vmem>>, %arg7: memref<8x256xf32, #tpu.memory_space<vmem>>) attributes {dimension_semantics = [#tpu.dimension_semantics<parallel>, #tpu.dimension_semantics<parallel>, #tpu.dimension_semantics<arbitrary>], iteration_bounds = array<i64: 1, 2, 3>, scalar_prefetch = 0 : i64, scratch_operands = 1 : i64, tpu.core_type = #tpu.core_type<tc>, window_params = [{transform_indices = @transform_0, window_bounds = array<i64: 8, 2432>}, {transform_indices = @transform_1, window_bounds = array<i64: 2432, 256>}, {transform_indices = @transform_2, window_bounds = array<i64: 1, 256>}, {transform_indices = @transform_3, window_bounds = array<i64: 8, 256>}]} {
    %c0_i32 = arith.constant 0 : i32
    %0 = arith.cmpi eq, %arg2, %c0_i32 : i32
    %1 = arith.extui %0 : i1 to i32
    %c0_i32_0 = arith.constant 0 : i32
    %2 = arith.cmpi ne, %1, %c0_i32_0 : i32
    scf.if %2 {
      %cst_9 = arith.constant 0.000000e+00 : f32
      %12 = vector.broadcast %cst_9 : f32 to vector<8x256xf32>
      %c0_10 = arith.constant 0 : index
      %c0_11 = arith.constant 0 : index
      %13 = vector.load %arg7[%c0_10, %c0_11] : memref<8x256xf32, #tpu.memory_space<vmem>>, vector<8x256xf32>
      tpu.vector_store %arg7[%c0_10, %c0_11], %12 {strides = array<i32>} : memref<8x256xf32, #tpu.memory_space<vmem>>, vector<8x256xf32>,
    } else {
    }
    %c0 = arith.constant 0 : index
    %c0_1 = arith.constant 0 : index
    %3 = vector.load %arg7[%c0, %c0_1] : memref<8x256xf32, #tpu.memory_space<vmem>>, vector<8x256xf32>
    %c0_2 = arith.constant 0 : index
    %c0_3 = arith.constant 0 : index
    %4 = vector.load %arg3[%c0_2, %c0_3] : memref<8x2432xf32, #tpu.memory_space<vmem>>, vector<8x2432xf32>
    %c0_4 = arith.constant 0 : index
    %c0_5 = arith.constant 0 : index
    %5 = vector.load %arg4[%c0_4, %c0_5] : memref<2432x256xf32, #tpu.memory_space<vmem>>, vector<2432x256xf32>
    %cst = arith.constant dense<0.000000e+00> : vector<8x256xf32>
    %6 = tpu.matmul %4, %5, %cst {dimension_numbers = #tpu.dot_dimension_numbers<[1], [0], [0], [1], [0, 0, 1, 1], [], []>} : vector<8x2432xf32>, vector<2432x256xf32>, vector<8x256xf32> -> vector<8x256xf32>
    %7 = arith.addf %3, %6 : vector<8x256xf32>
    %c0_6 = arith.constant 0 : index
    %c0_7 = arith.constant 0 : index
    %8 = vector.load %arg7[%c0_6, %c0_7] : memref<8x256xf32, #tpu.memory_space<vmem>>, vector<8x256xf32>
    tpu.vector_store %arg7[%c0_6, %c0_7], %7 {strides = array<i32>} : memref<8x256xf32, #tpu.memory_space<vmem>>, vector<8x256xf32>,
    %c2_i32 = arith.constant 2 : i32
    %9 = arith.cmpi eq, %arg2, %c2_i32 : i32
    %10 = arith.extui %9 : i1 to i32
    %c0_i32_8 = arith.constant 0 : i32
    %11 = arith.cmpi ne, %10, %c0_i32_8 : i32
    scf.if %11 {
      %c0_9 = arith.constant 0 : index
      %c0_10 = arith.constant 0 : index
      %12 = vector.load %arg7[%c0_9, %c0_10] : memref<8x256xf32, #tpu.memory_space<vmem>>, vector<8x256xf32>
      %c0_11 = arith.constant 0 : index
      %c0_12 = arith.constant 0 : index
      %13 = vector.load %arg5[%c0_11, %c0_12] : memref<1x256xf32, #tpu.memory_space<vmem>>, vector<1x256xf32>
      %14 = vector.broadcast %13 : vector<1x256xf32> to vector<8x256xf32>
      %15 = arith.addf %12, %14 : vector<8x256xf32>
      %cst_13 = arith.constant 0.000000e+00 : f32
      %16 = vector.broadcast %cst_13 : f32 to vector<8x256xf32>
      %17 = arith.maximumf %15, %16 : vector<8x256xf32>
      %c0_14 = arith.constant 0 : index
      %c0_15 = arith.constant 0 : index
      %18 = vector.load %arg6[%c0_14, %c0_15] : memref<8x256xf32, #tpu.memory_space<vmem>>, vector<8x256xf32>
      tpu.vector_store %arg6[%c0_14, %c0_15], %17 {strides = array<i32>} : memref<8x256xf32, #tpu.memory_space<vmem>>, vector<8x256xf32>,
    } else {
    }
    return
  }
  func.func @transform_0(%arg0: i32, %arg1: i32, %arg2: i32) -> (i32, i32) {
    %c0_i32 = arith.constant 0 : i32
    return %arg0, %arg2 : i32, i32
  }
  func.func @transform_1(%arg0: i32, %arg1: i32, %arg2: i32) -> (i32, i32) {
    %c0_i32 = arith.constant 0 : i32
    return %arg2, %arg1 : i32, i32
  }
  func.func @transform_2(%arg0: i32, %arg1: i32, %arg2: i32) -> (i32, i32) {
    %c0_i32 = arith.constant 0 : i32
    %c0_i32_0 = arith.constant 0 : i32
    return %c0_i32, %arg1 : i32, i32
  }
  func.func @transform_3(%arg0: i32, %arg1: i32, %arg2: i32) -> (i32, i32) {
    %c0_i32 = arith.constant 0 : i32
    return %arg0, %arg1 : i32, i32
  }
}

module attributes {stable_mosaic.version = 11 : i64} {
  func.func @_linear_kernel_1k(%arg0: i32, %arg1: i32, %arg2: i32, %arg3: memref<8x512xf32, #tpu.memory_space<vmem>>, %arg4: memref<512x512xf32, #tpu.memory_space<vmem>>, %arg5: memref<1x512xf32, #tpu.memory_space<vmem>>, %arg6: memref<8x512xf32, #tpu.memory_space<vmem>>) attributes {dimension_semantics = [#tpu.dimension_semantics<parallel>, #tpu.dimension_semantics<parallel>, #tpu.dimension_semantics<arbitrary>], iteration_bounds = array<i64: 1, 1, 1>, scalar_prefetch = 0 : i64, scratch_operands = 0 : i64, tpu.core_type = #tpu.core_type<tc>, window_params = [{transform_indices = @transform_0, window_bounds = array<i64: 8, 512>}, {transform_indices = @transform_1, window_bounds = array<i64: 512, 512>}, {transform_indices = @transform_2, window_bounds = array<i64: 1, 512>}, {transform_indices = @transform_3, window_bounds = array<i64: 8, 512>}]} {
    %c0 = arith.constant 0 : index
    %c0_0 = arith.constant 0 : index
    %0 = vector.load %arg3[%c0, %c0_0] : memref<8x512xf32, #tpu.memory_space<vmem>>, vector<8x512xf32>
    %c0_1 = arith.constant 0 : index
    %c0_2 = arith.constant 0 : index
    %1 = vector.load %arg4[%c0_1, %c0_2] : memref<512x512xf32, #tpu.memory_space<vmem>>, vector<512x512xf32>
    %cst = arith.constant dense<0.000000e+00> : vector<8x512xf32>
    %2 = tpu.matmul %0, %1, %cst {dimension_numbers = #tpu.dot_dimension_numbers<[1], [0], [0], [1], [0, 0, 1, 1], [], []>} : vector<8x512xf32>, vector<512x512xf32>, vector<8x512xf32> -> vector<8x512xf32>
    %c0_3 = arith.constant 0 : index
    %c0_4 = arith.constant 0 : index
    %3 = vector.load %arg5[%c0_3, %c0_4] : memref<1x512xf32, #tpu.memory_space<vmem>>, vector<1x512xf32>
    %4 = vector.broadcast %3 : vector<1x512xf32> to vector<8x512xf32>
    %5 = arith.addf %2, %4 : vector<8x512xf32>
    %cst_5 = arith.constant 0.000000e+00 : f32
    %6 = vector.broadcast %cst_5 : f32 to vector<8x512xf32>
    %7 = arith.maximumf %5, %6 : vector<8x512xf32>
    %c0_6 = arith.constant 0 : index
    %c0_7 = arith.constant 0 : index
    %8 = vector.load %arg6[%c0_6, %c0_7] : memref<8x512xf32, #tpu.memory_space<vmem>>, vector<8x512xf32>
    tpu.vector_store %arg6[%c0_6, %c0_7], %7 {strides = array<i32>} : memref<8x512xf32, #tpu.memory_space<vmem>>, vector<8x512xf32>,
    return
  }
  func.func @transform_0(%arg0: i32, %arg1: i32, %arg2: i32) -> (i32, i32) {
    %c0_i32 = arith.constant 0 : i32
    return %arg0, %arg2 : i32, i32
  }
  func.func @transform_1(%arg0: i32, %arg1: i32, %arg2: i32) -> (i32, i32) {
    %c0_i32 = arith.constant 0 : i32
    return %arg2, %arg1 : i32, i32
  }
  func.func @transform_2(%arg0: i32, %arg1: i32, %arg2: i32) -> (i32, i32) {
    %c0_i32 = arith.constant 0 : i32
    %c0_i32_0 = arith.constant 0 : i32
    return %c0_i32, %arg1 : i32, i32
  }
  func.func @transform_3(%arg0: i32, %arg1: i32, %arg2: i32) -> (i32, i32) {
    %c0_i32 = arith.constant 0 : i32
    return %arg0, %arg1 : i32, i32
  }
}

module attributes {stable_mosaic.version = 11 : i64} {
  func.func @_linear_kernel_1k(%arg0: i32, %arg1: i32, %arg2: i32, %arg3: memref<8x512xf32, #tpu.memory_space<vmem>>, %arg4: memref<512x128xf32, #tpu.memory_space<vmem>>, %arg5: memref<1x128xf32, #tpu.memory_space<vmem>>, %arg6: memref<8x128xf32, #tpu.memory_space<vmem>>) attributes {dimension_semantics = [#tpu.dimension_semantics<parallel>, #tpu.dimension_semantics<parallel>, #tpu.dimension_semantics<arbitrary>], iteration_bounds = array<i64: 1, 1, 1>, scalar_prefetch = 0 : i64, scratch_operands = 0 : i64, tpu.core_type = #tpu.core_type<tc>, window_params = [{transform_indices = @transform_0, window_bounds = array<i64: 8, 512>}, {transform_indices = @transform_1, window_bounds = array<i64: 512, 128>}, {transform_indices = @transform_2, window_bounds = array<i64: 1, 128>}, {transform_indices = @transform_3, window_bounds = array<i64: 8, 128>}]} {
    %c0 = arith.constant 0 : index
    %c0_0 = arith.constant 0 : index
    %0 = vector.load %arg3[%c0, %c0_0] : memref<8x512xf32, #tpu.memory_space<vmem>>, vector<8x512xf32>
    %c0_1 = arith.constant 0 : index
    %c0_2 = arith.constant 0 : index
    %1 = vector.load %arg4[%c0_1, %c0_2] : memref<512x128xf32, #tpu.memory_space<vmem>>, vector<512x128xf32>
    %cst = arith.constant dense<0.000000e+00> : vector<8x128xf32>
    %2 = tpu.matmul %0, %1, %cst {dimension_numbers = #tpu.dot_dimension_numbers<[1], [0], [0], [1], [0, 0, 1, 1], [], []>} : vector<8x512xf32>, vector<512x128xf32>, vector<8x128xf32> -> vector<8x128xf32>
    %c0_3 = arith.constant 0 : index
    %c0_4 = arith.constant 0 : index
    %3 = vector.load %arg5[%c0_3, %c0_4] : memref<1x128xf32, #tpu.memory_space<vmem>>, vector<1x128xf32>
    %4 = vector.broadcast %3 : vector<1x128xf32> to vector<8x128xf32>
    %5 = arith.addf %2, %4 : vector<8x128xf32>
    %c0_5 = arith.constant 0 : index
    %c0_6 = arith.constant 0 : index
    %6 = vector.load %arg6[%c0_5, %c0_6] : memref<8x128xf32, #tpu.memory_space<vmem>>, vector<8x128xf32>
    tpu.vector_store %arg6[%c0_5, %c0_6], %5 {strides = array<i32>} : memref<8x128xf32, #tpu.memory_space<vmem>>, vector<8x128xf32>,
    return
  }
  func.func @transform_0(%arg0: i32, %arg1: i32, %arg2: i32) -> (i32, i32) {
    %c0_i32 = arith.constant 0 : i32
    return %arg0, %arg2 : i32, i32
  }
  func.func @transform_1(%arg0: i32, %arg1: i32, %arg2: i32) -> (i32, i32) {
    %c0_i32 = arith.constant 0 : i32
    return %arg2, %arg1 : i32, i32
  }
  func.func @transform_2(%arg0: i32, %arg1: i32, %arg2: i32) -> (i32, i32) {
    %c0_i32 = arith.constant 0 : i32
    %c0_i32_0 = arith.constant 0 : i32
    return %c0_i32, %arg1 : i32, i32
  }
  func.func @transform_3(%arg0: i32, %arg1: i32, %arg2: i32) -> (i32, i32) {
    %c0_i32 = arith.constant 0 : i32
    return %arg0, %arg1 : i32, i32
  }
}

</mosaic_0001>

<bundles_post_ra>
// kernel: siamese_forward_impl.6
= control target key start
LH: loop header
LB: loop body
LE: loop exit
PB: predicated region body
PF: predicated region fallthrough
CT: control target
= control target key end

     0   :  { %s1887_s12 = smov 0   ;;  %s1889_s13 = smov 0   ;;  %s2672_s0 = inlined_call_operand.vmem [shape: f32[3600,128], index: 0, kind: input, shape index: {}]   ;;  %s2673_s1 = inlined_call_operand.vmem [shape: f32[128,128], index: 1, kind: input, shape index: {}]   ;;  %s2674_s2 = inlined_call_operand.vmem [shape: f32[1,128], index: 2, kind: input, shape index: {}]   ;;  %s2675_s3 = inlined_call_operand.vmem [shape: f32[3600,128], index: 3, kind: output, shape index: {}]  }
   0x1   :  { %s1891_s14 = smov 0  }
   0x2 LB: > { %s32_s15 = sadd.s32 1, %s1861_s13  ;;  %p1763_p0 = scmp.ge.s32.totalorder %s1865_s14, 1  ;;  %s1865_s14 = sphi %s1891_s14, %s13_s14   ;;  %s1861_s13 = sphi %s1889_s13, %s2677_s13   ;;  %s1857_s12 = sphi %s1887_s12, %s2676_s12  }
   0x3   : > { %p34_p1 = scmp.ge.s32.totalorder %s32_s15, 2  ;;  %p188_p2 = scmp.lt.s32.totalorder %s1865_s14, 3 }
   0x5   : > { %s2679_s15 = smov (%p34_p1, %s32_s15), 0  ;;  %p189_p3 = pnand %p1763_p0, %p188_p2 }
   0x6   : > { %s229_s30 = smul.u32 (!%p189_p3), 225, %s1857_s12 }
   0x7   : > { %192 = sbr.rel (%p189_p3) target bundleno = 630 (0x276), region = 32 }
   0x8   : > { %p230_p4 = scmp.lt.s32.totalorder (!%p189_p3), %s229_s30, 449 }
   0xc   : > { %v499_v0 = vld [vmem:[%s2673_s1 + $0x78] sm:$0xff]  ;;  %v498_v1 = vld [vmem:[%s2673_s1 + $0x70] sm:$0xff]  ;;  %v497_v2 = vld [vmem:[%s2673_s1 + $0x68] sm:$0xff]  ;;  %s2681_s30 = smov (!%p230_p4, %s229_s30), 449 }
   0xd   : > { %1769 = vmatpush.msra.mxu2 %v499_v0  ;;  %1770 = vmatpush.msra.mxu3 %v499_v0  ;;  %v496_v3 = vld [vmem:[%s2673_s1 + $0x60] sm:$0xff]  ;;  %v495_v4 = vld [vmem:[%s2673_s1 + $0x58] sm:$0xff]  ;;  %v494_v5 = vld [vmem:[%s2673_s1 + $0x50] sm:$0xff]  ;;  %s1764_s19 = sshll.u32 %s2681_s30, 3 }
   0xe   : > { %1768 = vmatpush.msra.mxu1 %v499_v0  ;;  %504 = vmatpush.msra.mxu0 %v499_v0  ;;  %v493_v6 = vld [vmem:[%s2673_s1 + $0x48] sm:$0xff]  ;;  %v492_v7 = vld [vmem:[%s2673_s1 + $0x40] sm:$0xff]  ;;  %v491_v8 = vld [vmem:[%s2673_s1 + $0x38] sm:$0xff]  ;;  %s1961_s26 = scalar_lea.vmem %s2672_s0, %s1764_s19  ;;  %s2046_s7 = scalar_lea.vmem %s2675_s3, %s1764_s19 }
   0xf   : > { %1772 = vmatpush.msra.mxu2 %v498_v1  ;;  %1773 = vmatpush.msra.mxu3 %v498_v1  ;;  %v490_v9 = vld [vmem:[%s2673_s1 + $0x30] sm:$0xff]  ;;  %v489_v10 = vld [vmem:[%s2673_s1 + $0x28] sm:$0xff]  ;;  %v488_v11 = vld [vmem:[%s2673_s1 + $0x20] sm:$0xff] }
  0x10   : > { %1771 = vmatpush.msra.mxu1 %v498_v1  ;;  %505 = vmatpush.msra.mxu0 %v498_v1  ;;  %v487_v12 = vld [vmem:[%s2673_s1 + $0x18] sm:$0xff]  ;;  %v486_v13 = vld [vmem:[%s2673_s1 + $0x10] sm:$0xff]  ;;  %v485_v14 = vld [vmem:[%s2673_s1 + $0x8] sm:$0xff] }
  0x11   : > { %1775 = vmatpush.msra.mxu2 %v497_v2  ;;  %1776 = vmatpush.msra.mxu3 %v497_v2  ;;  %v484_v15 = vld [vmem:[%s2673_s1] sm:$0xff]  ;;  %v370_v16 = vld [vmem:[%s1961_s26 + $0x378] sm:$0xff]  ;;  %v428_v21 = vld [vmem:[%s1961_s26 + $0x548] sm:$0xff] }
  0x12   : > { %1774 = vmatpush.msra.mxu1 %v497_v2  ;;  %506 = vmatpush.msra.mxu0 %v497_v2  ;;  %v427_v17 = vld [vmem:[%s1961_s26 + $0x540] sm:$0xff]  ;;  %v314_v18 = vld [vmem:[%s1961_s26 + $0x1b8] sm:$0xff]  ;;  %v260_v23 = vld [vmem:[%s1961_s26 + $0x8] sm:$0xff] }
  0x13   : > { %1778 = vmatpush.msra.mxu2 %v496_v3  ;;  %1779 = vmatpush.msra.mxu3 %v496_v3  ;;  %v259_v19 = vld [vmem:[%s1961_s26] sm:$0xff]  ;;  %v372_v24 = vld [vmem:[%s1961_s26 + $0x388] sm:$0xff]  ;;  %v429_v25 = vld [vmem:[%s1961_s26 + $0x550] sm:$0xff] }
  0x14   : > { %1777 = vmatpush.msra.mxu1 %v496_v3  ;;  %507 = vmatpush.msra.mxu0 %v496_v3  ;;  %v371_v20 = vld [vmem:[%s1961_s26 + $0x380] sm:$0xff]  ;;  %v316_v26 = vld [vmem:[%s1961_s26 + $0x1c8] sm:$0xff]  ;;  %v261_v27 = vld [vmem:[%s1961_s26 + $0x10] sm:$0xff] }
  0x15   : > { %1781 = vmatpush.msra.mxu2 %v495_v4  ;;  %1782 = vmatpush.msra.mxu3 %v495_v4  ;;  %v315_v22 = vld [vmem:[%s1961_s26 + $0x1c0] sm:$0xff]  ;;  %v373_v28 = vld [vmem:[%s1961_s26 + $0x390] sm:$0xff]  ;;  %v430_v29 = vld [vmem:[%s1961_s26 + $0x558] sm:$0xff] }
  0x16   : > { %1780 = vmatpush.msra.mxu1 %v495_v4  ;;  %508 = vmatpush.msra.mxu0 %v495_v4  ;;  %v317_v30 = vld [vmem:[%s1961_s26 + $0x1d0] sm:$0xff]  ;;  %v262_v31 = vld [vmem:[%s1961_s26 + $0x18] sm:$0xff]  ;;  %v431_v33 = vld [vmem:[%s1961_s26 + $0x560] sm:$0xff] }
  0x17   : > { %1784 = vmatpush.msra.mxu2 %v494_v5  ;;  %1785 = vmatpush.msra.mxu3 %v494_v5  ;;  %v374_v32 = vld [vmem:[%s1961_s26 + $0x398] sm:$0xff]  ;;  %v263_v35 = vld [vmem:[%s1961_s26 + $0x20] sm:$0xff]  ;;  %v432_v37 = vld [vmem:[%s1961_s26 + $0x568] sm:$0xff] }
  0x18   : > { %1783 = vmatpush.msra.mxu1 %v494_v5  ;;  %509 = vmatpush.msra.mxu0 %v494_v5  ;;  %v318_v34 = vld [vmem:[%s1961_s26 + $0x1d8] sm:$0xff]  ;;  %v375_v36 = vld [vmem:[%s1961_s26 + $0x3a0] sm:$0xff]  ;;  %v264_v39 = vld [vmem:[%s1961_s26 + $0x28] sm:$0xff] }
  0x19   : > { %1787 = vmatpush.msra.mxu2 %v493_v6  ;;  %1788 = vmatpush.msra.mxu3 %v493_v6  ;;  %v319_v38 = vld [vmem:[%s1961_s26 + $0x1e0] sm:$0xff]  ;;  %v376_v40 = vld [vmem:[%s1961_s26 + $0x3a8] sm:$0xff]  ;;  %v433_v41 = vld [vmem:[%s1961_s26 + $0x570] sm:$0xff] }
  0x1a   : > { %1786 = vmatpush.msra.mxu1 %v493_v6  ;;  %510 = vmatpush.msra.mxu0 %v493_v6  ;;  %v320_v42 = vld [vmem:[%s1961_s26 + $0x1e8] sm:$0xff]  ;;  %v265_v43 = vld [vmem:[%s1961_s26 + $0x30] sm:$0xff]  ;;  %v434_v45 = vld [vmem:[%s1961_s26 + $0x578] sm:$0xff] }
  0x1b   : > { %1790 = vmatpush.msra.mxu2 %v492_v7  ;;  %1791 = vmatpush.msra.mxu3 %v492_v7  ;;  %v377_v44 = vld [vmem:[%s1961_s26 + $0x3b0] sm:$0xff]  ;;  %v266_v47 = vld [vmem:[%s1961_s26 + $0x38] sm:$0xff]  ;;  %v435_v49 = vld [vmem:[%s1961_s26 + $0x580] sm:$0xff] }
  0x1c   : > { %1789 = vmatpush.msra.mxu1 %v492_v7  ;;  %511 = vmatpush.msra.mxu0 %v492_v7  ;;  %v321_v46 = vld [vmem:[%s1961_s26 + $0x1f0] sm:$0xff]  ;;  %v378_v48 = vld [vmem:[%s1961_s26 + $0x3b8] sm:$0xff]  ;;  %v267_v51 = vld [vmem:[%s1961_s26 + $0x40] sm:$0xff] }
  0x1d   : > { %1793 = vmatpush.msra.mxu2 %v491_v8  ;;  %1794 = vmatpush.msra.mxu3 %v491_v8  ;;  %v322_v50 = vld [vmem:[%s1961_s26 + $0x1f8] sm:$0xff]  ;;  %v379_v52 = vld [vmem:[%s1961_s26 + $0x3c0] sm:$0xff]  ;;  %v436_v53 = vld [vmem:[%s1961_s26 + $0x588] sm:$0xff] }
  0x1e   : > { %1792 = vmatpush.msra.mxu1 %v491_v8  ;;  %512 = vmatpush.msra.mxu0 %v491_v8  ;;  %v323_v54 = vld [vmem:[%s1961_s26 + $0x200] sm:$0xff]  ;;  %v268_v55 = vld [vmem:[%s1961_s26 + $0x48] sm:$0xff]  ;;  %v437_v57 = vld [vmem:[%s1961_s26 + $0x590] sm:$0xff] }
  0x1f   : > { %1796 = vmatpush.msra.mxu2 %v490_v9  ;;  %1797 = vmatpush.msra.mxu3 %v490_v9  ;;  %v380_v56 = vld [vmem:[%s1961_s26 + $0x3c8] sm:$0xff]  ;;  %v269_v59 = vld [vmem:[%s1961_s26 + $0x50] sm:$0xff]  ;;  %v438_v61 = vld [vmem:[%s1961_s26 + $0x598] sm:$0xff] }
  0x20   : > { %1795 = vmatpush.msra.mxu1 %v490_v9  ;;  %513 = vmatpush.msra.mxu0 %v490_v9  ;;  %v324_v58 = vld [vmem:[%s1961_s26 + $0x208] sm:$0xff]  ;;  %v381_v60 = vld [vmem:[%s1961_s26 + $0x3d0] sm:$0xff]  ;;  %v270_v63 = vld [vmem:[%s1961_s26 + $0x58] sm:$0xff] }
  0x21   : > { %1799 = vmatpush.msra.mxu2 %v489_v10  ;;  %1800 = vmatpush.msra.mxu3 %v489_v10  ;;  %v325_v62 = vld [vmem:[%s1961_s26 + $0x210] sm:$0xff]  ;;  %v382_v0 = vld [vmem:[%s1961_s26 + $0x3d8] sm:$0xff]  ;;  %v439_v1 = vld [vmem:[%s1961_s26 + $0x5a0] sm:$0xff] }
  0x22   : > { %1798 = vmatpush.msra.mxu1 %v489_v10  ;;  %514 = vmatpush.msra.mxu0 %v489_v10  ;;  %v326_v2 = vld [vmem:[%s1961_s26 + $0x218] sm:$0xff]  ;;  %v271_v3 = vld [vmem:[%s1961_s26 + $0x60] sm:$0xff]  ;;  %v440_v5 = vld [vmem:[%s1961_s26 + $0x5a8] sm:$0xff] }
  0x23   : > { %1802 = vmatpush.msra.mxu2 %v488_v11  ;;  %1803 = vmatpush.msra.mxu3 %v488_v11  ;;  %v383_v4 = vld [vmem:[%s1961_s26 + $0x3e0] sm:$0xff]  ;;  %v272_v7 = vld [vmem:[%s1961_s26 + $0x68] sm:$0xff]  ;;  %v441_v9 = vld [vmem:[%s1961_s26 + $0x5b0] sm:$0xff] }
  0x24   : > { %1801 = vmatpush.msra.mxu1 %v488_v11  ;;  %515 = vmatpush.msra.mxu0 %v488_v11  ;;  %v327_v6 = vld [vmem:[%s1961_s26 + $0x220] sm:$0xff]  ;;  %v384_v8 = vld [vmem:[%s1961_s26 + $0x3e8] sm:$0xff]  ;;  %v273_v11 = vld [vmem:[%s1961_s26 + $0x70] sm:$0xff] }
  0x25   : > { %1805 = vmatpush.msra.mxu2 %v487_v12  ;;  %1806 = vmatpush.msra.mxu3 %v487_v12  ;;  %v328_v10 = vld [vmem:[%s1961_s26 + $0x228] sm:$0xff] }
  0x26   : > { %1804 = vmatpush.msra.mxu1 %v487_v12  ;;  %516 = vmatpush.msra.mxu0 %v487_v12  ;;  %v385_v12 = vld [vmem:[%s1961_s26 + $0x3f0] sm:$0xff] }
  0x27   : > { %1808 = vmatpush.msra.mxu2 %v486_v13  ;;  %1809 = vmatpush.msra.mxu3 %v486_v13 }
  0x28   : > { %1807 = vmatpush.msra.mxu1 %v486_v13  ;;  %517 = vmatpush.msra.mxu0 %v486_v13  ;;  %v442_v13 = vld [vmem:[%s1961_s26 + $0x5b8] sm:$0xff] }
  0x29   : > { %1811 = vmatpush.msra.mxu2 %v485_v14  ;;  %1812 = vmatpush.msra.mxu3 %v485_v14 }
  0x2a   : > { %1810 = vmatpush.msra.mxu1 %v485_v14  ;;  %518 = vmatpush.msra.mxu0 %v485_v14  ;;  %v329_v14 = vld [vmem:[%s1961_s26 + $0x230] sm:$0xff] }
  0x2b   : > { %1814 = vmatpush.msra.mxu2 %v484_v15  ;;  %1815 = vmatpush.msra.mxu3 %v484_v15 }
  0x2c   : > { %853 = vmatmul.f32.vlgmr.msra.gmra.mxu2 %v370_v16  ;;  %1024 = vmatmul.f32.vlgmr.msra.gmra.mxu3 %v427_v17  ;;  %v386_v16 = vld [vmem:[%s1961_s26 + $0x3f8] sm:$0xff]  ;;  %v443_v17 = vld [vmem:[%s1961_s26 + $0x5c0] sm:$0xff] }
  0x2d   : > { %1813 = vmatpush.msra.mxu1 %v484_v15  ;;  %519 = vmatpush.msra.mxu0 %v484_v15  ;;  %v274_v15 = vld [vmem:[%s1961_s26 + $0x78] sm:$0xff] }
  0x2e   : > { %685 = vmatmul.f32.vlgmr.msra.gmra.mxu1 %v314_v18  ;;  %520 = vmatmul.f32.vlgmr.msra.gmra.mxu0 %v259_v19  ;;  %v2035_v18 = vld [vmem:[%s2674_s2] ss:$0 sm:$0xff] }
  0x34   : > { %856 = vmatmul.f32.gmra.mxu2 %v371_v20  ;;  %1027 = vmatmul.f32.gmra.mxu3 %v428_v21  ;;  %v330_v20 = vld [vmem:[%s1961_s26 + $0x238] sm:$0xff] }
  0x36   : > { %688 = vmatmul.f32.gmra.mxu1 %v315_v22  ;;  %523 = vmatmul.f32.gmra.mxu0 %v260_v23  ;;  %v275_v22 = vld [vmem:[%s1961_s26 + $0x80] sm:$0xff] }
  0x3c   : > { %859 = vmatmul.f32.gmra.mxu2 %v372_v24  ;;  %1030 = vmatmul.f32.gmra.mxu3 %v429_v25 }
  0x3e   : > { %691 = vmatmul.f32.gmra.mxu1 %v316_v26  ;;  %526 = vmatmul.f32.gmra.mxu0 %v261_v27 }
  0x44   : > { %862 = vmatmul.f32.gmra.mxu2 %v373_v28  ;;  %1033 = vmatmul.f32.gmra.mxu3 %v430_v29 }
  0x46   : > { %694 = vmatmul.f32.gmra.mxu1 %v317_v30  ;;  %529 = vmatmul.f32.gmra.mxu0 %v262_v31  ;;  %v387_v31 = vld [vmem:[%s1961_s26 + $0x400] sm:$0xff] }
  0x4c   : > { %865 = vmatmul.f32.gmra.mxu2 %v374_v32  ;;  %1036 = vmatmul.f32.gmra.mxu3 %v431_v33  ;;  %v444_v32 = vld [vmem:[%s1961_s26 + $0x5c8] sm:$0xff] }
  0x4e   : > { %697 = vmatmul.f32.gmra.mxu1 %v318_v34  ;;  %532 = vmatmul.f32.gmra.mxu0 %v263_v35 }
  0x54   : > { %868 = vmatmul.f32.gmra.mxu2 %v375_v36  ;;  %1039 = vmatmul.f32.gmra.mxu3 %v432_v37  ;;  %v331_v36 = vld [vmem:[%s1961_s26 + $0x240] sm:$0xff] }
  0x56   : > { %700 = vmatmul.f32.gmra.mxu1 %v319_v38  ;;  %535 = vmatmul.f32.gmra.mxu0 %v264_v39  ;;  %v276_v38 = vld [vmem:[%s1961_s26 + $0x88] sm:$0xff] }
  0x5c   : > { %871 = vmatmul.f32.gmra.mxu2 %v376_v40  ;;  %1042 = vmatmul.f32.gmra.mxu3 %v433_v41 }
  0x5e   : > { %703 = vmatmul.f32.gmra.mxu1 %v320_v42  ;;  %538 = vmatmul.f32.gmra.mxu0 %v265_v43 }
  0x64   : > { %874 = vmatmul.f32.gmra.mxu2 %v377_v44  ;;  %1045 = vmatmul.f32.gmra.mxu3 %v434_v45 }
  0x66   : > { %706 = vmatmul.f32.gmra.mxu1 %v321_v46  ;;  %541 = vmatmul.f32.gmra.mxu0 %v266_v47  ;;  %v388_v47 = vld [vmem:[%s1961_s26 + $0x408] sm:$0xff] }
  0x6c   : > { %877 = vmatmul.f32.gmra.mxu2 %v378_v48  ;;  %1048 = vmatmul.f32.gmra.mxu3 %v435_v49  ;;  %v445_v48 = vld [vmem:[%s1961_s26 + $0x5d0] sm:$0xff] }
  0x6e   : > { %709 = vmatmul.f32.gmra.mxu1 %v322_v50  ;;  %544 = vmatmul.f32.gmra.mxu0 %v267_v51 }
  0x74   : > { %880 = vmatmul.f32.gmra.mxu2 %v379_v52  ;;  %1051 = vmatmul.f32.gmra.mxu3 %v436_v53  ;;  %v332_v52 = vld [vmem:[%s1961_s26 + $0x248] sm:$0xff] }
  0x76   : > { %712 = vmatmul.f32.gmra.mxu1 %v323_v54  ;;  %547 = vmatmul.f32.gmra.mxu0 %v268_v55  ;;  %v277_v54 = vld [vmem:[%s1961_s26 + $0x90] sm:$0xff] }
  0x7c   : > { %883 = vmatmul.f32.gmra.mxu2 %v380_v56  ;;  %1054 = vmatmul.f32.gmra.mxu3 %v437_v57 }
  0x7e   : > { %715 = vmatmul.f32.gmra.mxu1 %v324_v58  ;;  %550 = vmatmul.f32.gmra.mxu0 %v269_v59 }
  0x84   : > { %886 = vmatmul.f32.gmra.mxu2 %v381_v60  ;;  %1057 = vmatmul.f32.gmra.mxu3 %v438_v61 }
  0x86   : > { %718 = vmatmul.f32.gmra.mxu1 %v325_v62  ;;  %553 = vmatmul.f32.gmra.mxu0 %v270_v63  ;;  %v389_v63 = vld [vmem:[%s1961_s26 + $0x410] sm:$0xff] }
  0x8c   : > { %889 = vmatmul.f32.gmra.mxu2 %v382_v0  ;;  %1060 = vmatmul.f32.gmra.mxu3 %v439_v1  ;;  %v446_v0 = vld [vmem:[%s1961_s26 + $0x5d8] sm:$0xff] }
  0x8e   : > { %721 = vmatmul.f32.gmra.mxu1 %v326_v2  ;;  %556 = vmatmul.f32.gmra.mxu0 %v271_v3 }
  0x94   : > { %892 = vmatmul.f32.gmra.mxu2 %v383_v4  ;;  %1063 = vmatmul.f32.gmra.mxu3 %v440_v5  ;;  %v333_v4 = vld [vmem:[%s1961_s26 + $0x250] sm:$0xff] }
  0x96   : > { %724 = vmatmul.f32.gmra.mxu1 %v327_v6  ;;  %559 = vmatmul.f32.gmra.mxu0 %v272_v7  ;;  %v278_v6 = vld [vmem:[%s1961_s26 + $0x98] sm:$0xff] }
  0x9c   : > { %895 = vmatmul.f32.gmra.mxu2 %v384_v8  ;;  %1066 = vmatmul.f32.gmra.mxu3 %v441_v9 }
  0x9e   : > { %727 = vmatmul.f32.gmra.mxu1 %v328_v10  ;;  %562 = vmatmul.f32.gmra.mxu0 %v273_v11 }
  0xa4   : > { %898 = vmatmul.f32.gmra.mxu2 %v385_v12  ;;  %1069 = vmatmul.f32.gmra.mxu3 %v442_v13 }
  0xa6   : > { %730 = vmatmul.f32.gmra.mxu1 %v329_v14  ;;  %565 = vmatmul.f32.gmra.mxu0 %v274_v15  ;;  %v390_v15 = vld [vmem:[%s1961_s26 + $0x418] sm:$0xff] }
  0xab   : > { %v686_v19 = vpop.f32.mrf.mxu1  ;;  %v521_v21 = vpop.f32.mrf.mxu0 }
  0xac   : > { %901 = vmatmul.f32.gmra.mxu2 %v386_v16  ;;  %1072 = vmatmul.f32.gmra.mxu3 %v443_v17  ;;  %v687_v23 = vadd.f32 %v2035_v18, %v686_v19  ;;  %v522_v24 = vadd.f32 %v2035_v18, %v521_v21  ;;  %v447_v16 = vld [vmem:[%s1961_s26 + $0x5e0] sm:$0xff]  ;;  %v334_v21 = vld [vmem:[%s1961_s26 + $0x258] sm:$0xff] }
  0xae   : > { %v1251_v25 = vmax.f32 %v687_v23, 0.0  ;;  %733 = vmatmul.f32.gmra.mxu1 %v330_v20  ;;  %v1196_v26 = vmax.f32 %v522_v24, 0.0  ;;  %568 = vmatmul.f32.gmra.mxu0 %v275_v22  ;;  %v279_v23 = vld [vmem:[%s1961_s26 + $0xa0] sm:$0xff] }
  0xaf   : > { %v854_v27 = vpop.f32.mrf.mxu2  ;;  %v1025_v28 = vpop.f32.mrf.mxu3 }
  0xb0   : > { %v855_v29 = vadd.f32 %v2035_v18, %v854_v27  ;;  %v1026_v30 = vadd.f32 %v2035_v18, %v1025_v28  ;;  %1476 = vst [vmem:[%s2046_s7 + $0x1b8] sm:$0xff] %v1251_v25 }
  0xb1   : > { %1421 = vst [vmem:[%s2046_s7] sm:$0xff] %v1196_v26 }
  0xb2   : > { %v1307_v33 = vmax.f32 %v855_v29, 0.0  ;;  %v1364_v34 = vmax.f32 %v1026_v30, 0.0 }
  0xb3   : > { %v689_v35 = vpop.f32.mrf.mxu1  ;;  %v524_v37 = vpop.f32.mrf.mxu0 }
  0xb4   : > { %1532 = vst [vmem:[%s2046_s7 + $0x378] sm:$0xff] %v1307_v33  ;;  %904 = vmatmul.f32.gmra.mxu2 %v387_v31  ;;  %1075 = vmatmul.f32.gmra.mxu3 %v444_v32  ;;  %v690_v39 = vadd.f32 %v2035_v18, %v689_v35  ;;  %v525_v40 = vadd.f32 %v2035_v18, %v524_v37  ;;  %v391_v32 = vld [vmem:[%s1961_s26 + $0x420] sm:$0xff]  ;;  %v448_v33 = vld [vmem:[%s1961_s26 + $0x5e8] sm:$0xff] }
  0xb5   : > { %1589 = vst [vmem:[%s2046_s7 + $0x540] sm:$0xff] %v1364_v34  ;;  %v335_v37 = vld [vmem:[%s1961_s26 + $0x260] sm:$0xff] }
  0xb6   : > { %v1252_v41 = vmax.f32 %v690_v39, 0.0  ;;  %736 = vmatmul.f32.gmra.mxu1 %v331_v36  ;;  %v1197_v42 = vmax.f32 %v525_v40, 0.0  ;;  %571 = vmatmul.f32.gmra.mxu0 %v276_v38  ;;  %v280_v39 = vld [vmem:[%s1961_s26 + $0xa8] sm:$0xff] }
  0xb7   : > { %v857_v43 = vpop.f32.mrf.mxu2  ;;  %v1028_v44 = vpop.f32.mrf.mxu3 }
  0xb8   : > { %v858_v45 = vadd.f32 %v2035_v18, %v857_v43  ;;  %v1029_v46 = vadd.f32 %v2035_v18, %v1028_v44  ;;  %1477 = vst [vmem:[%s2046_s7 + $0x1c0] sm:$0xff] %v1252_v41 }
  0xb9   : > { %1422 = vst [vmem:[%s2046_s7 + $0x8] sm:$0xff] %v1197_v42 }
  0xba   : > { %v1308_v49 = vmax.f32 %v858_v45, 0.0  ;;  %v1365_v50 = vmax.f32 %v1029_v46, 0.0 }
  0xbb   : > { %v692_v51 = vpop.f32.mrf.mxu1  ;;  %v527_v53 = vpop.f32.mrf.mxu0 }
  0xbc   : > { %1533 = vst [vmem:[%s2046_s7 + $0x380] sm:$0xff] %v1308_v49  ;;  %907 = vmatmul.f32.gmra.mxu2 %v388_v47  ;;  %1078 = vmatmul.f32.gmra.mxu3 %v445_v48  ;;  %v693_v55 = vadd.f32 %v2035_v18, %v692_v51  ;;  %v528_v56 = vadd.f32 %v2035_v18, %v527_v53  ;;  %v392_v48 = vld [vmem:[%s1961_s26 + $0x428] sm:$0xff]  ;;  %v449_v49 = vld [vmem:[%s1961_s26 + $0x5f0] sm:$0xff] }
  0xbd   : > { %1590 = vst [vmem:[%s2046_s7 + $0x548] sm:$0xff] %v1365_v50  ;;  %v336_v53 = vld [vmem:[%s1961_s26 + $0x268] sm:$0xff] }
  0xbe   : > { %v1253_v57 = vmax.f32 %v693_v55, 0.0  ;;  %739 = vmatmul.f32.gmra.mxu1 %v332_v52  ;;  %v1198_v58 = vmax.f32 %v528_v56, 0.0  ;;  %574 = vmatmul.f32.gmra.mxu0 %v277_v54  ;;  %v281_v55 = vld [vmem:[%s1961_s26 + $0xb0] sm:$0xff] }
  0xbf   : > { %v860_v59 = vpop.f32.mrf.mxu2  ;;  %v1031_v60 = vpop.f32.mrf.mxu3 }
  0xc0   : > { %v861_v61 = vadd.f32 %v2035_v18, %v860_v59  ;;  %v1032_v62 = vadd.f32 %v2035_v18, %v1031_v60  ;;  %1478 = vst [vmem:[%s2046_s7 + $0x1c8] sm:$0xff] %v1253_v57 }
  0xc1   : > { %1423 = vst [vmem:[%s2046_s7 + $0x10] sm:$0xff] %v1198_v58 }
  0xc2   : > { %v1309_v1 = vmax.f32 %v861_v61, 0.0  ;;  %v1366_v2 = vmax.f32 %v1032_v62, 0.0 }
  0xc3   : > { %v695_v3 = vpop.f32.mrf.mxu1  ;;  %v530_v5 = vpop.f32.mrf.mxu0 }
  0xc4   : > { %1534 = vst [vmem:[%s2046_s7 + $0x388] sm:$0xff] %v1309_v1  ;;  %910 = vmatmul.f32.gmra.mxu2 %v389_v63  ;;  %1081 = vmatmul.f32.gmra.mxu3 %v446_v0  ;;  %v696_v7 = vadd.f32 %v2035_v18, %v695_v3  ;;  %v531_v8 = vadd.f32 %v2035_v18, %v530_v5  ;;  %v393_v0 = vld [vmem:[%s1961_s26 + $0x430] sm:$0xff]  ;;  %v450_v1 = vld [vmem:[%s1961_s26 + $0x5f8] sm:$0xff] }
  0xc5   : > { %1591 = vst [vmem:[%s2046_s7 + $0x550] sm:$0xff] %v1366_v2  ;;  %v337_v5 = vld [vmem:[%s1961_s26 + $0x270] sm:$0xff] }
  0xc6   : > { %v1254_v9 = vmax.f32 %v696_v7, 0.0  ;;  %742 = vmatmul.f32.gmra.mxu1 %v333_v4  ;;  %v1199_v10 = vmax.f32 %v531_v8, 0.0  ;;  %577 = vmatmul.f32.gmra.mxu0 %v278_v6  ;;  %v282_v7 = vld [vmem:[%s1961_s26 + $0xb8] sm:$0xff] }
  0xc7   : > { %v863_v11 = vpop.f32.mrf.mxu2  ;;  %v1034_v12 = vpop.f32.mrf.mxu3 }
  0xc8   : > { %v864_v13 = vadd.f32 %v2035_v18, %v863_v11  ;;  %v1035_v14 = vadd.f32 %v2035_v18, %v1034_v12  ;;  %1479 = vst [vmem:[%s2046_s7 + $0x1d0] sm:$0xff] %v1254_v9 }
  0xc9   : > { %1424 = vst [vmem:[%s2046_s7 + $0x18] sm:$0xff] %v1199_v10 }
  0xca   : > { %v1310_v17 = vmax.f32 %v864_v13, 0.0  ;;  %v1367_v19 = vmax.f32 %v1035_v14, 0.0 }
  0xcb   : > { %v698_v20 = vpop.f32.mrf.mxu1  ;;  %v533_v22 = vpop.f32.mrf.mxu0 }
  0xcc   : > { %1535 = vst [vmem:[%s2046_s7 + $0x390] sm:$0xff] %v1310_v17  ;;  %913 = vmatmul.f32.gmra.mxu2 %v390_v15  ;;  %1084 = vmatmul.f32.gmra.mxu3 %v447_v16  ;;  %v699_v24 = vadd.f32 %v2035_v18, %v698_v20  ;;  %v534_v25 = vadd.f32 %v2035_v18, %v533_v22  ;;  %v394_v16 = vld [vmem:[%s1961_s26 + $0x438] sm:$0xff]  ;;  %v451_v17 = vld [vmem:[%s1961_s26 + $0x600] sm:$0xff] }
  0xcd   : > { %1592 = vst [vmem:[%s2046_s7 + $0x558] sm:$0xff] %v1367_v19  ;;  %v338_v22 = vld [vmem:[%s1961_s26 + $0x278] sm:$0xff] }
  0xce   : > { %v1255_v26 = vmax.f32 %v699_v24, 0.0  ;;  %745 = vmatmul.f32.gmra.mxu1 %v334_v21  ;;  %v1200_v27 = vmax.f32 %v534_v25, 0.0  ;;  %580 = vmatmul.f32.gmra.mxu0 %v279_v23  ;;  %v283_v24 = vld [vmem:[%s1961_s26 + $0xc0] sm:$0xff] }
  0xcf   : > { %v866_v28 = vpop.f32.mrf.mxu2  ;;  %v1037_v29 = vpop.f32.mrf.mxu3 }
  0xd0   : > { %v867_v30 = vadd.f32 %v2035_v18, %v866_v28  ;;  %v1038_v31 = vadd.f32 %v2035_v18, %v1037_v29  ;;  %1480 = vst [vmem:[%s2046_s7 + $0x1d8] sm:$0xff] %v1255_v26 }
  0xd1   : > { %1425 = vst [vmem:[%s2046_s7 + $0x20] sm:$0xff] %v1200_v27 }
  0xd2   : > { %v1311_v34 = vmax.f32 %v867_v30, 0.0  ;;  %v1368_v35 = vmax.f32 %v1038_v31, 0.0 }
  0xd3   : > { %v701_v36 = vpop.f32.mrf.mxu1  ;;  %v536_v38 = vpop.f32.mrf.mxu0 }
  0xd4   : > { %1536 = vst [vmem:[%s2046_s7 + $0x398] sm:$0xff] %v1311_v34  ;;  %916 = vmatmul.f32.gmra.mxu2 %v391_v32  ;;  %1087 = vmatmul.f32.gmra.mxu3 %v448_v33  ;;  %v702_v40 = vadd.f32 %v2035_v18, %v701_v36  ;;  %v537_v41 = vadd.f32 %v2035_v18, %v536_v38  ;;  %v395_v33 = vld [vmem:[%s1961_s26 + $0x440] sm:$0xff]  ;;  %v452_v34 = vld [vmem:[%s1961_s26 + $0x608] sm:$0xff] }
  0xd5   : > { %1593 = vst [vmem:[%s2046_s7 + $0x560] sm:$0xff] %v1368_v35  ;;  %v339_v38 = vld [vmem:[%s1961_s26 + $0x280] sm:$0xff] }
  0xd6   : > { %v1256_v42 = vmax.f32 %v702_v40, 0.0  ;;  %748 = vmatmul.f32.gmra.mxu1 %v335_v37  ;;  %v1201_v43 = vmax.f32 %v537_v41, 0.0  ;;  %583 = vmatmul.f32.gmra.mxu0 %v280_v39  ;;  %v284_v40 = vld [vmem:[%s1961_s26 + $0xc8] sm:$0xff] }
  0xd7   : > { %v869_v44 = vpop.f32.mrf.mxu2  ;;  %v1040_v45 = vpop.f32.mrf.mxu3 }
  0xd8   : > { %v870_v46 = vadd.f32 %v2035_v18, %v869_v44  ;;  %v1041_v47 = vadd.f32 %v2035_v18, %v1040_v45  ;;  %1481 = vst [vmem:[%s2046_s7 + $0x1e0] sm:$0xff] %v1256_v42 }
  0xd9   : > { %1426 = vst [vmem:[%s2046_s7 + $0x28] sm:$0xff] %v1201_v43 }
  0xda   : > { %v1312_v50 = vmax.f32 %v870_v46, 0.0  ;;  %v1369_v51 = vmax.f32 %v1041_v47, 0.0 }
  0xdb   : > { %v704_v52 = vpop.f32.mrf.mxu1  ;;  %v539_v54 = vpop.f32.mrf.mxu0 }
  0xdc   : > { %1537 = vst [vmem:[%s2046_s7 + $0x3a0] sm:$0xff] %v1312_v50  ;;  %919 = vmatmul.f32.gmra.mxu2 %v392_v48  ;;  %1090 = vmatmul.f32.gmra.mxu3 %v449_v49  ;;  %v705_v56 = vadd.f32 %v2035_v18, %v704_v52  ;;  %v540_v57 = vadd.f32 %v2035_v18, %v539_v54  ;;  %v396_v49 = vld [vmem:[%s1961_s26 + $0x448] sm:$0xff]  ;;  %v453_v50 = vld [vmem:[%s1961_s26 + $0x610] sm:$0xff] }
  0xdd   : > { %1594 = vst [vmem:[%s2046_s7 + $0x568] sm:$0xff] %v1369_v51  ;;  %v340_v54 = vld [vmem:[%s1961_s26 + $0x288] sm:$0xff] }
  0xde   : > { %v1257_v58 = vmax.f32 %v705_v56, 0.0  ;;  %751 = vmatmul.f32.gmra.mxu1 %v336_v53  ;;  %v1202_v59 = vmax.f32 %v540_v57, 0.0  ;;  %586 = vmatmul.f32.gmra.mxu0 %v281_v55  ;;  %v285_v56 = vld [vmem:[%s1961_s26 + $0xd0] sm:$0xff] }
  0xdf   : > { %v872_v60 = vpop.f32.mrf.mxu2  ;;  %v1043_v61 = vpop.f32.mrf.mxu3 }
  0xe0   : > { %v873_v62 = vadd.f32 %v2035_v18, %v872_v60  ;;  %v1044_v63 = vadd.f32 %v2035_v18, %v1043_v61  ;;  %1482 = vst [vmem:[%s2046_s7 + $0x1e8] sm:$0xff] %v1257_v58 }
  0xe1   : > { %1427 = vst [vmem:[%s2046_s7 + $0x30] sm:$0xff] %v1202_v59 }
  0xe2   : > { %v1313_v2 = vmax.f32 %v873_v62, 0.0  ;;  %v1370_v3 = vmax.f32 %v1044_v63, 0.0 }
  0xe3   : > { %v707_v4 = vpop.f32.mrf.mxu1  ;;  %v542_v6 = vpop.f32.mrf.mxu0 }
  0xe4   : > { %1538 = vst [vmem:[%s2046_s7 + $0x3a8] sm:$0xff] %v1313_v2  ;;  %922 = vmatmul.f32.gmra.mxu2 %v393_v0  ;;  %1093 = vmatmul.f32.gmra.mxu3 %v450_v1  ;;  %v708_v8 = vadd.f32 %v2035_v18, %v707_v4  ;;  %v543_v9 = vadd.f32 %v2035_v18, %v542_v6  ;;  %v397_v1 = vld [vmem:[%s1961_s26 + $0x450] sm:$0xff]  ;;  %v454_v2 = vld [vmem:[%s1961_s26 + $0x618] sm:$0xff] }
  0xe5   : > { %1595 = vst [vmem:[%s2046_s7 + $0x570] sm:$0xff] %v1370_v3  ;;  %v341_v6 = vld [vmem:[%s1961_s26 + $0x290] sm:$0xff] }
  0xe6   : > { %v1258_v10 = vmax.f32 %v708_v8, 0.0  ;;  %754 = vmatmul.f32.gmra.mxu1 %v337_v5  ;;  %v1203_v11 = vmax.f32 %v543_v9, 0.0  ;;  %589 = vmatmul.f32.gmra.mxu0 %v282_v7  ;;  %v286_v8 = vld [vmem:[%s1961_s26 + $0xd8] sm:$0xff] }
  0xe7   : > { %v875_v12 = vpop.f32.mrf.mxu2  ;;  %v1046_v13 = vpop.f32.mrf.mxu3 }
  0xe8   : > { %v876_v14 = vadd.f32 %v2035_v18, %v875_v12  ;;  %v1047_v15 = vadd.f32 %v2035_v18, %v1046_v13  ;;  %1483 = vst [vmem:[%s2046_s7 + $0x1f0] sm:$0xff] %v1258_v10 }
  0xe9   : > { %1428 = vst [vmem:[%s2046_s7 + $0x38] sm:$0xff] %v1203_v11 }
  0xea   : > { %v1314_v19 = vmax.f32 %v876_v14, 0.0  ;;  %v1371_v20 = vmax.f32 %v1047_v15, 0.0 }
  0xeb   : > { %v710_v21 = vpop.f32.mrf.mxu1  ;;  %v545_v23 = vpop.f32.mrf.mxu0 }
  0xec   : > { %1539 = vst [vmem:[%s2046_s7 + $0x3b0] sm:$0xff] %v1314_v19  ;;  %925 = vmatmul.f32.gmra.mxu2 %v394_v16  ;;  %1096 = vmatmul.f32.gmra.mxu3 %v451_v17  ;;  %v711_v25 = vadd.f32 %v2035_v18, %v710_v21  ;;  %v546_v26 = vadd.f32 %v2035_v18, %v545_v23  ;;  %v398_v17 = vld [vmem:[%s1961_s26 + $0x458] sm:$0xff]  ;;  %v455_v19 = vld [vmem:[%s1961_s26 + $0x620] sm:$0xff] }
  0xed   : > { %1596 = vst [vmem:[%s2046_s7 + $0x578] sm:$0xff] %v1371_v20  ;;  %v342_v23 = vld [vmem:[%s1961_s26 + $0x298] sm:$0xff] }
  0xee   : > { %v1259_v27 = vmax.f32 %v711_v25, 0.0  ;;  %757 = vmatmul.f32.gmra.mxu1 %v338_v22  ;;  %v1204_v28 = vmax.f32 %v546_v26, 0.0  ;;  %592 = vmatmul.f32.gmra.mxu0 %v283_v24  ;;  %v287_v25 = vld [vmem:[%s1961_s26 + $0xe0] sm:$0xff] }
  0xef   : > { %v878_v29 = vpop.f32.mrf.mxu2  ;;  %v1049_v30 = vpop.f32.mrf.mxu3 }
  0xf0   : > { %v879_v31 = vadd.f32 %v2035_v18, %v878_v29  ;;  %v1050_v32 = vadd.f32 %v2035_v18, %v1049_v30  ;;  %1484 = vst [vmem:[%s2046_s7 + $0x1f8] sm:$0xff] %v1259_v27 }
  0xf1   : > { %1429 = vst [vmem:[%s2046_s7 + $0x40] sm:$0xff] %v1204_v28 }
  0xf2   : > { %v1315_v35 = vmax.f32 %v879_v31, 0.0  ;;  %v1372_v36 = vmax.f32 %v1050_v32, 0.0 }
  0xf3   : > { %v713_v37 = vpop.f32.mrf.mxu1  ;;  %v548_v39 = vpop.f32.mrf.mxu0 }
  0xf4   : > { %1540 = vst [vmem:[%s2046_s7 + $0x3b8] sm:$0xff] %v1315_v35  ;;  %928 = vmatmul.f32.gmra.mxu2 %v395_v33  ;;  %1099 = vmatmul.f32.gmra.mxu3 %v452_v34  ;;  %v714_v41 = vadd.f32 %v2035_v18, %v713_v37  ;;  %v549_v42 = vadd.f32 %v2035_v18, %v548_v39  ;;  %v399_v34 = vld [vmem:[%s1961_s26 + $0x460] sm:$0xff]  ;;  %v456_v35 = vld [vmem:[%s1961_s26 + $0x628] sm:$0xff] }
  0xf5   : > { %1597 = vst [vmem:[%s2046_s7 + $0x580] sm:$0xff] %v1372_v36  ;;  %v343_v39 = vld [vmem:[%s1961_s26 + $0x2a0] sm:$0xff] }
  0xf6   : > { %v1260_v43 = vmax.f32 %v714_v41, 0.0  ;;  %760 = vmatmul.f32.gmra.mxu1 %v339_v38  ;;  %v1205_v44 = vmax.f32 %v549_v42, 0.0  ;;  %595 = vmatmul.f32.gmra.mxu0 %v284_v40  ;;  %v288_v41 = vld [vmem:[%s1961_s26 + $0xe8] sm:$0xff] }
  0xf7   : > { %v881_v45 = vpop.f32.mrf.mxu2  ;;  %v1052_v46 = vpop.f32.mrf.mxu3 }
  0xf8   : > { %v882_v47 = vadd.f32 %v2035_v18, %v881_v45  ;;  %v1053_v48 = vadd.f32 %v2035_v18, %v1052_v46  ;;  %1485 = vst [vmem:[%s2046_s7 + $0x200] sm:$0xff] %v1260_v43 }
  0xf9   : > { %1430 = vst [vmem:[%s2046_s7 + $0x48] sm:$0xff] %v1205_v44 }
  0xfa   : > { %v1316_v51 = vmax.f32 %v882_v47, 0.0  ;;  %v1373_v52 = vmax.f32 %v1053_v48, 0.0 }
  0xfb   : > { %v716_v53 = vpop.f32.mrf.mxu1  ;;  %v551_v55 = vpop.f32.mrf.mxu0 }
  0xfc   : > { %1541 = vst [vmem:[%s2046_s7 + $0x3c0] sm:$0xff] %v1316_v51  ;;  %931 = vmatmul.f32.gmra.mxu2 %v396_v49  ;;  %1102 = vmatmul.f32.gmra.mxu3 %v453_v50  ;;  %v717_v57 = vadd.f32 %v2035_v18, %v716_v53  ;;  %v552_v58 = vadd.f32 %v2035_v18, %v551_v55  ;;  %v400_v50 = vld [vmem:[%s1961_s26 + $0x468] sm:$0xff]  ;;  %v457_v51 = vld [vmem:[%s1961_s26 + $0x630] sm:$0xff] }
  0xfd   : > { %1598 = vst [vmem:[%s2046_s7 + $0x588] sm:$0xff] %v1373_v52  ;;  %v344_v55 = vld [vmem:[%s1961_s26 + $0x2a8] sm:$0xff] }
  0xfe   : > { %v1261_v59 = vmax.f32 %v717_v57, 0.0  ;;  %763 = vmatmul.f32.gmra.mxu1 %v340_v54  ;;  %v1206_v60 = vmax.f32 %v552_v58, 0.0  ;;  %598 = vmatmul.f32.gmra.mxu0 %v285_v56  ;;  %v289_v57 = vld [vmem:[%s1961_s26 + $0xf0] sm:$0xff] }
  0xff   : > { %v884_v61 = vpop.f32.mrf.mxu2  ;;  %v1055_v62 = vpop.f32.mrf.mxu3 }
 0x100   : > { %v885_v63 = vadd.f32 %v2035_v18, %v884_v61  ;;  %v1056_v0 = vadd.f32 %v2035_v18, %v1055_v62  ;;  %1486 = vst [vmem:[%s2046_s7 + $0x208] sm:$0xff] %v1261_v59 }
 0x101   : > { %1431 = vst [vmem:[%s2046_s7 + $0x50] sm:$0xff] %v1206_v60 }
 0x102   : > { %v1317_v3 = vmax.f32 %v885_v63, 0.0  ;;  %v1374_v4 = vmax.f32 %v1056_v0, 0.0 }
 0x103   : > { %v719_v5 = vpop.f32.mrf.mxu1  ;;  %v554_v7 = vpop.f32.mrf.mxu0 }
 0x104   : > { %1542 = vst [vmem:[%s2046_s7 + $0x3c8] sm:$0xff] %v1317_v3  ;;  %934 = vmatmul.f32.gmra.mxu2 %v397_v1  ;;  %1105 = vmatmul.f32.gmra.mxu3 %v454_v2  ;;  %v720_v9 = vadd.f32 %v2035_v18, %v719_v5  ;;  %v555_v10 = vadd.f32 %v2035_v18, %v554_v7  ;;  %v401_v2 = vld [vmem:[%s1961_s26 + $0x470] sm:$0xff]  ;;  %v458_v3 = vld [vmem:[%s1961_s26 + $0x638] sm:$0xff] }
 0x105   : > { %1599 = vst [vmem:[%s2046_s7 + $0x590] sm:$0xff] %v1374_v4  ;;  %v345_v7 = vld [vmem:[%s1961_s26 + $0x2b0] sm:$0xff] }
 0x106   : > { %v1262_v11 = vmax.f32 %v720_v9, 0.0  ;;  %766 = vmatmul.f32.gmra.mxu1 %v341_v6  ;;  %v1207_v12 = vmax.f32 %v555_v10, 0.0  ;;  %601 = vmatmul.f32.gmra.mxu0 %v286_v8  ;;  %v290_v9 = vld [vmem:[%s1961_s26 + $0xf8] sm:$0xff] }
 0x107   : > { %v887_v13 = vpop.f32.mrf.mxu2  ;;  %v1058_v14 = vpop.f32.mrf.mxu3 }
 0x108   : > { %v888_v15 = vadd.f32 %v2035_v18, %v887_v13  ;;  %v1059_v16 = vadd.f32 %v2035_v18, %v1058_v14  ;;  %1487 = vst [vmem:[%s2046_s7 + $0x210] sm:$0xff] %v1262_v11 }
 0x109   : > { %1432 = vst [vmem:[%s2046_s7 + $0x58] sm:$0xff] %v1207_v12 }
 0x10a   : > { %v1318_v20 = vmax.f32 %v888_v15, 0.0  ;;  %v1375_v21 = vmax.f32 %v1059_v16, 0.0 }
 0x10b   : > { %v722_v22 = vpop.f32.mrf.mxu1  ;;  %v557_v24 = vpop.f32.mrf.mxu0 }
 0x10c   : > { %1543 = vst [vmem:[%s2046_s7 + $0x3d0] sm:$0xff] %v1318_v20  ;;  %937 = vmatmul.f32.gmra.mxu2 %v398_v17  ;;  %1108 = vmatmul.f32.gmra.mxu3 %v455_v19  ;;  %v723_v26 = vadd.f32 %v2035_v18, %v722_v22  ;;  %v558_v27 = vadd.f32 %v2035_v18, %v557_v24  ;;  %v402_v19 = vld [vmem:[%s1961_s26 + $0x478] sm:$0xff]  ;;  %v459_v20 = vld [vmem:[%s1961_s26 + $0x640] sm:$0xff] }
 0x10d   : > { %1600 = vst [vmem:[%s2046_s7 + $0x598] sm:$0xff] %v1375_v21  ;;  %v346_v24 = vld [vmem:[%s1961_s26 + $0x2b8] sm:$0xff] }
 0x10e   : > { %v1263_v28 = vmax.f32 %v723_v26, 0.0  ;;  %769 = vmatmul.f32.gmra.mxu1 %v342_v23  ;;  %v1208_v29 = vmax.f32 %v558_v27, 0.0  ;;  %604 = vmatmul.f32.gmra.mxu0 %v287_v25  ;;  %v291_v26 = vld [vmem:[%s1961_s26 + $0x100] sm:$0xff] }
 0x10f   : > { %v890_v30 = vpop.f32.mrf.mxu2  ;;  %v1061_v31 = vpop.f32.mrf.mxu3 }
 0x110   : > { %v891_v32 = vadd.f32 %v2035_v18, %v890_v30  ;;  %v1062_v33 = vadd.f32 %v2035_v18, %v1061_v31  ;;  %1488 = vst [vmem:[%s2046_s7 + $0x218] sm:$0xff] %v1263_v28 }
 0x111   : > { %1433 = vst [vmem:[%s2046_s7 + $0x60] sm:$0xff] %v1208_v29 }
 0x112   : > { %v1319_v36 = vmax.f32 %v891_v32, 0.0  ;;  %v1376_v37 = vmax.f32 %v1062_v33, 0.0 }
 0x113   : > { %v725_v38 = vpop.f32.mrf.mxu1  ;;  %v560_v40 = vpop.f32.mrf.mxu0 }
 0x114   : > { %1544 = vst [vmem:[%s2046_s7 + $0x3d8] sm:$0xff] %v1319_v36  ;;  %940 = vmatmul.f32.gmra.mxu2 %v399_v34  ;;  %1111 = vmatmul.f32.gmra.mxu3 %v456_v35  ;;  %v726_v42 = vadd.f32 %v2035_v18, %v725_v38  ;;  %v561_v43 = vadd.f32 %v2035_v18, %v560_v40  ;;  %v403_v35 = vld [vmem:[%s1961_s26 + $0x480] sm:$0xff]  ;;  %v460_v36 = vld [vmem:[%s1961_s26 + $0x648] sm:$0xff] }
 0x115   : > { %1601 = vst [vmem:[%s2046_s7 + $0x5a0] sm:$0xff] %v1376_v37  ;;  %v347_v40 = vld [vmem:[%s1961_s26 + $0x2c0] sm:$0xff] }
 0x116   : > { %v1264_v44 = vmax.f32 %v726_v42, 0.0  ;;  %772 = vmatmul.f32.gmra.mxu1 %v343_v39  ;;  %v1209_v45 = vmax.f32 %v561_v43, 0.0  ;;  %607 = vmatmul.f32.gmra.mxu0 %v288_v41  ;;  %v292_v42 = vld [vmem:[%s1961_s26 + $0x108] sm:$0xff] }
 0x117   : > { %v893_v46 = vpop.f32.mrf.mxu2  ;;  %v1064_v47 = vpop.f32.mrf.mxu3 }
 0x118   : > { %v894_v48 = vadd.f32 %v2035_v18, %v893_v46  ;;  %v1065_v49 = vadd.f32 %v2035_v18, %v1064_v47  ;;  %1489 = vst [vmem:[%s2046_s7 + $0x220] sm:$0xff] %v1264_v44 }
 0x119   : > { %1434 = vst [vmem:[%s2046_s7 + $0x68] sm:$0xff] %v1209_v45 }
 0x11a   : > { %v1320_v52 = vmax.f32 %v894_v48, 0.0  ;;  %v1377_v53 = vmax.f32 %v1065_v49, 0.0 }
 0x11b   : > { %v728_v54 = vpop.f32.mrf.mxu1  ;;  %v563_v56 = vpop.f32.mrf.mxu0 }
 0x11c   : > { %1545 = vst [vmem:[%s2046_s7 + $0x3e0] sm:$0xff] %v1320_v52  ;;  %943 = vmatmul.f32.gmra.mxu2 %v400_v50  ;;  %1114 = vmatmul.f32.gmra.mxu3 %v457_v51  ;;  %v729_v58 = vadd.f32 %v2035_v18, %v728_v54  ;;  %v564_v59 = vadd.f32 %v2035_v18, %v563_v56  ;;  %v404_v51 = vld [vmem:[%s1961_s26 + $0x488] sm:$0xff]  ;;  %v461_v52 = vld [vmem:[%s1961_s26 + $0x650] sm:$0xff] }
 0x11d   : > { %1602 = vst [vmem:[%s2046_s7 + $0x5a8] sm:$0xff] %v1377_v53  ;;  %v348_v56 = vld [vmem:[%s1961_s26 + $0x2c8] sm:$0xff] }
 0x11e   : > { %v1265_v60 = vmax.f32 %v729_v58, 0.0  ;;  %775 = vmatmul.f32.gmra.mxu1 %v344_v55  ;;  %v1210_v61 = vmax.f32 %v564_v59, 0.0  ;;  %610 = vmatmul.f32.gmra.mxu0 %v289_v57  ;;  %v293_v58 = vld [vmem:[%s1961_s26 + $0x110] sm:$0xff] }
 0x11f   : > { %v896_v62 = vpop.f32.mrf.mxu2  ;;  %v1067_v63 = vpop.f32.mrf.mxu3 }
 0x120   : > { %v897_v0 = vadd.f32 %v2035_v18, %v896_v62  ;;  %v1068_v1 = vadd.f32 %v2035_v18, %v1067_v63  ;;  %1490 = vst [vmem:[%s2046_s7 + $0x228] sm:$0xff] %v1265_v60 }
 0x121   : > { %1435 = vst [vmem:[%s2046_s7 + $0x70] sm:$0xff] %v1210_v61 }
 0x122   : > { %v1321_v4 = vmax.f32 %v897_v0, 0.0  ;;  %v1378_v5 = vmax.f32 %v1068_v1, 0.0 }
 0x123   : > { %v731_v6 = vpop.f32.mrf.mxu1  ;;  %v566_v8 = vpop.f32.mrf.mxu0 }
 0x124   : > { %1546 = vst [vmem:[%s2046_s7 + $0x3e8] sm:$0xff] %v1321_v4  ;;  %946 = vmatmul.f32.gmra.mxu2 %v401_v2  ;;  %1117 = vmatmul.f32.gmra.mxu3 %v458_v3  ;;  %v732_v10 = vadd.f32 %v2035_v18, %v731_v6  ;;  %v567_v11 = vadd.f32 %v2035_v18, %v566_v8  ;;  %v405_v3 = vld [vmem:[%s1961_s26 + $0x490] sm:$0xff]  ;;  %v462_v4 = vld [vmem:[%s1961_s26 + $0x658] sm:$0xff] }
 0x125   : > { %1603 = vst [vmem:[%s2046_s7 + $0x5b0] sm:$0xff] %v1378_v5  ;;  %v349_v8 = vld [vmem:[%s1961_s26 + $0x2d0] sm:$0xff] }
 0x126   : > { %v1266_v12 = vmax.f32 %v732_v10, 0.0  ;;  %778 = vmatmul.f32.gmra.mxu1 %v345_v7  ;;  %v1211_v13 = vmax.f32 %v567_v11, 0.0  ;;  %613 = vmatmul.f32.gmra.mxu0 %v290_v9  ;;  %v294_v10 = vld [vmem:[%s1961_s26 + $0x118] sm:$0xff] }
 0x127   : > { %v899_v14 = vpop.f32.mrf.mxu2  ;;  %v1070_v15 = vpop.f32.mrf.mxu3 }
 0x128   : > { %v900_v16 = vadd.f32 %v2035_v18, %v899_v14  ;;  %v1071_v17 = vadd.f32 %v2035_v18, %v1070_v15  ;;  %1491 = vst [vmem:[%s2046_s7 + $0x230] sm:$0xff] %v1266_v12 }
 0x129   : > { %1436 = vst [vmem:[%s2046_s7 + $0x78] sm:$0xff] %v1211_v13 }
 0x12a   : > { %v1322_v21 = vmax.f32 %v900_v16, 0.0  ;;  %v1379_v22 = vmax.f32 %v1071_v17, 0.0 }
 0x12b   : > { %v734_v23 = vpop.f32.mrf.mxu1  ;;  %v569_v25 = vpop.f32.mrf.mxu0 }
 0x12c   : > { %1547 = vst [vmem:[%s2046_s7 + $0x3f0] sm:$0xff] %v1322_v21  ;;  %949 = vmatmul.f32.gmra.mxu2 %v402_v19  ;;  %1120 = vmatmul.f32.gmra.mxu3 %v459_v20  ;;  %v735_v27 = vadd.f32 %v2035_v18, %v734_v23  ;;  %v570_v28 = vadd.f32 %v2035_v18, %v569_v25  ;;  %v406_v20 = vld [vmem:[%s1961_s26 + $0x498] sm:$0xff]  ;;  %v463_v21 = vld [vmem:[%s1961_s26 + $0x660] sm:$0xff] }
 0x12d   : > { %1604 = vst [vmem:[%s2046_s7 + $0x5b8] sm:$0xff] %v1379_v22  ;;  %v350_v25 = vld [vmem:[%s1961_s26 + $0x2d8] sm:$0xff] }
 0x12e   : > { %v1267_v29 = vmax.f32 %v735_v27, 0.0  ;;  %781 = vmatmul.f32.gmra.mxu1 %v346_v24  ;;  %v1212_v30 = vmax.f32 %v570_v28, 0.0  ;;  %616 = vmatmul.f32.gmra.mxu0 %v291_v26  ;;  %v295_v27 = vld [vmem:[%s1961_s26 + $0x120] sm:$0xff] }
 0x12f   : > { %v902_v31 = vpop.f32.mrf.mxu2  ;;  %v1073_v32 = vpop.f32.mrf.mxu3 }
 0x130   : > { %v903_v33 = vadd.f32 %v2035_v18, %v902_v31  ;;  %v1074_v34 = vadd.f32 %v2035_v18, %v1073_v32  ;;  %1492 = vst [vmem:[%s2046_s7 + $0x238] sm:$0xff] %v1267_v29 }
 0x131   : > { %1437 = vst [vmem:[%s2046_s7 + $0x80] sm:$0xff] %v1212_v30 }
 0x132   : > { %v1323_v37 = vmax.f32 %v903_v33, 0.0  ;;  %v1380_v38 = vmax.f32 %v1074_v34, 0.0 }
 0x133   : > { %v737_v39 = vpop.f32.mrf.mxu1  ;;  %v572_v41 = vpop.f32.mrf.mxu0 }
 0x134   : > { %1548 = vst [vmem:[%s2046_s7 + $0x3f8] sm:$0xff] %v1323_v37  ;;  %952 = vmatmul.f32.gmra.mxu2 %v403_v35  ;;  %1123 = vmatmul.f32.gmra.mxu3 %v460_v36  ;;  %v738_v43 = vadd.f32 %v2035_v18, %v737_v39  ;;  %v573_v44 = vadd.f32 %v2035_v18, %v572_v41  ;;  %v407_v36 = vld [vmem:[%s1961_s26 + $0x4a0] sm:$0xff]  ;;  %v464_v37 = vld [vmem:[%s1961_s26 + $0x668] sm:$0xff] }
 0x135   : > { %1605 = vst [vmem:[%s2046_s7 + $0x5c0] sm:$0xff] %v1380_v38  ;;  %v351_v41 = vld [vmem:[%s1961_s26 + $0x2e0] sm:$0xff] }
 0x136   : > { %v1268_v45 = vmax.f32 %v738_v43, 0.0  ;;  %784 = vmatmul.f32.gmra.mxu1 %v347_v40  ;;  %v1213_v46 = vmax.f32 %v573_v44, 0.0  ;;  %619 = vmatmul.f32.gmra.mxu0 %v292_v42  ;;  %v296_v43 = vld [vmem:[%s1961_s26 + $0x128] sm:$0xff] }
 0x137   : > { %v905_v47 = vpop.f32.mrf.mxu2  ;;  %v1076_v48 = vpop.f32.mrf.mxu3 }
 0x138   : > { %v906_v49 = vadd.f32 %v2035_v18, %v905_v47  ;;  %v1077_v50 = vadd.f32 %v2035_v18, %v1076_v48  ;;  %1493 = vst [vmem:[%s2046_s7 + $0x240] sm:$0xff] %v1268_v45  ;;  %v2301_v45 = vld [vmem:[%s2674_s2] ss:$0 sm:$0xff] }
 0x139   : > { %1438 = vst [vmem:[%s2046_s7 + $0x88] sm:$0xff] %v1213_v46 }
 0x13a   : > { %v1324_v53 = vmax.f32 %v906_v49, 0.0  ;;  %v1381_v54 = vmax.f32 %v1077_v50, 0.0 }
 0x13b   : > { %v740_v55 = vpop.f32.mrf.mxu1  ;;  %v575_v57 = vpop.f32.mrf.mxu0 }
 0x13c   : > { %1549 = vst [vmem:[%s2046_s7 + $0x400] sm:$0xff] %v1324_v53  ;;  %955 = vmatmul.f32.gmra.mxu2 %v404_v51  ;;  %1126 = vmatmul.f32.gmra.mxu3 %v461_v52  ;;  %v741_v59 = vadd.f32 %v2035_v18, %v740_v55  ;;  %v576_v60 = vadd.f32 %v2035_v18, %v575_v57  ;;  %v408_v52 = vld [vmem:[%s1961_s26 + $0x4a8] sm:$0xff]  ;;  %v465_v53 = vld [vmem:[%s1961_s26 + $0x670] sm:$0xff] }
 0x13d   : > { %1606 = vst [vmem:[%s2046_s7 + $0x5c8] sm:$0xff] %v1381_v54  ;;  %v352_v57 = vld [vmem:[%s1961_s26 + $0x2e8] sm:$0xff] }
 0x13e   : > { %v1269_v61 = vmax.f32 %v741_v59, 0.0  ;;  %787 = vmatmul.f32.gmra.mxu1 %v348_v56  ;;  %v1214_v62 = vmax.f32 %v576_v60, 0.0  ;;  %622 = vmatmul.f32.gmra.mxu0 %v293_v58  ;;  %v297_v59 = vld [vmem:[%s1961_s26 + $0x130] sm:$0xff] }
 0x13f   : > { %v908_v63 = vpop.f32.mrf.mxu2  ;;  %v1079_v0 = vpop.f32.mrf.mxu3 }
 0x140   : > { %v909_v1 = vadd.f32 %v2035_v18, %v908_v63  ;;  %v1080_v2 = vadd.f32 %v2035_v18, %v1079_v0  ;;  %1494 = vst [vmem:[%s2046_s7 + $0x248] sm:$0xff] %v1269_v61 }
 0x141   : > { %1439 = vst [vmem:[%s2046_s7 + $0x90] sm:$0xff] %v1214_v62 }
 0x142   : > { %v1325_v5 = vmax.f32 %v909_v1, 0.0  ;;  %v1382_v6 = vmax.f32 %v1080_v2, 0.0 }
 0x143   : > { %v743_v7 = vpop.f32.mrf.mxu1  ;;  %v578_v9 = vpop.f32.mrf.mxu0 }
 0x144   : > { %1550 = vst [vmem:[%s2046_s7 + $0x408] sm:$0xff] %v1325_v5  ;;  %958 = vmatmul.f32.gmra.mxu2 %v405_v3  ;;  %1129 = vmatmul.f32.gmra.mxu3 %v462_v4  ;;  %v744_v11 = vadd.f32 %v2035_v18, %v743_v7  ;;  %v579_v12 = vadd.f32 %v2035_v18, %v578_v9  ;;  %v409_v4 = vld [vmem:[%s1961_s26 + $0x4b0] sm:$0xff]  ;;  %v466_v5 = vld [vmem:[%s1961_s26 + $0x678] sm:$0xff] }
 0x145   : > { %1607 = vst [vmem:[%s2046_s7 + $0x5d0] sm:$0xff] %v1382_v6  ;;  %v353_v9 = vld [vmem:[%s1961_s26 + $0x2f0] sm:$0xff] }
 0x146   : > { %v1270_v13 = vmax.f32 %v744_v11, 0.0  ;;  %790 = vmatmul.f32.gmra.mxu1 %v349_v8  ;;  %v1215_v14 = vmax.f32 %v579_v12, 0.0  ;;  %625 = vmatmul.f32.gmra.mxu0 %v294_v10  ;;  %v298_v11 = vld [vmem:[%s1961_s26 + $0x138] sm:$0xff] }
 0x147   : > { %v911_v15 = vpop.f32.mrf.mxu2  ;;  %v1082_v16 = vpop.f32.mrf.mxu3 }
 0x148   : > { %v912_v17 = vadd.f32 %v2035_v18, %v911_v15  ;;  %v1083_v19 = vadd.f32 %v2035_v18, %v1082_v16  ;;  %1495 = vst [vmem:[%s2046_s7 + $0x250] sm:$0xff] %v1270_v13 }
 0x149   : > { %1440 = vst [vmem:[%s2046_s7 + $0x98] sm:$0xff] %v1215_v14 }
 0x14a   : > { %v1326_v22 = vmax.f32 %v912_v17, 0.0  ;;  %v1383_v23 = vmax.f32 %v1083_v19, 0.0 }
 0x14b   : > { %v746_v24 = vpop.f32.mrf.mxu1  ;;  %v581_v26 = vpop.f32.mrf.mxu0 }
 0x14c   : > { %1551 = vst [vmem:[%s2046_s7 + $0x410] sm:$0xff] %v1326_v22  ;;  %961 = vmatmul.f32.gmra.mxu2 %v406_v20  ;;  %1132 = vmatmul.f32.gmra.mxu3 %v463_v21  ;;  %v747_v28 = vadd.f32 %v2035_v18, %v746_v24  ;;  %v582_v29 = vadd.f32 %v2035_v18, %v581_v26  ;;  %v410_v21 = vld [vmem:[%s1961_s26 + $0x4b8] sm:$0xff]  ;;  %v467_v22 = vld [vmem:[%s1961_s26 + $0x680] sm:$0xff] }
 0x14d   : > { %1608 = vst [vmem:[%s2046_s7 + $0x5d8] sm:$0xff] %v1383_v23  ;;  %v354_v26 = vld [vmem:[%s1961_s26 + $0x2f8] sm:$0xff] }
 0x14e   : > { %v1271_v30 = vmax.f32 %v747_v28, 0.0  ;;  %793 = vmatmul.f32.gmra.mxu1 %v350_v25  ;;  %v1216_v31 = vmax.f32 %v582_v29, 0.0  ;;  %628 = vmatmul.f32.gmra.mxu0 %v295_v27  ;;  %v299_v28 = vld [vmem:[%s1961_s26 + $0x140] sm:$0xff] }
 0x14f   : > { %v914_v32 = vpop.f32.mrf.mxu2  ;;  %v1085_v33 = vpop.f32.mrf.mxu3 }
 0x150   : > { %v915_v34 = vadd.f32 %v2035_v18, %v914_v32  ;;  %v1086_v35 = vadd.f32 %v2035_v18, %v1085_v33  ;;  %1496 = vst [vmem:[%s2046_s7 + $0x258] sm:$0xff] %v1271_v30 }
 0x151   : > { %1441 = vst [vmem:[%s2046_s7 + $0xa0] sm:$0xff] %v1216_v31 }
 0x152   : > { %v1327_v38 = vmax.f32 %v915_v34, 0.0  ;;  %v1384_v39 = vmax.f32 %v1086_v35, 0.0 }
 0x153   : > { %v749_v40 = vpop.f32.mrf.mxu1  ;;  %v584_v42 = vpop.f32.mrf.mxu0 }
 0x154   : > { %1552 = vst [vmem:[%s2046_s7 + $0x418] sm:$0xff] %v1327_v38  ;;  %964 = vmatmul.f32.gmra.mxu2 %v407_v36  ;;  %1135 = vmatmul.f32.gmra.mxu3 %v464_v37  ;;  %v750_v44 = vadd.f32 %v2035_v18, %v749_v40  ;;  %v585_v46 = vadd.f32 %v2301_v45, %v584_v42  ;;  %v411_v37 = vld [vmem:[%s1961_s26 + $0x4c0] sm:$0xff]  ;;  %v468_v38 = vld [vmem:[%s1961_s26 + $0x688] sm:$0xff] }
 0x155   : > { %1609 = vst [vmem:[%s2046_s7 + $0x5e0] sm:$0xff] %v1384_v39  ;;  %v355_v42 = vld [vmem:[%s1961_s26 + $0x300] sm:$0xff] }
 0x156   : > { %v1272_v47 = vmax.f32 %v750_v44, 0.0  ;;  %796 = vmatmul.f32.gmra.mxu1 %v351_v41  ;;  %v1217_v48 = vmax.f32 %v585_v46, 0.0  ;;  %631 = vmatmul.f32.gmra.mxu0 %v296_v43  ;;  %v300_v44 = vld [vmem:[%s1961_s26 + $0x148] sm:$0xff] }
 0x157   : > { %v917_v49 = vpop.f32.mrf.mxu2  ;;  %v1088_v50 = vpop.f32.mrf.mxu3 }
 0x158   : > { %v918_v51 = vadd.f32 %v2301_v45, %v917_v49  ;;  %v1089_v18 = vadd.f32 %v2301_v45, %v1088_v50  ;;  %1497 = vst [vmem:[%s2046_s7 + $0x260] sm:$0xff] %v1272_v47 }
 0x159   : > { %1442 = vst [vmem:[%s2046_s7 + $0xa8] sm:$0xff] %v1217_v48 }
 0x15a   : > { %v1328_v54 = vmax.f32 %v918_v51, 0.0  ;;  %v1385_v55 = vmax.f32 %v1089_v18, 0.0 }
 0x15b   : > { %v752_v56 = vpop.f32.mrf.mxu1  ;;  %v587_v58 = vpop.f32.mrf.mxu0 }
 0x15c   : > { %1553 = vst [vmem:[%s2046_s7 + $0x420] sm:$0xff] %v1328_v54  ;;  %967 = vmatmul.f32.gmra.mxu2 %v408_v52  ;;  %1138 = vmatmul.f32.gmra.mxu3 %v465_v53  ;;  %v753_v60 = vadd.f32 %v2301_v45, %v752_v56  ;;  %v588_v61 = vadd.f32 %v2301_v45, %v587_v58  ;;  %v412_v53 = vld [vmem:[%s1961_s26 + $0x4c8] sm:$0xff]  ;;  %v469_v54 = vld [vmem:[%s1961_s26 + $0x690] sm:$0xff] }
 0x15d   : > { %1610 = vst [vmem:[%s2046_s7 + $0x5e8] sm:$0xff] %v1385_v55  ;;  %v356_v58 = vld [vmem:[%s1961_s26 + $0x308] sm:$0xff] }
 0x15e   : > { %v1273_v62 = vmax.f32 %v753_v60, 0.0  ;;  %799 = vmatmul.f32.gmra.mxu1 %v352_v57  ;;  %v1218_v63 = vmax.f32 %v588_v61, 0.0  ;;  %634 = vmatmul.f32.gmra.mxu0 %v297_v59  ;;  %v301_v60 = vld [vmem:[%s1961_s26 + $0x150] sm:$0xff] }
 0x15f   : > { %v920_v0 = vpop.f32.mrf.mxu2  ;;  %v1091_v1 = vpop.f32.mrf.mxu3 }
 0x160   : > { %v921_v2 = vadd.f32 %v2301_v45, %v920_v0  ;;  %v1092_v3 = vadd.f32 %v2301_v45, %v1091_v1  ;;  %1498 = vst [vmem:[%s2046_s7 + $0x268] sm:$0xff] %v1273_v62 }
 0x161   : > { %1443 = vst [vmem:[%s2046_s7 + $0xb0] sm:$0xff] %v1218_v63 }
 0x162   : > { %v1329_v6 = vmax.f32 %v921_v2, 0.0  ;;  %v1386_v7 = vmax.f32 %v1092_v3, 0.0 }
 0x163   : > { %v755_v8 = vpop.f32.mrf.mxu1  ;;  %v590_v10 = vpop.f32.mrf.mxu0 }
 0x164   : > { %1554 = vst [vmem:[%s2046_s7 + $0x428] sm:$0xff] %v1329_v6  ;;  %970 = vmatmul.f32.gmra.mxu2 %v409_v4  ;;  %1141 = vmatmul.f32.gmra.mxu3 %v466_v5  ;;  %v756_v12 = vadd.f32 %v2301_v45, %v755_v8  ;;  %v591_v13 = vadd.f32 %v2301_v45, %v590_v10  ;;  %v413_v5 = vld [vmem:[%s1961_s26 + $0x4d0] sm:$0xff]  ;;  %v470_v6 = vld [vmem:[%s1961_s26 + $0x698] sm:$0xff] }
 0x165   : > { %1611 = vst [vmem:[%s2046_s7 + $0x5f0] sm:$0xff] %v1386_v7  ;;  %v357_v10 = vld [vmem:[%s1961_s26 + $0x310] sm:$0xff] }
 0x166   : > { %v1274_v14 = vmax.f32 %v756_v12, 0.0  ;;  %802 = vmatmul.f32.gmra.mxu1 %v353_v9  ;;  %v1219_v15 = vmax.f32 %v591_v13, 0.0  ;;  %637 = vmatmul.f32.gmra.mxu0 %v298_v11  ;;  %v302_v12 = vld [vmem:[%s1961_s26 + $0x158] sm:$0xff] }
 0x167   : > { %v923_v16 = vpop.f32.mrf.mxu2  ;;  %v1094_v17 = vpop.f32.mrf.mxu3 }
 0x168   : > { %v924_v19 = vadd.f32 %v2301_v45, %v923_v16  ;;  %v1095_v20 = vadd.f32 %v2301_v45, %v1094_v17  ;;  %1499 = vst [vmem:[%s2046_s7 + $0x270] sm:$0xff] %v1274_v14 }
 0x169   : > { %1444 = vst [vmem:[%s2046_s7 + $0xb8] sm:$0xff] %v1219_v15 }
 0x16a   : > { %v1330_v23 = vmax.f32 %v924_v19, 0.0  ;;  %v1387_v24 = vmax.f32 %v1095_v20, 0.0 }
 0x16b   : > { %v758_v25 = vpop.f32.mrf.mxu1  ;;  %v593_v27 = vpop.f32.mrf.mxu0 }
 0x16c   : > { %1555 = vst [vmem:[%s2046_s7 + $0x430] sm:$0xff] %v1330_v23  ;;  %973 = vmatmul.f32.gmra.mxu2 %v410_v21  ;;  %1144 = vmatmul.f32.gmra.mxu3 %v467_v22  ;;  %v759_v29 = vadd.f32 %v2301_v45, %v758_v25  ;;  %v594_v30 = vadd.f32 %v2301_v45, %v593_v27  ;;  %v414_v22 = vld [vmem:[%s1961_s26 + $0x4d8] sm:$0xff]  ;;  %v471_v23 = vld [vmem:[%s1961_s26 + $0x6a0] sm:$0xff] }
 0x16d   : > { %1612 = vst [vmem:[%s2046_s7 + $0x5f8] sm:$0xff] %v1387_v24  ;;  %v358_v27 = vld [vmem:[%s1961_s26 + $0x318] sm:$0xff] }
 0x16e   : > { %v1275_v31 = vmax.f32 %v759_v29, 0.0  ;;  %805 = vmatmul.f32.gmra.mxu1 %v354_v26  ;;  %v1220_v32 = vmax.f32 %v594_v30, 0.0  ;;  %640 = vmatmul.f32.gmra.mxu0 %v299_v28  ;;  %v303_v29 = vld [vmem:[%s1961_s26 + $0x160] sm:$0xff] }
 0x16f   : > { %v926_v33 = vpop.f32.mrf.mxu2  ;;  %v1097_v34 = vpop.f32.mrf.mxu3 }
 0x170   : > { %v927_v35 = vadd.f32 %v2301_v45, %v926_v33  ;;  %v1098_v36 = vadd.f32 %v2301_v45, %v1097_v34  ;;  %1500 = vst [vmem:[%s2046_s7 + $0x278] sm:$0xff] %v1275_v31 }
 0x171   : > { %1445 = vst [vmem:[%s2046_s7 + $0xc0] sm:$0xff] %v1220_v32 }
 0x172   : > { %v1331_v39 = vmax.f32 %v927_v35, 0.0  ;;  %v1388_v40 = vmax.f32 %v1098_v36, 0.0 }
 0x173   : > { %v761_v41 = vpop.f32.mrf.mxu1  ;;  %v596_v43 = vpop.f32.mrf.mxu0 }
 0x174   : > { %1556 = vst [vmem:[%s2046_s7 + $0x438] sm:$0xff] %v1331_v39  ;;  %976 = vmatmul.f32.gmra.mxu2 %v411_v37  ;;  %1147 = vmatmul.f32.gmra.mxu3 %v468_v38  ;;  %v762_v46 = vadd.f32 %v2301_v45, %v761_v41  ;;  %v597_v47 = vadd.f32 %v2301_v45, %v596_v43  ;;  %v415_v38 = vld [vmem:[%s1961_s26 + $0x4e0] sm:$0xff]  ;;  %v472_v39 = vld [vmem:[%s1961_s26 + $0x6a8] sm:$0xff] }
 0x175   : > { %1613 = vst [vmem:[%s2046_s7 + $0x600] sm:$0xff] %v1388_v40  ;;  %v359_v43 = vld [vmem:[%s1961_s26 + $0x320] sm:$0xff] }
 0x176   : > { %v1276_v48 = vmax.f32 %v762_v46, 0.0  ;;  %808 = vmatmul.f32.gmra.mxu1 %v355_v42  ;;  %v1221_v49 = vmax.f32 %v597_v47, 0.0  ;;  %643 = vmatmul.f32.gmra.mxu0 %v300_v44  ;;  %v304_v46 = vld [vmem:[%s1961_s26 + $0x168] sm:$0xff] }
 0x177   : > { %v929_v50 = vpop.f32.mrf.mxu2  ;;  %v1100_v51 = vpop.f32.mrf.mxu3 }
 0x178   : > { %v930_v18 = vadd.f32 %v2301_v45, %v929_v50  ;;  %v1101_v52 = vadd.f32 %v2301_v45, %v1100_v51  ;;  %1501 = vst [vmem:[%s2046_s7 + $0x280] sm:$0xff] %v1276_v48 }
 0x179   : > { %1446 = vst [vmem:[%s2046_s7 + $0xc8] sm:$0xff] %v1221_v49 }
 0x17a   : > { %v1332_v55 = vmax.f32 %v930_v18, 0.0  ;;  %v1389_v56 = vmax.f32 %v1101_v52, 0.0 }
 0x17b   : > { %v764_v57 = vpop.f32.mrf.mxu1  ;;  %v599_v59 = vpop.f32.mrf.mxu0 }
 0x17c   : > { %1557 = vst [vmem:[%s2046_s7 + $0x440] sm:$0xff] %v1332_v55  ;;  %979 = vmatmul.f32.gmra.mxu2 %v412_v53  ;;  %1150 = vmatmul.f32.gmra.mxu3 %v469_v54  ;;  %v765_v61 = vadd.f32 %v2301_v45, %v764_v57  ;;  %v600_v62 = vadd.f32 %v2301_v45, %v599_v59  ;;  %v416_v54 = vld [vmem:[%s1961_s26 + $0x4e8] sm:$0xff]  ;;  %v473_v55 = vld [vmem:[%s1961_s26 + $0x6b0] sm:$0xff] }
 0x17d   : > { %1614 = vst [vmem:[%s2046_s7 + $0x608] sm:$0xff] %v1389_v56  ;;  %v360_v59 = vld [vmem:[%s1961_s26 + $0x328] sm:$0xff] }
 0x17e   : > { %v1277_v63 = vmax.f32 %v765_v61, 0.0  ;;  %811 = vmatmul.f32.gmra.mxu1 %v356_v58  ;;  %v1222_v0 = vmax.f32 %v600_v62, 0.0  ;;  %646 = vmatmul.f32.gmra.mxu0 %v301_v60  ;;  %v305_v61 = vld [vmem:[%s1961_s26 + $0x170] sm:$0xff] }
 0x17f   : > { %v932_v1 = vpop.f32.mrf.mxu2  ;;  %v1103_v2 = vpop.f32.mrf.mxu3 }
 0x180   : > { %v933_v3 = vadd.f32 %v2301_v45, %v932_v1  ;;  %v1104_v4 = vadd.f32 %v2301_v45, %v1103_v2  ;;  %1502 = vst [vmem:[%s2046_s7 + $0x288] sm:$0xff] %v1277_v63 }
 0x181   : > { %1447 = vst [vmem:[%s2046_s7 + $0xd0] sm:$0xff] %v1222_v0 }
 0x182   : > { %v1333_v7 = vmax.f32 %v933_v3, 0.0  ;;  %v1390_v8 = vmax.f32 %v1104_v4, 0.0 }
 0x183   : > { %v767_v9 = vpop.f32.mrf.mxu1  ;;  %v602_v11 = vpop.f32.mrf.mxu0 }
 0x184   : > { %1558 = vst [vmem:[%s2046_s7 + $0x448] sm:$0xff] %v1333_v7  ;;  %982 = vmatmul.f32.gmra.mxu2 %v413_v5  ;;  %1153 = vmatmul.f32.gmra.mxu3 %v470_v6  ;;  %v768_v13 = vadd.f32 %v2301_v45, %v767_v9  ;;  %v603_v14 = vadd.f32 %v2301_v45, %v602_v11  ;;  %v417_v6 = vld [vmem:[%s1961_s26 + $0x4f0] sm:$0xff]  ;;  %v474_v7 = vld [vmem:[%s1961_s26 + $0x6b8] sm:$0xff] }
 0x185   : > { %1615 = vst [vmem:[%s2046_s7 + $0x610] sm:$0xff] %v1390_v8  ;;  %v361_v11 = vld [vmem:[%s1961_s26 + $0x330] sm:$0xff] }
 0x186   : > { %v1278_v15 = vmax.f32 %v768_v13, 0.0  ;;  %814 = vmatmul.f32.gmra.mxu1 %v357_v10  ;;  %v1223_v16 = vmax.f32 %v603_v14, 0.0  ;;  %649 = vmatmul.f32.gmra.mxu0 %v302_v12  ;;  %v306_v13 = vld [vmem:[%s1961_s26 + $0x178] sm:$0xff] }
 0x187   : > { %v935_v17 = vpop.f32.mrf.mxu2  ;;  %v1106_v19 = vpop.f32.mrf.mxu3 }
 0x188   : > { %v936_v20 = vadd.f32 %v2301_v45, %v935_v17  ;;  %v1107_v21 = vadd.f32 %v2301_v45, %v1106_v19  ;;  %1503 = vst [vmem:[%s2046_s7 + $0x290] sm:$0xff] %v1278_v15 }
 0x189   : > { %1448 = vst [vmem:[%s2046_s7 + $0xd8] sm:$0xff] %v1223_v16 }
 0x18a   : > { %v1334_v24 = vmax.f32 %v936_v20, 0.0  ;;  %v1391_v25 = vmax.f32 %v1107_v21, 0.0 }
 0x18b   : > { %v770_v26 = vpop.f32.mrf.mxu1  ;;  %v605_v28 = vpop.f32.mrf.mxu0 }
 0x18c   : > { %1559 = vst [vmem:[%s2046_s7 + $0x450] sm:$0xff] %v1334_v24  ;;  %985 = vmatmul.f32.gmra.mxu2 %v414_v22  ;;  %1156 = vmatmul.f32.gmra.mxu3 %v471_v23  ;;  %v771_v30 = vadd.f32 %v2301_v45, %v770_v26  ;;  %v606_v31 = vadd.f32 %v2301_v45, %v605_v28  ;;  %v418_v23 = vld [vmem:[%s1961_s26 + $0x4f8] sm:$0xff]  ;;  %v475_v24 = vld [vmem:[%s1961_s26 + $0x6c0] sm:$0xff] }
 0x18d   : > { %1616 = vst [vmem:[%s2046_s7 + $0x618] sm:$0xff] %v1391_v25  ;;  %v362_v28 = vld [vmem:[%s1961_s26 + $0x338] sm:$0xff] }
 0x18e   : > { %v1279_v32 = vmax.f32 %v771_v30, 0.0  ;;  %817 = vmatmul.f32.gmra.mxu1 %v358_v27  ;;  %v1224_v33 = vmax.f32 %v606_v31, 0.0  ;;  %652 = vmatmul.f32.gmra.mxu0 %v303_v29  ;;  %v307_v30 = vld [vmem:[%s1961_s26 + $0x180] sm:$0xff] }
 0x18f   : > { %v938_v34 = vpop.f32.mrf.mxu2  ;;  %v1109_v35 = vpop.f32.mrf.mxu3 }
 0x190   : > { %v939_v36 = vadd.f32 %v2301_v45, %v938_v34  ;;  %v1110_v37 = vadd.f32 %v2301_v45, %v1109_v35  ;;  %1504 = vst [vmem:[%s2046_s7 + $0x298] sm:$0xff] %v1279_v32 }
 0x191   : > { %1449 = vst [vmem:[%s2046_s7 + $0xe0] sm:$0xff] %v1224_v33 }
 0x192   : > { %v1335_v40 = vmax.f32 %v939_v36, 0.0  ;;  %v1392_v41 = vmax.f32 %v1110_v37, 0.0 }
 0x193   : > { %v773_v42 = vpop.f32.mrf.mxu1  ;;  %v608_v44 = vpop.f32.mrf.mxu0 }
 0x194   : > { %1560 = vst [vmem:[%s2046_s7 + $0x458] sm:$0xff] %v1335_v40  ;;  %988 = vmatmul.f32.gmra.mxu2 %v415_v38  ;;  %1159 = vmatmul.f32.gmra.mxu3 %v472_v39  ;;  %v774_v47 = vadd.f32 %v2301_v45, %v773_v42  ;;  %v609_v48 = vadd.f32 %v2301_v45, %v608_v44  ;;  %v419_v39 = vld [vmem:[%s1961_s26 + $0x500] sm:$0xff]  ;;  %v476_v40 = vld [vmem:[%s1961_s26 + $0x6c8] sm:$0xff] }
 0x195   : > { %1617 = vst [vmem:[%s2046_s7 + $0x620] sm:$0xff] %v1392_v41  ;;  %v363_v44 = vld [vmem:[%s1961_s26 + $0x340] sm:$0xff] }
 0x196   : > { %v1280_v49 = vmax.f32 %v774_v47, 0.0  ;;  %820 = vmatmul.f32.gmra.mxu1 %v359_v43  ;;  %v1225_v50 = vmax.f32 %v609_v48, 0.0  ;;  %655 = vmatmul.f32.gmra.mxu0 %v304_v46  ;;  %v308_v47 = vld [vmem:[%s1961_s26 + $0x188] sm:$0xff] }
 0x197   : > { %v941_v51 = vpop.f32.mrf.mxu2  ;;  %v1112_v18 = vpop.f32.mrf.mxu3 }
 0x198   : > { %v942_v52 = vadd.f32 %v2301_v45, %v941_v51  ;;  %v1113_v53 = vadd.f32 %v2301_v45, %v1112_v18  ;;  %1505 = vst [vmem:[%s2046_s7 + $0x2a0] sm:$0xff] %v1280_v49 }
 0x199   : > { %1450 = vst [vmem:[%s2046_s7 + $0xe8] sm:$0xff] %v1225_v50 }
 0x19a   : > { %v1336_v56 = vmax.f32 %v942_v52, 0.0  ;;  %v1393_v57 = vmax.f32 %v1113_v53, 0.0 }
 0x19b   : > { %v776_v58 = vpop.f32.mrf.mxu1  ;;  %v611_v60 = vpop.f32.mrf.mxu0 }
 0x19c   : > { %1561 = vst [vmem:[%s2046_s7 + $0x460] sm:$0xff] %v1336_v56  ;;  %991 = vmatmul.f32.gmra.mxu2 %v416_v54  ;;  %1162 = vmatmul.f32.gmra.mxu3 %v473_v55  ;;  %v777_v62 = vadd.f32 %v2301_v45, %v776_v58  ;;  %v612_v63 = vadd.f32 %v2301_v45, %v611_v60  ;;  %v420_v55 = vld [vmem:[%s1961_s26 + $0x508] sm:$0xff]  ;;  %v477_v56 = vld [vmem:[%s1961_s26 + $0x6d0] sm:$0xff] }
 0x19d   : > { %1618 = vst [vmem:[%s2046_s7 + $0x628] sm:$0xff] %v1393_v57  ;;  %v364_v60 = vld [vmem:[%s1961_s26 + $0x348] sm:$0xff] }
 0x19e   : > { %v1281_v0 = vmax.f32 %v777_v62, 0.0  ;;  %823 = vmatmul.f32.gmra.mxu1 %v360_v59  ;;  %v1226_v1 = vmax.f32 %v612_v63, 0.0  ;;  %658 = vmatmul.f32.gmra.mxu0 %v305_v61  ;;  %v309_v62 = vld [vmem:[%s1961_s26 + $0x190] sm:$0xff] }
 0x19f   : > { %v944_v2 = vpop.f32.mrf.mxu2  ;;  %v1115_v3 = vpop.f32.mrf.mxu3 }
 0x1a0   : > { %v945_v4 = vadd.f32 %v2301_v45, %v944_v2  ;;  %v1116_v5 = vadd.f32 %v2301_v45, %v1115_v3  ;;  %1506 = vst [vmem:[%s2046_s7 + $0x2a8] sm:$0xff] %v1281_v0 }
 0x1a1   : > { %1451 = vst [vmem:[%s2046_s7 + $0xf0] sm:$0xff] %v1226_v1 }
 0x1a2   : > { %v1337_v8 = vmax.f32 %v945_v4, 0.0  ;;  %v1394_v9 = vmax.f32 %v1116_v5, 0.0 }
 0x1a3   : > { %v779_v10 = vpop.f32.mrf.mxu1  ;;  %v614_v12 = vpop.f32.mrf.mxu0 }
 0x1a4   : > { %1562 = vst [vmem:[%s2046_s7 + $0x468] sm:$0xff] %v1337_v8  ;;  %994 = vmatmul.f32.gmra.mxu2 %v417_v6  ;;  %1165 = vmatmul.f32.gmra.mxu3 %v474_v7  ;;  %v780_v14 = vadd.f32 %v2301_v45, %v779_v10  ;;  %v615_v15 = vadd.f32 %v2301_v45, %v614_v12  ;;  %v421_v7 = vld [vmem:[%s1961_s26 + $0x510] sm:$0xff]  ;;  %v478_v8 = vld [vmem:[%s1961_s26 + $0x6d8] sm:$0xff] }
 0x1a5   : > { %1619 = vst [vmem:[%s2046_s7 + $0x630] sm:$0xff] %v1394_v9  ;;  %v365_v12 = vld [vmem:[%s1961_s26 + $0x350] sm:$0xff] }
 0x1a6   : > { %v1282_v16 = vmax.f32 %v780_v14, 0.0  ;;  %826 = vmatmul.f32.gmra.mxu1 %v361_v11  ;;  %v1227_v17 = vmax.f32 %v615_v15, 0.0  ;;  %661 = vmatmul.f32.gmra.mxu0 %v306_v13  ;;  %v310_v14 = vld [vmem:[%s1961_s26 + $0x198] sm:$0xff] }
 0x1a7   : > { %v947_v19 = vpop.f32.mrf.mxu2  ;;  %v1118_v20 = vpop.f32.mrf.mxu3 }
 0x1a8   : > { %v948_v21 = vadd.f32 %v2301_v45, %v947_v19  ;;  %v1119_v22 = vadd.f32 %v2301_v45, %v1118_v20  ;;  %1507 = vst [vmem:[%s2046_s7 + $0x2b0] sm:$0xff] %v1282_v16 }
 0x1a9   : > { %1452 = vst [vmem:[%s2046_s7 + $0xf8] sm:$0xff] %v1227_v17 }
 0x1aa   : > { %v1338_v25 = vmax.f32 %v948_v21, 0.0  ;;  %v1395_v26 = vmax.f32 %v1119_v22, 0.0 }
 0x1ab   : > { %v782_v27 = vpop.f32.mrf.mxu1  ;;  %v617_v29 = vpop.f32.mrf.mxu0 }
 0x1ac   : > { %1563 = vst [vmem:[%s2046_s7 + $0x470] sm:$0xff] %v1338_v25  ;;  %997 = vmatmul.f32.gmra.mxu2 %v418_v23  ;;  %1168 = vmatmul.f32.gmra.mxu3 %v475_v24  ;;  %v783_v31 = vadd.f32 %v2301_v45, %v782_v27  ;;  %v618_v32 = vadd.f32 %v2301_v45, %v617_v29  ;;  %v422_v24 = vld [vmem:[%s1961_s26 + $0x518] sm:$0xff]  ;;  %v479_v25 = vld [vmem:[%s1961_s26 + $0x6e0] sm:$0xff] }
 0x1ad   : > { %1620 = vst [vmem:[%s2046_s7 + $0x638] sm:$0xff] %v1395_v26  ;;  %v366_v29 = vld [vmem:[%s1961_s26 + $0x358] sm:$0xff] }
 0x1ae   : > { %v1283_v33 = vmax.f32 %v783_v31, 0.0  ;;  %829 = vmatmul.f32.gmra.mxu1 %v362_v28  ;;  %v1228_v34 = vmax.f32 %v618_v32, 0.0  ;;  %664 = vmatmul.f32.gmra.mxu0 %v307_v30  ;;  %v311_v31 = vld [vmem:[%s1961_s26 + $0x1a0] sm:$0xff] }
 0x1af   : > { %v950_v35 = vpop.f32.mrf.mxu2  ;;  %v1121_v36 = vpop.f32.mrf.mxu3 }
 0x1b0   : > { %v951_v37 = vadd.f32 %v2301_v45, %v950_v35  ;;  %v1122_v38 = vadd.f32 %v2301_v45, %v1121_v36  ;;  %1508 = vst [vmem:[%s2046_s7 + $0x2b8] sm:$0xff] %v1283_v33 }
 0x1b1   : > { %1453 = vst [vmem:[%s2046_s7 + $0x100] sm:$0xff] %v1228_v34 }
 0x1b2   : > { %v1339_v41 = vmax.f32 %v951_v37, 0.0  ;;  %v1396_v42 = vmax.f32 %v1122_v38, 0.0 }
 0x1b3   : > { %v785_v43 = vpop.f32.mrf.mxu1  ;;  %v620_v46 = vpop.f32.mrf.mxu0 }
 0x1b4   : > { %1564 = vst [vmem:[%s2046_s7 + $0x478] sm:$0xff] %v1339_v41  ;;  %1000 = vmatmul.f32.gmra.mxu2 %v419_v39  ;;  %1171 = vmatmul.f32.gmra.mxu3 %v476_v40  ;;  %v786_v48 = vadd.f32 %v2301_v45, %v785_v43  ;;  %v621_v49 = vadd.f32 %v2301_v45, %v620_v46  ;;  %v423_v40 = vld [vmem:[%s1961_s26 + $0x520] sm:$0xff]  ;;  %v480_v41 = vld [vmem:[%s1961_s26 + $0x6e8] sm:$0xff] }
 0x1b5   : > { %1621 = vst [vmem:[%s2046_s7 + $0x640] sm:$0xff] %v1396_v42  ;;  %v367_v46 = vld [vmem:[%s1961_s26 + $0x360] sm:$0xff] }
 0x1b6   : > { %v1284_v50 = vmax.f32 %v786_v48, 0.0  ;;  %832 = vmatmul.f32.gmra.mxu1 %v363_v44  ;;  %v1229_v51 = vmax.f32 %v621_v49, 0.0  ;;  %667 = vmatmul.f32.gmra.mxu0 %v308_v47  ;;  %v312_v48 = vld [vmem:[%s1961_s26 + $0x1a8] sm:$0xff] }
 0x1b7   : > { %v953_v18 = vpop.f32.mrf.mxu2  ;;  %v1124_v52 = vpop.f32.mrf.mxu3 }
 0x1b8   : > { %v954_v53 = vadd.f32 %v2301_v45, %v953_v18  ;;  %v1125_v54 = vadd.f32 %v2301_v45, %v1124_v52  ;;  %1509 = vst [vmem:[%s2046_s7 + $0x2c0] sm:$0xff] %v1284_v50 }
 0x1b9   : > { %1454 = vst [vmem:[%s2046_s7 + $0x108] sm:$0xff] %v1229_v51 }
 0x1ba   : > { %v1340_v57 = vmax.f32 %v954_v53, 0.0  ;;  %v1397_v58 = vmax.f32 %v1125_v54, 0.0 }
 0x1bb   : > { %v788_v59 = vpop.f32.mrf.mxu1  ;;  %v623_v61 = vpop.f32.mrf.mxu0 }
 0x1bc   : > { %1565 = vst [vmem:[%s2046_s7 + $0x480] sm:$0xff] %v1340_v57  ;;  %1003 = vmatmul.f32.gmra.mxu2 %v420_v55  ;;  %1174 = vmatmul.f32.gmra.mxu3 %v477_v56  ;;  %v789_v63 = vadd.f32 %v2301_v45, %v788_v59  ;;  %v624_v0 = vadd.f32 %v2301_v45, %v623_v61  ;;  %v424_v56 = vld [vmem:[%s1961_s26 + $0x528] sm:$0xff]  ;;  %v481_v57 = vld [vmem:[%s1961_s26 + $0x6f0] sm:$0xff] }
 0x1bd   : > { %1622 = vst [vmem:[%s2046_s7 + $0x648] sm:$0xff] %v1397_v58  ;;  %v368_v61 = vld [vmem:[%s1961_s26 + $0x368] sm:$0xff] }
 0x1be   : > { %v1285_v1 = vmax.f32 %v789_v63, 0.0  ;;  %835 = vmatmul.f32.gmra.mxu1 %v364_v60  ;;  %v1230_v2 = vmax.f32 %v624_v0, 0.0  ;;  %670 = vmatmul.f32.gmra.mxu0 %v309_v62  ;;  %v313_v63 = vld [vmem:[%s1961_s26 + $0x1b0] sm:$0xff] }
 0x1bf   : > { %v956_v3 = vpop.f32.mrf.mxu2  ;;  %v1127_v4 = vpop.f32.mrf.mxu3 }
 0x1c0   : > { %v957_v5 = vadd.f32 %v2301_v45, %v956_v3  ;;  %v1128_v6 = vadd.f32 %v2301_v45, %v1127_v4  ;;  %1510 = vst [vmem:[%s2046_s7 + $0x2c8] sm:$0xff] %v1285_v1 }
 0x1c1   : > { %1455 = vst [vmem:[%s2046_s7 + $0x110] sm:$0xff] %v1230_v2 }
 0x1c2   : > { %v1341_v9 = vmax.f32 %v957_v5, 0.0  ;;  %v1398_v10 = vmax.f32 %v1128_v6, 0.0 }
 0x1c3   : > { %v791_v11 = vpop.f32.mrf.mxu1  ;;  %v626_v13 = vpop.f32.mrf.mxu0 }
 0x1c4   : > { %1566 = vst [vmem:[%s2046_s7 + $0x488] sm:$0xff] %v1341_v9  ;;  %1006 = vmatmul.f32.gmra.mxu2 %v421_v7  ;;  %1177 = vmatmul.f32.gmra.mxu3 %v478_v8  ;;  %v792_v15 = vadd.f32 %v2301_v45, %v791_v11  ;;  %v627_v16 = vadd.f32 %v2301_v45, %v626_v13  ;;  %v425_v8 = vld [vmem:[%s1961_s26 + $0x530] sm:$0xff]  ;;  %v482_v9 = vld [vmem:[%s1961_s26 + $0x6f8] sm:$0xff] }
 0x1c5   : > { %1623 = vst [vmem:[%s2046_s7 + $0x650] sm:$0xff] %v1398_v10  ;;  %v369_v13 = vld [vmem:[%s1961_s26 + $0x370] sm:$0xff] }
 0x1c6   : > { %v1286_v17 = vmax.f32 %v792_v15, 0.0  ;;  %838 = vmatmul.f32.gmra.mxu1 %v365_v12  ;;  %v1231_v19 = vmax.f32 %v627_v16, 0.0  ;;  %673 = vmatmul.f32.gmra.mxu0 %v310_v14 }
 0x1c7   : > { %v959_v20 = vpop.f32.mrf.mxu2  ;;  %v1130_v21 = vpop.f32.mrf.mxu3 }
 0x1c8   : > { %v960_v22 = vadd.f32 %v2301_v45, %v959_v20  ;;  %v1131_v23 = vadd.f32 %v2301_v45, %v1130_v21  ;;  %1511 = vst [vmem:[%s2046_s7 + $0x2d0] sm:$0xff] %v1286_v17 }
 0x1c9   : > { %1456 = vst [vmem:[%s2046_s7 + $0x118] sm:$0xff] %v1231_v19 }
 0x1ca   : > { %v1342_v26 = vmax.f32 %v960_v22, 0.0  ;;  %v1399_v27 = vmax.f32 %v1131_v23, 0.0 }
 0x1cb   : > { %v794_v28 = vpop.f32.mrf.mxu1  ;;  %v629_v30 = vpop.f32.mrf.mxu0 }
 0x1cc   : > { %1567 = vst [vmem:[%s2046_s7 + $0x490] sm:$0xff] %v1342_v26  ;;  %1009 = vmatmul.f32.gmra.mxu2 %v422_v24  ;;  %1180 = vmatmul.f32.gmra.mxu3 %v479_v25  ;;  %v795_v32 = vadd.f32 %v2301_v45, %v794_v28  ;;  %v630_v33 = vadd.f32 %v2301_v45, %v629_v30  ;;  %v426_v24 = vld [vmem:[%s1961_s26 + $0x538] sm:$0xff]  ;;  %v483_v25 = vld [vmem:[%s1961_s26 + $0x700] sm:$0xff] }
 0x1cd   : > { %1624 = vst [vmem:[%s2046_s7 + $0x658] sm:$0xff] %v1399_v27 }
 0x1ce   : > { %v1287_v34 = vmax.f32 %v795_v32, 0.0  ;;  %841 = vmatmul.f32.gmra.mxu1 %v366_v29  ;;  %v1232_v35 = vmax.f32 %v630_v33, 0.0  ;;  %676 = vmatmul.f32.gmra.mxu0 %v311_v31 }
 0x1cf   : > { %v962_v36 = vpop.f32.mrf.mxu2  ;;  %v1133_v37 = vpop.f32.mrf.mxu3 }
 0x1d0   : > { %v963_v38 = vadd.f32 %v2301_v45, %v962_v36  ;;  %v1134_v39 = vadd.f32 %v2301_v45, %v1133_v37  ;;  %1512 = vst [vmem:[%s2046_s7 + $0x2d8] sm:$0xff] %v1287_v34 }
 0x1d1   : > { %1457 = vst [vmem:[%s2046_s7 + $0x120] sm:$0xff] %v1232_v35 }
 0x1d2   : > { %v1343_v42 = vmax.f32 %v963_v38, 0.0  ;;  %v1400_v43 = vmax.f32 %v1134_v39, 0.0 }
 0x1d3   : > { %v797_v44 = vpop.f32.mrf.mxu1  ;;  %v632_v47 = vpop.f32.mrf.mxu0 }
 0x1d4   : > { %1568 = vst [vmem:[%s2046_s7 + $0x498] sm:$0xff] %v1343_v42  ;;  %1012 = vmatmul.f32.gmra.mxu2 %v423_v40  ;;  %1183 = vmatmul.f32.gmra.mxu3 %v480_v41  ;;  %v798_v49 = vadd.f32 %v2301_v45, %v797_v44  ;;  %v633_v50 = vadd.f32 %v2301_v45, %v632_v47 }
 0x1d5   : > { %1625 = vst [vmem:[%s2046_s7 + $0x660] sm:$0xff] %v1400_v43 }
 0x1d6   : > { %v1288_v51 = vmax.f32 %v798_v49, 0.0  ;;  %844 = vmatmul.f32.gmra.mxu1 %v367_v46  ;;  %v1233_v18 = vmax.f32 %v633_v50, 0.0  ;;  %679 = vmatmul.f32.gmra.mxu0 %v312_v48 }
 0x1d7   : > { %v965_v52 = vpop.f32.mrf.mxu2  ;;  %v1136_v53 = vpop.f32.mrf.mxu3 }
 0x1d8   : > { %v966_v54 = vadd.f32 %v2301_v45, %v965_v52  ;;  %v1137_v55 = vadd.f32 %v2301_v45, %v1136_v53  ;;  %1513 = vst [vmem:[%s2046_s7 + $0x2e0] sm:$0xff] %v1288_v51 }
 0x1d9   : > { %1458 = vst [vmem:[%s2046_s7 + $0x128] sm:$0xff] %v1233_v18 }
 0x1da   : > { %v1344_v58 = vmax.f32 %v966_v54, 0.0  ;;  %v1401_v59 = vmax.f32 %v1137_v55, 0.0 }
 0x1db   : > { %v800_v60 = vpop.f32.mrf.mxu1  ;;  %v635_v62 = vpop.f32.mrf.mxu0 }
 0x1dc   : > { %1569 = vst [vmem:[%s2046_s7 + $0x4a0] sm:$0xff] %v1344_v58  ;;  %1015 = vmatmul.f32.gmra.mxu2 %v424_v56  ;;  %1186 = vmatmul.f32.gmra.mxu3 %v481_v57  ;;  %v801_v0 = vadd.f32 %v2301_v45, %v800_v60  ;;  %v636_v1 = vadd.f32 %v2301_v45, %v635_v62 }
 0x1dd   : > { %1626 = vst [vmem:[%s2046_s7 + $0x668] sm:$0xff] %v1401_v59 }
 0x1de   : > { %v1289_v2 = vmax.f32 %v801_v0, 0.0  ;;  %847 = vmatmul.f32.gmra.mxu1 %v368_v61  ;;  %v1234_v3 = vmax.f32 %v636_v1, 0.0  ;;  %682 = vmatmul.f32.gmra.mxu0 %v313_v63 }
 0x1df   : > { %v968_v4 = vpop.f32.mrf.mxu2  ;;  %v1139_v5 = vpop.f32.mrf.mxu3 }
 0x1e0   : > { %v969_v6 = vadd.f32 %v2301_v45, %v968_v4  ;;  %v1140_v7 = vadd.f32 %v2301_v45, %v1139_v5  ;;  %1514 = vst [vmem:[%s2046_s7 + $0x2e8] sm:$0xff] %v1289_v2 }
 0x1e1   : > { %1459 = vst [vmem:[%s2046_s7 + $0x130] sm:$0xff] %v1234_v3 }
 0x1e2   : > { %v1345_v10 = vmax.f32 %v969_v6, 0.0  ;;  %v1402_v11 = vmax.f32 %v1140_v7, 0.0 }
 0x1e3   : > { %v803_v12 = vpop.f32.mrf.mxu1  ;;  %v638_v14 = vpop.f32.mrf.mxu0 }
 0x1e4   : > { %1570 = vst [vmem:[%s2046_s7 + $0x4a8] sm:$0xff] %v1345_v10  ;;  %1018 = vmatmul.f32.gmra.mxu2 %v425_v8  ;;  %1189 = vmatmul.f32.gmra.mxu3 %v482_v9  ;;  %v804_v15 = vadd.f32 %v2301_v45, %v803_v12  ;;  %v639_v16 = vadd.f32 %v2301_v45, %v638_v14  ;;  %v2562_v14 = vld [vmem:[%s2674_s2] ss:$0 sm:$0xff] }
 0x1e5   : > { %1627 = vst [vmem:[%s2046_s7 + $0x670] sm:$0xff] %v1402_v11 }
 0x1e6   : > { %v1290_v17 = vmax.f32 %v804_v15, 0.0  ;;  %850 = vmatmul.f32.gmra.mxu1 %v369_v13  ;;  %v1235_v19 = vmax.f32 %v639_v16, 0.0 }
 0x1e7   : > { %v971_v20 = vpop.f32.mrf.mxu2  ;;  %v1142_v21 = vpop.f32.mrf.mxu3 }
 0x1e8   : > { %v972_v22 = vadd.f32 %v2301_v45, %v971_v20  ;;  %v1143_v23 = vadd.f32 %v2301_v45, %v1142_v21  ;;  %1515 = vst [vmem:[%s2046_s7 + $0x2f0] sm:$0xff] %v1290_v17 }
 0x1e9   : > { %1460 = vst [vmem:[%s2046_s7 + $0x138] sm:$0xff] %v1235_v19 }
 0x1ea   : > { %v1346_v26 = vmax.f32 %v972_v22, 0.0  ;;  %v1403_v27 = vmax.f32 %v1143_v23, 0.0 }
 0x1eb   : > { %v806_v28 = vpop.f32.mrf.mxu1  ;;  %v641_v29 = vpop.f32.mrf.mxu0 }
 0x1ec   : > { %1571 = vst [vmem:[%s2046_s7 + $0x4b0] sm:$0xff] %v1346_v26  ;;  %1021 = vmatmul.f32.gmra.mxu2 %v426_v24  ;;  %1192 = vmatmul.f32.gmra.mxu3 %v483_v25  ;;  %v807_v30 = vadd.f32 %v2301_v45, %v806_v28  ;;  %v642_v31 = vadd.f32 %v2301_v45, %v641_v29 }
 0x1ed   : > { %1628 = vst [vmem:[%s2046_s7 + $0x678] sm:$0xff] %v1403_v27 }
 0x1ee   : > { %v1291_v32 = vmax.f32 %v807_v30, 0.0  ;;  %v1236_v33 = vmax.f32 %v642_v31, 0.0 }
 0x1ef   : > { %v974_v34 = vpop.f32.mrf.mxu2  ;;  %v1145_v35 = vpop.f32.mrf.mxu3 }
 0x1f0   : > { %v975_v36 = vadd.f32 %v2301_v45, %v974_v34  ;;  %v1146_v37 = vadd.f32 %v2301_v45, %v1145_v35  ;;  %1516 = vst [vmem:[%s2046_s7 + $0x2f8] sm:$0xff] %v1291_v32 }
 0x1f1   : > { %1461 = vst [vmem:[%s2046_s7 + $0x140] sm:$0xff] %v1236_v33 }
 0x1f2   : > { %v1347_v38 = vmax.f32 %v975_v36, 0.0  ;;  %v1404_v39 = vmax.f32 %v1146_v37, 0.0 }
 0x1f3   : > { %v809_v40 = vpop.f32.mrf.mxu1  ;;  %v644_v41 = vpop.f32.mrf.mxu0 }
 0x1f4   : > { %1572 = vst [vmem:[%s2046_s7 + $0x4b8] sm:$0xff] %v1347_v38  ;;  %v810_v42 = vadd.f32 %v2301_v45, %v809_v40  ;;  %v645_v43 = vadd.f32 %v2301_v45, %v644_v41 }
 0x1f5   : > { %1629 = vst [vmem:[%s2046_s7 + $0x680] sm:$0xff] %v1404_v39 }
 0x1f6   : > { %v1292_v44 = vmax.f32 %v810_v42, 0.0  ;;  %v1237_v46 = vmax.f32 %v645_v43, 0.0 }
 0x1f7   : > { %v977_v47 = vpop.f32.mrf.mxu2  ;;  %v1148_v48 = vpop.f32.mrf.mxu3 }
 0x1f8   : > { %v978_v49 = vadd.f32 %v2301_v45, %v977_v47  ;;  %v1149_v50 = vadd.f32 %v2301_v45, %v1148_v48  ;;  %1517 = vst [vmem:[%s2046_s7 + $0x300] sm:$0xff] %v1292_v44 }
 0x1f9   : > { %1462 = vst [vmem:[%s2046_s7 + $0x148] sm:$0xff] %v1237_v46 }
 0x1fa   : > { %v1348_v51 = vmax.f32 %v978_v49, 0.0  ;;  %v1405_v18 = vmax.f32 %v1149_v50, 0.0 }
 0x1fb   : > { %v812_v52 = vpop.f32.mrf.mxu1  ;;  %v647_v53 = vpop.f32.mrf.mxu0 }
 0x1fc   : > { %1573 = vst [vmem:[%s2046_s7 + $0x4c0] sm:$0xff] %v1348_v51  ;;  %v813_v54 = vadd.f32 %v2301_v45, %v812_v52  ;;  %v648_v55 = vadd.f32 %v2301_v45, %v647_v53 }
 0x1fd   : > { %1630 = vst [vmem:[%s2046_s7 + $0x688] sm:$0xff] %v1405_v18 }
 0x1fe   : > { %v1293_v56 = vmax.f32 %v813_v54, 0.0  ;;  %v1238_v57 = vmax.f32 %v648_v55, 0.0 }
 0x1ff   : > { %v980_v58 = vpop.f32.mrf.mxu2  ;;  %v1151_v59 = vpop.f32.mrf.mxu3 }
 0x200   : > { %v981_v60 = vadd.f32 %v2301_v45, %v980_v58  ;;  %v1152_v61 = vadd.f32 %v2301_v45, %v1151_v59  ;;  %1518 = vst [vmem:[%s2046_s7 + $0x308] sm:$0xff] %v1293_v56 }
 0x201   : > { %1463 = vst [vmem:[%s2046_s7 + $0x150] sm:$0xff] %v1238_v57 }
 0x202   : > { %v1349_v62 = vmax.f32 %v981_v60, 0.0  ;;  %v1406_v63 = vmax.f32 %v1152_v61, 0.0 }
 0x203   : > { %v815_v0 = vpop.f32.mrf.mxu1  ;;  %v650_v1 = vpop.f32.mrf.mxu0 }
 0x204   : > { %1574 = vst [vmem:[%s2046_s7 + $0x4c8] sm:$0xff] %v1349_v62  ;;  %v816_v2 = vadd.f32 %v2301_v45, %v815_v0  ;;  %v651_v3 = vadd.f32 %v2301_v45, %v650_v1 }
 0x205   : > { %1631 = vst [vmem:[%s2046_s7 + $0x690] sm:$0xff] %v1406_v63 }
 0x206   : > { %v1294_v4 = vmax.f32 %v816_v2, 0.0  ;;  %v1239_v5 = vmax.f32 %v651_v3, 0.0 }
 0x207   : > { %v983_v6 = vpop.f32.mrf.mxu2  ;;  %v1154_v7 = vpop.f32.mrf.mxu3 }
 0x208   : > { %v984_v8 = vadd.f32 %v2301_v45, %v983_v6  ;;  %v1155_v9 = vadd.f32 %v2301_v45, %v1154_v7  ;;  %1519 = vst [vmem:[%s2046_s7 + $0x310] sm:$0xff] %v1294_v4 }
 0x209   : > { %1464 = vst [vmem:[%s2046_s7 + $0x158] sm:$0xff] %v1239_v5 }
 0x20a   : > { %v1350_v10 = vmax.f32 %v984_v8, 0.0  ;;  %v1407_v11 = vmax.f32 %v1155_v9, 0.0 }
 0x20b   : > { %v818_v12 = vpop.f32.mrf.mxu1  ;;  %v653_v13 = vpop.f32.mrf.mxu0 }
 0x20c   : > { %1575 = vst [vmem:[%s2046_s7 + $0x4d0] sm:$0xff] %v1350_v10  ;;  %v819_v15 = vadd.f32 %v2562_v14, %v818_v12  ;;  %v654_v16 = vadd.f32 %v2562_v14, %v653_v13 }
 0x20d   : > { %1632 = vst [vmem:[%s2046_s7 + $0x698] sm:$0xff] %v1407_v11 }
 0x20e   : > { %v1295_v45 = vmax.f32 %v819_v15, 0.0  ;;  %v1240_v17 = vmax.f32 %v654_v16, 0.0 }
 0x20f   : > { %v986_v19 = vpop.f32.mrf.mxu2  ;;  %v1157_v20 = vpop.f32.mrf.mxu3 }
 0x210   : > { %v987_v21 = vadd.f32 %v2562_v14, %v986_v19  ;;  %v1158_v22 = vadd.f32 %v2562_v14, %v1157_v20  ;;  %1520 = vst [vmem:[%s2046_s7 + $0x318] sm:$0xff] %v1295_v45 }
 0x211   : > { %1465 = vst [vmem:[%s2046_s7 + $0x160] sm:$0xff] %v1240_v17 }
 0x212   : > { %v1351_v23 = vmax.f32 %v987_v21, 0.0  ;;  %v1408_v24 = vmax.f32 %v1158_v22, 0.0 }
 0x213   : > { %v821_v25 = vpop.f32.mrf.mxu1  ;;  %v656_v26 = vpop.f32.mrf.mxu0 }
 0x214   : > { %1576 = vst [vmem:[%s2046_s7 + $0x4d8] sm:$0xff] %v1351_v23  ;;  %v822_v27 = vadd.f32 %v2562_v14, %v821_v25  ;;  %v657_v28 = vadd.f32 %v2562_v14, %v656_v26 }
 0x215   : > { %1633 = vst [vmem:[%s2046_s7 + $0x6a0] sm:$0xff] %v1408_v24 }
 0x216   : > { %v1296_v29 = vmax.f32 %v822_v27, 0.0  ;;  %v1241_v30 = vmax.f32 %v657_v28, 0.0 }
 0x217   : > { %v989_v31 = vpop.f32.mrf.mxu2  ;;  %v1160_v32 = vpop.f32.mrf.mxu3 }
 0x218   : > { %v990_v33 = vadd.f32 %v2562_v14, %v989_v31  ;;  %v1161_v34 = vadd.f32 %v2562_v14, %v1160_v32  ;;  %1521 = vst [vmem:[%s2046_s7 + $0x320] sm:$0xff] %v1296_v29 }
 0x219   : > { %1466 = vst [vmem:[%s2046_s7 + $0x168] sm:$0xff] %v1241_v30 }
 0x21a   : > { %v1352_v35 = vmax.f32 %v990_v33, 0.0  ;;  %v1409_v36 = vmax.f32 %v1161_v34, 0.0 }
 0x21b   : > { %v824_v37 = vpop.f32.mrf.mxu1  ;;  %v659_v38 = vpop.f32.mrf.mxu0 }
 0x21c   : > { %1577 = vst [vmem:[%s2046_s7 + $0x4e0] sm:$0xff] %v1352_v35  ;;  %v825_v39 = vadd.f32 %v2562_v14, %v824_v37  ;;  %v660_v40 = vadd.f32 %v2562_v14, %v659_v38 }
 0x21d   : > { %1634 = vst [vmem:[%s2046_s7 + $0x6a8] sm:$0xff] %v1409_v36 }
 0x21e   : > { %v1297_v41 = vmax.f32 %v825_v39, 0.0  ;;  %v1242_v42 = vmax.f32 %v660_v40, 0.0 }
 0x21f   : > { %v992_v43 = vpop.f32.mrf.mxu2  ;;  %v1163_v44 = vpop.f32.mrf.mxu3 }
 0x220   : > { %v993_v46 = vadd.f32 %v2562_v14, %v992_v43  ;;  %v1164_v47 = vadd.f32 %v2562_v14, %v1163_v44  ;;  %1522 = vst [vmem:[%s2046_s7 + $0x328] sm:$0xff] %v1297_v41 }
 0x221   : > { %1467 = vst [vmem:[%s2046_s7 + $0x170] sm:$0xff] %v1242_v42 }
 0x222   : > { %v1353_v48 = vmax.f32 %v993_v46, 0.0  ;;  %v1410_v49 = vmax.f32 %v1164_v47, 0.0 }
 0x223   : > { %v827_v50 = vpop.f32.mrf.mxu1  ;;  %v662_v51 = vpop.f32.mrf.mxu0 }
 0x224   : > { %1578 = vst [vmem:[%s2046_s7 + $0x4e8] sm:$0xff] %v1353_v48  ;;  %v828_v18 = vadd.f32 %v2562_v14, %v827_v50  ;;  %v663_v52 = vadd.f32 %v2562_v14, %v662_v51 }
 0x225   : > { %1635 = vst [vmem:[%s2046_s7 + $0x6b0] sm:$0xff] %v1410_v49 }
 0x226   : > { %v1298_v53 = vmax.f32 %v828_v18, 0.0  ;;  %v1243_v54 = vmax.f32 %v663_v52, 0.0 }
 0x227   : > { %v995_v55 = vpop.f32.mrf.mxu2  ;;  %v1166_v56 = vpop.f32.mrf.mxu3 }
 0x228   : > { %v996_v57 = vadd.f32 %v2562_v14, %v995_v55  ;;  %v1167_v58 = vadd.f32 %v2562_v14, %v1166_v56  ;;  %1523 = vst [vmem:[%s2046_s7 + $0x330] sm:$0xff] %v1298_v53 }
 0x229   : > { %1468 = vst [vmem:[%s2046_s7 + $0x178] sm:$0xff] %v1243_v54 }
 0x22a   : > { %v1354_v59 = vmax.f32 %v996_v57, 0.0  ;;  %v1411_v60 = vmax.f32 %v1167_v58, 0.0 }
 0x22b   : > { %v830_v61 = vpop.f32.mrf.mxu1  ;;  %v665_v62 = vpop.f32.mrf.mxu0 }
 0x22c   : > { %1579 = vst [vmem:[%s2046_s7 + $0x4f0] sm:$0xff] %v1354_v59  ;;  %v831_v63 = vadd.f32 %v2562_v14, %v830_v61  ;;  %v666_v0 = vadd.f32 %v2562_v14, %v665_v62 }
 0x22d   : > { %1636 = vst [vmem:[%s2046_s7 + $0x6b8] sm:$0xff] %v1411_v60 }
 0x22e   : > { %v1299_v1 = vmax.f32 %v831_v63, 0.0  ;;  %v1244_v2 = vmax.f32 %v666_v0, 0.0 }
 0x22f   : > { %v998_v3 = vpop.f32.mrf.mxu2  ;;  %v1169_v4 = vpop.f32.mrf.mxu3 }
 0x230   : > { %v999_v5 = vadd.f32 %v2562_v14, %v998_v3  ;;  %v1170_v6 = vadd.f32 %v2562_v14, %v1169_v4  ;;  %1524 = vst [vmem:[%s2046_s7 + $0x338] sm:$0xff] %v1299_v1 }
 0x231   : > { %1469 = vst [vmem:[%s2046_s7 + $0x180] sm:$0xff] %v1244_v2 }
 0x232   : > { %v1355_v7 = vmax.f32 %v999_v5, 0.0  ;;  %v1412_v8 = vmax.f32 %v1170_v6, 0.0 }
 0x233   : > { %v833_v9 = vpop.f32.mrf.mxu1  ;;  %v668_v10 = vpop.f32.mrf.mxu0 }
 0x234   : > { %1580 = vst [vmem:[%s2046_s7 + $0x4f8] sm:$0xff] %v1355_v7  ;;  %v834_v11 = vadd.f32 %v2562_v14, %v833_v9  ;;  %v669_v12 = vadd.f32 %v2562_v14, %v668_v10 }
 0x235   : > { %1637 = vst [vmem:[%s2046_s7 + $0x6c0] sm:$0xff] %v1412_v8 }
 0x236   : > { %v1300_v13 = vmax.f32 %v834_v11, 0.0  ;;  %v1245_v15 = vmax.f32 %v669_v12, 0.0 }
 0x237   : > { %v1001_v16 = vpop.f32.mrf.mxu2  ;;  %v1172_v45 = vpop.f32.mrf.mxu3 }
 0x238   : > { %v1002_v17 = vadd.f32 %v2562_v14, %v1001_v16  ;;  %v1173_v19 = vadd.f32 %v2562_v14, %v1172_v45  ;;  %1525 = vst [vmem:[%s2046_s7 + $0x340] sm:$0xff] %v1300_v13 }
 0x239   : > { %1470 = vst [vmem:[%s2046_s7 + $0x188] sm:$0xff] %v1245_v15 }
 0x23a   : > { %v1356_v20 = vmax.f32 %v1002_v17, 0.0  ;;  %v1413_v21 = vmax.f32 %v1173_v19, 0.0 }
 0x23b   : > { %v836_v22 = vpop.f32.mrf.mxu1  ;;  %v671_v23 = vpop.f32.mrf.mxu0 }
 0x23c   : > { %1581 = vst [vmem:[%s2046_s7 + $0x500] sm:$0xff] %v1356_v20  ;;  %v837_v24 = vadd.f32 %v2562_v14, %v836_v22  ;;  %v672_v25 = vadd.f32 %v2562_v14, %v671_v23 }
 0x23d   : > { %1638 = vst [vmem:[%s2046_s7 + $0x6c8] sm:$0xff] %v1413_v21 }
 0x23e   : > { %v1301_v26 = vmax.f32 %v837_v24, 0.0  ;;  %v1246_v27 = vmax.f32 %v672_v25, 0.0 }
 0x23f   : > { %v1004_v28 = vpop.f32.mrf.mxu2  ;;  %v1175_v29 = vpop.f32.mrf.mxu3 }
 0x240   : > { %v1005_v30 = vadd.f32 %v2562_v14, %v1004_v28  ;;  %v1176_v31 = vadd.f32 %v2562_v14, %v1175_v29  ;;  %1526 = vst [vmem:[%s2046_s7 + $0x348] sm:$0xff] %v1301_v26 }
 0x241   : > { %1471 = vst [vmem:[%s2046_s7 + $0x190] sm:$0xff] %v1246_v27 }
 0x242   : > { %v1357_v32 = vmax.f32 %v1005_v30, 0.0  ;;  %v1414_v33 = vmax.f32 %v1176_v31, 0.0 }
 0x243   : > { %v839_v34 = vpop.f32.mrf.mxu1  ;;  %v674_v35 = vpop.f32.mrf.mxu0 }
 0x244   : > { %1582 = vst [vmem:[%s2046_s7 + $0x508] sm:$0xff] %v1357_v32  ;;  %v840_v36 = vadd.f32 %v2562_v14, %v839_v34  ;;  %v675_v37 = vadd.f32 %v2562_v14, %v674_v35 }
 0x245   : > { %1639 = vst [vmem:[%s2046_s7 + $0x6d0] sm:$0xff] %v1414_v33 }
 0x246   : > { %v1302_v38 = vmax.f32 %v840_v36, 0.0  ;;  %v1247_v39 = vmax.f32 %v675_v37, 0.0 }
 0x247   : > { %v1007_v40 = vpop.f32.mrf.mxu2  ;;  %v1178_v41 = vpop.f32.mrf.mxu3 }
 0x248   : > { %v1008_v42 = vadd.f32 %v2562_v14, %v1007_v40  ;;  %v1179_v43 = vadd.f32 %v2562_v14, %v1178_v41  ;;  %1527 = vst [vmem:[%s2046_s7 + $0x350] sm:$0xff] %v1302_v38 }
 0x249   : > { %1472 = vst [vmem:[%s2046_s7 + $0x198] sm:$0xff] %v1247_v39 }
 0x24a   : > { %v1358_v44 = vmax.f32 %v1008_v42, 0.0  ;;  %v1415_v46 = vmax.f32 %v1179_v43, 0.0 }
 0x24b   : > { %v842_v47 = vpop.f32.mrf.mxu1  ;;  %v677_v48 = vpop.f32.mrf.mxu0 }
 0x24c   : > { %1583 = vst [vmem:[%s2046_s7 + $0x510] sm:$0xff] %v1358_v44  ;;  %v843_v49 = vadd.f32 %v2562_v14, %v842_v47  ;;  %v678_v50 = vadd.f32 %v2562_v14, %v677_v48 }
 0x24d   : > { %1640 = vst [vmem:[%s2046_s7 + $0x6d8] sm:$0xff] %v1415_v46 }
 0x24e   : > { %v1303_v51 = vmax.f32 %v843_v49, 0.0  ;;  %v1248_v18 = vmax.f32 %v678_v50, 0.0 }
 0x24f   : > { %v1010_v52 = vpop.f32.mrf.mxu2  ;;  %v1181_v53 = vpop.f32.mrf.mxu3 }
 0x250   : > { %v1011_v54 = vadd.f32 %v2562_v14, %v1010_v52  ;;  %v1182_v55 = vadd.f32 %v2562_v14, %v1181_v53  ;;  %1528 = vst [vmem:[%s2046_s7 + $0x358] sm:$0xff] %v1303_v51 }
 0x251   : > { %1473 = vst [vmem:[%s2046_s7 + $0x1a0] sm:$0xff] %v1248_v18 }
 0x252   : > { %v1359_v56 = vmax.f32 %v1011_v54, 0.0  ;;  %v1416_v57 = vmax.f32 %v1182_v55, 0.0 }
 0x253   : > { %v845_v58 = vpop.f32.mrf.mxu1  ;;  %v680_v59 = vpop.f32.mrf.mxu0 }
 0x254   : > { %1584 = vst [vmem:[%s2046_s7 + $0x518] sm:$0xff] %v1359_v56  ;;  %v846_v60 = vadd.f32 %v2562_v14, %v845_v58  ;;  %v681_v61 = vadd.f32 %v2562_v14, %v680_v59 }
 0x255   : > { %1641 = vst [vmem:[%s2046_s7 + $0x6e0] sm:$0xff] %v1416_v57 }
 0x256   : > { %v1304_v62 = vmax.f32 %v846_v60, 0.0  ;;  %v1249_v63 = vmax.f32 %v681_v61, 0.0 }
 0x257   : > { %v1013_v0 = vpop.f32.mrf.mxu2  ;;  %v1184_v1 = vpop.f32.mrf.mxu3 }
 0x258   : > { %v1014_v2 = vadd.f32 %v2562_v14, %v1013_v0  ;;  %v1185_v3 = vadd.f32 %v2562_v14, %v1184_v1  ;;  %1529 = vst [vmem:[%s2046_s7 + $0x360] sm:$0xff] %v1304_v62 }
 0x259   : > { %1474 = vst [vmem:[%s2046_s7 + $0x1a8] sm:$0xff] %v1249_v63 }
 0x25a   : > { %v1360_v4 = vmax.f32 %v1014_v2, 0.0  ;;  %v1417_v5 = vmax.f32 %v1185_v3, 0.0 }
 0x25b   : > { %v848_v6 = vpop.f32.mrf.mxu1  ;;  %v683_v7 = vpop.f32.mrf.mxu0 }
 0x25c   : > { %1585 = vst [vmem:[%s2046_s7 + $0x520] sm:$0xff] %v1360_v4  ;;  %v849_v8 = vadd.f32 %v2562_v14, %v848_v6  ;;  %v684_v9 = vadd.f32 %v2562_v14, %v683_v7 }
 0x25d   : > { %1642 = vst [vmem:[%s2046_s7 + $0x6e8] sm:$0xff] %v1417_v5 }
 0x25e   : > { %v1305_v10 = vmax.f32 %v849_v8, 0.0  ;;  %v1250_v11 = vmax.f32 %v684_v9, 0.0 }
 0x25f   : > { %v1016_v12 = vpop.f32.mrf.mxu2  ;;  %v1187_v13 = vpop.f32.mrf.mxu3 }
 0x260   : > { %v1017_v15 = vadd.f32 %v2562_v14, %v1016_v12  ;;  %v1188_v16 = vadd.f32 %v2562_v14, %v1187_v13  ;;  %1530 = vst [vmem:[%s2046_s7 + $0x368] sm:$0xff] %v1305_v10 }
 0x261   : > { %1475 = vst [vmem:[%s2046_s7 + $0x1b0] sm:$0xff] %v1250_v11 }
 0x262   : > { %v1361_v45 = vmax.f32 %v1017_v15, 0.0  ;;  %v1418_v17 = vmax.f32 %v1188_v16, 0.0 }
 0x263   : > { %v851_v19 = vpop.f32.mrf.mxu1 }
 0x264   : > { %1586 = vst [vmem:[%s2046_s7 + $0x528] sm:$0xff] %v1361_v45  ;;  %v852_v20 = vadd.f32 %v2562_v14, %v851_v19 }
 0x265   : > { %1643 = vst [vmem:[%s2046_s7 + $0x6f0] sm:$0xff] %v1418_v17 }
 0x266   : > { %v1306_v21 = vmax.f32 %v852_v20, 0.0 }
 0x267   : > { %v1019_v22 = vpop.f32.mrf.mxu2  ;;  %v1190_v23 = vpop.f32.mrf.mxu3 }
 0x268   : > { %v1020_v24 = vadd.f32 %v2562_v14, %v1019_v22  ;;  %v1191_v25 = vadd.f32 %v2562_v14, %v1190_v23  ;;  %1531 = vst [vmem:[%s2046_s7 + $0x370] sm:$0xff] %v1306_v21 }
 0x26a   : > { %v1362_v26 = vmax.f32 %v1020_v24, 0.0  ;;  %v1419_v27 = vmax.f32 %v1191_v25, 0.0 }
 0x26c   : > { %1587 = vst [vmem:[%s2046_s7 + $0x530] sm:$0xff] %v1362_v26 }
 0x26d   : > { %1644 = vst [vmem:[%s2046_s7 + $0x6f8] sm:$0xff] %v1419_v27 }
 0x26f   : > { %v1022_v28 = vpop.f32.mrf.mxu2  ;;  %v1193_v29 = vpop.f32.mrf.mxu3 }
 0x270   : > { %v1023_v30 = vadd.f32 %v2562_v14, %v1022_v28  ;;  %v1194_v31 = vadd.f32 %v2562_v14, %v1193_v29 }
 0x272   : > { %v1363_v32 = vmax.f32 %v1023_v30, 0.0  ;;  %v1420_v33 = vmax.f32 %v1194_v31, 0.0 }
 0x274   : > { %1588 = vst [vmem:[%s2046_s7 + $0x538] sm:$0xff] %v1363_v32 }
 0x275   : > { %1645 = vst [vmem:[%s2046_s7 + $0x700] sm:$0xff] %v1420_v33 }
 0x276 PF: > { %s13_s14 = sadd.s32 1, %s1865_s14   ;;  %s2676_s12 = smov %s1861_s13 }
 0x277   : > { %p10_p5 = scmp.ge.s32.totalorder %s13_s14, 4   ;;  %s2677_s13 = smov %s2679_s15 }
 0x279   :  { %12 = sbr.rel (!%p10_p5) target bundleno = 2 (0x2), region = 68 }

// kernel: siamese_forward_impl.9
= control target key start
LH: loop header
LB: loop body
LE: loop exit
PB: predicated region body
PF: predicated region fallthrough
CT: control target
= control target key end

     0   :  { %s3937_s12 = smov 0   ;;  %s3939_s13 = smov 0   ;;  %s5356_s0 = inlined_call_operand.vmem [shape: f32[8,7296], index: 0, kind: input, shape index: {}]   ;;  %s5357_s1 = inlined_call_operand.vmem [shape: f32[7296,512], index: 1, kind: input, shape index: {}]   ;;  %s5358_s2 = inlined_call_operand.vmem [shape: f32[1,512], index: 2, kind: input, shape index: {}]   ;;  %s5359_s3 = inlined_call_operand.vmem [shape: f32[8,512], index: 3, kind: output, shape index: {}]  }
   0x1   :  { %s3941_s14 = smov 0   ;;  %s3943_s15 = smov 0  }
   0x2   :  { %s3945_s16 = smov 0   ;;  %s3947_s17 = smov 0  }
   0x3   :  { %s3949_s18 = smov 0  }
   0x4 LB: > { %s25_s19 = sadd.s32 1, %s3890_s16  ;;  %s28_s20 = sadd.s32 1, %s3894_s17  ;;  %s3898_s18 = sphi %s3949_s18, %s13_s18   ;;  %s3894_s17 = sphi %s3947_s17, %s5370_s17   ;;  %s3890_s16 = sphi %s3945_s16, %s5369_s16   ;;  %s3886_s15 = sphi %s3943_s15, %s5368_s15   ;;  %s3882_s14 = sphi %s3941_s14, %s5367_s14   ;;  %s3878_s13 = sphi %s3939_s13, %s5366_s13   ;;  %s3874_s12 = sphi %s3937_s12, %s5365_s12  }
   0x5   : > { %p26_p0 = scmp.ge.s32.totalorder %s25_s19, 3  ;;  %p76_p1 = scmp.ne.s32.totalorder %s3878_s13, %s3874_s12 }
   0x6   : > { %p77_p2 = scmp.eq.s32.totalorder %s3898_s18, 0  ;;  %s69_s24 = sadd.s32 1, %s3878_s13 }
   0x7   : > { %s5372_s19 = smov (%p26_p0, %s25_s19), 0  ;;  %s5374_s20 = smov (!%p26_p0, %s28_s20), %s3894_s17 }
   0x8   : > { %p78_p3 = por %p77_p2, %p76_p1  ;;  %p30_p4 = scmp.ge.s32.totalorder %s5374_s20, 2 }
   0x9   : > { %s64_s21 = ssub.s32 %s3890_s16, %s5372_s19  ;;  %p3702_p6 = scmp.ge.s32.totalorder %s3898_s18, 6 }
   0xa   : > { %s5376_s20 = smov (%p30_p4, %s5374_s20), 0 }
   0xb   : > { %s65_s22 = ssub.s32 %s3894_s17, %s5376_s20  ;;  %156 = sbr.rel (%p3702_p6) target bundleno = 329 (0x149), region = 16 }
   0xc   : > { %s66_s23 = sor.u32 %s65_s22, %s64_s21 }
   0xd   : > { %p67_p5 = scmp.eq.s32.totalorder %s66_s23, 0 }
   0xf   : > { %s3988_s25 = scalar_select %p67_p5, %s3878_s13, %s69_s24  }
  0x10   : > { %172 = sbr.rel (!%p78_p3) target bundleno = 329 (0x149), region = 24  ;;  %s174_s26 = sand.u32 (%p78_p3), 1, %s3878_s13  }
  0x11   : > { %s3992_s27 = smul.u32 (%p78_p3), 4864, %s174_s26  ;;  %s3703_s28 = sshll.u32 (%p78_p3), %s3894_s17, 1 }
  0x12   : > { %s3717_s29 = smul.u32 (%p78_p3), 1216, %s3890_s16  ;;  %s4009_s11 = smov (%p78_p3), 0  }
  0x13   : > { %s176_s8 = scalar_lea.vmem (%p78_p3), [#allocation3], %s3992_s27   ;;  %s4011_s21 = smov (%p78_p3), 0  }
  0x14   : > { %s180_s30 = sadd.s32 (%p78_p3), %s3717_s29, %s3703_s28  ;;  %s5360_s9 = smov (%p78_p3), %s176_s8 }
  0x15   : > { %s3705_s4 = sshll.u32 %s180_s30, 3 }
  0x16   : > { %s3999_s7 = scalar_lea.vmem %s5357_s1, %s3705_s4  }
  0x17   : > { %s5361_s10 = smov %s3999_s7 }
  0x18 LB: >> { %v196_v0 = vld [vmem:[%s3906_s10] sm:$0xff]  ;;  %s804_s22 = sadd.s32 1, %s3910_s11  ;;  %s192_s21 = sadd.s32 1, %s3914_s21   ;;  %s3914_s21 = sphi %s4011_s21, %s192_s21   ;;  %s3910_s11 = sphi %s4009_s11, %s5364_s11   ;;  %s3906_s10 = sphi %s5361_s10, %s5363_s10   ;;  %s3902_s9 = sphi %s5360_s9, %s5362_s9  }
  0x19   : >> { %v198_v1 = vld [vmem:[%s3906_s10 + $0x20] sm:$0xff]  ;;  %197 = vst [vmem:[%s3902_s9] sm:$0xff] %v196_v0  ;;  %p805_p7 = scmp.ge.s32.totalorder %s804_s22, 2  ;;  %p189_p8 = scmp.ge.s32.totalorder %s192_s21, 2  }
  0x1a   : >> { %v200_v2 = vld [vmem:[%s3906_s10 + $0x40] sm:$0xff]  ;;  %199 = vst [vmem:[%s3902_s9 + $0x10] sm:$0xff] %v198_v1 }
  0x1b   : >> { %v202_v3 = vld [vmem:[%s3906_s10 + $0x60] sm:$0xff]  ;;  %201 = vst [vmem:[%s3902_s9 + $0x20] sm:$0xff] %v200_v2  ;;  %s5378_s22 = smov (%p805_p7, %s804_s22), 0 }
  0x1c   : >> { %v204_v4 = vld [vmem:[%s3906_s10 + $0x80] sm:$0xff]  ;;  %203 = vst [vmem:[%s3902_s9 + $0x30] sm:$0xff] %v202_v3  ;;  %s3706_s23 = sshll.u32 %s5378_s22, 3  ;;  %s5364_s11 = smov %s5378_s22 }
  0x1d   : >> { %v206_v5 = vld [vmem:[%s3906_s10 + $0xa0] sm:$0xff]  ;;  %205 = vst [vmem:[%s3902_s9 + $0x40] sm:$0xff] %v204_v4  ;;  %s4385_s24 = scalar_lea.vmem %s3999_s7, %s3706_s23   ;;  %s4389_s26 = scalar_lea.vmem %s176_s8, %s3706_s23 [#allocation3]  }
  0x1e   : >> { %v208_v6 = vld [vmem:[%s3906_s10 + $0xc0] sm:$0xff]  ;;  %207 = vst [vmem:[%s3902_s9 + $0x50] sm:$0xff] %v206_v5 }
  0x1f   : >> { %v210_v7 = vld [vmem:[%s3906_s10 + $0xe0] sm:$0xff]  ;;  %209 = vst [vmem:[%s3902_s9 + $0x60] sm:$0xff] %v208_v6 }
  0x20   : >> { %v212_v8 = vld [vmem:[%s3906_s10 + $0x100] sm:$0xff]  ;;  %211 = vst [vmem:[%s3902_s9 + $0x70] sm:$0xff] %v210_v7 }
  0x21   : >> { %v214_v9 = vld [vmem:[%s3906_s10 + $0x120] sm:$0xff]  ;;  %213 = vst [vmem:[%s3902_s9 + $0x80] sm:$0xff] %v212_v8 }
  0x22   : >> { %v216_v10 = vld [vmem:[%s3906_s10 + $0x140] sm:$0xff]  ;;  %215 = vst [vmem:[%s3902_s9 + $0x90] sm:$0xff] %v214_v9 }
  0x23   : >> { %v218_v11 = vld [vmem:[%s3906_s10 + $0x160] sm:$0xff]  ;;  %217 = vst [vmem:[%s3902_s9 + $0xa0] sm:$0xff] %v216_v10 }
  0x24   : >> { %v220_v12 = vld [vmem:[%s3906_s10 + $0x180] sm:$0xff]  ;;  %219 = vst [vmem:[%s3902_s9 + $0xb0] sm:$0xff] %v218_v11 }
  0x25   : >> { %v222_v13 = vld [vmem:[%s3906_s10 + $0x1a0] sm:$0xff]  ;;  %221 = vst [vmem:[%s3902_s9 + $0xc0] sm:$0xff] %v220_v12 }
  0x26   : >> { %v224_v14 = vld [vmem:[%s3906_s10 + $0x1c0] sm:$0xff]  ;;  %223 = vst [vmem:[%s3902_s9 + $0xd0] sm:$0xff] %v222_v13 }
  0x27   : >> { %v226_v15 = vld [vmem:[%s3906_s10 + $0x1e0] sm:$0xff]  ;;  %225 = vst [vmem:[%s3902_s9 + $0xe0] sm:$0xff] %v224_v14 }
  0x28   : >> { %v228_v16 = vld [vmem:[%s3906_s10 + $0x200] sm:$0xff]  ;;  %227 = vst [vmem:[%s3902_s9 + $0xf0] sm:$0xff] %v226_v15 }
  0x29   : >> { %v230_v17 = vld [vmem:[%s3906_s10 + $0x220] sm:$0xff]  ;;  %229 = vst [vmem:[%s3902_s9 + $0x100] sm:$0xff] %v228_v16 }
  0x2a   : >> { %v232_v18 = vld [vmem:[%s3906_s10 + $0x240] sm:$0xff]  ;;  %231 = vst [vmem:[%s3902_s9 + $0x110] sm:$0xff] %v230_v17 }
  0x2b   : >> { %v234_v19 = vld [vmem:[%s3906_s10 + $0x260] sm:$0xff]  ;;  %233 = vst [vmem:[%s3902_s9 + $0x120] sm:$0xff] %v232_v18 }
  0x2c   : >> { %v236_v20 = vld [vmem:[%s3906_s10 + $0x280] sm:$0xff]  ;;  %235 = vst [vmem:[%s3902_s9 + $0x130] sm:$0xff] %v234_v19 }
  0x2d   : >> { %v238_v21 = vld [vmem:[%s3906_s10 + $0x2a0] sm:$0xff]  ;;  %237 = vst [vmem:[%s3902_s9 + $0x140] sm:$0xff] %v236_v20 }
  0x2e   : >> { %v240_v22 = vld [vmem:[%s3906_s10 + $0x2c0] sm:$0xff]  ;;  %239 = vst [vmem:[%s3902_s9 + $0x150] sm:$0xff] %v238_v21 }
  0x2f   : >> { %v242_v23 = vld [vmem:[%s3906_s10 + $0x2e0] sm:$0xff]  ;;  %241 = vst [vmem:[%s3902_s9 + $0x160] sm:$0xff] %v240_v22 }
  0x30   : >> { %v244_v24 = vld [vmem:[%s3906_s10 + $0x300] sm:$0xff]  ;;  %243 = vst [vmem:[%s3902_s9 + $0x170] sm:$0xff] %v242_v23 }
  0x31   : >> { %v246_v25 = vld [vmem:[%s3906_s10 + $0x320] sm:$0xff]  ;;  %245 = vst [vmem:[%s3902_s9 + $0x180] sm:$0xff] %v244_v24 }
  0x32   : >> { %v248_v26 = vld [vmem:[%s3906_s10 + $0x340] sm:$0xff]  ;;  %247 = vst [vmem:[%s3902_s9 + $0x190] sm:$0xff] %v246_v25 }
  0x33   : >> { %v250_v27 = vld [vmem:[%s3906_s10 + $0x360] sm:$0xff]  ;;  %249 = vst [vmem:[%s3902_s9 + $0x1a0] sm:$0xff] %v248_v26 }
  0x34   : >> { %v252_v28 = vld [vmem:[%s3906_s10 + $0x380] sm:$0xff]  ;;  %251 = vst [vmem:[%s3902_s9 + $0x1b0] sm:$0xff] %v250_v27 }
  0x35   : >> { %v254_v29 = vld [vmem:[%s3906_s10 + $0x3a0] sm:$0xff]  ;;  %253 = vst [vmem:[%s3902_s9 + $0x1c0] sm:$0xff] %v252_v28 }
  0x36   : >> { %v256_v30 = vld [vmem:[%s3906_s10 + $0x3c0] sm:$0xff]  ;;  %255 = vst [vmem:[%s3902_s9 + $0x1d0] sm:$0xff] %v254_v29 }
  0x37   : >> { %v258_v31 = vld [vmem:[%s3906_s10 + $0x3e0] sm:$0xff]  ;;  %257 = vst [vmem:[%s3902_s9 + $0x1e0] sm:$0xff] %v256_v30 }
  0x38   : >> { %v260_v32 = vld [vmem:[%s3906_s10 + $0x400] sm:$0xff]  ;;  %259 = vst [vmem:[%s3902_s9 + $0x1f0] sm:$0xff] %v258_v31 }
  0x39   : >> { %v262_v33 = vld [vmem:[%s3906_s10 + $0x420] sm:$0xff]  ;;  %261 = vst [vmem:[%s3902_s9 + $0x200] sm:$0xff] %v260_v32 }
  0x3a   : >> { %v264_v34 = vld [vmem:[%s3906_s10 + $0x440] sm:$0xff]  ;;  %263 = vst [vmem:[%s3902_s9 + $0x210] sm:$0xff] %v262_v33 }
  0x3b   : >> { %v266_v35 = vld [vmem:[%s3906_s10 + $0x460] sm:$0xff]  ;;  %265 = vst [vmem:[%s3902_s9 + $0x220] sm:$0xff] %v264_v34 }
  0x3c   : >> { %v268_v36 = vld [vmem:[%s3906_s10 + $0x480] sm:$0xff]  ;;  %267 = vst [vmem:[%s3902_s9 + $0x230] sm:$0xff] %v266_v35 }
  0x3d   : >> { %v270_v37 = vld [vmem:[%s3906_s10 + $0x4a0] sm:$0xff]  ;;  %269 = vst [vmem:[%s3902_s9 + $0x240] sm:$0xff] %v268_v36 }
  0x3e   : >> { %v272_v38 = vld [vmem:[%s3906_s10 + $0x4c0] sm:$0xff]  ;;  %271 = vst [vmem:[%s3902_s9 + $0x250] sm:$0xff] %v270_v37 }
  0x3f   : >> { %v274_v39 = vld [vmem:[%s3906_s10 + $0x4e0] sm:$0xff]  ;;  %273 = vst [vmem:[%s3902_s9 + $0x260] sm:$0xff] %v272_v38 }
  0x40   : >> { %v276_v40 = vld [vmem:[%s3906_s10 + $0x500] sm:$0xff]  ;;  %275 = vst [vmem:[%s3902_s9 + $0x270] sm:$0xff] %v274_v39 }
  0x41   : >> { %v278_v41 = vld [vmem:[%s3906_s10 + $0x520] sm:$0xff]  ;;  %277 = vst [vmem:[%s3902_s9 + $0x280] sm:$0xff] %v276_v40 }
  0x42   : >> { %v280_v42 = vld [vmem:[%s3906_s10 + $0x540] sm:$0xff]  ;;  %279 = vst [vmem:[%s3902_s9 + $0x290] sm:$0xff] %v278_v41 }
  0x43   : >> { %v282_v43 = vld [vmem:[%s3906_s10 + $0x560] sm:$0xff]  ;;  %281 = vst [vmem:[%s3902_s9 + $0x2a0] sm:$0xff] %v280_v42 }
  0x44   : >> { %v284_v44 = vld [vmem:[%s3906_s10 + $0x580] sm:$0xff]  ;;  %283 = vst [vmem:[%s3902_s9 + $0x2b0] sm:$0xff] %v282_v43 }
  0x45   : >> { %v286_v45 = vld [vmem:[%s3906_s10 + $0x5a0] sm:$0xff]  ;;  %285 = vst [vmem:[%s3902_s9 + $0x2c0] sm:$0xff] %v284_v44 }
  0x46   : >> { %v288_v46 = vld [vmem:[%s3906_s10 + $0x5c0] sm:$0xff]  ;;  %287 = vst [vmem:[%s3902_s9 + $0x2d0] sm:$0xff] %v286_v45 }
  0x47   : >> { %v290_v47 = vld [vmem:[%s3906_s10 + $0x5e0] sm:$0xff]  ;;  %289 = vst [vmem:[%s3902_s9 + $0x2e0] sm:$0xff] %v288_v46 }
  0x48   : >> { %v292_v48 = vld [vmem:[%s3906_s10 + $0x600] sm:$0xff]  ;;  %291 = vst [vmem:[%s3902_s9 + $0x2f0] sm:$0xff] %v290_v47 }
  0x49   : >> { %v294_v49 = vld [vmem:[%s3906_s10 + $0x620] sm:$0xff]  ;;  %293 = vst [vmem:[%s3902_s9 + $0x300] sm:$0xff] %v292_v48 }
  0x4a   : >> { %v296_v50 = vld [vmem:[%s3906_s10 + $0x640] sm:$0xff]  ;;  %295 = vst [vmem:[%s3902_s9 + $0x310] sm:$0xff] %v294_v49 }
  0x4b   : >> { %v298_v51 = vld [vmem:[%s3906_s10 + $0x660] sm:$0xff]  ;;  %297 = vst [vmem:[%s3902_s9 + $0x320] sm:$0xff] %v296_v50 }
  0x4c   : >> { %v300_v52 = vld [vmem:[%s3906_s10 + $0x680] sm:$0xff]  ;;  %299 = vst [vmem:[%s3902_s9 + $0x330] sm:$0xff] %v298_v51 }
  0x4d   : >> { %v302_v53 = vld [vmem:[%s3906_s10 + $0x6a0] sm:$0xff]  ;;  %301 = vst [vmem:[%s3902_s9 + $0x340] sm:$0xff] %v300_v52 }
  0x4e   : >> { %v304_v54 = vld [vmem:[%s3906_s10 + $0x6c0] sm:$0xff]  ;;  %303 = vst [vmem:[%s3902_s9 + $0x350] sm:$0xff] %v302_v53 }
  0x4f   : >> { %v306_v55 = vld [vmem:[%s3906_s10 + $0x6e0] sm:$0xff]  ;;  %305 = vst [vmem:[%s3902_s9 + $0x360] sm:$0xff] %v304_v54 }
  0x50   : >> { %v308_v56 = vld [vmem:[%s3906_s10 + $0x700] sm:$0xff]  ;;  %307 = vst [vmem:[%s3902_s9 + $0x370] sm:$0xff] %v306_v55 }
  0x51   : >> { %v310_v57 = vld [vmem:[%s3906_s10 + $0x720] sm:$0xff]  ;;  %309 = vst [vmem:[%s3902_s9 + $0x380] sm:$0xff] %v308_v56 }
  0x52   : >> { %v312_v58 = vld [vmem:[%s3906_s10 + $0x740] sm:$0xff]  ;;  %311 = vst [vmem:[%s3902_s9 + $0x390] sm:$0xff] %v310_v57 }
  0x53   : >> { %v314_v59 = vld [vmem:[%s3906_s10 + $0x760] sm:$0xff]  ;;  %313 = vst [vmem:[%s3902_s9 + $0x3a0] sm:$0xff] %v312_v58 }
  0x54   : >> { %v316_v60 = vld [vmem:[%s3906_s10 + $0x780] sm:$0xff]  ;;  %315 = vst [vmem:[%s3902_s9 + $0x3b0] sm:$0xff] %v314_v59 }
  0x55   : >> { %v318_v61 = vld [vmem:[%s3906_s10 + $0x7a0] sm:$0xff]  ;;  %317 = vst [vmem:[%s3902_s9 + $0x3c0] sm:$0xff] %v316_v60 }
  0x56   : >> { %v320_v62 = vld [vmem:[%s3906_s10 + $0x7c0] sm:$0xff]  ;;  %319 = vst [vmem:[%s3902_s9 + $0x3d0] sm:$0xff] %v318_v61 }
  0x57   : >> { %v322_v63 = vld [vmem:[%s3906_s10 + $0x7e0] sm:$0xff]  ;;  %321 = vst [vmem:[%s3902_s9 + $0x3e0] sm:$0xff] %v320_v62 }
  0x58   : >> { %v324_v0 = vld [vmem:[%s3906_s10 + $0x800] sm:$0xff]  ;;  %323 = vst [vmem:[%s3902_s9 + $0x3f0] sm:$0xff] %v322_v63 }
  0x59   : >> { %v326_v1 = vld [vmem:[%s3906_s10 + $0x820] sm:$0xff]  ;;  %325 = vst [vmem:[%s3902_s9 + $0x400] sm:$0xff] %v324_v0 }
  0x5a   : >> { %v328_v2 = vld [vmem:[%s3906_s10 + $0x840] sm:$0xff]  ;;  %327 = vst [vmem:[%s3902_s9 + $0x410] sm:$0xff] %v326_v1 }
  0x5b   : >> { %v330_v3 = vld [vmem:[%s3906_s10 + $0x860] sm:$0xff]  ;;  %329 = vst [vmem:[%s3902_s9 + $0x420] sm:$0xff] %v328_v2 }
  0x5c   : >> { %v332_v4 = vld [vmem:[%s3906_s10 + $0x880] sm:$0xff]  ;;  %331 = vst [vmem:[%s3902_s9 + $0x430] sm:$0xff] %v330_v3 }
  0x5d   : >> { %v334_v5 = vld [vmem:[%s3906_s10 + $0x8a0] sm:$0xff]  ;;  %333 = vst [vmem:[%s3902_s9 + $0x440] sm:$0xff] %v332_v4 }
  0x5e   : >> { %v336_v6 = vld [vmem:[%s3906_s10 + $0x8c0] sm:$0xff]  ;;  %335 = vst [vmem:[%s3902_s9 + $0x450] sm:$0xff] %v334_v5 }
  0x5f   : >> { %v338_v7 = vld [vmem:[%s3906_s10 + $0x8e0] sm:$0xff]  ;;  %337 = vst [vmem:[%s3902_s9 + $0x460] sm:$0xff] %v336_v6 }
  0x60   : >> { %v340_v8 = vld [vmem:[%s3906_s10 + $0x900] sm:$0xff]  ;;  %339 = vst [vmem:[%s3902_s9 + $0x470] sm:$0xff] %v338_v7 }
  0x61   : >> { %v342_v9 = vld [vmem:[%s3906_s10 + $0x920] sm:$0xff]  ;;  %341 = vst [vmem:[%s3902_s9 + $0x480] sm:$0xff] %v340_v8 }
  0x62   : >> { %v344_v10 = vld [vmem:[%s3906_s10 + $0x940] sm:$0xff]  ;;  %343 = vst [vmem:[%s3902_s9 + $0x490] sm:$0xff] %v342_v9 }
  0x63   : >> { %v346_v11 = vld [vmem:[%s3906_s10 + $0x960] sm:$0xff]  ;;  %345 = vst [vmem:[%s3902_s9 + $0x4a0] sm:$0xff] %v344_v10 }
  0x64   : >> { %v348_v12 = vld [vmem:[%s3906_s10 + $0x980] sm:$0xff]  ;;  %347 = vst [vmem:[%s3902_s9 + $0x4b0] sm:$0xff] %v346_v11 }
  0x65   : >> { %v350_v13 = vld [vmem:[%s3906_s10 + $0x9a0] sm:$0xff]  ;;  %349 = vst [vmem:[%s3902_s9 + $0x4c0] sm:$0xff] %v348_v12 }
  0x66   : >> { %v352_v14 = vld [vmem:[%s3906_s10 + $0x9c0] sm:$0xff]  ;;  %351 = vst [vmem:[%s3902_s9 + $0x4d0] sm:$0xff] %v350_v13 }
  0x67   : >> { %v354_v15 = vld [vmem:[%s3906_s10 + $0x9e0] sm:$0xff]  ;;  %353 = vst [vmem:[%s3902_s9 + $0x4e0] sm:$0xff] %v352_v14 }
  0x68   : >> { %v356_v16 = vld [vmem:[%s3906_s10 + $0xa00] sm:$0xff]  ;;  %355 = vst [vmem:[%s3902_s9 + $0x4f0] sm:$0xff] %v354_v15 }
  0x69   : >> { %v358_v17 = vld [vmem:[%s3906_s10 + $0xa20] sm:$0xff]  ;;  %357 = vst [vmem:[%s3902_s9 + $0x500] sm:$0xff] %v356_v16 }
  0x6a   : >> { %v360_v18 = vld [vmem:[%s3906_s10 + $0xa40] sm:$0xff]  ;;  %359 = vst [vmem:[%s3902_s9 + $0x510] sm:$0xff] %v358_v17 }
  0x6b   : >> { %v362_v19 = vld [vmem:[%s3906_s10 + $0xa60] sm:$0xff]  ;;  %361 = vst [vmem:[%s3902_s9 + $0x520] sm:$0xff] %v360_v18 }
  0x6c   : >> { %v364_v20 = vld [vmem:[%s3906_s10 + $0xa80] sm:$0xff]  ;;  %363 = vst [vmem:[%s3902_s9 + $0x530] sm:$0xff] %v362_v19 }
  0x6d   : >> { %v366_v21 = vld [vmem:[%s3906_s10 + $0xaa0] sm:$0xff]  ;;  %365 = vst [vmem:[%s3902_s9 + $0x540] sm:$0xff] %v364_v20 }
  0x6e   : >> { %v368_v22 = vld [vmem:[%s3906_s10 + $0xac0] sm:$0xff]  ;;  %367 = vst [vmem:[%s3902_s9 + $0x550] sm:$0xff] %v366_v21 }
  0x6f   : >> { %v370_v23 = vld [vmem:[%s3906_s10 + $0xae0] sm:$0xff]  ;;  %369 = vst [vmem:[%s3902_s9 + $0x560] sm:$0xff] %v368_v22 }
  0x70   : >> { %v372_v24 = vld [vmem:[%s3906_s10 + $0xb00] sm:$0xff]  ;;  %371 = vst [vmem:[%s3902_s9 + $0x570] sm:$0xff] %v370_v23 }
  0x71   : >> { %v374_v25 = vld [vmem:[%s3906_s10 + $0xb20] sm:$0xff]  ;;  %373 = vst [vmem:[%s3902_s9 + $0x580] sm:$0xff] %v372_v24 }
  0x72   : >> { %v376_v26 = vld [vmem:[%s3906_s10 + $0xb40] sm:$0xff]  ;;  %375 = vst [vmem:[%s3902_s9 + $0x590] sm:$0xff] %v374_v25 }
  0x73   : >> { %v378_v27 = vld [vmem:[%s3906_s10 + $0xb60] sm:$0xff]  ;;  %377 = vst [vmem:[%s3902_s9 + $0x5a0] sm:$0xff] %v376_v26 }
  0x74   : >> { %v380_v28 = vld [vmem:[%s3906_s10 + $0xb80] sm:$0xff]  ;;  %379 = vst [vmem:[%s3902_s9 + $0x5b0] sm:$0xff] %v378_v27 }
  0x75   : >> { %v382_v29 = vld [vmem:[%s3906_s10 + $0xba0] sm:$0xff]  ;;  %381 = vst [vmem:[%s3902_s9 + $0x5c0] sm:$0xff] %v380_v28 }
  0x76   : >> { %v384_v30 = vld [vmem:[%s3906_s10 + $0xbc0] sm:$0xff]  ;;  %383 = vst [vmem:[%s3902_s9 + $0x5d0] sm:$0xff] %v382_v29 }
  0x77   : >> { %v386_v31 = vld [vmem:[%s3906_s10 + $0xbe0] sm:$0xff]  ;;  %385 = vst [vmem:[%s3902_s9 + $0x5e0] sm:$0xff] %v384_v30 }
  0x78   : >> { %v388_v32 = vld [vmem:[%s3906_s10 + $0xc00] sm:$0xff]  ;;  %387 = vst [vmem:[%s3902_s9 + $0x5f0] sm:$0xff] %v386_v31 }
  0x79   : >> { %v390_v33 = vld [vmem:[%s3906_s10 + $0xc20] sm:$0xff]  ;;  %389 = vst [vmem:[%s3902_s9 + $0x600] sm:$0xff] %v388_v32 }
  0x7a   : >> { %v392_v34 = vld [vmem:[%s3906_s10 + $0xc40] sm:$0xff]  ;;  %391 = vst [vmem:[%s3902_s9 + $0x610] sm:$0xff] %v390_v33 }
  0x7b   : >> { %v394_v35 = vld [vmem:[%s3906_s10 + $0xc60] sm:$0xff]  ;;  %393 = vst [vmem:[%s3902_s9 + $0x620] sm:$0xff] %v392_v34 }
  0x7c   : >> { %v396_v36 = vld [vmem:[%s3906_s10 + $0xc80] sm:$0xff]  ;;  %395 = vst [vmem:[%s3902_s9 + $0x630] sm:$0xff] %v394_v35 }
  0x7d   : >> { %v398_v37 = vld [vmem:[%s3906_s10 + $0xca0] sm:$0xff]  ;;  %397 = vst [vmem:[%s3902_s9 + $0x640] sm:$0xff] %v396_v36 }
  0x7e   : >> { %v400_v38 = vld [vmem:[%s3906_s10 + $0xcc0] sm:$0xff]  ;;  %399 = vst [vmem:[%s3902_s9 + $0x650] sm:$0xff] %v398_v37 }
  0x7f   : >> { %v402_v39 = vld [vmem:[%s3906_s10 + $0xce0] sm:$0xff]  ;;  %401 = vst [vmem:[%s3902_s9 + $0x660] sm:$0xff] %v400_v38 }
  0x80   : >> { %v404_v40 = vld [vmem:[%s3906_s10 + $0xd00] sm:$0xff]  ;;  %403 = vst [vmem:[%s3902_s9 + $0x670] sm:$0xff] %v402_v39 }
  0x81   : >> { %v406_v41 = vld [vmem:[%s3906_s10 + $0xd20] sm:$0xff]  ;;  %405 = vst [vmem:[%s3902_s9 + $0x680] sm:$0xff] %v404_v40 }
  0x82   : >> { %v408_v42 = vld [vmem:[%s3906_s10 + $0xd40] sm:$0xff]  ;;  %407 = vst [vmem:[%s3902_s9 + $0x690] sm:$0xff] %v406_v41 }
  0x83   : >> { %v410_v43 = vld [vmem:[%s3906_s10 + $0xd60] sm:$0xff]  ;;  %409 = vst [vmem:[%s3902_s9 + $0x6a0] sm:$0xff] %v408_v42 }
  0x84   : >> { %v412_v44 = vld [vmem:[%s3906_s10 + $0xd80] sm:$0xff]  ;;  %411 = vst [vmem:[%s3902_s9 + $0x6b0] sm:$0xff] %v410_v43 }
  0x85   : >> { %v414_v45 = vld [vmem:[%s3906_s10 + $0xda0] sm:$0xff]  ;;  %413 = vst [vmem:[%s3902_s9 + $0x6c0] sm:$0xff] %v412_v44 }
  0x86   : >> { %v416_v46 = vld [vmem:[%s3906_s10 + $0xdc0] sm:$0xff]  ;;  %415 = vst [vmem:[%s3902_s9 + $0x6d0] sm:$0xff] %v414_v45 }
  0x87   : >> { %v418_v47 = vld [vmem:[%s3906_s10 + $0xde0] sm:$0xff]  ;;  %417 = vst [vmem:[%s3902_s9 + $0x6e0] sm:$0xff] %v416_v46 }
  0x88   : >> { %v420_v48 = vld [vmem:[%s3906_s10 + $0xe00] sm:$0xff]  ;;  %419 = vst [vmem:[%s3902_s9 + $0x6f0] sm:$0xff] %v418_v47 }
  0x89   : >> { %v422_v49 = vld [vmem:[%s3906_s10 + $0xe20] sm:$0xff]  ;;  %421 = vst [vmem:[%s3902_s9 + $0x700] sm:$0xff] %v420_v48 }
  0x8a   : >> { %v424_v50 = vld [vmem:[%s3906_s10 + $0xe40] sm:$0xff]  ;;  %423 = vst [vmem:[%s3902_s9 + $0x710] sm:$0xff] %v422_v49 }
  0x8b   : >> { %v426_v51 = vld [vmem:[%s3906_s10 + $0xe60] sm:$0xff]  ;;  %425 = vst [vmem:[%s3902_s9 + $0x720] sm:$0xff] %v424_v50 }
  0x8c   : >> { %v428_v52 = vld [vmem:[%s3906_s10 + $0xe80] sm:$0xff]  ;;  %427 = vst [vmem:[%s3902_s9 + $0x730] sm:$0xff] %v426_v51 }
  0x8d   : >> { %v430_v53 = vld [vmem:[%s3906_s10 + $0xea0] sm:$0xff]  ;;  %429 = vst [vmem:[%s3902_s9 + $0x740] sm:$0xff] %v428_v52 }
  0x8e   : >> { %v432_v54 = vld [vmem:[%s3906_s10 + $0xec0] sm:$0xff]  ;;  %431 = vst [vmem:[%s3902_s9 + $0x750] sm:$0xff] %v430_v53 }
  0x8f   : >> { %v434_v55 = vld [vmem:[%s3906_s10 + $0xee0] sm:$0xff]  ;;  %433 = vst [vmem:[%s3902_s9 + $0x760] sm:$0xff] %v432_v54 }
  0x90   : >> { %v436_v56 = vld [vmem:[%s3906_s10 + $0xf00] sm:$0xff]  ;;  %435 = vst [vmem:[%s3902_s9 + $0x770] sm:$0xff] %v434_v55 }
  0x91   : >> { %v438_v57 = vld [vmem:[%s3906_s10 + $0xf20] sm:$0xff]  ;;  %437 = vst [vmem:[%s3902_s9 + $0x780] sm:$0xff] %v436_v56 }
  0x92   : >> { %v440_v58 = vld [vmem:[%s3906_s10 + $0xf40] sm:$0xff]  ;;  %439 = vst [vmem:[%s3902_s9 + $0x790] sm:$0xff] %v438_v57 }
  0x93   : >> { %v442_v59 = vld [vmem:[%s3906_s10 + $0xf60] sm:$0xff]  ;;  %441 = vst [vmem:[%s3902_s9 + $0x7a0] sm:$0xff] %v440_v58 }
  0x94   : >> { %v444_v60 = vld [vmem:[%s3906_s10 + $0xf80] sm:$0xff]  ;;  %443 = vst [vmem:[%s3902_s9 + $0x7b0] sm:$0xff] %v442_v59 }
  0x95   : >> { %v446_v61 = vld [vmem:[%s3906_s10 + $0xfa0] sm:$0xff]  ;;  %445 = vst [vmem:[%s3902_s9 + $0x7c0] sm:$0xff] %v444_v60 }
  0x96   : >> { %v448_v62 = vld [vmem:[%s3906_s10 + $0xfc0] sm:$0xff]  ;;  %447 = vst [vmem:[%s3902_s9 + $0x7d0] sm:$0xff] %v446_v61 }
  0x97   : >> { %v450_v63 = vld [vmem:[%s3906_s10 + $0xfe0] sm:$0xff]  ;;  %449 = vst [vmem:[%s3902_s9 + $0x7e0] sm:$0xff] %v448_v62 }
  0x98   : >> { %v452_v0 = vld [vmem:[%s3906_s10 + $0x1000] sm:$0xff]  ;;  %451 = vst [vmem:[%s3902_s9 + $0x7f0] sm:$0xff] %v450_v63 }
  0x99   : >> { %v454_v1 = vld [vmem:[%s3906_s10 + $0x1020] sm:$0xff]  ;;  %453 = vst [vmem:[%s3902_s9 + $0x800] sm:$0xff] %v452_v0 }
  0x9a   : >> { %v456_v2 = vld [vmem:[%s3906_s10 + $0x1040] sm:$0xff]  ;;  %455 = vst [vmem:[%s3902_s9 + $0x810] sm:$0xff] %v454_v1 }
  0x9b   : >> { %v458_v3 = vld [vmem:[%s3906_s10 + $0x1060] sm:$0xff]  ;;  %457 = vst [vmem:[%s3902_s9 + $0x820] sm:$0xff] %v456_v2 }
  0x9c   : >> { %v460_v4 = vld [vmem:[%s3906_s10 + $0x1080] sm:$0xff]  ;;  %459 = vst [vmem:[%s3902_s9 + $0x830] sm:$0xff] %v458_v3 }
  0x9d   : >> { %v462_v5 = vld [vmem:[%s3906_s10 + $0x10a0] sm:$0xff]  ;;  %461 = vst [vmem:[%s3902_s9 + $0x840] sm:$0xff] %v460_v4 }
  0x9e   : >> { %v464_v6 = vld [vmem:[%s3906_s10 + $0x10c0] sm:$0xff]  ;;  %463 = vst [vmem:[%s3902_s9 + $0x850] sm:$0xff] %v462_v5 }
  0x9f   : >> { %v466_v7 = vld [vmem:[%s3906_s10 + $0x10e0] sm:$0xff]  ;;  %465 = vst [vmem:[%s3902_s9 + $0x860] sm:$0xff] %v464_v6 }
  0xa0   : >> { %v468_v8 = vld [vmem:[%s3906_s10 + $0x1100] sm:$0xff]  ;;  %467 = vst [vmem:[%s3902_s9 + $0x870] sm:$0xff] %v466_v7 }
  0xa1   : >> { %v470_v9 = vld [vmem:[%s3906_s10 + $0x1120] sm:$0xff]  ;;  %469 = vst [vmem:[%s3902_s9 + $0x880] sm:$0xff] %v468_v8 }
  0xa2   : >> { %v472_v10 = vld [vmem:[%s3906_s10 + $0x1140] sm:$0xff]  ;;  %471 = vst [vmem:[%s3902_s9 + $0x890] sm:$0xff] %v470_v9 }
  0xa3   : >> { %v474_v11 = vld [vmem:[%s3906_s10 + $0x1160] sm:$0xff]  ;;  %473 = vst [vmem:[%s3902_s9 + $0x8a0] sm:$0xff] %v472_v10 }
  0xa4   : >> { %v476_v12 = vld [vmem:[%s3906_s10 + $0x1180] sm:$0xff]  ;;  %475 = vst [vmem:[%s3902_s9 + $0x8b0] sm:$0xff] %v474_v11 }
  0xa5   : >> { %v478_v13 = vld [vmem:[%s3906_s10 + $0x11a0] sm:$0xff]  ;;  %477 = vst [vmem:[%s3902_s9 + $0x8c0] sm:$0xff] %v476_v12 }
  0xa6   : >> { %v480_v14 = vld [vmem:[%s3906_s10 + $0x11c0] sm:$0xff]  ;;  %479 = vst [vmem:[%s3902_s9 + $0x8d0] sm:$0xff] %v478_v13 }
  0xa7   : >> { %v482_v15 = vld [vmem:[%s3906_s10 + $0x11e0] sm:$0xff]  ;;  %481 = vst [vmem:[%s3902_s9 + $0x8e0] sm:$0xff] %v480_v14 }
  0xa8   : >> { %v484_v16 = vld [vmem:[%s3906_s10 + $0x1200] sm:$0xff]  ;;  %483 = vst [vmem:[%s3902_s9 + $0x8f0] sm:$0xff] %v482_v15 }
  0xa9   : >> { %v486_v17 = vld [vmem:[%s3906_s10 + $0x1220] sm:$0xff]  ;;  %485 = vst [vmem:[%s3902_s9 + $0x900] sm:$0xff] %v484_v16 }
  0xaa   : >> { %v488_v18 = vld [vmem:[%s3906_s10 + $0x1240] sm:$0xff]  ;;  %487 = vst [vmem:[%s3902_s9 + $0x910] sm:$0xff] %v486_v17 }
  0xab   : >> { %v490_v19 = vld [vmem:[%s3906_s10 + $0x1260] sm:$0xff]  ;;  %489 = vst [vmem:[%s3902_s9 + $0x920] sm:$0xff] %v488_v18 }
  0xac   : >> { %v492_v20 = vld [vmem:[%s3906_s10 + $0x1280] sm:$0xff]  ;;  %491 = vst [vmem:[%s3902_s9 + $0x930] sm:$0xff] %v490_v19 }
  0xad   : >> { %v494_v21 = vld [vmem:[%s3906_s10 + $0x12a0] sm:$0xff]  ;;  %493 = vst [vmem:[%s3902_s9 + $0x940] sm:$0xff] %v492_v20 }
  0xae   : >> { %v496_v22 = vld [vmem:[%s3906_s10 + $0x12c0] sm:$0xff]  ;;  %495 = vst [vmem:[%s3902_s9 + $0x950] sm:$0xff] %v494_v21 }
  0xaf   : >> { %v498_v23 = vld [vmem:[%s3906_s10 + $0x12e0] sm:$0xff]  ;;  %497 = vst [vmem:[%s3902_s9 + $0x960] sm:$0xff] %v496_v22 }
  0xb0   : >> { %v500_v24 = vld [vmem:[%s3906_s10 + $0x1300] sm:$0xff]  ;;  %499 = vst [vmem:[%s3902_s9 + $0x970] sm:$0xff] %v498_v23 }
  0xb1   : >> { %v502_v25 = vld [vmem:[%s3906_s10 + $0x1320] sm:$0xff]  ;;  %501 = vst [vmem:[%s3902_s9 + $0x980] sm:$0xff] %v500_v24 }
  0xb2   : >> { %v504_v26 = vld [vmem:[%s3906_s10 + $0x1340] sm:$0xff]  ;;  %503 = vst [vmem:[%s3902_s9 + $0x990] sm:$0xff] %v502_v25 }
  0xb3   : >> { %v506_v27 = vld [vmem:[%s3906_s10 + $0x1360] sm:$0xff]  ;;  %505 = vst [vmem:[%s3902_s9 + $0x9a0] sm:$0xff] %v504_v26 }
  0xb4   : >> { %v508_v28 = vld [vmem:[%s3906_s10 + $0x1380] sm:$0xff]  ;;  %507 = vst [vmem:[%s3902_s9 + $0x9b0] sm:$0xff] %v506_v27 }
  0xb5   : >> { %v510_v29 = vld [vmem:[%s3906_s10 + $0x13a0] sm:$0xff]  ;;  %509 = vst [vmem:[%s3902_s9 + $0x9c0] sm:$0xff] %v508_v28 }
  0xb6   : >> { %v512_v30 = vld [vmem:[%s3906_s10 + $0x13c0] sm:$0xff]  ;;  %511 = vst [vmem:[%s3902_s9 + $0x9d0] sm:$0xff] %v510_v29 }
  0xb7   : >> { %v514_v31 = vld [vmem:[%s3906_s10 + $0x13e0] sm:$0xff]  ;;  %513 = vst [vmem:[%s3902_s9 + $0x9e0] sm:$0xff] %v512_v30 }
  0xb8   : >> { %v516_v32 = vld [vmem:[%s3906_s10 + $0x1400] sm:$0xff]  ;;  %515 = vst [vmem:[%s3902_s9 + $0x9f0] sm:$0xff] %v514_v31 }
  0xb9   : >> { %v518_v33 = vld [vmem:[%s3906_s10 + $0x1420] sm:$0xff]  ;;  %517 = vst [vmem:[%s3902_s9 + $0xa00] sm:$0xff] %v516_v32 }
  0xba   : >> { %v520_v34 = vld [vmem:[%s3906_s10 + $0x1440] sm:$0xff]  ;;  %519 = vst [vmem:[%s3902_s9 + $0xa10] sm:$0xff] %v518_v33 }
  0xbb   : >> { %v522_v35 = vld [vmem:[%s3906_s10 + $0x1460] sm:$0xff]  ;;  %521 = vst [vmem:[%s3902_s9 + $0xa20] sm:$0xff] %v520_v34 }
  0xbc   : >> { %v524_v36 = vld [vmem:[%s3906_s10 + $0x1480] sm:$0xff]  ;;  %523 = vst [vmem:[%s3902_s9 + $0xa30] sm:$0xff] %v522_v35 }
  0xbd   : >> { %v526_v37 = vld [vmem:[%s3906_s10 + $0x14a0] sm:$0xff]  ;;  %525 = vst [vmem:[%s3902_s9 + $0xa40] sm:$0xff] %v524_v36 }
  0xbe   : >> { %v528_v38 = vld [vmem:[%s3906_s10 + $0x14c0] sm:$0xff]  ;;  %527 = vst [vmem:[%s3902_s9 + $0xa50] sm:$0xff] %v526_v37 }
  0xbf   : >> { %v530_v39 = vld [vmem:[%s3906_s10 + $0x14e0] sm:$0xff]  ;;  %529 = vst [vmem:[%s3902_s9 + $0xa60] sm:$0xff] %v528_v38 }
  0xc0   : >> { %v532_v40 = vld [vmem:[%s3906_s10 + $0x1500] sm:$0xff]  ;;  %531 = vst [vmem:[%s3902_s9 + $0xa70] sm:$0xff] %v530_v39 }
  0xc1   : >> { %v534_v41 = vld [vmem:[%s3906_s10 + $0x1520] sm:$0xff]  ;;  %533 = vst [vmem:[%s3902_s9 + $0xa80] sm:$0xff] %v532_v40 }
  0xc2   : >> { %v536_v42 = vld [vmem:[%s3906_s10 + $0x1540] sm:$0xff]  ;;  %535 = vst [vmem:[%s3902_s9 + $0xa90] sm:$0xff] %v534_v41 }
  0xc3   : >> { %v538_v43 = vld [vmem:[%s3906_s10 + $0x1560] sm:$0xff]  ;;  %537 = vst [vmem:[%s3902_s9 + $0xaa0] sm:$0xff] %v536_v42 }
  0xc4   : >> { %v540_v44 = vld [vmem:[%s3906_s10 + $0x1580] sm:$0xff]  ;;  %539 = vst [vmem:[%s3902_s9 + $0xab0] sm:$0xff] %v538_v43 }
  0xc5   : >> { %v542_v45 = vld [vmem:[%s3906_s10 + $0x15a0] sm:$0xff]  ;;  %541 = vst [vmem:[%s3902_s9 + $0xac0] sm:$0xff] %v540_v44 }
  0xc6   : >> { %v544_v46 = vld [vmem:[%s3906_s10 + $0x15c0] sm:$0xff]  ;;  %543 = vst [vmem:[%s3902_s9 + $0xad0] sm:$0xff] %v542_v45 }
  0xc7   : >> { %v546_v47 = vld [vmem:[%s3906_s10 + $0x15e0] sm:$0xff]  ;;  %545 = vst [vmem:[%s3902_s9 + $0xae0] sm:$0xff] %v544_v46 }
  0xc8   : >> { %v548_v48 = vld [vmem:[%s3906_s10 + $0x1600] sm:$0xff]  ;;  %547 = vst [vmem:[%s3902_s9 + $0xaf0] sm:$0xff] %v546_v47 }
  0xc9   : >> { %v550_v49 = vld [vmem:[%s3906_s10 + $0x1620] sm:$0xff]  ;;  %549 = vst [vmem:[%s3902_s9 + $0xb00] sm:$0xff] %v548_v48 }
  0xca   : >> { %v552_v50 = vld [vmem:[%s3906_s10 + $0x1640] sm:$0xff]  ;;  %551 = vst [vmem:[%s3902_s9 + $0xb10] sm:$0xff] %v550_v49 }
  0xcb   : >> { %v554_v51 = vld [vmem:[%s3906_s10 + $0x1660] sm:$0xff]  ;;  %553 = vst [vmem:[%s3902_s9 + $0xb20] sm:$0xff] %v552_v50 }
  0xcc   : >> { %v556_v52 = vld [vmem:[%s3906_s10 + $0x1680] sm:$0xff]  ;;  %555 = vst [vmem:[%s3902_s9 + $0xb30] sm:$0xff] %v554_v51 }
  0xcd   : >> { %v558_v53 = vld [vmem:[%s3906_s10 + $0x16a0] sm:$0xff]  ;;  %557 = vst [vmem:[%s3902_s9 + $0xb40] sm:$0xff] %v556_v52 }
  0xce   : >> { %v560_v54 = vld [vmem:[%s3906_s10 + $0x16c0] sm:$0xff]  ;;  %559 = vst [vmem:[%s3902_s9 + $0xb50] sm:$0xff] %v558_v53 }
  0xcf   : >> { %v562_v55 = vld [vmem:[%s3906_s10 + $0x16e0] sm:$0xff]  ;;  %561 = vst [vmem:[%s3902_s9 + $0xb60] sm:$0xff] %v560_v54 }
  0xd0   : >> { %v564_v56 = vld [vmem:[%s3906_s10 + $0x1700] sm:$0xff]  ;;  %563 = vst [vmem:[%s3902_s9 + $0xb70] sm:$0xff] %v562_v55 }
  0xd1   : >> { %v566_v57 = vld [vmem:[%s3906_s10 + $0x1720] sm:$0xff]  ;;  %565 = vst [vmem:[%s3902_s9 + $0xb80] sm:$0xff] %v564_v56 }
  0xd2   : >> { %v568_v58 = vld [vmem:[%s3906_s10 + $0x1740] sm:$0xff]  ;;  %567 = vst [vmem:[%s3902_s9 + $0xb90] sm:$0xff] %v566_v57 }
  0xd3   : >> { %v570_v59 = vld [vmem:[%s3906_s10 + $0x1760] sm:$0xff]  ;;  %569 = vst [vmem:[%s3902_s9 + $0xba0] sm:$0xff] %v568_v58 }
  0xd4   : >> { %v572_v60 = vld [vmem:[%s3906_s10 + $0x1780] sm:$0xff]  ;;  %571 = vst [vmem:[%s3902_s9 + $0xbb0] sm:$0xff] %v570_v59 }
  0xd5   : >> { %v574_v61 = vld [vmem:[%s3906_s10 + $0x17a0] sm:$0xff]  ;;  %573 = vst [vmem:[%s3902_s9 + $0xbc0] sm:$0xff] %v572_v60 }
  0xd6   : >> { %v576_v62 = vld [vmem:[%s3906_s10 + $0x17c0] sm:$0xff]  ;;  %575 = vst [vmem:[%s3902_s9 + $0xbd0] sm:$0xff] %v574_v61 }
  0xd7   : >> { %v578_v63 = vld [vmem:[%s3906_s10 + $0x17e0] sm:$0xff]  ;;  %577 = vst [vmem:[%s3902_s9 + $0xbe0] sm:$0xff] %v576_v62 }
  0xd8   : >> { %v580_v0 = vld [vmem:[%s3906_s10 + $0x1800] sm:$0xff]  ;;  %579 = vst [vmem:[%s3902_s9 + $0xbf0] sm:$0xff] %v578_v63 }
  0xd9   : >> { %v582_v1 = vld [vmem:[%s3906_s10 + $0x1820] sm:$0xff]  ;;  %581 = vst [vmem:[%s3902_s9 + $0xc00] sm:$0xff] %v580_v0 }
  0xda   : >> { %v584_v2 = vld [vmem:[%s3906_s10 + $0x1840] sm:$0xff]  ;;  %583 = vst [vmem:[%s3902_s9 + $0xc10] sm:$0xff] %v582_v1 }
  0xdb   : >> { %v586_v3 = vld [vmem:[%s3906_s10 + $0x1860] sm:$0xff]  ;;  %585 = vst [vmem:[%s3902_s9 + $0xc20] sm:$0xff] %v584_v2 }
  0xdc   : >> { %v588_v4 = vld [vmem:[%s3906_s10 + $0x1880] sm:$0xff]  ;;  %587 = vst [vmem:[%s3902_s9 + $0xc30] sm:$0xff] %v586_v3 }
  0xdd   : >> { %v590_v5 = vld [vmem:[%s3906_s10 + $0x18a0] sm:$0xff]  ;;  %589 = vst [vmem:[%s3902_s9 + $0xc40] sm:$0xff] %v588_v4 }
  0xde   : >> { %v592_v6 = vld [vmem:[%s3906_s10 + $0x18c0] sm:$0xff]  ;;  %591 = vst [vmem:[%s3902_s9 + $0xc50] sm:$0xff] %v590_v5 }
  0xdf   : >> { %v594_v7 = vld [vmem:[%s3906_s10 + $0x18e0] sm:$0xff]  ;;  %593 = vst [vmem:[%s3902_s9 + $0xc60] sm:$0xff] %v592_v6 }
  0xe0   : >> { %v596_v8 = vld [vmem:[%s3906_s10 + $0x1900] sm:$0xff]  ;;  %595 = vst [vmem:[%s3902_s9 + $0xc70] sm:$0xff] %v594_v7 }
  0xe1   : >> { %v598_v9 = vld [vmem:[%s3906_s10 + $0x1920] sm:$0xff]  ;;  %597 = vst [vmem:[%s3902_s9 + $0xc80] sm:$0xff] %v596_v8 }
  0xe2   : >> { %v600_v10 = vld [vmem:[%s3906_s10 + $0x1940] sm:$0xff]  ;;  %599 = vst [vmem:[%s3902_s9 + $0xc90] sm:$0xff] %v598_v9 }
  0xe3   : >> { %v602_v11 = vld [vmem:[%s3906_s10 + $0x1960] sm:$0xff]  ;;  %601 = vst [vmem:[%s3902_s9 + $0xca0] sm:$0xff] %v600_v10 }
  0xe4   : >> { %v604_v12 = vld [vmem:[%s3906_s10 + $0x1980] sm:$0xff]  ;;  %603 = vst [vmem:[%s3902_s9 + $0xcb0] sm:$0xff] %v602_v11 }
  0xe5   : >> { %v606_v13 = vld [vmem:[%s3906_s10 + $0x19a0] sm:$0xff]  ;;  %605 = vst [vmem:[%s3902_s9 + $0xcc0] sm:$0xff] %v604_v12 }
  0xe6   : >> { %v608_v14 = vld [vmem:[%s3906_s10 + $0x19c0] sm:$0xff]  ;;  %607 = vst [vmem:[%s3902_s9 + $0xcd0] sm:$0xff] %v606_v13 }
  0xe7   : >> { %v610_v15 = vld [vmem:[%s3906_s10 + $0x19e0] sm:$0xff]  ;;  %609 = vst [vmem:[%s3902_s9 + $0xce0] sm:$0xff] %v608_v14 }
  0xe8   : >> { %v612_v16 = vld [vmem:[%s3906_s10 + $0x1a00] sm:$0xff]  ;;  %611 = vst [vmem:[%s3902_s9 + $0xcf0] sm:$0xff] %v610_v15 }
  0xe9   : >> { %v614_v17 = vld [vmem:[%s3906_s10 + $0x1a20] sm:$0xff]  ;;  %613 = vst [vmem:[%s3902_s9 + $0xd00] sm:$0xff] %v612_v16 }
  0xea   : >> { %v616_v18 = vld [vmem:[%s3906_s10 + $0x1a40] sm:$0xff]  ;;  %615 = vst [vmem:[%s3902_s9 + $0xd10] sm:$0xff] %v614_v17 }
  0xeb   : >> { %v618_v19 = vld [vmem:[%s3906_s10 + $0x1a60] sm:$0xff]  ;;  %617 = vst [vmem:[%s3902_s9 + $0xd20] sm:$0xff] %v616_v18 }
  0xec   : >> { %v620_v20 = vld [vmem:[%s3906_s10 + $0x1a80] sm:$0xff]  ;;  %619 = vst [vmem:[%s3902_s9 + $0xd30] sm:$0xff] %v618_v19 }
  0xed   : >> { %v622_v21 = vld [vmem:[%s3906_s10 + $0x1aa0] sm:$0xff]  ;;  %621 = vst [vmem:[%s3902_s9 + $0xd40] sm:$0xff] %v620_v20 }
  0xee   : >> { %v624_v22 = vld [vmem:[%s3906_s10 + $0x1ac0] sm:$0xff]  ;;  %623 = vst [vmem:[%s3902_s9 + $0xd50] sm:$0xff] %v622_v21 }
  0xef   : >> { %v626_v23 = vld [vmem:[%s3906_s10 + $0x1ae0] sm:$0xff]  ;;  %625 = vst [vmem:[%s3902_s9 + $0xd60] sm:$0xff] %v624_v22 }
  0xf0   : >> { %v628_v24 = vld [vmem:[%s3906_s10 + $0x1b00] sm:$0xff]  ;;  %627 = vst [vmem:[%s3902_s9 + $0xd70] sm:$0xff] %v626_v23 }
  0xf1   : >> { %v630_v25 = vld [vmem:[%s3906_s10 + $0x1b20] sm:$0xff]  ;;  %629 = vst [vmem:[%s3902_s9 + $0xd80] sm:$0xff] %v628_v24 }
  0xf2   : >> { %v632_v26 = vld [vmem:[%s3906_s10 + $0x1b40] sm:$0xff]  ;;  %631 = vst [vmem:[%s3902_s9 + $0xd90] sm:$0xff] %v630_v25 }
  0xf3   : >> { %v634_v27 = vld [vmem:[%s3906_s10 + $0x1b60] sm:$0xff]  ;;  %633 = vst [vmem:[%s3902_s9 + $0xda0] sm:$0xff] %v632_v26 }
  0xf4   : >> { %v636_v28 = vld [vmem:[%s3906_s10 + $0x1b80] sm:$0xff]  ;;  %635 = vst [vmem:[%s3902_s9 + $0xdb0] sm:$0xff] %v634_v27 }
  0xf5   : >> { %v638_v29 = vld [vmem:[%s3906_s10 + $0x1ba0] sm:$0xff]  ;;  %637 = vst [vmem:[%s3902_s9 + $0xdc0] sm:$0xff] %v636_v28 }
  0xf6   : >> { %v640_v30 = vld [vmem:[%s3906_s10 + $0x1bc0] sm:$0xff]  ;;  %639 = vst [vmem:[%s3902_s9 + $0xdd0] sm:$0xff] %v638_v29 }
  0xf7   : >> { %v642_v31 = vld [vmem:[%s3906_s10 + $0x1be0] sm:$0xff]  ;;  %641 = vst [vmem:[%s3902_s9 + $0xde0] sm:$0xff] %v640_v30 }
  0xf8   : >> { %v644_v32 = vld [vmem:[%s3906_s10 + $0x1c00] sm:$0xff]  ;;  %643 = vst [vmem:[%s3902_s9 + $0xdf0] sm:$0xff] %v642_v31 }
  0xf9   : >> { %v646_v33 = vld [vmem:[%s3906_s10 + $0x1c20] sm:$0xff]  ;;  %645 = vst [vmem:[%s3902_s9 + $0xe00] sm:$0xff] %v644_v32 }
  0xfa   : >> { %v648_v34 = vld [vmem:[%s3906_s10 + $0x1c40] sm:$0xff]  ;;  %647 = vst [vmem:[%s3902_s9 + $0xe10] sm:$0xff] %v646_v33 }
  0xfb   : >> { %v650_v35 = vld [vmem:[%s3906_s10 + $0x1c60] sm:$0xff]  ;;  %649 = vst [vmem:[%s3902_s9 + $0xe20] sm:$0xff] %v648_v34 }
  0xfc   : >> { %v652_v36 = vld [vmem:[%s3906_s10 + $0x1c80] sm:$0xff]  ;;  %651 = vst [vmem:[%s3902_s9 + $0xe30] sm:$0xff] %v650_v35 }
  0xfd   : >> { %v654_v37 = vld [vmem:[%s3906_s10 + $0x1ca0] sm:$0xff]  ;;  %653 = vst [vmem:[%s3902_s9 + $0xe40] sm:$0xff] %v652_v36 }
  0xfe   : >> { %v656_v38 = vld [vmem:[%s3906_s10 + $0x1cc0] sm:$0xff]  ;;  %655 = vst [vmem:[%s3902_s9 + $0xe50] sm:$0xff] %v654_v37 }
  0xff   : >> { %v658_v39 = vld [vmem:[%s3906_s10 + $0x1ce0] sm:$0xff]  ;;  %657 = vst [vmem:[%s3902_s9 + $0xe60] sm:$0xff] %v656_v38 }
 0x100   : >> { %v660_v40 = vld [vmem:[%s3906_s10 + $0x1d00] sm:$0xff]  ;;  %659 = vst [vmem:[%s3902_s9 + $0xe70] sm:$0xff] %v658_v39 }
 0x101   : >> { %v662_v41 = vld [vmem:[%s3906_s10 + $0x1d20] sm:$0xff]  ;;  %661 = vst [vmem:[%s3902_s9 + $0xe80] sm:$0xff] %v660_v40 }
 0x102   : >> { %v664_v42 = vld [vmem:[%s3906_s10 + $0x1d40] sm:$0xff]  ;;  %663 = vst [vmem:[%s3902_s9 + $0xe90] sm:$0xff] %v662_v41 }
 0x103   : >> { %v666_v43 = vld [vmem:[%s3906_s10 + $0x1d60] sm:$0xff]  ;;  %665 = vst [vmem:[%s3902_s9 + $0xea0] sm:$0xff] %v664_v42 }
 0x104   : >> { %v668_v44 = vld [vmem:[%s3906_s10 + $0x1d80] sm:$0xff]  ;;  %667 = vst [vmem:[%s3902_s9 + $0xeb0] sm:$0xff] %v666_v43 }
 0x105   : >> { %v670_v45 = vld [vmem:[%s3906_s10 + $0x1da0] sm:$0xff]  ;;  %669 = vst [vmem:[%s3902_s9 + $0xec0] sm:$0xff] %v668_v44 }
 0x106   : >> { %v672_v46 = vld [vmem:[%s3906_s10 + $0x1dc0] sm:$0xff]  ;;  %671 = vst [vmem:[%s3902_s9 + $0xed0] sm:$0xff] %v670_v45 }
 0x107   : >> { %v674_v47 = vld [vmem:[%s3906_s10 + $0x1de0] sm:$0xff]  ;;  %673 = vst [vmem:[%s3902_s9 + $0xee0] sm:$0xff] %v672_v46 }
 0x108   : >> { %v676_v48 = vld [vmem:[%s3906_s10 + $0x1e00] sm:$0xff]  ;;  %675 = vst [vmem:[%s3902_s9 + $0xef0] sm:$0xff] %v674_v47 }
 0x109   : >> { %v678_v49 = vld [vmem:[%s3906_s10 + $0x1e20] sm:$0xff]  ;;  %677 = vst [vmem:[%s3902_s9 + $0xf00] sm:$0xff] %v676_v48 }
 0x10a   : >> { %v680_v50 = vld [vmem:[%s3906_s10 + $0x1e40] sm:$0xff]  ;;  %679 = vst [vmem:[%s3902_s9 + $0xf10] sm:$0xff] %v678_v49 }
 0x10b   : >> { %v682_v51 = vld [vmem:[%s3906_s10 + $0x1e60] sm:$0xff]  ;;  %681 = vst [vmem:[%s3902_s9 + $0xf20] sm:$0xff] %v680_v50 }
 0x10c   : >> { %v684_v52 = vld [vmem:[%s3906_s10 + $0x1e80] sm:$0xff]  ;;  %683 = vst [vmem:[%s3902_s9 + $0xf30] sm:$0xff] %v682_v51 }
 0x10d   : >> { %v686_v53 = vld [vmem:[%s3906_s10 + $0x1ea0] sm:$0xff]  ;;  %685 = vst [vmem:[%s3902_s9 + $0xf40] sm:$0xff] %v684_v52 }
 0x10e   : >> { %v688_v54 = vld [vmem:[%s3906_s10 + $0x1ec0] sm:$0xff]  ;;  %687 = vst [vmem:[%s3902_s9 + $0xf50] sm:$0xff] %v686_v53 }
 0x10f   : >> { %v690_v55 = vld [vmem:[%s3906_s10 + $0x1ee0] sm:$0xff]  ;;  %689 = vst [vmem:[%s3902_s9 + $0xf60] sm:$0xff] %v688_v54 }
 0x110   : >> { %v692_v56 = vld [vmem:[%s3906_s10 + $0x1f00] sm:$0xff]  ;;  %691 = vst [vmem:[%s3902_s9 + $0xf70] sm:$0xff] %v690_v55 }
 0x111   : >> { %v694_v57 = vld [vmem:[%s3906_s10 + $0x1f20] sm:$0xff]  ;;  %693 = vst [vmem:[%s3902_s9 + $0xf80] sm:$0xff] %v692_v56 }
 0x112   : >> { %v696_v58 = vld [vmem:[%s3906_s10 + $0x1f40] sm:$0xff]  ;;  %695 = vst [vmem:[%s3902_s9 + $0xf90] sm:$0xff] %v694_v57 }
 0x113   : >> { %v698_v59 = vld [vmem:[%s3906_s10 + $0x1f60] sm:$0xff]  ;;  %697 = vst [vmem:[%s3902_s9 + $0xfa0] sm:$0xff] %v696_v58 }
 0x114   : >> { %v700_v60 = vld [vmem:[%s3906_s10 + $0x1f80] sm:$0xff]  ;;  %699 = vst [vmem:[%s3902_s9 + $0xfb0] sm:$0xff] %v698_v59 }
 0x115   : >> { %v702_v61 = vld [vmem:[%s3906_s10 + $0x1fa0] sm:$0xff]  ;;  %701 = vst [vmem:[%s3902_s9 + $0xfc0] sm:$0xff] %v700_v60 }
 0x116   : >> { %v704_v62 = vld [vmem:[%s3906_s10 + $0x1fc0] sm:$0xff]  ;;  %703 = vst [vmem:[%s3902_s9 + $0xfd0] sm:$0xff] %v702_v61 }
 0x117   : >> { %v706_v63 = vld [vmem:[%s3906_s10 + $0x1fe0] sm:$0xff]  ;;  %705 = vst [vmem:[%s3902_s9 + $0xfe0] sm:$0xff] %v704_v62 }
 0x118   : >> { %v708_v0 = vld [vmem:[%s3906_s10 + $0x2000] sm:$0xff]  ;;  %707 = vst [vmem:[%s3902_s9 + $0xff0] sm:$0xff] %v706_v63 }
 0x119   : >> { %v710_v1 = vld [vmem:[%s3906_s10 + $0x2020] sm:$0xff]  ;;  %709 = vst [vmem:[%s3902_s9 + $0x1000] sm:$0xff] %v708_v0 }
 0x11a   : >> { %v712_v2 = vld [vmem:[%s3906_s10 + $0x2040] sm:$0xff]  ;;  %711 = vst [vmem:[%s3902_s9 + $0x1010] sm:$0xff] %v710_v1 }
 0x11b   : >> { %v714_v3 = vld [vmem:[%s3906_s10 + $0x2060] sm:$0xff]  ;;  %713 = vst [vmem:[%s3902_s9 + $0x1020] sm:$0xff] %v712_v2 }
 0x11c   : >> { %v716_v4 = vld [vmem:[%s3906_s10 + $0x2080] sm:$0xff]  ;;  %715 = vst [vmem:[%s3902_s9 + $0x1030] sm:$0xff] %v714_v3 }
 0x11d   : >> { %v718_v5 = vld [vmem:[%s3906_s10 + $0x20a0] sm:$0xff]  ;;  %717 = vst [vmem:[%s3902_s9 + $0x1040] sm:$0xff] %v716_v4 }
 0x11e   : >> { %v720_v6 = vld [vmem:[%s3906_s10 + $0x20c0] sm:$0xff]  ;;  %719 = vst [vmem:[%s3902_s9 + $0x1050] sm:$0xff] %v718_v5 }
 0x11f   : >> { %v722_v7 = vld [vmem:[%s3906_s10 + $0x20e0] sm:$0xff]  ;;  %721 = vst [vmem:[%s3902_s9 + $0x1060] sm:$0xff] %v720_v6 }
 0x120   : >> { %v724_v8 = vld [vmem:[%s3906_s10 + $0x2100] sm:$0xff]  ;;  %723 = vst [vmem:[%s3902_s9 + $0x1070] sm:$0xff] %v722_v7 }
 0x121   : >> { %v726_v9 = vld [vmem:[%s3906_s10 + $0x2120] sm:$0xff]  ;;  %725 = vst [vmem:[%s3902_s9 + $0x1080] sm:$0xff] %v724_v8 }
 0x122   : >> { %v728_v10 = vld [vmem:[%s3906_s10 + $0x2140] sm:$0xff]  ;;  %727 = vst [vmem:[%s3902_s9 + $0x1090] sm:$0xff] %v726_v9 }
 0x123   : >> { %v730_v11 = vld [vmem:[%s3906_s10 + $0x2160] sm:$0xff]  ;;  %729 = vst [vmem:[%s3902_s9 + $0x10a0] sm:$0xff] %v728_v10 }
 0x124   : >> { %v732_v12 = vld [vmem:[%s3906_s10 + $0x2180] sm:$0xff]  ;;  %731 = vst [vmem:[%s3902_s9 + $0x10b0] sm:$0xff] %v730_v11 }
 0x125   : >> { %v734_v13 = vld [vmem:[%s3906_s10 + $0x21a0] sm:$0xff]  ;;  %733 = vst [vmem:[%s3902_s9 + $0x10c0] sm:$0xff] %v732_v12 }
 0x126   : >> { %v736_v14 = vld [vmem:[%s3906_s10 + $0x21c0] sm:$0xff]  ;;  %735 = vst [vmem:[%s3902_s9 + $0x10d0] sm:$0xff] %v734_v13 }
 0x127   : >> { %v738_v15 = vld [vmem:[%s3906_s10 + $0x21e0] sm:$0xff]  ;;  %737 = vst [vmem:[%s3902_s9 + $0x10e0] sm:$0xff] %v736_v14 }
 0x128   : >> { %v740_v16 = vld [vmem:[%s3906_s10 + $0x2200] sm:$0xff]  ;;  %739 = vst [vmem:[%s3902_s9 + $0x10f0] sm:$0xff] %v738_v15 }
 0x129   : >> { %v742_v17 = vld [vmem:[%s3906_s10 + $0x2220] sm:$0xff]  ;;  %741 = vst [vmem:[%s3902_s9 + $0x1100] sm:$0xff] %v740_v16 }
 0x12a   : >> { %v744_v18 = vld [vmem:[%s3906_s10 + $0x2240] sm:$0xff]  ;;  %743 = vst [vmem:[%s3902_s9 + $0x1110] sm:$0xff] %v742_v17 }
 0x12b   : >> { %v746_v19 = vld [vmem:[%s3906_s10 + $0x2260] sm:$0xff]  ;;  %745 = vst [vmem:[%s3902_s9 + $0x1120] sm:$0xff] %v744_v18 }
 0x12c   : >> { %v748_v20 = vld [vmem:[%s3906_s10 + $0x2280] sm:$0xff]  ;;  %747 = vst [vmem:[%s3902_s9 + $0x1130] sm:$0xff] %v746_v19 }
 0x12d   : >> { %v750_v21 = vld [vmem:[%s3906_s10 + $0x22a0] sm:$0xff]  ;;  %749 = vst [vmem:[%s3902_s9 + $0x1140] sm:$0xff] %v748_v20 }
 0x12e   : >> { %v752_v22 = vld [vmem:[%s3906_s10 + $0x22c0] sm:$0xff]  ;;  %751 = vst [vmem:[%s3902_s9 + $0x1150] sm:$0xff] %v750_v21 }
 0x12f   : >> { %v754_v23 = vld [vmem:[%s3906_s10 + $0x22e0] sm:$0xff]  ;;  %753 = vst [vmem:[%s3902_s9 + $0x1160] sm:$0xff] %v752_v22 }
 0x130   : >> { %v756_v24 = vld [vmem:[%s3906_s10 + $0x2300] sm:$0xff]  ;;  %755 = vst [vmem:[%s3902_s9 + $0x1170] sm:$0xff] %v754_v23 }
 0x131   : >> { %v758_v25 = vld [vmem:[%s3906_s10 + $0x2320] sm:$0xff]  ;;  %757 = vst [vmem:[%s3902_s9 + $0x1180] sm:$0xff] %v756_v24 }
 0x132   : >> { %v760_v26 = vld [vmem:[%s3906_s10 + $0x2340] sm:$0xff]  ;;  %759 = vst [vmem:[%s3902_s9 + $0x1190] sm:$0xff] %v758_v25 }
 0x133   : >> { %v762_v27 = vld [vmem:[%s3906_s10 + $0x2360] sm:$0xff]  ;;  %761 = vst [vmem:[%s3902_s9 + $0x11a0] sm:$0xff] %v760_v26 }
 0x134   : >> { %v764_v28 = vld [vmem:[%s3906_s10 + $0x2380] sm:$0xff]  ;;  %763 = vst [vmem:[%s3902_s9 + $0x11b0] sm:$0xff] %v762_v27 }
 0x135   : >> { %v766_v29 = vld [vmem:[%s3906_s10 + $0x23a0] sm:$0xff]  ;;  %765 = vst [vmem:[%s3902_s9 + $0x11c0] sm:$0xff] %v764_v28 }
 0x136   : >> { %v768_v30 = vld [vmem:[%s3906_s10 + $0x23c0] sm:$0xff]  ;;  %767 = vst [vmem:[%s3902_s9 + $0x11d0] sm:$0xff] %v766_v29 }
 0x137   : >> { %v770_v31 = vld [vmem:[%s3906_s10 + $0x23e0] sm:$0xff]  ;;  %769 = vst [vmem:[%s3902_s9 + $0x11e0] sm:$0xff] %v768_v30 }
 0x138   : >> { %v772_v32 = vld [vmem:[%s3906_s10 + $0x2400] sm:$0xff]  ;;  %771 = vst [vmem:[%s3902_s9 + $0x11f0] sm:$0xff] %v770_v31 }
 0x139   : >> { %v774_v33 = vld [vmem:[%s3906_s10 + $0x2420] sm:$0xff]  ;;  %773 = vst [vmem:[%s3902_s9 + $0x1200] sm:$0xff] %v772_v32 }
 0x13a   : >> { %v776_v34 = vld [vmem:[%s3906_s10 + $0x2440] sm:$0xff]  ;;  %775 = vst [vmem:[%s3902_s9 + $0x1210] sm:$0xff] %v774_v33 }
 0x13b   : >> { %v778_v35 = vld [vmem:[%s3906_s10 + $0x2460] sm:$0xff]  ;;  %777 = vst [vmem:[%s3902_s9 + $0x1220] sm:$0xff] %v776_v34 }
 0x13c   : >> { %v780_v36 = vld [vmem:[%s3906_s10 + $0x2480] sm:$0xff]  ;;  %779 = vst [vmem:[%s3902_s9 + $0x1230] sm:$0xff] %v778_v35 }
 0x13d   : >> { %v782_v37 = vld [vmem:[%s3906_s10 + $0x24a0] sm:$0xff]  ;;  %781 = vst [vmem:[%s3902_s9 + $0x1240] sm:$0xff] %v780_v36 }
 0x13e   : >> { %v784_v38 = vld [vmem:[%s3906_s10 + $0x24c0] sm:$0xff]  ;;  %783 = vst [vmem:[%s3902_s9 + $0x1250] sm:$0xff] %v782_v37 }
 0x13f   : >> { %v786_v39 = vld [vmem:[%s3906_s10 + $0x24e0] sm:$0xff]  ;;  %785 = vst [vmem:[%s3902_s9 + $0x1260] sm:$0xff] %v784_v38 }
 0x140   : >> { %v788_v40 = vld [vmem:[%s3906_s10 + $0x2500] sm:$0xff]  ;;  %787 = vst [vmem:[%s3902_s9 + $0x1270] sm:$0xff] %v786_v39 }
 0x141   : >> { %v790_v41 = vld [vmem:[%s3906_s10 + $0x2520] sm:$0xff]  ;;  %789 = vst [vmem:[%s3902_s9 + $0x1280] sm:$0xff] %v788_v40 }
 0x142   : >> { %v792_v42 = vld [vmem:[%s3906_s10 + $0x2540] sm:$0xff]  ;;  %791 = vst [vmem:[%s3902_s9 + $0x1290] sm:$0xff] %v790_v41 }
 0x143   : >> { %v794_v43 = vld [vmem:[%s3906_s10 + $0x2560] sm:$0xff]  ;;  %793 = vst [vmem:[%s3902_s9 + $0x12a0] sm:$0xff] %v792_v42 }
 0x144   : >> { %v796_v44 = vld [vmem:[%s3906_s10 + $0x2580] sm:$0xff]  ;;  %795 = vst [vmem:[%s3902_s9 + $0x12b0] sm:$0xff] %v794_v43  ;;  %191 = sbr.rel (!%p189_p8) target bundleno = 24 (0x18), region = 120 }
 0x145   : >> { %v798_v45 = vld [vmem:[%s3906_s10 + $0x25a0] sm:$0xff]  ;;  %797 = vst [vmem:[%s3902_s9 + $0x12c0] sm:$0xff] %v796_v44 }
 0x146   : >> { %v800_v46 = vld [vmem:[%s3906_s10 + $0x25c0] sm:$0xff]  ;;  %799 = vst [vmem:[%s3902_s9 + $0x12d0] sm:$0xff] %v798_v45 }
 0x147   : >> { %v802_v47 = vld [vmem:[%s3906_s10 + $0x25e0] sm:$0xff]  ;;  %801 = vst [vmem:[%s3902_s9 + $0x12e0] sm:$0xff] %v800_v46  ;;  %s5363_s10 = smov %s4385_s24 }
 0x148   : >> { %803 = vst [vmem:[%s3902_s9 + $0x12f0] sm:$0xff] %v802_v47  ;;  %s5362_s9 = smov %s4389_s26 }
 0x149 PF: > { %p3708_p9 = scmp.ge.s32.totalorder %s3898_s18, 1  ;;  %p2067_p10 = scmp.lt.s32.totalorder %s3898_s18, 7 }
 0x14b   : > { %p2068_p11 = pnand %p3708_p9, %p2067_p10 }
 0x14c   : > { %s2074_s28 = sand.u32 (!%p2068_p11), 1, %s3874_s12   ;;  %s2114_s29 = smul.u32 (!%p2068_p11), 19, %s3882_s14 }
 0x14d   : > { %2071 = sbr.rel (%p2068_p11) target bundleno = 832 (0x340), region = 65  ;;  %s3710_s4 = sshll.u32 (!%p2068_p11), %s3886_s15, 1 }
 0x14e   : > { %s3719_s30 = smul.u32 (!%p2068_p11), 4864, %s2074_s28  ;;  %p2117_p12 = scmp.lt.s32.totalorder (!%p2068_p11), %s2114_s29, 56 }
 0x14f   : > { %p2127_p13 = scmp.lt.s32.totalorder (!%p2068_p11), %s3710_s4, 3  ;;  %p3713_p0 = scmp.ne.s32.totalorder (!%p2068_p11), %s3882_s14, 0 }
 0x150   : > { %s4678_s22 = scalar_lea.vmem (!%p2068_p11), [#allocation3], %s3719_s30 }
 0x152   : > { %s5380_s29 = smov (!%p2117_p12, %s2114_s29), 56  ;;  %s5382_s4 = smov (!%p2127_p13, %s3710_s4), 3 }
 0x153   : > { %s3709_s27 = sshll.u32 %s5380_s29, 3  ;;  %s2129_s12 = scalar_lea.vmem %s5358_s2, %s5382_s4 }
 0x154   : > { %s4666_s7 = scalar_lea.vmem %s5356_s0, %s3709_s27  ;;  %s3712_s10 = sshll.u32 %s5382_s4, 3 }
 0x155   : > { %s4676_s21 = scalar_lea.vmem %s5359_s3, %s3712_s10  ;;  %2144 = sbr.rel (%p3713_p0) target bundleno = 349 (0x15d), region = 73 }
 0x15a   : > { %v3916_v48 = vmov 0.0  }
 0x15b   : > { %2145 = vst [vmem:[#allocation2] sm:$0xff] %v3916_v48 }
 0x15c   : > { %2146 = vst [vmem:[#allocation2 + $0x8] sm:$0xff] %v3916_v48 }
 0x15d PF: > { %v2198_v49 = vld [vmem:[%s4678_s22 + $0xf0] sm:$0xff]  ;;  %v2196_v51 = vld [vmem:[%s4678_s22 + $0xe0] sm:$0xff]  ;;  %p3714_p1 = scmp.ne.s32.totalorder %s3882_s14, 2 }
 0x15e   : > { %v2262_v50 = vld [vmem:[%s4678_s22 + $0x2f0] sm:$0xff]  ;;  %2776 = vmatpush.msra.mxu0 %v2198_v49  ;;  %v2260_v53 = vld [vmem:[%s4678_s22 + $0x2e0] sm:$0xff] }
 0x15f   : > { %2816 = vmatpush.msra.mxu2 %v2262_v50  ;;  %v2230_v52 = vld [vmem:[%s4678_s22 + $0x1f0] sm:$0xff]  ;;  %v2228_v56 = vld [vmem:[%s4678_s22 + $0x1e0] sm:$0xff] }
 0x160   : > { %v2294_v54 = vld [vmem:[%s4678_s22 + $0x3f0] sm:$0xff]  ;;  %2796 = vmatpush.msra.mxu1 %v2230_v52  ;;  %2777 = vmatpush.msra.mxu0 %v2196_v51  ;;  %v2292_v58 = vld [vmem:[%s4678_s22 + $0x3e0] sm:$0xff] }
 0x161   : > { %2836 = vmatpush.msra.mxu3 %v2294_v54  ;;  %v2194_v55 = vld [vmem:[%s4678_s22 + $0xd0] sm:$0xff]  ;;  %2817 = vmatpush.msra.mxu2 %v2260_v53  ;;  %v2192_v60 = vld [vmem:[%s4678_s22 + $0xc0] sm:$0xff] }
 0x162   : > { %v2258_v57 = vld [vmem:[%s4678_s22 + $0x2d0] sm:$0xff]  ;;  %2797 = vmatpush.msra.mxu1 %v2228_v56  ;;  %v2256_v61 = vld [vmem:[%s4678_s22 + $0x2c0] sm:$0xff]  ;;  %2778 = vmatpush.msra.mxu0 %v2194_v55 }
 0x163   : > { %v2226_v59 = vld [vmem:[%s4678_s22 + $0x1d0] sm:$0xff]  ;;  %2837 = vmatpush.msra.mxu3 %v2292_v58  ;;  %2818 = vmatpush.msra.mxu2 %v2258_v57  ;;  %v2224_v63 = vld [vmem:[%s4678_s22 + $0x1c0] sm:$0xff] }
 0x164   : > { %v2290_v62 = vld [vmem:[%s4678_s22 + $0x3d0] sm:$0xff]  ;;  %v2288_v0 = vld [vmem:[%s4678_s22 + $0x3c0] sm:$0xff]  ;;  %2798 = vmatpush.msra.mxu1 %v2226_v59  ;;  %2779 = vmatpush.msra.mxu0 %v2192_v60 }
 0x165   : > { %2838 = vmatpush.msra.mxu3 %v2290_v62  ;;  %v2190_v1 = vld [vmem:[%s4678_s22 + $0xb0] sm:$0xff]  ;;  %2819 = vmatpush.msra.mxu2 %v2256_v61  ;;  %v2188_v5 = vld [vmem:[%s4678_s22 + $0xa0] sm:$0xff] }
 0x166   : > { %v2254_v2 = vld [vmem:[%s4678_s22 + $0x2b0] sm:$0xff]  ;;  %2799 = vmatpush.msra.mxu1 %v2224_v63  ;;  %v2252_v6 = vld [vmem:[%s4678_s22 + $0x2a0] sm:$0xff]  ;;  %2780 = vmatpush.msra.mxu0 %v2190_v1 }
 0x167   : > { %v2222_v3 = vld [vmem:[%s4678_s22 + $0x1b0] sm:$0xff]  ;;  %2839 = vmatpush.msra.mxu3 %v2288_v0  ;;  %2820 = vmatpush.msra.mxu2 %v2254_v2  ;;  %v2220_v7 = vld [vmem:[%s4678_s22 + $0x1a0] sm:$0xff] }
 0x168   : > { %v2286_v4 = vld [vmem:[%s4678_s22 + $0x3b0] sm:$0xff]  ;;  %v2284_v8 = vld [vmem:[%s4678_s22 + $0x3a0] sm:$0xff]  ;;  %2800 = vmatpush.msra.mxu1 %v2222_v3  ;;  %2781 = vmatpush.msra.mxu0 %v2188_v5 }
 0x169   : > { %2840 = vmatpush.msra.mxu3 %v2286_v4  ;;  %v2186_v9 = vld [vmem:[%s4678_s22 + $0x90] sm:$0xff]  ;;  %2821 = vmatpush.msra.mxu2 %v2252_v6  ;;  %v2184_v13 = vld [vmem:[%s4678_s22 + $0x80] sm:$0xff] }
 0x16a   : > { %v2250_v10 = vld [vmem:[%s4678_s22 + $0x290] sm:$0xff]  ;;  %2801 = vmatpush.msra.mxu1 %v2220_v7  ;;  %v2248_v14 = vld [vmem:[%s4678_s22 + $0x280] sm:$0xff]  ;;  %2782 = vmatpush.msra.mxu0 %v2186_v9 }
 0x16b   : > { %v2218_v11 = vld [vmem:[%s4678_s22 + $0x190] sm:$0xff]  ;;  %2841 = vmatpush.msra.mxu3 %v2284_v8  ;;  %2822 = vmatpush.msra.mxu2 %v2250_v10  ;;  %v2216_v15 = vld [vmem:[%s4678_s22 + $0x180] sm:$0xff] }
 0x16c   : > { %v2282_v12 = vld [vmem:[%s4678_s22 + $0x390] sm:$0xff]  ;;  %v2280_v16 = vld [vmem:[%s4678_s22 + $0x380] sm:$0xff]  ;;  %2802 = vmatpush.msra.mxu1 %v2218_v11  ;;  %2783 = vmatpush.msra.mxu0 %v2184_v13 }
 0x16d   : > { %2842 = vmatpush.msra.mxu3 %v2282_v12  ;;  %v2182_v17 = vld [vmem:[%s4678_s22 + $0x70] sm:$0xff]  ;;  %2823 = vmatpush.msra.mxu2 %v2248_v14  ;;  %v2180_v21 = vld [vmem:[%s4678_s22 + $0x60] sm:$0xff] }
 0x16e   : > { %v2246_v18 = vld [vmem:[%s4678_s22 + $0x270] sm:$0xff]  ;;  %2803 = vmatpush.msra.mxu1 %v2216_v15  ;;  %v2244_v22 = vld [vmem:[%s4678_s22 + $0x260] sm:$0xff]  ;;  %2784 = vmatpush.msra.mxu0 %v2182_v17 }
 0x16f   : > { %v2214_v19 = vld [vmem:[%s4678_s22 + $0x170] sm:$0xff]  ;;  %2843 = vmatpush.msra.mxu3 %v2280_v16  ;;  %2824 = vmatpush.msra.mxu2 %v2246_v18  ;;  %v2212_v23 = vld [vmem:[%s4678_s22 + $0x160] sm:$0xff] }
 0x170   : > { %v2278_v20 = vld [vmem:[%s4678_s22 + $0x370] sm:$0xff]  ;;  %v2276_v24 = vld [vmem:[%s4678_s22 + $0x360] sm:$0xff]  ;;  %2804 = vmatpush.msra.mxu1 %v2214_v19  ;;  %2785 = vmatpush.msra.mxu0 %v2180_v21 }
 0x171   : > { %2844 = vmatpush.msra.mxu3 %v2278_v20  ;;  %v2178_v25 = vld [vmem:[%s4678_s22 + $0x50] sm:$0xff]  ;;  %2825 = vmatpush.msra.mxu2 %v2244_v22  ;;  %v2176_v29 = vld [vmem:[%s4678_s22 + $0x40] sm:$0xff] }
 0x172   : > { %v2242_v26 = vld [vmem:[%s4678_s22 + $0x250] sm:$0xff]  ;;  %2805 = vmatpush.msra.mxu1 %v2212_v23  ;;  %v2240_v30 = vld [vmem:[%s4678_s22 + $0x240] sm:$0xff]  ;;  %2786 = vmatpush.msra.mxu0 %v2178_v25 }
 0x173   : > { %v2210_v27 = vld [vmem:[%s4678_s22 + $0x150] sm:$0xff]  ;;  %2845 = vmatpush.msra.mxu3 %v2276_v24  ;;  %2826 = vmatpush.msra.mxu2 %v2242_v26  ;;  %v2208_v31 = vld [vmem:[%s4678_s22 + $0x140] sm:$0xff] }
 0x174   : > { %v2274_v28 = vld [vmem:[%s4678_s22 + $0x350] sm:$0xff]  ;;  %v2272_v32 = vld [vmem:[%s4678_s22 + $0x340] sm:$0xff]  ;;  %2806 = vmatpush.msra.mxu1 %v2210_v27  ;;  %2787 = vmatpush.msra.mxu0 %v2176_v29 }
 0x175   : > { %2846 = vmatpush.msra.mxu3 %v2274_v28  ;;  %v2174_v33 = vld [vmem:[%s4678_s22 + $0x30] sm:$0xff]  ;;  %2827 = vmatpush.msra.mxu2 %v2240_v30  ;;  %v2172_v37 = vld [vmem:[%s4678_s22 + $0x20] sm:$0xff] }
 0x176   : > { %v2238_v34 = vld [vmem:[%s4678_s22 + $0x230] sm:$0xff]  ;;  %2807 = vmatpush.msra.mxu1 %v2208_v31  ;;  %v2236_v38 = vld [vmem:[%s4678_s22 + $0x220] sm:$0xff]  ;;  %2788 = vmatpush.msra.mxu0 %v2174_v33 }
 0x177   : > { %v2206_v35 = vld [vmem:[%s4678_s22 + $0x130] sm:$0xff]  ;;  %2847 = vmatpush.msra.mxu3 %v2272_v32  ;;  %2828 = vmatpush.msra.mxu2 %v2238_v34  ;;  %v2204_v39 = vld [vmem:[%s4678_s22 + $0x120] sm:$0xff] }
 0x178   : > { %v2270_v36 = vld [vmem:[%s4678_s22 + $0x330] sm:$0xff]  ;;  %v2268_v40 = vld [vmem:[%s4678_s22 + $0x320] sm:$0xff]  ;;  %2808 = vmatpush.msra.mxu1 %v2206_v35  ;;  %2789 = vmatpush.msra.mxu0 %v2172_v37 }
 0x179   : > { %2848 = vmatpush.msra.mxu3 %v2270_v36  ;;  %v2170_v41 = vld [vmem:[%s4678_s22 + $0x10] sm:$0xff]  ;;  %2829 = vmatpush.msra.mxu2 %v2236_v38  ;;  %v2168_v45 = vld [vmem:[%s4678_s22] sm:$0xff] }
 0x17a   : > { %v2234_v42 = vld [vmem:[%s4678_s22 + $0x210] sm:$0xff]  ;;  %2809 = vmatpush.msra.mxu1 %v2204_v39  ;;  %v2232_v46 = vld [vmem:[%s4678_s22 + $0x200] sm:$0xff]  ;;  %2790 = vmatpush.msra.mxu0 %v2170_v41 }
 0x17b   : > { %v2202_v43 = vld [vmem:[%s4678_s22 + $0x110] sm:$0xff]  ;;  %2849 = vmatpush.msra.mxu3 %v2268_v40  ;;  %2830 = vmatpush.msra.mxu2 %v2234_v42  ;;  %v2200_v49 = vld [vmem:[%s4678_s22 + $0x100] sm:$0xff] }
 0x17c   : > { %v2266_v44 = vld [vmem:[%s4678_s22 + $0x310] sm:$0xff]  ;;  %2810 = vmatpush.msra.mxu1 %v2202_v43  ;;  %v2264_v50 = vld [vmem:[%s4678_s22 + $0x300] sm:$0xff]  ;;  %2791 = vmatpush.msra.mxu0 %v2168_v45  ;;  %v2152_v45 = vld [vmem:[%s4666_s7 + $0x18] sm:$0xff] }
 0x17d   : > { %v2326_v47 = vld [vmem:[%s4678_s22 + $0x4f0] sm:$0xff]  ;;  %2850 = vmatpush.msra.mxu3 %v2266_v44  ;;  %2831 = vmatpush.msra.mxu2 %v2232_v46  ;;  %v2324_v51 = vld [vmem:[%s4678_s22 + $0x4e0] sm:$0xff] }
 0x17e   : > { %v2390_v48 = vld [vmem:[%s4678_s22 + $0x6f0] sm:$0xff]  ;;  %2856 = vmatpush.msrb.mxu0 %v2326_v47  ;;  %v2388_v53 = vld [vmem:[%s4678_s22 + $0x6e0] sm:$0xff]  ;;  %2811 = vmatpush.msra.mxu1 %v2200_v49 }
 0x17f   : > { %v2358_v52 = vld [vmem:[%s4678_s22 + $0x5f0] sm:$0xff]  ;;  %2896 = vmatpush.msrb.mxu2 %v2390_v48  ;;  %2851 = vmatpush.msra.mxu3 %v2264_v50  ;;  %v2356_v56 = vld [vmem:[%s4678_s22 + $0x5e0] sm:$0xff]  ;;  %v2150_v50 = vld [vmem:[%s4666_s7 + $0x8] sm:$0xff] }
 0x180   : > { %v2422_v54 = vld [vmem:[%s4678_s22 + $0x7f0] sm:$0xff]  ;;  %2857 = vmatpush.msrb.mxu0 %v2324_v51  ;;  %2876 = vmatpush.msrb.mxu1 %v2358_v52  ;;  %v2420_v58 = vld [vmem:[%s4678_s22 + $0x7e0] sm:$0xff] }
 0x181   : > { %v2322_v55 = vld [vmem:[%s4678_s22 + $0x4d0] sm:$0xff]  ;;  %2897 = vmatpush.msrb.mxu2 %v2388_v53  ;;  %2916 = vmatpush.msrb.mxu3 %v2422_v54  ;;  %v2320_v59 = vld [vmem:[%s4678_s22 + $0x4c0] sm:$0xff] }
 0x182   : > { %v2386_v57 = vld [vmem:[%s4678_s22 + $0x6d0] sm:$0xff]  ;;  %2858 = vmatpush.msrb.mxu0 %v2322_v55  ;;  %2877 = vmatpush.msrb.mxu1 %v2356_v56  ;;  %v2384_v61 = vld [vmem:[%s4678_s22 + $0x6c0] sm:$0xff] }
 0x183   : > { %v2354_v60 = vld [vmem:[%s4678_s22 + $0x5d0] sm:$0xff]  ;;  %2898 = vmatpush.msrb.mxu2 %v2386_v57  ;;  %2917 = vmatpush.msrb.mxu3 %v2420_v58  ;;  %v2352_v0 = vld [vmem:[%s4678_s22 + $0x5c0] sm:$0xff] }
 0x184   : > { %v2418_v62 = vld [vmem:[%s4678_s22 + $0x7d0] sm:$0xff]  ;;  %2859 = vmatpush.msrb.mxu0 %v2320_v59  ;;  %2878 = vmatpush.msrb.mxu1 %v2354_v60  ;;  %v2416_v2 = vld [vmem:[%s4678_s22 + $0x7c0] sm:$0xff] }
 0x185   : > { %v2318_v63 = vld [vmem:[%s4678_s22 + $0x4b0] sm:$0xff]  ;;  %2899 = vmatpush.msrb.mxu2 %v2384_v61  ;;  %2918 = vmatpush.msrb.mxu3 %v2418_v62  ;;  %v2316_v3 = vld [vmem:[%s4678_s22 + $0x4a0] sm:$0xff] }
 0x186   : > { %v2382_v1 = vld [vmem:[%s4678_s22 + $0x6b0] sm:$0xff]  ;;  %2860 = vmatpush.msrb.mxu0 %v2318_v63  ;;  %2879 = vmatpush.msrb.mxu1 %v2352_v0  ;;  %v2380_v5 = vld [vmem:[%s4678_s22 + $0x6a0] sm:$0xff] }
 0x187   : > { %v2350_v4 = vld [vmem:[%s4678_s22 + $0x5b0] sm:$0xff]  ;;  %2900 = vmatpush.msrb.mxu2 %v2382_v1  ;;  %2919 = vmatpush.msrb.mxu3 %v2416_v2  ;;  %v2348_v8 = vld [vmem:[%s4678_s22 + $0x5a0] sm:$0xff]  ;;  %v2156_v1 = vld [vmem:[%s4666_s7 + $0x38] sm:$0xff] }
 0x188   : > { %v2414_v6 = vld [vmem:[%s4678_s22 + $0x7b0] sm:$0xff]  ;;  %2861 = vmatpush.msrb.mxu0 %v2316_v3  ;;  %2880 = vmatpush.msrb.mxu1 %v2350_v4  ;;  %v2412_v10 = vld [vmem:[%s4678_s22 + $0x7a0] sm:$0xff] }
 0x189   : > { %v2314_v7 = vld [vmem:[%s4678_s22 + $0x490] sm:$0xff]  ;;  %2901 = vmatpush.msrb.mxu2 %v2380_v5  ;;  %2920 = vmatpush.msrb.mxu3 %v2414_v6  ;;  %v2312_v11 = vld [vmem:[%s4678_s22 + $0x480] sm:$0xff]  ;;  %v2154_v6 = vld [vmem:[%s4666_s7 + $0x28] sm:$0xff] }
 0x18a   : > { %v2378_v9 = vld [vmem:[%s4678_s22 + $0x690] sm:$0xff]  ;;  %2862 = vmatpush.msrb.mxu0 %v2314_v7  ;;  %2881 = vmatpush.msrb.mxu1 %v2348_v8  ;;  %v2376_v13 = vld [vmem:[%s4678_s22 + $0x680] sm:$0xff] }
 0x18b   : > { %v2346_v12 = vld [vmem:[%s4678_s22 + $0x590] sm:$0xff]  ;;  %2902 = vmatpush.msrb.mxu2 %v2378_v9  ;;  %2921 = vmatpush.msrb.mxu3 %v2412_v10  ;;  %v2344_v16 = vld [vmem:[%s4678_s22 + $0x580] sm:$0xff] }
 0x18c   : > { %v2410_v14 = vld [vmem:[%s4678_s22 + $0x790] sm:$0xff]  ;;  %2863 = vmatpush.msrb.mxu0 %v2312_v11  ;;  %2882 = vmatpush.msrb.mxu1 %v2346_v12  ;;  %v2408_v18 = vld [vmem:[%s4678_s22 + $0x780] sm:$0xff] }
 0x18d   : > { %v2310_v15 = vld [vmem:[%s4678_s22 + $0x470] sm:$0xff]  ;;  %2903 = vmatpush.msrb.mxu2 %v2376_v13  ;;  %2922 = vmatpush.msrb.mxu3 %v2410_v14  ;;  %v2308_v19 = vld [vmem:[%s4678_s22 + $0x460] sm:$0xff] }
 0x18e   : > { %v2374_v17 = vld [vmem:[%s4678_s22 + $0x670] sm:$0xff]  ;;  %2864 = vmatpush.msrb.mxu0 %v2310_v15  ;;  %2883 = vmatpush.msrb.mxu1 %v2344_v16  ;;  %v2372_v21 = vld [vmem:[%s4678_s22 + $0x660] sm:$0xff] }
 0x18f   : > { %v2342_v20 = vld [vmem:[%s4678_s22 + $0x570] sm:$0xff]  ;;  %2904 = vmatpush.msrb.mxu2 %v2374_v17  ;;  %2923 = vmatpush.msrb.mxu3 %v2408_v18  ;;  %v2340_v24 = vld [vmem:[%s4678_s22 + $0x560] sm:$0xff] }
 0x190   : > { %v2406_v22 = vld [vmem:[%s4678_s22 + $0x770] sm:$0xff]  ;;  %2865 = vmatpush.msrb.mxu0 %v2308_v19  ;;  %2884 = vmatpush.msrb.mxu1 %v2342_v20  ;;  %v2404_v26 = vld [vmem:[%s4678_s22 + $0x760] sm:$0xff] }
 0x191   : > { %v2306_v23 = vld [vmem:[%s4678_s22 + $0x450] sm:$0xff]  ;;  %2905 = vmatpush.msrb.mxu2 %v2372_v21  ;;  %2924 = vmatpush.msrb.mxu3 %v2406_v22  ;;  %v2304_v27 = vld [vmem:[%s4678_s22 + $0x440] sm:$0xff] }
 0x192   : > { %v2370_v25 = vld [vmem:[%s4678_s22 + $0x650] sm:$0xff]  ;;  %2866 = vmatpush.msrb.mxu0 %v2306_v23  ;;  %2885 = vmatpush.msrb.mxu1 %v2340_v24  ;;  %v2368_v29 = vld [vmem:[%s4678_s22 + $0x640] sm:$0xff] }
 0x193   : > { %v2338_v28 = vld [vmem:[%s4678_s22 + $0x550] sm:$0xff]  ;;  %2906 = vmatpush.msrb.mxu2 %v2370_v25  ;;  %2925 = vmatpush.msrb.mxu3 %v2404_v26  ;;  %v2336_v32 = vld [vmem:[%s4678_s22 + $0x540] sm:$0xff] }
 0x194   : > { %v2402_v30 = vld [vmem:[%s4678_s22 + $0x750] sm:$0xff]  ;;  %2867 = vmatpush.msrb.mxu0 %v2304_v27  ;;  %2886 = vmatpush.msrb.mxu1 %v2338_v28  ;;  %v2400_v34 = vld [vmem:[%s4678_s22 + $0x740] sm:$0xff] }
 0x195   : > { %v2302_v31 = vld [vmem:[%s4678_s22 + $0x430] sm:$0xff]  ;;  %2907 = vmatpush.msrb.mxu2 %v2368_v29  ;;  %2926 = vmatpush.msrb.mxu3 %v2402_v30  ;;  %v2300_v35 = vld [vmem:[%s4678_s22 + $0x420] sm:$0xff] }
 0x196   : > { %v2366_v33 = vld [vmem:[%s4678_s22 + $0x630] sm:$0xff]  ;;  %2868 = vmatpush.msrb.mxu0 %v2302_v31  ;;  %2887 = vmatpush.msrb.mxu1 %v2336_v32  ;;  %v2364_v37 = vld [vmem:[%s4678_s22 + $0x620] sm:$0xff] }
 0x197   : > { %v2334_v36 = vld [vmem:[%s4678_s22 + $0x530] sm:$0xff]  ;;  %2908 = vmatpush.msrb.mxu2 %v2366_v33  ;;  %2927 = vmatpush.msrb.mxu3 %v2400_v34  ;;  %v2151_v39 = vld [vmem:[%s4666_s7 + $0x10] sm:$0xff] }
 0x198   : > { %v2398_v38 = vld [vmem:[%s4678_s22 + $0x730] sm:$0xff]  ;;  %2869 = vmatpush.msrb.mxu0 %v2300_v35  ;;  %2888 = vmatpush.msrb.mxu1 %v2334_v36  ;;  %v2332_v41 = vld [vmem:[%s4678_s22 + $0x520] sm:$0xff] }
 0x199   : > { %v2298_v40 = vld [vmem:[%s4678_s22 + $0x410] sm:$0xff]  ;;  %2909 = vmatpush.msrb.mxu2 %v2364_v37  ;;  %2928 = vmatpush.msrb.mxu3 %v2398_v38  ;;  %v2396_v43 = vld [vmem:[%s4678_s22 + $0x720] sm:$0xff] }
 0x19a   : > { %v2362_v42 = vld [vmem:[%s4678_s22 + $0x610] sm:$0xff]  ;;  %2832 = vmatmul.f32.vlgmr.msra.gmra.mxu2 %v2151_v39  ;;  %2870 = vmatpush.msrb.mxu0 %v2298_v40  ;;  %v2296_v46 = vld [vmem:[%s4678_s22 + $0x400] sm:$0xff] }
 0x19b   : > { %v2149_v44 = vld [vmem:[%s4666_s7] sm:$0xff]  ;;  %2889 = vmatpush.msrb.mxu1 %v2332_v41  ;;  %2910 = vmatpush.msrb.mxu2 %v2362_v42  ;;  %v2360_v48 = vld [vmem:[%s4678_s22 + $0x600] sm:$0xff] }
 0x19c   : > { %v2330_v47 = vld [vmem:[%s4678_s22 + $0x510] sm:$0xff]  ;;  %2929 = vmatpush.msrb.mxu3 %v2396_v43  ;;  %2792 = vmatmul.f32.vlgmr.msra.gmra.mxu0 %v2149_v44  ;;  %v2328_v53 = vld [vmem:[%s4678_s22 + $0x500] sm:$0xff] }
 0x19d   : > { %v2394_v49 = vld [vmem:[%s4678_s22 + $0x710] sm:$0xff]  ;;  %2852 = vmatmul.f32.vlgmr.msra.gmra.mxu3 %v2152_v45  ;;  %2871 = vmatpush.msrb.mxu0 %v2296_v46  ;;  %v2392_v54 = vld [vmem:[%s4678_s22 + $0x700] sm:$0xff] }
 0x19e   : > { %v2454_v51 = vld [vmem:[%s4678_s22 + $0x8f0] sm:$0xff]  ;;  %2890 = vmatpush.msrb.mxu1 %v2330_v47  ;;  %2911 = vmatpush.msrb.mxu2 %v2360_v48  ;;  %v2452_v55 = vld [vmem:[%s4678_s22 + $0x8e0] sm:$0xff] }
 0x19f   : > { %v2518_v52 = vld [vmem:[%s4678_s22 + $0xaf0] sm:$0xff]  ;;  %2930 = vmatpush.msrb.mxu3 %v2394_v49  ;;  %2812 = vmatmul.f32.vlgmr.msra.gmra.mxu1 %v2150_v50  ;;  %v2516_v57 = vld [vmem:[%s4678_s22 + $0xae0] sm:$0xff] }
 0x1a0   : > { %v2486_v56 = vld [vmem:[%s4678_s22 + $0x9f0] sm:$0xff]  ;;  %2936 = vmatpush.msra.mxu0 %v2454_v51  ;;  %2976 = vmatpush.msra.mxu2 %v2518_v52  ;;  %v2155_v59 = vld [vmem:[%s4666_s7 + $0x30] sm:$0xff] }
 0x1a1   : > { %v2550_v58 = vld [vmem:[%s4678_s22 + $0xbf0] sm:$0xff]  ;;  %2891 = vmatpush.msrb.mxu1 %v2328_v53  ;;  %2931 = vmatpush.msrb.mxu3 %v2392_v54  ;;  %v2484_v61 = vld [vmem:[%s4678_s22 + $0x9e0] sm:$0xff] }
 0x1a2   : > { %v2450_v60 = vld [vmem:[%s4678_s22 + $0x8d0] sm:$0xff]  ;;  %2937 = vmatpush.msra.mxu0 %v2452_v55  ;;  %2977 = vmatpush.msra.mxu2 %v2516_v57  ;;  %v2548_v63 = vld [vmem:[%s4678_s22 + $0xbe0] sm:$0xff] }
 0x1a3   : > { %2956 = vmatpush.msra.mxu1 %v2486_v56  ;;  %v2514_v62 = vld [vmem:[%s4678_s22 + $0xad0] sm:$0xff]  ;;  %2996 = vmatpush.msra.mxu3 %v2550_v58  ;;  %v2448_v2 = vld [vmem:[%s4678_s22 + $0x8c0] sm:$0xff] }
 0x1a4   : > { %v2153_v0 = vld [vmem:[%s4666_s7 + $0x20] sm:$0xff]  ;;  %2912 = vmatmul.f32.vlgmr.msrb.gmra.mxu2 %v2155_v59  ;;  %2938 = vmatpush.msra.mxu0 %v2450_v60  ;;  %v2512_v4 = vld [vmem:[%s4678_s22 + $0xac0] sm:$0xff] }
 0x1a5   : > { %2957 = vmatpush.msra.mxu1 %v2484_v61  ;;  %2978 = vmatpush.msra.mxu2 %v2514_v62  ;;  %v2482_v3 = vld [vmem:[%s4678_s22 + $0x9d0] sm:$0xff]  ;;  %v2480_v8 = vld [vmem:[%s4678_s22 + $0x9c0] sm:$0xff]  ;;  %v2158_v61 = vld [vmem:[%s4666_s7 + $0x48] sm:$0xff] }
 0x1a6   : > { %2997 = vmatpush.msra.mxu3 %v2548_v63  ;;  %2872 = vmatmul.f32.vlgmr.msrb.gmra.mxu0 %v2153_v0  ;;  %v2546_v5 = vld [vmem:[%s4678_s22 + $0xbd0] sm:$0xff]  ;;  %v2544_v10 = vld [vmem:[%s4678_s22 + $0xbc0] sm:$0xff]  ;;  %v2160_v62 = vld [vmem:[%s4666_s7 + $0x58] sm:$0xff] }
 0x1a7   : > { %2932 = vmatmul.f32.vlgmr.msrb.gmra.mxu3 %v2156_v1  ;;  %2939 = vmatpush.msra.mxu0 %v2448_v2  ;;  %v2446_v7 = vld [vmem:[%s4678_s22 + $0x8b0] sm:$0xff]  ;;  %v2444_v11 = vld [vmem:[%s4678_s22 + $0x8a0] sm:$0xff] }
 0x1a8   : > { %2958 = vmatpush.msra.mxu1 %v2482_v3  ;;  %2979 = vmatpush.msra.mxu2 %v2512_v4  ;;  %v2510_v9 = vld [vmem:[%s4678_s22 + $0xab0] sm:$0xff]  ;;  %v2508_v13 = vld [vmem:[%s4678_s22 + $0xaa0] sm:$0xff] }
 0x1a9   : > { %2998 = vmatpush.msra.mxu3 %v2546_v5  ;;  %2892 = vmatmul.f32.vlgmr.msrb.gmra.mxu1 %v2154_v6  ;;  %v2478_v12 = vld [vmem:[%s4678_s22 + $0x9b0] sm:$0xff]  ;;  %v2476_v16 = vld [vmem:[%s4678_s22 + $0x9a0] sm:$0xff] }
 0x1aa   : > { %2940 = vmatpush.msra.mxu0 %v2446_v7  ;;  %2959 = vmatpush.msra.mxu1 %v2480_v8  ;;  %v2542_v14 = vld [vmem:[%s4678_s22 + $0xbb0] sm:$0xff]  ;;  %v2540_v18 = vld [vmem:[%s4678_s22 + $0xba0] sm:$0xff] }
 0x1ab   : > { %2980 = vmatpush.msra.mxu2 %v2510_v9  ;;  %2999 = vmatpush.msra.mxu3 %v2544_v10  ;;  %v2442_v15 = vld [vmem:[%s4678_s22 + $0x890] sm:$0xff]  ;;  %v2440_v19 = vld [vmem:[%s4678_s22 + $0x880] sm:$0xff] }
 0x1ac   : > { %2941 = vmatpush.msra.mxu0 %v2444_v11  ;;  %2960 = vmatpush.msra.mxu1 %v2478_v12  ;;  %v2506_v17 = vld [vmem:[%s4678_s22 + $0xa90] sm:$0xff]  ;;  %v2504_v21 = vld [vmem:[%s4678_s22 + $0xa80] sm:$0xff] }
 0x1ad   : > { %2981 = vmatpush.msra.mxu2 %v2508_v13  ;;  %3000 = vmatpush.msra.mxu3 %v2542_v14  ;;  %v2474_v20 = vld [vmem:[%s4678_s22 + $0x990] sm:$0xff]  ;;  %v2472_v24 = vld [vmem:[%s4678_s22 + $0x980] sm:$0xff] }
 0x1ae   : > { %2942 = vmatpush.msra.mxu0 %v2442_v15  ;;  %2961 = vmatpush.msra.mxu1 %v2476_v16  ;;  %v2538_v22 = vld [vmem:[%s4678_s22 + $0xb90] sm:$0xff]  ;;  %v2536_v26 = vld [vmem:[%s4678_s22 + $0xb80] sm:$0xff] }
 0x1af   : > { %2982 = vmatpush.msra.mxu2 %v2506_v17  ;;  %3001 = vmatpush.msra.mxu3 %v2540_v18  ;;  %v2438_v23 = vld [vmem:[%s4678_s22 + $0x870] sm:$0xff]  ;;  %v2436_v27 = vld [vmem:[%s4678_s22 + $0x860] sm:$0xff] }
 0x1b0   : > { %2943 = vmatpush.msra.mxu0 %v2440_v19  ;;  %2962 = vmatpush.msra.mxu1 %v2474_v20  ;;  %v2502_v25 = vld [vmem:[%s4678_s22 + $0xa70] sm:$0xff]  ;;  %v2500_v29 = vld [vmem:[%s4678_s22 + $0xa60] sm:$0xff] }
 0x1b1   : > { %2983 = vmatpush.msra.mxu2 %v2504_v21  ;;  %3002 = vmatpush.msra.mxu3 %v2538_v22  ;;  %v2470_v28 = vld [vmem:[%s4678_s22 + $0x970] sm:$0xff]  ;;  %v2468_v32 = vld [vmem:[%s4678_s22 + $0x960] sm:$0xff] }
 0x1b2   : > { %2944 = vmatpush.msra.mxu0 %v2438_v23  ;;  %2963 = vmatpush.msra.mxu1 %v2472_v24  ;;  %v2534_v30 = vld [vmem:[%s4678_s22 + $0xb70] sm:$0xff]  ;;  %v2532_v34 = vld [vmem:[%s4678_s22 + $0xb60] sm:$0xff] }
 0x1b3   : > { %2984 = vmatpush.msra.mxu2 %v2502_v25  ;;  %3003 = vmatpush.msra.mxu3 %v2536_v26  ;;  %v2434_v31 = vld [vmem:[%s4678_s22 + $0x850] sm:$0xff]  ;;  %v2432_v35 = vld [vmem:[%s4678_s22 + $0x840] sm:$0xff] }
 0x1b4   : > { %2945 = vmatpush.msra.mxu0 %v2436_v27  ;;  %2964 = vmatpush.msra.mxu1 %v2470_v28  ;;  %v2498_v33 = vld [vmem:[%s4678_s22 + $0xa50] sm:$0xff]  ;;  %v2496_v37 = vld [vmem:[%s4678_s22 + $0xa40] sm:$0xff] }
 0x1b5   : > { %2985 = vmatpush.msra.mxu2 %v2500_v29  ;;  %3004 = vmatpush.msra.mxu3 %v2534_v30  ;;  %v2466_v36 = vld [vmem:[%s4678_s22 + $0x950] sm:$0xff]  ;;  %v2464_v40 = vld [vmem:[%s4678_s22 + $0x940] sm:$0xff] }
 0x1b6   : > { %2946 = vmatpush.msra.mxu0 %v2434_v31  ;;  %2965 = vmatpush.msra.mxu1 %v2468_v32  ;;  %v2530_v38 = vld [vmem:[%s4678_s22 + $0xb50] sm:$0xff]  ;;  %v2528_v42 = vld [vmem:[%s4678_s22 + $0xb40] sm:$0xff] }
 0x1b7   : > { %2986 = vmatpush.msra.mxu2 %v2498_v33  ;;  %3005 = vmatpush.msra.mxu3 %v2532_v34  ;;  %v2430_v39 = vld [vmem:[%s4678_s22 + $0x830] sm:$0xff]  ;;  %v2428_v43 = vld [vmem:[%s4678_s22 + $0x820] sm:$0xff] }
 0x1b8   : > { %2947 = vmatpush.msra.mxu0 %v2432_v35  ;;  %2966 = vmatpush.msra.mxu1 %v2466_v36  ;;  %v2494_v41 = vld [vmem:[%s4678_s22 + $0xa30] sm:$0xff]  ;;  %v2492_v45 = vld [vmem:[%s4678_s22 + $0xa20] sm:$0xff] }
 0x1b9   : > { %2987 = vmatpush.msra.mxu2 %v2496_v37  ;;  %3006 = vmatpush.msra.mxu3 %v2530_v38  ;;  %v2462_v44 = vld [vmem:[%s4678_s22 + $0x930] sm:$0xff]  ;;  %v2460_v48 = vld [vmem:[%s4678_s22 + $0x920] sm:$0xff] }
 0x1ba   : > { %2948 = vmatpush.msra.mxu0 %v2430_v39  ;;  %2967 = vmatpush.msra.mxu1 %v2464_v40  ;;  %v2526_v46 = vld [vmem:[%s4678_s22 + $0xb30] sm:$0xff]  ;;  %v2524_v50 = vld [vmem:[%s4678_s22 + $0xb20] sm:$0xff] }
 0x1bb   : > { %2988 = vmatpush.msra.mxu2 %v2494_v41  ;;  %3007 = vmatpush.msra.mxu3 %v2528_v42  ;;  %v2426_v47 = vld [vmem:[%s4678_s22 + $0x810] sm:$0xff]  ;;  %v2424_v51 = vld [vmem:[%s4678_s22 + $0x800] sm:$0xff] }
 0x1bc   : > { %2949 = vmatpush.msra.mxu0 %v2428_v43  ;;  %2968 = vmatpush.msra.mxu1 %v2462_v44  ;;  %v2490_v49 = vld [vmem:[%s4678_s22 + $0xa10] sm:$0xff]  ;;  %v2488_v53 = vld [vmem:[%s4678_s22 + $0xa00] sm:$0xff] }
 0x1bd   : > { %2989 = vmatpush.msra.mxu2 %v2492_v45  ;;  %3008 = vmatpush.msra.mxu3 %v2526_v46  ;;  %v2458_v52 = vld [vmem:[%s4678_s22 + $0x910] sm:$0xff]  ;;  %v2159_v56 = vld [vmem:[%s4666_s7 + $0x50] sm:$0xff] }
 0x1be   : > { %2950 = vmatpush.msra.mxu0 %v2426_v47  ;;  %2969 = vmatpush.msra.mxu1 %v2460_v48  ;;  %v2522_v54 = vld [vmem:[%s4678_s22 + $0xb10] sm:$0xff]  ;;  %v2456_v59 = vld [vmem:[%s4678_s22 + $0x900] sm:$0xff] }
 0x1bf   : > { %2990 = vmatpush.msra.mxu2 %v2490_v49  ;;  %3009 = vmatpush.msra.mxu3 %v2524_v50  ;;  %v2157_v55 = vld [vmem:[%s4666_s7 + $0x40] sm:$0xff]  ;;  %v2520_v60 = vld [vmem:[%s4678_s22 + $0xb00] sm:$0xff] }
 0x1c0   : > { %2951 = vmatpush.msra.mxu0 %v2424_v51  ;;  %2970 = vmatpush.msra.mxu1 %v2458_v52  ;;  %v2582_v57 = vld [vmem:[%s4678_s22 + $0xcf0] sm:$0xff]  ;;  %v2580_v63 = vld [vmem:[%s4678_s22 + $0xce0] sm:$0xff] }
 0x1c1   : > { %v2646_v58 = vld [vmem:[%s4678_s22 + $0xef0] sm:$0xff]  ;;  %2991 = vmatpush.msra.mxu2 %v2488_v53  ;;  %3010 = vmatpush.msra.mxu3 %v2522_v54  ;;  %v2644_v1 = vld [vmem:[%s4678_s22 + $0xee0] sm:$0xff] }
 0x1c2   : > { %2952 = vmatmul.f32.vlgmr.msra.gmra.mxu0 %v2157_v55  ;;  %2992 = vmatmul.f32.vlgmr.msra.gmra.mxu2 %v2159_v56  ;;  %v2614_v0 = vld [vmem:[%s4678_s22 + $0xdf0] sm:$0xff]  ;;  %v2612_v4 = vld [vmem:[%s4678_s22 + $0xde0] sm:$0xff] }
 0x1c3   : > { %3016 = vmatpush.msrb.mxu0 %v2582_v57  ;;  %3056 = vmatpush.msrb.mxu2 %v2646_v58  ;;  %v2678_v2 = vld [vmem:[%s4678_s22 + $0xff0] sm:$0xff]  ;;  %v2676_v6 = vld [vmem:[%s4678_s22 + $0xfe0] sm:$0xff] }
 0x1c4   : > { %2971 = vmatpush.msra.mxu1 %v2456_v59  ;;  %3011 = vmatpush.msra.mxu3 %v2520_v60  ;;  %v2578_v3 = vld [vmem:[%s4678_s22 + $0xcd0] sm:$0xff]  ;;  %v2576_v7 = vld [vmem:[%s4678_s22 + $0xcc0] sm:$0xff] }
 0x1c5   : > { %2972 = vmatmul.f32.vlgmr.msra.gmra.mxu1 %v2158_v61  ;;  %3012 = vmatmul.f32.vlgmr.msra.gmra.mxu3 %v2160_v62  ;;  %v2642_v5 = vld [vmem:[%s4678_s22 + $0xed0] sm:$0xff]  ;;  %v2640_v9 = vld [vmem:[%s4678_s22 + $0xec0] sm:$0xff] }
 0x1c6   : > { %3017 = vmatpush.msrb.mxu0 %v2580_v63  ;;  %3036 = vmatpush.msrb.mxu1 %v2614_v0  ;;  %v2610_v8 = vld [vmem:[%s4678_s22 + $0xdd0] sm:$0xff]  ;;  %v2608_v12 = vld [vmem:[%s4678_s22 + $0xdc0] sm:$0xff] }
 0x1c7   : > { %3057 = vmatpush.msrb.mxu2 %v2644_v1  ;;  %3076 = vmatpush.msrb.mxu3 %v2678_v2  ;;  %v2674_v10 = vld [vmem:[%s4678_s22 + $0xfd0] sm:$0xff]  ;;  %v2672_v14 = vld [vmem:[%s4678_s22 + $0xfc0] sm:$0xff]  ;;  %v2162_v1 = vld [vmem:[%s4666_s7 + $0x68] sm:$0xff] }
 0x1c8   : > { %3018 = vmatpush.msrb.mxu0 %v2578_v3  ;;  %3037 = vmatpush.msrb.mxu1 %v2612_v4  ;;  %v2574_v11 = vld [vmem:[%s4678_s22 + $0xcb0] sm:$0xff]  ;;  %v2572_v15 = vld [vmem:[%s4678_s22 + $0xca0] sm:$0xff]  ;;  %v2164_v2 = vld [vmem:[%s4666_s7 + $0x78] sm:$0xff] }
 0x1c9   : > { %3058 = vmatpush.msrb.mxu2 %v2642_v5  ;;  %3077 = vmatpush.msrb.mxu3 %v2676_v6  ;;  %v2638_v13 = vld [vmem:[%s4678_s22 + $0xeb0] sm:$0xff]  ;;  %v2636_v17 = vld [vmem:[%s4678_s22 + $0xea0] sm:$0xff]  ;;  %v2199_v6 = vld [vmem:[%s4678_s22 + $0xf8] sm:$0xff] }
 0x1ca   : > { %3019 = vmatpush.msrb.mxu0 %v2576_v7  ;;  %3038 = vmatpush.msrb.mxu1 %v2610_v8  ;;  %v2606_v16 = vld [vmem:[%s4678_s22 + $0xdb0] sm:$0xff]  ;;  %v2604_v20 = vld [vmem:[%s4678_s22 + $0xda0] sm:$0xff] }
 0x1cb   : > { %3059 = vmatpush.msrb.mxu2 %v2640_v9  ;;  %3078 = vmatpush.msrb.mxu3 %v2674_v10  ;;  %v2670_v18 = vld [vmem:[%s4678_s22 + $0xfb0] sm:$0xff]  ;;  %v2668_v22 = vld [vmem:[%s4678_s22 + $0xfa0] sm:$0xff]  ;;  %v2197_v10 = vld [vmem:[%s4678_s22 + $0xe8] sm:$0xff] }
 0x1cc   : > { %3020 = vmatpush.msrb.mxu0 %v2574_v11  ;;  %3039 = vmatpush.msrb.mxu1 %v2608_v12  ;;  %v2570_v19 = vld [vmem:[%s4678_s22 + $0xc90] sm:$0xff]  ;;  %v2568_v23 = vld [vmem:[%s4678_s22 + $0xc80] sm:$0xff] }
 0x1cd   : > { %3060 = vmatpush.msrb.mxu2 %v2638_v13  ;;  %3079 = vmatpush.msrb.mxu3 %v2672_v14  ;;  %v2634_v21 = vld [vmem:[%s4678_s22 + $0xe90] sm:$0xff]  ;;  %v2632_v25 = vld [vmem:[%s4678_s22 + $0xe80] sm:$0xff]  ;;  %v2195_v14 = vld [vmem:[%s4678_s22 + $0xd8] sm:$0xff] }
 0x1ce   : > { %3021 = vmatpush.msrb.mxu0 %v2572_v15  ;;  %3040 = vmatpush.msrb.mxu1 %v2606_v16  ;;  %v2602_v24 = vld [vmem:[%s4678_s22 + $0xd90] sm:$0xff]  ;;  %v2600_v28 = vld [vmem:[%s4678_s22 + $0xd80] sm:$0xff] }
 0x1cf   : > { %3061 = vmatpush.msrb.mxu2 %v2636_v17  ;;  %3080 = vmatpush.msrb.mxu3 %v2670_v18  ;;  %v2666_v26 = vld [vmem:[%s4678_s22 + $0xf90] sm:$0xff]  ;;  %v2664_v30 = vld [vmem:[%s4678_s22 + $0xf80] sm:$0xff]  ;;  %v2193_v18 = vld [vmem:[%s4678_s22 + $0xc8] sm:$0xff] }
 0x1d0   : > { %3022 = vmatpush.msrb.mxu0 %v2570_v19  ;;  %3041 = vmatpush.msrb.mxu1 %v2604_v20  ;;  %v2566_v27 = vld [vmem:[%s4678_s22 + $0xc70] sm:$0xff]  ;;  %v2564_v31 = vld [vmem:[%s4678_s22 + $0xc60] sm:$0xff] }
 0x1d1   : > { %3062 = vmatpush.msrb.mxu2 %v2634_v21  ;;  %3081 = vmatpush.msrb.mxu3 %v2668_v22  ;;  %v2630_v29 = vld [vmem:[%s4678_s22 + $0xe70] sm:$0xff]  ;;  %v2628_v33 = vld [vmem:[%s4678_s22 + $0xe60] sm:$0xff]  ;;  %v2191_v22 = vld [vmem:[%s4678_s22 + $0xb8] sm:$0xff] }
 0x1d2   : > { %3023 = vmatpush.msrb.mxu0 %v2568_v23  ;;  %3042 = vmatpush.msrb.mxu1 %v2602_v24  ;;  %v2598_v32 = vld [vmem:[%s4678_s22 + $0xd70] sm:$0xff]  ;;  %v2596_v36 = vld [vmem:[%s4678_s22 + $0xd60] sm:$0xff] }
 0x1d3   : > { %3063 = vmatpush.msrb.mxu2 %v2632_v25  ;;  %3082 = vmatpush.msrb.mxu3 %v2666_v26  ;;  %v2662_v34 = vld [vmem:[%s4678_s22 + $0xf70] sm:$0xff]  ;;  %v2660_v38 = vld [vmem:[%s4678_s22 + $0xf60] sm:$0xff]  ;;  %v2189_v26 = vld [vmem:[%s4678_s22 + $0xa8] sm:$0xff] }
 0x1d4   : > { %3024 = vmatpush.msrb.mxu0 %v2566_v27  ;;  %3043 = vmatpush.msrb.mxu1 %v2600_v28  ;;  %v2562_v35 = vld [vmem:[%s4678_s22 + $0xc50] sm:$0xff]  ;;  %v2560_v39 = vld [vmem:[%s4678_s22 + $0xc40] sm:$0xff] }
 0x1d5   : > { %3064 = vmatpush.msrb.mxu2 %v2630_v29  ;;  %3083 = vmatpush.msrb.mxu3 %v2664_v30  ;;  %v2626_v37 = vld [vmem:[%s4678_s22 + $0xe50] sm:$0xff]  ;;  %v2624_v41 = vld [vmem:[%s4678_s22 + $0xe40] sm:$0xff]  ;;  %v2187_v30 = vld [vmem:[%s4678_s22 + $0x98] sm:$0xff] }
 0x1d6   : > { %3025 = vmatpush.msrb.mxu0 %v2564_v31  ;;  %3044 = vmatpush.msrb.mxu1 %v2598_v32  ;;  %v2594_v40 = vld [vmem:[%s4678_s22 + $0xd50] sm:$0xff]  ;;  %v2592_v44 = vld [vmem:[%s4678_s22 + $0xd40] sm:$0xff] }
 0x1d7   : > { %3065 = vmatpush.msrb.mxu2 %v2628_v33  ;;  %3084 = vmatpush.msrb.mxu3 %v2662_v34  ;;  %v2658_v42 = vld [vmem:[%s4678_s22 + $0xf50] sm:$0xff]  ;;  %v2656_v46 = vld [vmem:[%s4678_s22 + $0xf40] sm:$0xff]  ;;  %v2185_v34 = vld [vmem:[%s4678_s22 + $0x88] sm:$0xff] }
 0x1d8   : > { %3026 = vmatpush.msrb.mxu0 %v2562_v35  ;;  %3045 = vmatpush.msrb.mxu1 %v2596_v36  ;;  %v2558_v43 = vld [vmem:[%s4678_s22 + $0xc30] sm:$0xff]  ;;  %v2556_v47 = vld [vmem:[%s4678_s22 + $0xc20] sm:$0xff] }
 0x1d9   : > { %3066 = vmatpush.msrb.mxu2 %v2626_v37  ;;  %3085 = vmatpush.msrb.mxu3 %v2660_v38  ;;  %v2622_v45 = vld [vmem:[%s4678_s22 + $0xe30] sm:$0xff]  ;;  %v2620_v49 = vld [vmem:[%s4678_s22 + $0xe20] sm:$0xff]  ;;  %v2183_v38 = vld [vmem:[%s4678_s22 + $0x78] sm:$0xff] }
 0x1da   : > { %3027 = vmatpush.msrb.mxu0 %v2560_v39  ;;  %3046 = vmatpush.msrb.mxu1 %v2594_v40  ;;  %v2590_v48 = vld [vmem:[%s4678_s22 + $0xd30] sm:$0xff]  ;;  %v2588_v52 = vld [vmem:[%s4678_s22 + $0xd20] sm:$0xff] }
 0x1db   : > { %3067 = vmatpush.msrb.mxu2 %v2624_v41  ;;  %3086 = vmatpush.msrb.mxu3 %v2658_v42  ;;  %v2654_v50 = vld [vmem:[%s4678_s22 + $0xf30] sm:$0xff]  ;;  %v2652_v54 = vld [vmem:[%s4678_s22 + $0xf20] sm:$0xff]  ;;  %v2181_v42 = vld [vmem:[%s4678_s22 + $0x68] sm:$0xff] }
 0x1dc   : > { %3028 = vmatpush.msrb.mxu0 %v2558_v43  ;;  %3047 = vmatpush.msrb.mxu1 %v2592_v44  ;;  %v2554_v51 = vld [vmem:[%s4678_s22 + $0xc10] sm:$0xff]  ;;  %v2552_v55 = vld [vmem:[%s4678_s22 + $0xc00] sm:$0xff] }
 0x1dd   : > { %3068 = vmatpush.msrb.mxu2 %v2622_v45  ;;  %3087 = vmatpush.msrb.mxu3 %v2656_v46  ;;  %v2618_v53 = vld [vmem:[%s4678_s22 + $0xe10] sm:$0xff]  ;;  %v2616_v57 = vld [vmem:[%s4678_s22 + $0xe00] sm:$0xff]  ;;  %v2179_v46 = vld [vmem:[%s4678_s22 + $0x58] sm:$0xff] }
 0x1de   : > { %3029 = vmatpush.msrb.mxu0 %v2556_v47  ;;  %3048 = vmatpush.msrb.mxu1 %v2590_v48  ;;  %v2586_v56 = vld [vmem:[%s4678_s22 + $0xd10] sm:$0xff]  ;;  %v2163_v60 = vld [vmem:[%s4666_s7 + $0x70] sm:$0xff] }
 0x1df   : > { %3069 = vmatpush.msrb.mxu2 %v2620_v49  ;;  %3088 = vmatpush.msrb.mxu3 %v2654_v50  ;;  %v2650_v58 = vld [vmem:[%s4678_s22 + $0xf10] sm:$0xff]  ;;  %v2584_v63 = vld [vmem:[%s4678_s22 + $0xd00] sm:$0xff]  ;;  %v2177_v50 = vld [vmem:[%s4678_s22 + $0x48] sm:$0xff] }
 0x1e0   : > { %3030 = vmatpush.msrb.mxu0 %v2554_v51  ;;  %3049 = vmatpush.msrb.mxu1 %v2588_v52  ;;  %v2161_v59 = vld [vmem:[%s4666_s7 + $0x60] sm:$0xff]  ;;  %v2648_v0 = vld [vmem:[%s4678_s22 + $0xf00] sm:$0xff] }
 0x1e1   : > { %3070 = vmatpush.msrb.mxu2 %v2618_v53  ;;  %3089 = vmatpush.msrb.mxu3 %v2652_v54  ;;  %v2710_v61 = vld [vmem:[%s4678_s22 + $0x10f0] sm:$0xff]  ;;  %v2708_v3 = vld [vmem:[%s4678_s22 + $0x10e0] sm:$0xff]  ;;  %v2175_v54 = vld [vmem:[%s4678_s22 + $0x38] sm:$0xff] }
 0x1e2   : > { %3031 = vmatpush.msrb.mxu0 %v2552_v55  ;;  %3050 = vmatpush.msrb.mxu1 %v2586_v56  ;;  %v2774_v62 = vld [vmem:[%s4678_s22 + $0x12f0] sm:$0xff]  ;;  %v2772_v5 = vld [vmem:[%s4678_s22 + $0x12e0] sm:$0xff] }
 0x1e3   : > { %3071 = vmatpush.msrb.mxu2 %v2616_v57  ;;  %3090 = vmatpush.msrb.mxu3 %v2650_v58  ;;  %v2742_v4 = vld [vmem:[%s4678_s22 + $0x11f0] sm:$0xff]  ;;  %v2740_v8 = vld [vmem:[%s4678_s22 + $0x11e0] sm:$0xff]  ;;  %v2173_v58 = vld [vmem:[%s4678_s22 + $0x28] sm:$0xff] }
 0x1e4   : > { %3032 = vmatmul.f32.vlgmr.msrb.gmra.mxu0 %v2161_v59  ;;  %3072 = vmatmul.f32.vlgmr.msrb.gmra.mxu2 %v2163_v60  ;;  %v2706_v7 = vld [vmem:[%s4678_s22 + $0x10d0] sm:$0xff]  ;;  %v2704_v11 = vld [vmem:[%s4678_s22 + $0x10c0] sm:$0xff] }
 0x1e5   : > { %3096 = vmatpush.msra.mxu0 %v2710_v61  ;;  %3136 = vmatpush.msra.mxu2 %v2774_v62  ;;  %v2770_v9 = vld [vmem:[%s4678_s22 + $0x12d0] sm:$0xff]  ;;  %v2768_v13 = vld [vmem:[%s4678_s22 + $0x12c0] sm:$0xff]  ;;  %v2171_v62 = vld [vmem:[%s4678_s22 + $0x18] sm:$0xff] }
 0x1e6   : > { %3051 = vmatpush.msrb.mxu1 %v2584_v63  ;;  %3091 = vmatpush.msrb.mxu3 %v2648_v0  ;;  %v2738_v12 = vld [vmem:[%s4678_s22 + $0x11d0] sm:$0xff]  ;;  %v2736_v16 = vld [vmem:[%s4678_s22 + $0x11c0] sm:$0xff] }
 0x1e7   : > { %3052 = vmatmul.f32.vlgmr.msrb.gmra.mxu1 %v2162_v1  ;;  %3092 = vmatmul.f32.vlgmr.msrb.gmra.mxu3 %v2164_v2  ;;  %v2702_v15 = vld [vmem:[%s4678_s22 + $0x10b0] sm:$0xff]  ;;  %v2700_v19 = vld [vmem:[%s4678_s22 + $0x10a0] sm:$0xff]  ;;  %v2231_v1 = vld [vmem:[%s4678_s22 + $0x1f8] sm:$0xff] }
 0x1e8   : > { %3097 = vmatpush.msra.mxu0 %v2708_v3  ;;  %3116 = vmatpush.msra.mxu1 %v2742_v4  ;;  %v2766_v17 = vld [vmem:[%s4678_s22 + $0x12b0] sm:$0xff]  ;;  %v2764_v21 = vld [vmem:[%s4678_s22 + $0x12a0] sm:$0xff]  ;;  %v2295_v2 = vld [vmem:[%s4678_s22 + $0x3f8] sm:$0xff] }
 0x1e9   : > { %3137 = vmatpush.msra.mxu2 %v2772_v5  ;;  %3156 = vmatpush.msra.mxu3 %v2199_v6  ;;  %v2734_v20 = vld [vmem:[%s4678_s22 + $0x11b0] sm:$0xff]  ;;  %v2732_v24 = vld [vmem:[%s4678_s22 + $0x11a0] sm:$0xff]  ;;  %v2169_v4 = vld [vmem:[%s4678_s22 + $0x8] sm:$0xff] }
 0x1ea   : > { %3098 = vmatpush.msra.mxu0 %v2706_v7  ;;  %3117 = vmatpush.msra.mxu1 %v2740_v8  ;;  %v2698_v23 = vld [vmem:[%s4678_s22 + $0x1090] sm:$0xff]  ;;  %v2696_v27 = vld [vmem:[%s4678_s22 + $0x1080] sm:$0xff]  ;;  %v2166_v5 = vld [vmem:[%s4666_s7 + $0x88] sm:$0xff] }
 0x1eb   : > { %3138 = vmatpush.msra.mxu2 %v2770_v9  ;;  %3157 = vmatpush.msra.mxu3 %v2197_v10  ;;  %v2762_v25 = vld [vmem:[%s4678_s22 + $0x1290] sm:$0xff]  ;;  %v2760_v29 = vld [vmem:[%s4678_s22 + $0x1280] sm:$0xff]  ;;  %v2229_v6 = vld [vmem:[%s4678_s22 + $0x1e8] sm:$0xff] }
 0x1ec   : > { %3099 = vmatpush.msra.mxu0 %v2704_v11  ;;  %3118 = vmatpush.msra.mxu1 %v2738_v12  ;;  %v2730_v28 = vld [vmem:[%s4678_s22 + $0x1190] sm:$0xff]  ;;  %v2728_v32 = vld [vmem:[%s4678_s22 + $0x1180] sm:$0xff]  ;;  %v2263_v7 = vld [vmem:[%s4678_s22 + $0x2f8] sm:$0xff] }
 0x1ed   : > { %3139 = vmatpush.msra.mxu2 %v2768_v13  ;;  %3158 = vmatpush.msra.mxu3 %v2195_v14  ;;  %v2694_v31 = vld [vmem:[%s4678_s22 + $0x1070] sm:$0xff]  ;;  %v2692_v35 = vld [vmem:[%s4678_s22 + $0x1060] sm:$0xff]  ;;  %v2293_v8 = vld [vmem:[%s4678_s22 + $0x3e8] sm:$0xff] }
 0x1ee   : > { %3100 = vmatpush.msra.mxu0 %v2702_v15  ;;  %3119 = vmatpush.msra.mxu1 %v2736_v16  ;;  %v2758_v33 = vld [vmem:[%s4678_s22 + $0x1270] sm:$0xff]  ;;  %v2756_v37 = vld [vmem:[%s4678_s22 + $0x1260] sm:$0xff]  ;;  %v2327_v9 = vld [vmem:[%s4678_s22 + $0x4f8] sm:$0xff] }
 0x1ef   : > { %3140 = vmatpush.msra.mxu2 %v2766_v17  ;;  %3159 = vmatpush.msra.mxu3 %v2193_v18  ;;  %v2726_v36 = vld [vmem:[%s4678_s22 + $0x1170] sm:$0xff]  ;;  %v2724_v40 = vld [vmem:[%s4678_s22 + $0x1160] sm:$0xff]  ;;  %v2227_v10 = vld [vmem:[%s4678_s22 + $0x1d8] sm:$0xff] }
 0x1f0   : > { %3101 = vmatpush.msra.mxu0 %v2700_v19  ;;  %3120 = vmatpush.msra.mxu1 %v2734_v20  ;;  %v2690_v39 = vld [vmem:[%s4678_s22 + $0x1050] sm:$0xff]  ;;  %v2688_v43 = vld [vmem:[%s4678_s22 + $0x1040] sm:$0xff]  ;;  %v2261_v11 = vld [vmem:[%s4678_s22 + $0x2e8] sm:$0xff] }
 0x1f1   : > { %3141 = vmatpush.msra.mxu2 %v2764_v21  ;;  %3160 = vmatpush.msra.mxu3 %v2191_v22  ;;  %v2754_v41 = vld [vmem:[%s4678_s22 + $0x1250] sm:$0xff]  ;;  %v2752_v45 = vld [vmem:[%s4678_s22 + $0x1240] sm:$0xff]  ;;  %v2291_v12 = vld [vmem:[%s4678_s22 + $0x3d8] sm:$0xff] }
 0x1f2   : > { %3102 = vmatpush.msra.mxu0 %v2698_v23  ;;  %3121 = vmatpush.msra.mxu1 %v2732_v24  ;;  %v2722_v44 = vld [vmem:[%s4678_s22 + $0x1150] sm:$0xff]  ;;  %v2720_v48 = vld [vmem:[%s4678_s22 + $0x1140] sm:$0xff]  ;;  %v2325_v13 = vld [vmem:[%s4678_s22 + $0x4e8] sm:$0xff] }
 0x1f3   : > { %3142 = vmatpush.msra.mxu2 %v2762_v25  ;;  %3161 = vmatpush.msra.mxu3 %v2189_v26  ;;  %v2686_v47 = vld [vmem:[%s4678_s22 + $0x1030] sm:$0xff]  ;;  %v2684_v51 = vld [vmem:[%s4678_s22 + $0x1020] sm:$0xff]  ;;  %v2225_v14 = vld [vmem:[%s4678_s22 + $0x1c8] sm:$0xff] }
 0x1f4   : > { %3103 = vmatpush.msra.mxu0 %v2696_v27  ;;  %3122 = vmatpush.msra.mxu1 %v2730_v28  ;;  %v2750_v49 = vld [vmem:[%s4678_s22 + $0x1230] sm:$0xff]  ;;  %v2748_v53 = vld [vmem:[%s4678_s22 + $0x1220] sm:$0xff]  ;;  %v2259_v15 = vld [vmem:[%s4678_s22 + $0x2d8] sm:$0xff] }
 0x1f5   : > { %3143 = vmatpush.msra.mxu2 %v2760_v29  ;;  %3162 = vmatpush.msra.mxu3 %v2187_v30  ;;  %v2718_v52 = vld [vmem:[%s4678_s22 + $0x1130] sm:$0xff]  ;;  %v2716_v56 = vld [vmem:[%s4678_s22 + $0x1120] sm:$0xff]  ;;  %v2289_v16 = vld [vmem:[%s4678_s22 + $0x3c8] sm:$0xff] }
 0x1f6   : > { %3104 = vmatpush.msra.mxu0 %v2694_v31  ;;  %3123 = vmatpush.msra.mxu1 %v2728_v32  ;;  %v2682_v55 = vld [vmem:[%s4678_s22 + $0x1010] sm:$0xff]  ;;  %v2680_v59 = vld [vmem:[%s4678_s22 + $0x1000] sm:$0xff]  ;;  %v2323_v17 = vld [vmem:[%s4678_s22 + $0x4d8] sm:$0xff] }
 0x1f7   : > { %3144 = vmatpush.msra.mxu2 %v2758_v33  ;;  %3163 = vmatpush.msra.mxu3 %v2185_v34  ;;  %v2746_v57 = vld [vmem:[%s4678_s22 + $0x1210] sm:$0xff]  ;;  %v2744_v61 = vld [vmem:[%s4678_s22 + $0x1200] sm:$0xff]  ;;  %v2223_v18 = vld [vmem:[%s4678_s22 + $0x1b8] sm:$0xff] }
 0x1f8   : > { %3105 = vmatpush.msra.mxu0 %v2692_v35  ;;  %3124 = vmatpush.msra.mxu1 %v2726_v36  ;;  %v2714_v60 = vld [vmem:[%s4678_s22 + $0x1110] sm:$0xff]  ;;  %v2167_v0 = vld [vmem:[%s4666_s7 + $0x90] sm:$0xff]  ;;  %v2257_v19 = vld [vmem:[%s4678_s22 + $0x2c8] sm:$0xff] }
 0x1f9   : > { %3145 = vmatpush.msra.mxu2 %v2756_v37  ;;  %3164 = vmatpush.msra.mxu3 %v2183_v38  ;;  %v2165_v63 = vld [vmem:[%s4666_s7 + $0x80] sm:$0xff]  ;;  %v2712_v3 = vld [vmem:[%s4678_s22 + $0x1100] sm:$0xff]  ;;  %v2287_v20 = vld [vmem:[%s4678_s22 + $0x3b8] sm:$0xff] }
 0x1fa   : > { %3106 = vmatpush.msra.mxu0 %v2690_v39  ;;  %3125 = vmatpush.msra.mxu1 %v2724_v40  ;;  %v2321_v21 = vld [vmem:[%s4678_s22 + $0x4c8] sm:$0xff]  ;;  %v2255_v23 = vld [vmem:[%s4678_s22 + $0x2b8] sm:$0xff] }
 0x1fb   : > { %3146 = vmatpush.msra.mxu2 %v2754_v41  ;;  %3165 = vmatpush.msra.mxu3 %v2181_v42  ;;  %v2221_v22 = vld [vmem:[%s4678_s22 + $0x1a8] sm:$0xff]  ;;  %v2319_v25 = vld [vmem:[%s4678_s22 + $0x4b8] sm:$0xff] }
 0x1fc   : > { %3107 = vmatpush.msra.mxu0 %v2688_v43  ;;  %3126 = vmatpush.msra.mxu1 %v2722_v44  ;;  %v2285_v24 = vld [vmem:[%s4678_s22 + $0x3a8] sm:$0xff]  ;;  %v2219_v26 = vld [vmem:[%s4678_s22 + $0x198] sm:$0xff] }
 0x1fd   : > { %3147 = vmatpush.msra.mxu2 %v2752_v45  ;;  %3166 = vmatpush.msra.mxu3 %v2179_v46  ;;  %v2253_v27 = vld [vmem:[%s4678_s22 + $0x2a8] sm:$0xff]  ;;  %v2283_v28 = vld [vmem:[%s4678_s22 + $0x398] sm:$0xff] }
 0x1fe   : > { %3108 = vmatpush.msra.mxu0 %v2686_v47  ;;  %3127 = vmatpush.msra.mxu1 %v2720_v48  ;;  %v2317_v29 = vld [vmem:[%s4678_s22 + $0x4a8] sm:$0xff]  ;;  %v2251_v31 = vld [vmem:[%s4678_s22 + $0x298] sm:$0xff] }
 0x1ff   : > { %3148 = vmatpush.msra.mxu2 %v2750_v49  ;;  %3167 = vmatpush.msra.mxu3 %v2177_v50  ;;  %v2217_v30 = vld [vmem:[%s4678_s22 + $0x188] sm:$0xff]  ;;  %v2315_v33 = vld [vmem:[%s4678_s22 + $0x498] sm:$0xff] }
 0x200   : > { %3109 = vmatpush.msra.mxu0 %v2684_v51  ;;  %3128 = vmatpush.msra.mxu1 %v2718_v52  ;;  %v2281_v32 = vld [vmem:[%s4678_s22 + $0x388] sm:$0xff]  ;;  %v2215_v34 = vld [vmem:[%s4678_s22 + $0x178] sm:$0xff] }
 0x201   : > { %3149 = vmatpush.msra.mxu2 %v2748_v53  ;;  %3168 = vmatpush.msra.mxu3 %v2175_v54  ;;  %v2249_v35 = vld [vmem:[%s4678_s22 + $0x288] sm:$0xff]  ;;  %v2279_v36 = vld [vmem:[%s4678_s22 + $0x378] sm:$0xff] }
 0x202   : > { %3110 = vmatpush.msra.mxu0 %v2682_v55  ;;  %3129 = vmatpush.msra.mxu1 %v2716_v56  ;;  %v2313_v37 = vld [vmem:[%s4678_s22 + $0x488] sm:$0xff]  ;;  %v2247_v39 = vld [vmem:[%s4678_s22 + $0x278] sm:$0xff] }
 0x203   : > { %3150 = vmatpush.msra.mxu2 %v2746_v57  ;;  %3169 = vmatpush.msra.mxu3 %v2173_v58  ;;  %v2213_v38 = vld [vmem:[%s4678_s22 + $0x168] sm:$0xff]  ;;  %v2311_v41 = vld [vmem:[%s4678_s22 + $0x478] sm:$0xff] }
 0x204   : > { %3111 = vmatpush.msra.mxu0 %v2680_v59  ;;  %3130 = vmatpush.msra.mxu1 %v2714_v60  ;;  %v2277_v40 = vld [vmem:[%s4678_s22 + $0x368] sm:$0xff]  ;;  %v2211_v42 = vld [vmem:[%s4678_s22 + $0x158] sm:$0xff] }
 0x205   : > { %3151 = vmatpush.msra.mxu2 %v2744_v61  ;;  %3170 = vmatpush.msra.mxu3 %v2171_v62  ;;  %v2245_v43 = vld [vmem:[%s4678_s22 + $0x268] sm:$0xff]  ;;  %v2275_v44 = vld [vmem:[%s4678_s22 + $0x358] sm:$0xff] }
 0x206   : > { %3112 = vmatmul.f32.vlgmr.msra.gmra.mxu0 %v2165_v63  ;;  %3152 = vmatmul.f32.vlgmr.msra.gmra.mxu2 %v2167_v0  ;;  %v2309_v45 = vld [vmem:[%s4678_s22 + $0x468] sm:$0xff]  ;;  %v2243_v47 = vld [vmem:[%s4678_s22 + $0x258] sm:$0xff] }
 0x207   : > { %3176 = vmatpush.msrb.mxu0 %v2231_v1  ;;  %3216 = vmatpush.msrb.mxu2 %v2295_v2  ;;  %v2209_v46 = vld [vmem:[%s4678_s22 + $0x148] sm:$0xff]  ;;  %v2307_v49 = vld [vmem:[%s4678_s22 + $0x458] sm:$0xff] }
 0x208   : > { %3131 = vmatpush.msra.mxu1 %v2712_v3  ;;  %3171 = vmatpush.msra.mxu3 %v2169_v4  ;;  %v2273_v48 = vld [vmem:[%s4678_s22 + $0x348] sm:$0xff]  ;;  %v2207_v50 = vld [vmem:[%s4678_s22 + $0x138] sm:$0xff] }
 0x209   : > { %3132 = vmatmul.f32.vlgmr.msra.gmra.mxu1 %v2166_v5  ;;  %3177 = vmatpush.msrb.mxu0 %v2229_v6  ;;  %v2241_v51 = vld [vmem:[%s4678_s22 + $0x248] sm:$0xff]  ;;  %v2271_v52 = vld [vmem:[%s4678_s22 + $0x338] sm:$0xff] }
 0x20a   : > { %3196 = vmatpush.msrb.mxu1 %v2263_v7  ;;  %3217 = vmatpush.msrb.mxu2 %v2293_v8  ;;  %v2305_v53 = vld [vmem:[%s4678_s22 + $0x448] sm:$0xff]  ;;  %v2239_v55 = vld [vmem:[%s4678_s22 + $0x238] sm:$0xff] }
 0x20b   : > { %3236 = vmatpush.msrb.mxu3 %v2327_v9  ;;  %3178 = vmatpush.msrb.mxu0 %v2227_v10  ;;  %v2205_v54 = vld [vmem:[%s4678_s22 + $0x128] sm:$0xff]  ;;  %v2303_v57 = vld [vmem:[%s4678_s22 + $0x438] sm:$0xff] }
 0x20c   : > { %3197 = vmatpush.msrb.mxu1 %v2261_v11  ;;  %3218 = vmatpush.msrb.mxu2 %v2291_v12  ;;  %v2269_v56 = vld [vmem:[%s4678_s22 + $0x328] sm:$0xff]  ;;  %v2203_v58 = vld [vmem:[%s4678_s22 + $0x118] sm:$0xff]  ;;  %v3809_v12 = vld [vmem:[%s4666_s7] sm:$0xff] }
 0x20d   : > { %3237 = vmatpush.msrb.mxu3 %v2325_v13  ;;  %3179 = vmatpush.msrb.mxu0 %v2225_v14  ;;  %v2237_v59 = vld [vmem:[%s4678_s22 + $0x228] sm:$0xff]  ;;  %v2267_v60 = vld [vmem:[%s4678_s22 + $0x318] sm:$0xff] }
 0x20e   : > { %3198 = vmatpush.msrb.mxu1 %v2259_v15  ;;  %3219 = vmatpush.msrb.mxu2 %v2289_v16  ;;  %v2301_v61 = vld [vmem:[%s4678_s22 + $0x428] sm:$0xff]  ;;  %v2235_v63 = vld [vmem:[%s4678_s22 + $0x218] sm:$0xff] }
 0x20f   : > { %3238 = vmatpush.msrb.mxu3 %v2323_v17  ;;  %3180 = vmatpush.msrb.mxu0 %v2223_v18  ;;  %v2201_v62 = vld [vmem:[%s4678_s22 + $0x108] sm:$0xff]  ;;  %v2299_v1 = vld [vmem:[%s4678_s22 + $0x418] sm:$0xff] }
 0x210   : > { %3199 = vmatpush.msrb.mxu1 %v2257_v19  ;;  %3220 = vmatpush.msrb.mxu2 %v2287_v20  ;;  %v2265_v0 = vld [vmem:[%s4678_s22 + $0x308] sm:$0xff]  ;;  %v2359_v2 = vld [vmem:[%s4678_s22 + $0x5f8] sm:$0xff] }
 0x211   : > { %3239 = vmatpush.msrb.mxu3 %v2321_v21  ;;  %3181 = vmatpush.msrb.mxu0 %v2221_v22  ;;  %v2423_v3 = vld [vmem:[%s4678_s22 + $0x7f8] sm:$0xff]  ;;  %v2233_v4 = vld [vmem:[%s4678_s22 + $0x208] sm:$0xff] }
 0x212   : > { %3200 = vmatpush.msrb.mxu1 %v2255_v23  ;;  %3221 = vmatpush.msrb.mxu2 %v2285_v24  ;;  %v2297_v5 = vld [vmem:[%s4678_s22 + $0x408] sm:$0xff]  ;;  %v2391_v7 = vld [vmem:[%s4678_s22 + $0x6f8] sm:$0xff] }
 0x213   : > { %3240 = vmatpush.msrb.mxu3 %v2319_v25  ;;  %3182 = vmatpush.msrb.mxu0 %v2219_v26  ;;  %v2357_v6 = vld [vmem:[%s4678_s22 + $0x5e8] sm:$0xff]  ;;  %v2455_v9 = vld [vmem:[%s4678_s22 + $0x8f8] sm:$0xff] }
 0x214   : > { %3201 = vmatpush.msrb.mxu1 %v2253_v27  ;;  %3222 = vmatpush.msrb.mxu2 %v2283_v28  ;;  %v2421_v8 = vld [vmem:[%s4678_s22 + $0x7e8] sm:$0xff]  ;;  %v2355_v10 = vld [vmem:[%s4678_s22 + $0x5d8] sm:$0xff] }
 0x215   : > { %3241 = vmatpush.msrb.mxu3 %v2317_v29  ;;  %3183 = vmatpush.msrb.mxu0 %v2217_v30  ;;  %v2389_v11 = vld [vmem:[%s4678_s22 + $0x6e8] sm:$0xff]  ;;  %v2419_v13 = vld [vmem:[%s4678_s22 + $0x7d8] sm:$0xff] }
 0x216   : > { %3202 = vmatpush.msrb.mxu1 %v2251_v31  ;;  %3223 = vmatpush.msrb.mxu2 %v2281_v32  ;;  %v2453_v14 = vld [vmem:[%s4678_s22 + $0x8e8] sm:$0xff]  ;;  %v2387_v16 = vld [vmem:[%s4678_s22 + $0x6d8] sm:$0xff] }
 0x217   : > { %3242 = vmatpush.msrb.mxu3 %v2315_v33  ;;  %3184 = vmatpush.msrb.mxu0 %v2215_v34  ;;  %v2353_v15 = vld [vmem:[%s4678_s22 + $0x5c8] sm:$0xff]  ;;  %v2451_v18 = vld [vmem:[%s4678_s22 + $0x8d8] sm:$0xff] }
 0x218   : > { %3203 = vmatpush.msrb.mxu1 %v2249_v35  ;;  %3224 = vmatpush.msrb.mxu2 %v2279_v36  ;;  %v2417_v17 = vld [vmem:[%s4678_s22 + $0x7c8] sm:$0xff]  ;;  %v2351_v19 = vld [vmem:[%s4678_s22 + $0x5b8] sm:$0xff] }
 0x219   : > { %3243 = vmatpush.msrb.mxu3 %v2313_v37  ;;  %3185 = vmatpush.msrb.mxu0 %v2213_v38  ;;  %v2385_v20 = vld [vmem:[%s4678_s22 + $0x6c8] sm:$0xff]  ;;  %v2415_v21 = vld [vmem:[%s4678_s22 + $0x7b8] sm:$0xff] }
 0x21a   : > { %3204 = vmatpush.msrb.mxu1 %v2247_v39  ;;  %3225 = vmatpush.msrb.mxu2 %v2277_v40  ;;  %v2449_v22 = vld [vmem:[%s4678_s22 + $0x8c8] sm:$0xff]  ;;  %v2383_v24 = vld [vmem:[%s4678_s22 + $0x6b8] sm:$0xff] }
 0x21b   : > { %3244 = vmatpush.msrb.mxu3 %v2311_v41  ;;  %3186 = vmatpush.msrb.mxu0 %v2211_v42  ;;  %v2349_v23 = vld [vmem:[%s4678_s22 + $0x5a8] sm:$0xff]  ;;  %v2447_v26 = vld [vmem:[%s4678_s22 + $0x8b8] sm:$0xff] }
 0x21c   : > { %3205 = vmatpush.msrb.mxu1 %v2245_v43  ;;  %3226 = vmatpush.msrb.mxu2 %v2275_v44  ;;  %v2413_v25 = vld [vmem:[%s4678_s22 + $0x7a8] sm:$0xff]  ;;  %v2347_v27 = vld [vmem:[%s4678_s22 + $0x598] sm:$0xff] }
 0x21d   : > { %3245 = vmatpush.msrb.mxu3 %v2309_v45  ;;  %3187 = vmatpush.msrb.mxu0 %v2209_v46  ;;  %v2381_v28 = vld [vmem:[%s4678_s22 + $0x6a8] sm:$0xff]  ;;  %v2411_v29 = vld [vmem:[%s4678_s22 + $0x798] sm:$0xff] }
 0x21e   : > { %3206 = vmatpush.msrb.mxu1 %v2243_v47  ;;  %3227 = vmatpush.msrb.mxu2 %v2273_v48  ;;  %v2445_v30 = vld [vmem:[%s4678_s22 + $0x8a8] sm:$0xff]  ;;  %v2379_v32 = vld [vmem:[%s4678_s22 + $0x698] sm:$0xff] }
 0x21f   : > { %3246 = vmatpush.msrb.mxu3 %v2307_v49  ;;  %3188 = vmatpush.msrb.mxu0 %v2207_v50  ;;  %v2345_v31 = vld [vmem:[%s4678_s22 + $0x588] sm:$0xff]  ;;  %v2443_v34 = vld [vmem:[%s4678_s22 + $0x898] sm:$0xff] }
 0x220   : > { %3207 = vmatpush.msrb.mxu1 %v2241_v51  ;;  %3228 = vmatpush.msrb.mxu2 %v2271_v52  ;;  %v2409_v33 = vld [vmem:[%s4678_s22 + $0x788] sm:$0xff]  ;;  %v2343_v35 = vld [vmem:[%s4678_s22 + $0x578] sm:$0xff] }
 0x221   : > { %3247 = vmatpush.msrb.mxu3 %v2305_v53  ;;  %3189 = vmatpush.msrb.mxu0 %v2205_v54  ;;  %v2377_v36 = vld [vmem:[%s4678_s22 + $0x688] sm:$0xff]  ;;  %v2407_v37 = vld [vmem:[%s4678_s22 + $0x778] sm:$0xff] }
 0x222   : > { %3208 = vmatpush.msrb.mxu1 %v2239_v55  ;;  %3229 = vmatpush.msrb.mxu2 %v2269_v56  ;;  %v2441_v38 = vld [vmem:[%s4678_s22 + $0x888] sm:$0xff]  ;;  %v2375_v40 = vld [vmem:[%s4678_s22 + $0x678] sm:$0xff] }
 0x223   : > { %3248 = vmatpush.msrb.mxu3 %v2303_v57  ;;  %3190 = vmatpush.msrb.mxu0 %v2203_v58  ;;  %v2341_v39 = vld [vmem:[%s4678_s22 + $0x568] sm:$0xff]  ;;  %v2439_v42 = vld [vmem:[%s4678_s22 + $0x878] sm:$0xff] }
 0x224   : > { %3209 = vmatpush.msrb.mxu1 %v2237_v59  ;;  %3230 = vmatpush.msrb.mxu2 %v2267_v60  ;;  %v2405_v41 = vld [vmem:[%s4678_s22 + $0x768] sm:$0xff]  ;;  %v2339_v43 = vld [vmem:[%s4678_s22 + $0x558] sm:$0xff] }
 0x225   : > { %3249 = vmatpush.msrb.mxu3 %v2301_v61  ;;  %3191 = vmatpush.msrb.mxu0 %v2201_v62  ;;  %v2373_v44 = vld [vmem:[%s4678_s22 + $0x668] sm:$0xff]  ;;  %v2403_v45 = vld [vmem:[%s4678_s22 + $0x758] sm:$0xff] }
 0x226   : > { %3210 = vmatpush.msrb.mxu1 %v2235_v63  ;;  %3231 = vmatpush.msrb.mxu2 %v2265_v0  ;;  %v2437_v46 = vld [vmem:[%s4678_s22 + $0x868] sm:$0xff]  ;;  %v2371_v48 = vld [vmem:[%s4678_s22 + $0x658] sm:$0xff] }
 0x227   : > { %3250 = vmatpush.msrb.mxu3 %v2299_v1  ;;  %3256 = vmatpush.msra.mxu0 %v2359_v2  ;;  %v2337_v47 = vld [vmem:[%s4678_s22 + $0x548] sm:$0xff]  ;;  %v2435_v50 = vld [vmem:[%s4678_s22 + $0x858] sm:$0xff] }
 0x228   : > { %3296 = vmatpush.msra.mxu2 %v2423_v3  ;;  %3211 = vmatpush.msrb.mxu1 %v2233_v4  ;;  %v2401_v49 = vld [vmem:[%s4678_s22 + $0x748] sm:$0xff]  ;;  %v2335_v51 = vld [vmem:[%s4678_s22 + $0x538] sm:$0xff] }
 0x229   : > { %3251 = vmatpush.msrb.mxu3 %v2297_v5  ;;  %3257 = vmatpush.msra.mxu0 %v2357_v6  ;;  %v2369_v52 = vld [vmem:[%s4678_s22 + $0x648] sm:$0xff]  ;;  %v2399_v53 = vld [vmem:[%s4678_s22 + $0x738] sm:$0xff]  ;;  %v3812_v5 = vld [vmem:[%s4666_s7 + $0x20] sm:$0xff] }
 0x22a   : > { %3172 = vmatmul.f32.vlgmr.msra.gmra.mxu3 %v3809_v12  ;;  %3276 = vmatpush.msra.mxu1 %v2391_v7  ;;  %v2433_v54 = vld [vmem:[%s4678_s22 + $0x848] sm:$0xff]  ;;  %v2367_v56 = vld [vmem:[%s4678_s22 + $0x638] sm:$0xff] }
 0x22b   : > { %3297 = vmatpush.msra.mxu2 %v2421_v8  ;;  %3316 = vmatpush.msra.mxu3 %v2455_v9  ;;  %v2333_v55 = vld [vmem:[%s4678_s22 + $0x528] sm:$0xff]  ;;  %v2431_v58 = vld [vmem:[%s4678_s22 + $0x838] sm:$0xff] }
 0x22c   : > { %3258 = vmatpush.msra.mxu0 %v2355_v10  ;;  %3277 = vmatpush.msra.mxu1 %v2389_v11  ;;  %v2397_v57 = vld [vmem:[%s4678_s22 + $0x728] sm:$0xff]  ;;  %v2331_v59 = vld [vmem:[%s4678_s22 + $0x518] sm:$0xff]  ;;  %v3813_v10 = vld [vmem:[%s4666_s7 + $0x10] sm:$0xff] }
 0x22d   : > { %3298 = vmatpush.msra.mxu2 %v2419_v13  ;;  %3317 = vmatpush.msra.mxu3 %v2453_v14  ;;  %v2365_v60 = vld [vmem:[%s4678_s22 + $0x628] sm:$0xff]  ;;  %v2395_v61 = vld [vmem:[%s4678_s22 + $0x718] sm:$0xff] }
 0x22e   : > { %3259 = vmatpush.msra.mxu0 %v2353_v15  ;;  %3278 = vmatpush.msra.mxu1 %v2387_v16  ;;  %v2429_v62 = vld [vmem:[%s4678_s22 + $0x828] sm:$0xff]  ;;  %v2363_v1 = vld [vmem:[%s4678_s22 + $0x618] sm:$0xff] }
 0x22f   : > { %3299 = vmatpush.msra.mxu2 %v2417_v17  ;;  %3318 = vmatpush.msra.mxu3 %v2451_v18  ;;  %v3810_v63 = vld [vmem:[%s4666_s7 + $0x18] sm:$0xff]  ;;  %v3811_v3 = vld [vmem:[%s4666_s7 + $0x8] sm:$0xff] }
 0x230   : > { %3260 = vmatpush.msra.mxu0 %v2351_v19  ;;  %3279 = vmatpush.msra.mxu1 %v2385_v20  ;;  %v2329_v0 = vld [vmem:[%s4678_s22 + $0x508] sm:$0xff]  ;;  %v2427_v4 = vld [vmem:[%s4678_s22 + $0x818] sm:$0xff] }
 0x231   : > { %3300 = vmatpush.msra.mxu2 %v2415_v21  ;;  %3319 = vmatpush.msra.mxu3 %v2449_v22  ;;  %v2393_v2 = vld [vmem:[%s4678_s22 + $0x708] sm:$0xff]  ;;  %v2487_v6 = vld [vmem:[%s4678_s22 + $0x9f8] sm:$0xff]  ;;  %v2813_v21 = vpop.f32.mrf.mxu1 }
 0x232   : > { %3261 = vmatpush.msra.mxu0 %v2349_v23  ;;  %3280 = vmatpush.msra.mxu1 %v2383_v24  ;;  %v2551_v7 = vld [vmem:[%s4678_s22 + $0xbf8] sm:$0xff]  ;;  %v2361_v8 = vld [vmem:[%s4678_s22 + $0x608] sm:$0xff] }
 0x233   : > { %3301 = vmatpush.msra.mxu2 %v2413_v25  ;;  %3320 = vmatpush.msra.mxu3 %v2447_v26  ;;  %v2425_v9 = vld [vmem:[%s4678_s22 + $0x808] sm:$0xff]  ;;  %v2519_v12 = vld [vmem:[%s4678_s22 + $0xaf8] sm:$0xff]  ;;  %v2793_v26 = vpop.f32.mrf.mxu0 }
 0x234   : > { %3262 = vmatpush.msra.mxu0 %v2347_v27  ;;  %3281 = vmatpush.msra.mxu1 %v2381_v28  ;;  %v2485_v11 = vld [vmem:[%s4678_s22 + $0x9e8] sm:$0xff]  ;;  %v2583_v14 = vld [vmem:[%s4678_s22 + $0xcf8] sm:$0xff]  ;;  %v3816_v27 = vld [vmem:[%s4666_s7 + $0x40] sm:$0xff] }
 0x235   : > { %3302 = vmatpush.msra.mxu2 %v2411_v29  ;;  %3321 = vmatpush.msra.mxu3 %v2445_v30  ;;  %v2549_v13 = vld [vmem:[%s4678_s22 + $0xbe8] sm:$0xff]  ;;  %v2483_v15 = vld [vmem:[%s4678_s22 + $0x9d8] sm:$0xff]  ;;  %v2814_v30 = vadd.f32 %v2813_v21, %v2793_v26 }
 0x236   : > { %3263 = vmatpush.msra.mxu0 %v2345_v31  ;;  %3282 = vmatpush.msra.mxu1 %v2379_v32  ;;  %v2517_v16 = vld [vmem:[%s4678_s22 + $0xae8] sm:$0xff]  ;;  %v2547_v17 = vld [vmem:[%s4678_s22 + $0xbd8] sm:$0xff] }
 0x237   : > { %3303 = vmatpush.msra.mxu2 %v2409_v33  ;;  %3322 = vmatpush.msra.mxu3 %v2443_v34  ;;  %v2581_v18 = vld [vmem:[%s4678_s22 + $0xce8] sm:$0xff]  ;;  %v2515_v22 = vld [vmem:[%s4678_s22 + $0xad8] sm:$0xff]  ;;  %v2833_v33 = vpop.f32.mrf.mxu2  ;;  %v3817_v34 = vld [vmem:[%s4666_s7 + $0x30] sm:$0xff] }
 0x238   : > { %3264 = vmatpush.msra.mxu0 %v2343_v35  ;;  %3283 = vmatpush.msra.mxu1 %v2377_v36  ;;  %v3814_v19 = vld [vmem:[%s4666_s7 + $0x38] sm:$0xff]  ;;  %v3815_v24 = vld [vmem:[%s4666_s7 + $0x28] sm:$0xff] }
 0x239   : > { %3304 = vmatpush.msra.mxu2 %v2407_v37  ;;  %3323 = vmatpush.msra.mxu3 %v2441_v38  ;;  %v2481_v20 = vld [vmem:[%s4678_s22 + $0x9c8] sm:$0xff]  ;;  %v2579_v25 = vld [vmem:[%s4678_s22 + $0xcd8] sm:$0xff] }
 0x23a   : > { %3265 = vmatpush.msra.mxu0 %v2341_v39  ;;  %3284 = vmatpush.msra.mxu1 %v2375_v40  ;;  %v2545_v23 = vld [vmem:[%s4678_s22 + $0xbc8] sm:$0xff]  ;;  %v2479_v28 = vld [vmem:[%s4678_s22 + $0x9b8] sm:$0xff] }
 0x23b   : > { %3305 = vmatpush.msra.mxu2 %v2405_v41  ;;  %3324 = vmatpush.msra.mxu3 %v2439_v42  ;;  %v2513_v29 = vld [vmem:[%s4678_s22 + $0xac8] sm:$0xff]  ;;  %v2543_v31 = vld [vmem:[%s4678_s22 + $0xbb8] sm:$0xff]  ;;  %v2834_v41 = vadd.f32 %v2833_v33, %v2814_v30 }
 0x23c   : > { %3266 = vmatpush.msra.mxu0 %v2339_v43  ;;  %3285 = vmatpush.msra.mxu1 %v2373_v44  ;;  %v2577_v32 = vld [vmem:[%s4678_s22 + $0xcc8] sm:$0xff]  ;;  %v2511_v36 = vld [vmem:[%s4678_s22 + $0xab8] sm:$0xff]  ;;  %v2853_v44 = vpop.f32.mrf.mxu3 }
 0x23d   : > { %3306 = vmatpush.msra.mxu2 %v2403_v45  ;;  %3325 = vmatpush.msra.mxu3 %v2437_v46  ;;  %v2477_v35 = vld [vmem:[%s4678_s22 + $0x9a8] sm:$0xff]  ;;  %v2575_v38 = vld [vmem:[%s4678_s22 + $0xcb8] sm:$0xff] }
 0x23e   : > { %3267 = vmatpush.msra.mxu0 %v2337_v47  ;;  %3286 = vmatpush.msra.mxu1 %v2371_v48  ;;  %v2541_v37 = vld [vmem:[%s4678_s22 + $0xba8] sm:$0xff]  ;;  %v2475_v39 = vld [vmem:[%s4678_s22 + $0x998] sm:$0xff] }
 0x23f   : > { %3307 = vmatpush.msra.mxu2 %v2401_v49  ;;  %3326 = vmatpush.msra.mxu3 %v2435_v50  ;;  %v2509_v40 = vld [vmem:[%s4678_s22 + $0xaa8] sm:$0xff]  ;;  %v2539_v42 = vld [vmem:[%s4678_s22 + $0xb98] sm:$0xff] }
 0x240   : > { %3268 = vmatpush.msra.mxu0 %v2335_v51  ;;  %3287 = vmatpush.msra.mxu1 %v2369_v52  ;;  %v2573_v43 = vld [vmem:[%s4678_s22 + $0xca8] sm:$0xff]  ;;  %v2507_v46 = vld [vmem:[%s4678_s22 + $0xa98] sm:$0xff]  ;;  %v2854_v51 = vadd.f32 %v2853_v44, %v2834_v41  ;;  %v3821_v41 = vld [vmem:[%s4666_s7 + $0x60] sm:$0xff] }
 0x241   : > { %3308 = vmatpush.msra.mxu2 %v2399_v53  ;;  %3327 = vmatpush.msra.mxu3 %v2433_v54  ;;  %v2473_v45 = vld [vmem:[%s4678_s22 + $0x988] sm:$0xff]  ;;  %v2571_v48 = vld [vmem:[%s4678_s22 + $0xc98] sm:$0xff]  ;;  %v2873_v54 = vpop.f32.mrf.mxu0 }
 0x242   : > { %3269 = vmatpush.msra.mxu0 %v2333_v55  ;;  %3288 = vmatpush.msra.mxu1 %v2367_v56  ;;  %v2537_v47 = vld [vmem:[%s4678_s22 + $0xb88] sm:$0xff]  ;;  %v2471_v49 = vld [vmem:[%s4678_s22 + $0x978] sm:$0xff] }
 0x243   : > { %3309 = vmatpush.msra.mxu2 %v2397_v57  ;;  %3328 = vmatpush.msra.mxu3 %v2431_v58  ;;  %v2505_v50 = vld [vmem:[%s4678_s22 + $0xa88] sm:$0xff]  ;;  %v2535_v52 = vld [vmem:[%s4678_s22 + $0xb78] sm:$0xff] }
 0x244   : > { %3232 = vmatmul.f32.vlgmr.msrb.gmra.mxu2 %v3810_v63  ;;  %3270 = vmatpush.msra.mxu0 %v2331_v59  ;;  %v2569_v53 = vld [vmem:[%s4678_s22 + $0xc88] sm:$0xff]  ;;  %v2503_v56 = vld [vmem:[%s4678_s22 + $0xa78] sm:$0xff] }
 0x245   : > { %3289 = vmatpush.msra.mxu1 %v2365_v60  ;;  %3310 = vmatpush.msra.mxu2 %v2395_v61  ;;  %v2469_v55 = vld [vmem:[%s4678_s22 + $0x968] sm:$0xff]  ;;  %v2567_v58 = vld [vmem:[%s4678_s22 + $0xc78] sm:$0xff]  ;;  %v2874_v61 = vadd.f32 %v2873_v54, %v2854_v51 }
 0x246   : > { %3329 = vmatpush.msra.mxu3 %v2429_v62  ;;  %3192 = vmatmul.f32.vlgmr.msrb.gmra.mxu0 %v3811_v3  ;;  %v2533_v57 = vld [vmem:[%s4678_s22 + $0xb68] sm:$0xff]  ;;  %v2467_v59 = vld [vmem:[%s4678_s22 + $0x958] sm:$0xff] }
 0x247   : > { %3252 = vmatmul.f32.vlgmr.msrb.gmra.mxu3 %v3812_v5  ;;  %3271 = vmatpush.msra.mxu0 %v2329_v0  ;;  %v2501_v60 = vld [vmem:[%s4678_s22 + $0xa68] sm:$0xff]  ;;  %v2531_v62 = vld [vmem:[%s4678_s22 + $0xb58] sm:$0xff]  ;;  %v2893_v0 = vpop.f32.mrf.mxu1 }
 0x248   : > { %3290 = vmatpush.msra.mxu1 %v2363_v1  ;;  %3311 = vmatpush.msra.mxu2 %v2393_v2  ;;  %v2565_v63 = vld [vmem:[%s4678_s22 + $0xc68] sm:$0xff]  ;;  %v2499_v2 = vld [vmem:[%s4678_s22 + $0xa58] sm:$0xff] }
 0x249   : > { %3330 = vmatpush.msra.mxu3 %v2427_v4  ;;  %3212 = vmatmul.f32.vlgmr.msrb.gmra.mxu1 %v3813_v10  ;;  %v2465_v1 = vld [vmem:[%s4678_s22 + $0x948] sm:$0xff]  ;;  %v2563_v4 = vld [vmem:[%s4678_s22 + $0xc58] sm:$0xff]  ;;  %v2913_v10 = vpop.f32.mrf.mxu2 }
 0x24a   : > { %3336 = vmatpush.msrb.mxu0 %v2487_v6  ;;  %3376 = vmatpush.msrb.mxu2 %v2551_v7  ;;  %v2529_v3 = vld [vmem:[%s4678_s22 + $0xb48] sm:$0xff]  ;;  %v2463_v5 = vld [vmem:[%s4678_s22 + $0x938] sm:$0xff]  ;;  %v2894_v7 = vadd.f32 %v2893_v0, %v2874_v61 }
 0x24b   : > { %3291 = vmatpush.msra.mxu1 %v2361_v8  ;;  %3331 = vmatpush.msra.mxu3 %v2425_v9  ;;  %v2497_v6 = vld [vmem:[%s4678_s22 + $0xa48] sm:$0xff]  ;;  %v2527_v8 = vld [vmem:[%s4678_s22 + $0xb38] sm:$0xff] }
 0x24c   : > { %3337 = vmatpush.msrb.mxu0 %v2485_v11  ;;  %3377 = vmatpush.msrb.mxu2 %v2549_v13  ;;  %v2561_v9 = vld [vmem:[%s4678_s22 + $0xc48] sm:$0xff]  ;;  %v2707_v51 = vld [vmem:[%s4678_s22 + $0x10d8] sm:$0xff] }
 0x24d   : > { %3356 = vmatpush.msrb.mxu1 %v2519_v12  ;;  %3396 = vmatpush.msrb.mxu3 %v2583_v14  ;;  %v2461_v11 = vld [vmem:[%s4678_s22 + $0x928] sm:$0xff]  ;;  %v2495_v12 = vld [vmem:[%s4678_s22 + $0xa38] sm:$0xff] }
 0x24e   : > { %3312 = vmatmul.f32.vlgmr.msra.gmra.mxu2 %v3814_v19  ;;  %3338 = vmatpush.msrb.mxu0 %v2483_v15  ;;  %v2525_v13 = vld [vmem:[%s4678_s22 + $0xb28] sm:$0xff]  ;;  %v2559_v14 = vld [vmem:[%s4678_s22 + $0xc38] sm:$0xff] }
 0x24f   : > { %3357 = vmatpush.msrb.mxu1 %v2517_v16  ;;  %3378 = vmatpush.msrb.mxu2 %v2547_v17  ;;  %v2459_v15 = vld [vmem:[%s4678_s22 + $0x918] sm:$0xff]  ;;  %v2493_v16 = vld [vmem:[%s4678_s22 + $0xa28] sm:$0xff]  ;;  %v2914_v17 = vadd.f32 %v2913_v10, %v2894_v7 }
 0x250   : > { %3397 = vmatpush.msrb.mxu3 %v2581_v18  ;;  %3272 = vmatmul.f32.vlgmr.msra.gmra.mxu0 %v3815_v24  ;;  %v2523_v18 = vld [vmem:[%s4678_s22 + $0xb18] sm:$0xff]  ;;  %v2557_v19 = vld [vmem:[%s4678_s22 + $0xc28] sm:$0xff] }
 0x251   : > { %3332 = vmatmul.f32.vlgmr.msra.gmra.mxu3 %v3816_v27  ;;  %3339 = vmatpush.msrb.mxu0 %v2481_v20  ;;  %v2933_v20 = vpop.f32.mrf.mxu3  ;;  %v2457_v21 = vld [vmem:[%s4678_s22 + $0x908] sm:$0xff]  ;;  %v2555_v24 = vld [vmem:[%s4678_s22 + $0xc18] sm:$0xff] }
 0x252   : > { %3358 = vmatpush.msrb.mxu1 %v2515_v22  ;;  %3379 = vmatpush.msrb.mxu2 %v2545_v23  ;;  %v2491_v22 = vld [vmem:[%s4678_s22 + $0xa18] sm:$0xff]  ;;  %v2521_v23 = vld [vmem:[%s4678_s22 + $0xb08] sm:$0xff]  ;;  %v2934_v26 = vadd.f32 %v2933_v20, %v2914_v17 }
 0x253   : > { %3398 = vmatpush.msrb.mxu3 %v2579_v25  ;;  %3292 = vmatmul.f32.vlgmr.msra.gmra.mxu1 %v3817_v34  ;;  %v2953_v25 = vpop.f32.mrf.mxu0  ;;  %v2615_v27 = vld [vmem:[%s4678_s22 + $0xdf8] sm:$0xff]  ;;  %v2553_v30 = vld [vmem:[%s4678_s22 + $0xc08] sm:$0xff]  ;;  %v2973_v34 = vpop.f32.mrf.mxu1 }
 0x254   : > { %3340 = vmatpush.msrb.mxu0 %v2479_v28  ;;  %3359 = vmatpush.msrb.mxu1 %v2513_v29  ;;  %v2679_v28 = vld [vmem:[%s4678_s22 + $0xff8] sm:$0xff]  ;;  %v2489_v29 = vld [vmem:[%s4678_s22 + $0xa08] sm:$0xff] }
 0x255   : > { %3380 = vmatpush.msrb.mxu2 %v2543_v31  ;;  %3399 = vmatpush.msrb.mxu3 %v2577_v32  ;;  %v2954_v31 = vadd.f32 %v2953_v25, %v2934_v26  ;;  %v3818_v32 = vld [vmem:[%s4666_s7 + $0x48] sm:$0xff]  ;;  %v3819_v33 = vld [vmem:[%s4666_s7 + $0x58] sm:$0xff] }
 0x256   : > { %3341 = vmatpush.msrb.mxu0 %v2477_v35  ;;  %3360 = vmatpush.msrb.mxu1 %v2511_v36  ;;  %v2613_v35 = vld [vmem:[%s4678_s22 + $0xde8] sm:$0xff]  ;;  %v2647_v36 = vld [vmem:[%s4678_s22 + $0xef8] sm:$0xff] }
 0x257   : > { %3381 = vmatpush.msrb.mxu2 %v2541_v37  ;;  %3400 = vmatpush.msrb.mxu3 %v2575_v38  ;;  %v2677_v37 = vld [vmem:[%s4678_s22 + $0xfe8] sm:$0xff]  ;;  %v2711_v38 = vld [vmem:[%s4678_s22 + $0x10f8] sm:$0xff]  ;;  %v2974_v44 = vadd.f32 %v2973_v34, %v2954_v31 }
 0x258   : > { %3342 = vmatpush.msrb.mxu0 %v2475_v39  ;;  %3361 = vmatpush.msrb.mxu1 %v2509_v40  ;;  %v2993_v39 = vpop.f32.mrf.mxu2  ;;  %v3820_v40 = vld [vmem:[%s4666_s7 + $0x50] sm:$0xff]  ;;  %v2641_v54 = vld [vmem:[%s4678_s22 + $0xec8] sm:$0xff]  ;;  %v2599_v10 = vld [vmem:[%s4678_s22 + $0xd78] sm:$0xff] }
 0x259   : > { %3382 = vmatpush.msrb.mxu2 %v2539_v42  ;;  %3401 = vmatpush.msrb.mxu3 %v2573_v43  ;;  %v2611_v42 = vld [vmem:[%s4678_s22 + $0xdd8] sm:$0xff]  ;;  %v2645_v43 = vld [vmem:[%s4678_s22 + $0xee8] sm:$0xff] }
 0x25a   : > { %3343 = vmatpush.msrb.mxu0 %v2473_v45  ;;  %3362 = vmatpush.msrb.mxu1 %v2507_v46  ;;  %v2675_v45 = vld [vmem:[%s4678_s22 + $0xfd8] sm:$0xff]  ;;  %v2709_v46 = vld [vmem:[%s4678_s22 + $0x10e8] sm:$0xff] }
 0x25b   : > { %3383 = vmatpush.msrb.mxu2 %v2537_v47  ;;  %3402 = vmatpush.msrb.mxu3 %v2571_v48  ;;  %v2609_v47 = vld [vmem:[%s4678_s22 + $0xdc8] sm:$0xff]  ;;  %v2643_v48 = vld [vmem:[%s4678_s22 + $0xed8] sm:$0xff] }
 0x25c   : > { %3344 = vmatpush.msrb.mxu0 %v2471_v49  ;;  %3363 = vmatpush.msrb.mxu1 %v2505_v50  ;;  %v2994_v49 = vadd.f32 %v2993_v39, %v2974_v44  ;;  %v2673_v50 = vld [vmem:[%s4678_s22 + $0xfc8] sm:$0xff]  ;;  %v2627_v26 = vld [vmem:[%s4678_s22 + $0xe58] sm:$0xff] }
 0x25d   : > { %3384 = vmatpush.msrb.mxu2 %v2535_v52  ;;  %3403 = vmatpush.msrb.mxu3 %v2569_v53  ;;  %v3013_v52 = vpop.f32.mrf.mxu3  ;;  %v2607_v53 = vld [vmem:[%s4678_s22 + $0xdb8] sm:$0xff]  ;;  %v2669_v61 = vld [vmem:[%s4678_s22 + $0xfa8] sm:$0xff] }
 0x25e   : > { %3345 = vmatpush.msrb.mxu0 %v2469_v55  ;;  %3364 = vmatpush.msrb.mxu1 %v2503_v56  ;;  %v2671_v55 = vld [vmem:[%s4678_s22 + $0xfb8] sm:$0xff]  ;;  %v2705_v56 = vld [vmem:[%s4678_s22 + $0x10c8] sm:$0xff] }
 0x25f   : > { %3385 = vmatpush.msrb.mxu2 %v2533_v57  ;;  %3404 = vmatpush.msrb.mxu3 %v2567_v58  ;;  %v2605_v58 = vld [vmem:[%s4678_s22 + $0xda8] sm:$0xff]  ;;  %v2687_v39 = vld [vmem:[%s4678_s22 + $0x1038] sm:$0xff] }
 0x260   : > { %3346 = vmatpush.msrb.mxu0 %v2467_v59  ;;  %3365 = vmatpush.msrb.mxu1 %v2501_v60  ;;  %v2639_v59 = vld [vmem:[%s4678_s22 + $0xeb8] sm:$0xff]  ;;  %v3014_v60 = vadd.f32 %v3013_v52, %v2994_v49  ;;  %v2637_v0 = vld [vmem:[%s4678_s22 + $0xea8] sm:$0xff] }
 0x261   : > { %3386 = vmatpush.msrb.mxu2 %v2531_v62  ;;  %3405 = vmatpush.msrb.mxu3 %v2565_v63  ;;  %v3033_v57 = vpop.f32.mrf.mxu0  ;;  %v2703_v62 = vld [vmem:[%s4678_s22 + $0x10b8] sm:$0xff]  ;;  %v2665_v7 = vld [vmem:[%s4678_s22 + $0xf88] sm:$0xff] }
 0x262   : > { %3347 = vmatpush.msrb.mxu0 %v2465_v1  ;;  %3366 = vmatpush.msrb.mxu1 %v2499_v2  ;;  %v2603_v63 = vld [vmem:[%s4678_s22 + $0xd98] sm:$0xff]  ;;  %v3034_v1 = vadd.f32 %v3033_v57, %v3014_v60  ;;  %v2593_v25 = vld [vmem:[%s4678_s22 + $0xd48] sm:$0xff] }
 0x263   : > { %3387 = vmatpush.msrb.mxu2 %v2529_v3  ;;  %3406 = vmatpush.msrb.mxu3 %v2563_v4  ;;  %v2667_v2 = vld [vmem:[%s4678_s22 + $0xf98] sm:$0xff]  ;;  %v2701_v3 = vld [vmem:[%s4678_s22 + $0x10a8] sm:$0xff] }
 0x264   : > { %3348 = vmatpush.msrb.mxu0 %v2463_v5  ;;  %3367 = vmatpush.msrb.mxu1 %v2497_v6  ;;  %v3053_v4 = vpop.f32.mrf.mxu1  ;;  %v2601_v5 = vld [vmem:[%s4678_s22 + $0xd88] sm:$0xff]  ;;  %v2635_v6 = vld [vmem:[%s4678_s22 + $0xe98] sm:$0xff] }
 0x265   : > { %3388 = vmatpush.msrb.mxu2 %v2527_v8  ;;  %3407 = vmatpush.msrb.mxu3 %v2561_v9  ;;  %v2699_v8 = vld [vmem:[%s4678_s22 + $0x1098] sm:$0xff]  ;;  %v2625_v31 = vld [vmem:[%s4678_s22 + $0xe48] sm:$0xff] }
 0x266   : > { %3349 = vmatpush.msrb.mxu0 %v2461_v11  ;;  %3368 = vmatpush.msrb.mxu1 %v2495_v12  ;;  %v2633_v11 = vld [vmem:[%s4678_s22 + $0xe88] sm:$0xff]  ;;  %v3054_v12 = vadd.f32 %v3053_v4, %v3034_v1  ;;  %v3822_v57 = vld [vmem:[%s4666_s7 + $0x68] sm:$0xff] }
 0x267   : > { %3389 = vmatpush.msrb.mxu2 %v2525_v13  ;;  %3408 = vmatpush.msrb.mxu3 %v2559_v14  ;;  %v3073_v9 = vpop.f32.mrf.mxu2  ;;  %v2663_v13 = vld [vmem:[%s4678_s22 + $0xf78] sm:$0xff]  ;;  %v2697_v14 = vld [vmem:[%s4678_s22 + $0x1088] sm:$0xff] }
 0x268   : > { %3350 = vmatpush.msrb.mxu0 %v2459_v15  ;;  %3369 = vmatpush.msrb.mxu1 %v2493_v16  ;;  %v2597_v15 = vld [vmem:[%s4678_s22 + $0xd68] sm:$0xff]  ;;  %v2631_v16 = vld [vmem:[%s4678_s22 + $0xe78] sm:$0xff]  ;;  %v3074_v17 = vadd.f32 %v3073_v9, %v3054_v12 }
 0x269   : > { %3390 = vmatpush.msrb.mxu2 %v2523_v18  ;;  %3409 = vmatpush.msrb.mxu3 %v2557_v19  ;;  %v2661_v18 = vld [vmem:[%s4678_s22 + $0xf68] sm:$0xff]  ;;  %v2695_v19 = vld [vmem:[%s4678_s22 + $0x1078] sm:$0xff] }
 0x26a   : > { %3351 = vmatpush.msrb.mxu0 %v2457_v21  ;;  %3370 = vmatpush.msrb.mxu1 %v2491_v22  ;;  %v3093_v20 = vpop.f32.mrf.mxu3  ;;  %v2595_v21 = vld [vmem:[%s4678_s22 + $0xd58] sm:$0xff]  ;;  %v2629_v22 = vld [vmem:[%s4678_s22 + $0xe68] sm:$0xff] }
 0x26b   : > { %3391 = vmatpush.msrb.mxu2 %v2521_v23  ;;  %3410 = vmatpush.msrb.mxu3 %v2555_v24  ;;  %v2659_v23 = vld [vmem:[%s4678_s22 + $0xf58] sm:$0xff]  ;;  %v2693_v24 = vld [vmem:[%s4678_s22 + $0x1068] sm:$0xff] }
 0x26c   : > { %3352 = vmatmul.f32.vlgmr.msrb.gmra.mxu0 %v3818_v32  ;;  %3392 = vmatmul.f32.vlgmr.msrb.gmra.mxu2 %v3819_v33  ;;  %v2655_v33 = vld [vmem:[%s4678_s22 + $0xf38] sm:$0xff]  ;;  %v2689_v34 = vld [vmem:[%s4678_s22 + $0x1048] sm:$0xff] }
 0x26d   : > { %3416 = vmatpush.msra.mxu0 %v2615_v27  ;;  %3456 = vmatpush.msra.mxu2 %v2679_v28  ;;  %v3094_v27 = vadd.f32 %v3093_v20, %v3074_v17  ;;  %v2657_v28 = vld [vmem:[%s4678_s22 + $0xf48] sm:$0xff]  ;;  %v2775_v60 = vld [vmem:[%s4678_s22 + $0x12f8] sm:$0xff] }
 0x26e   : > { %3371 = vmatpush.msrb.mxu1 %v2489_v29  ;;  %3411 = vmatpush.msrb.mxu3 %v2553_v30  ;;  %v2691_v29 = vld [vmem:[%s4678_s22 + $0x1058] sm:$0xff]  ;;  %v2685_v44 = vld [vmem:[%s4678_s22 + $0x1028] sm:$0xff] }
 0x26f   : > { %3372 = vmatmul.f32.vlgmr.msrb.gmra.mxu1 %v3820_v40  ;;  %3412 = vmatmul.f32.vlgmr.msrb.gmra.mxu3 %v3821_v41  ;;  %v2591_v30 = vld [vmem:[%s4678_s22 + $0xd38] sm:$0xff]  ;;  %v2737_v1 = vld [vmem:[%s4678_s22 + $0x11c8] sm:$0xff] }
 0x270   : > { %3417 = vmatpush.msra.mxu0 %v2613_v35  ;;  %3436 = vmatpush.msra.mxu1 %v2647_v36  ;;  %v2589_v36 = vld [vmem:[%s4678_s22 + $0xd28] sm:$0xff]  ;;  %v2587_v41 = vld [vmem:[%s4678_s22 + $0xd18] sm:$0xff] }
 0x271   : > { %3457 = vmatpush.msra.mxu2 %v2677_v37  ;;  %3476 = vmatpush.msra.mxu3 %v2711_v38  ;;  %v2623_v37 = vld [vmem:[%s4678_s22 + $0xe38] sm:$0xff]  ;;  %v2653_v38 = vld [vmem:[%s4678_s22 + $0xf28] sm:$0xff] }
 0x272   : > { %3418 = vmatpush.msra.mxu0 %v2611_v42  ;;  %3437 = vmatpush.msra.mxu1 %v2645_v43  ;;  %v2621_v42 = vld [vmem:[%s4678_s22 + $0xe28] sm:$0xff]  ;;  %v2651_v43 = vld [vmem:[%s4678_s22 + $0xf18] sm:$0xff] }
 0x273   : > { %3458 = vmatpush.msra.mxu2 %v2675_v45  ;;  %3477 = vmatpush.msra.mxu3 %v2709_v46  ;;  %v2585_v46 = vld [vmem:[%s4678_s22 + $0xd08] sm:$0xff] }
 0x274   : > { %3419 = vmatpush.msra.mxu0 %v2609_v47  ;;  %3438 = vmatpush.msra.mxu1 %v2643_v48  ;;  %v2619_v47 = vld [vmem:[%s4678_s22 + $0xe18] sm:$0xff]  ;;  %v2147_v48 = vld [vmem:[#allocation2] sm:$0xff]  ;;  %v2769_v4 = vld [vmem:[%s4678_s22 + $0x12c8] sm:$0xff] }
 0x275   : > { %3459 = vmatpush.msra.mxu2 %v2673_v50  ;;  %3478 = vmatpush.msra.mxu3 %v2707_v51  ;;  %v2649_v50 = vld [vmem:[%s4678_s22 + $0xf08] sm:$0xff]  ;;  %v2683_v51 = vld [vmem:[%s4678_s22 + $0x1018] sm:$0xff] }
 0x276   : > { %3420 = vmatpush.msra.mxu0 %v2607_v53  ;;  %3439 = vmatpush.msra.mxu1 %v2641_v54  ;;  %v2743_v53 = vld [vmem:[%s4678_s22 + $0x11f8] sm:$0xff]  ;;  %v2617_v54 = vld [vmem:[%s4678_s22 + $0xe08] sm:$0xff] }
 0x277   : > { %3460 = vmatpush.msra.mxu2 %v2671_v55  ;;  %3479 = vmatpush.msra.mxu3 %v2705_v56  ;;  %v2681_v56 = vld [vmem:[%s4678_s22 + $0x1008] sm:$0xff] }
 0x278   : > { %3421 = vmatpush.msra.mxu0 %v2605_v58  ;;  %3440 = vmatpush.msra.mxu1 %v2639_v59  ;;  %v3823_v58 = vld [vmem:[%s4666_s7 + $0x78] sm:$0xff] }
 0x279   : > { %3461 = vmatpush.msra.mxu2 %v2669_v61  ;;  %3480 = vmatpush.msra.mxu3 %v2703_v62  ;;  %v2741_v59 = vld [vmem:[%s4678_s22 + $0x11e8] sm:$0xff]  ;;  %v3824_v61 = vld [vmem:[%s4666_s7 + $0x70] sm:$0xff]  ;;  %v2739_v62 = vld [vmem:[%s4678_s22 + $0x11d8] sm:$0xff] }
 0x27a   : > { %3422 = vmatpush.msra.mxu0 %v2603_v63  ;;  %3441 = vmatpush.msra.mxu1 %v2637_v0  ;;  %v3825_v63 = vld [vmem:[%s4666_s7 + $0x80] sm:$0xff]  ;;  %v2773_v0 = vld [vmem:[%s4678_s22 + $0x12e8] sm:$0xff] }
 0x27b   : > { %3462 = vmatpush.msra.mxu2 %v2667_v2  ;;  %3481 = vmatpush.msra.mxu3 %v2701_v3  ;;  %v2771_v2 = vld [vmem:[%s4678_s22 + $0x12d8] sm:$0xff]  ;;  %v2729_v9 = vld [vmem:[%s4678_s22 + $0x1188] sm:$0xff] }
 0x27c   : > { %3423 = vmatpush.msra.mxu0 %v2601_v5  ;;  %3442 = vmatpush.msra.mxu1 %v2635_v6  ;;  %v2735_v3 = vld [vmem:[%s4678_s22 + $0x11b8] sm:$0xff]  ;;  %v2733_v5 = vld [vmem:[%s4678_s22 + $0x11a8] sm:$0xff] }
 0x27d   : > { %3463 = vmatpush.msra.mxu2 %v2665_v7  ;;  %3482 = vmatpush.msra.mxu3 %v2699_v8  ;;  %v2767_v6 = vld [vmem:[%s4678_s22 + $0x12b8] sm:$0xff]  ;;  %v2765_v8 = vld [vmem:[%s4678_s22 + $0x12a8] sm:$0xff] }
 0x27e   : > { %3424 = vmatpush.msra.mxu0 %v2599_v10  ;;  %3443 = vmatpush.msra.mxu1 %v2633_v11  ;;  %v2731_v7 = vld [vmem:[%s4678_s22 + $0x1198] sm:$0xff]  ;;  %v2761_v12 = vld [vmem:[%s4678_s22 + $0x1288] sm:$0xff] }
 0x27f   : > { %3464 = vmatpush.msra.mxu2 %v2663_v13  ;;  %3483 = vmatpush.msra.mxu3 %v2697_v14  ;;  %v2763_v10 = vld [vmem:[%s4678_s22 + $0x1298] sm:$0xff]  ;;  %v2725_v13 = vld [vmem:[%s4678_s22 + $0x1168] sm:$0xff] }
 0x280   : > { %3425 = vmatpush.msra.mxu0 %v2597_v15  ;;  %3444 = vmatpush.msra.mxu1 %v2631_v16  ;;  %v2727_v11 = vld [vmem:[%s4678_s22 + $0x1178] sm:$0xff]  ;;  %v2757_v16 = vld [vmem:[%s4678_s22 + $0x1268] sm:$0xff] }
 0x281   : > { %3465 = vmatpush.msra.mxu2 %v2661_v18  ;;  %3484 = vmatpush.msra.mxu3 %v2695_v19  ;;  %v2759_v14 = vld [vmem:[%s4678_s22 + $0x1278] sm:$0xff]  ;;  %v2721_v17 = vld [vmem:[%s4678_s22 + $0x1148] sm:$0xff] }
 0x282   : > { %3426 = vmatpush.msra.mxu0 %v2595_v21  ;;  %3445 = vmatpush.msra.mxu1 %v2629_v22  ;;  %v2723_v15 = vld [vmem:[%s4678_s22 + $0x1158] sm:$0xff]  ;;  %v2753_v20 = vld [vmem:[%s4678_s22 + $0x1248] sm:$0xff] }
 0x283   : > { %3466 = vmatpush.msra.mxu2 %v2659_v23  ;;  %3485 = vmatpush.msra.mxu3 %v2693_v24  ;;  %v3113_v32 = vpop.f32.mrf.mxu0  ;;  %v2755_v18 = vld [vmem:[%s4678_s22 + $0x1258] sm:$0xff]  ;;  %v2717_v21 = vld [vmem:[%s4678_s22 + $0x1128] sm:$0xff] }
 0x284   : > { %3427 = vmatpush.msra.mxu0 %v2593_v25  ;;  %3446 = vmatpush.msra.mxu1 %v2627_v26  ;;  %v3114_v35 = vadd.f32 %v3113_v32, %v3094_v27  ;;  %v2719_v19 = vld [vmem:[%s4678_s22 + $0x1138] sm:$0xff]  ;;  %v2749_v24 = vld [vmem:[%s4678_s22 + $0x1228] sm:$0xff] }
 0x285   : > { %3467 = vmatpush.msra.mxu2 %v2657_v28  ;;  %3486 = vmatpush.msra.mxu3 %v2691_v29  ;;  %v2751_v22 = vld [vmem:[%s4678_s22 + $0x1238] sm:$0xff]  ;;  %v2713_v25 = vld [vmem:[%s4678_s22 + $0x1108] sm:$0xff]  ;;  %v3827_v29 = vld [vmem:[%s4666_s7 + $0x90] sm:$0xff] }
 0x286   : > { %3428 = vmatpush.msra.mxu0 %v2591_v30  ;;  %3447 = vmatpush.msra.mxu1 %v2625_v31  ;;  %v3133_v40 = vpop.f32.mrf.mxu1  ;;  %v2715_v23 = vld [vmem:[%s4678_s22 + $0x1118] sm:$0xff]  ;;  %v2745_v27 = vld [vmem:[%s4678_s22 + $0x1208] sm:$0xff] }
 0x287   : > { %3468 = vmatpush.msra.mxu2 %v2655_v33  ;;  %3487 = vmatpush.msra.mxu3 %v2689_v34  ;;  %v3134_v45 = vadd.f32 %v3133_v40, %v3114_v35  ;;  %v2747_v26 = vld [vmem:[%s4678_s22 + $0x1218] sm:$0xff] }
 0x288   : > { %3429 = vmatpush.msra.mxu0 %v2589_v36  ;;  %3448 = vmatpush.msra.mxu1 %v2623_v37  ;;  %v3826_v28 = vld [vmem:[%s4666_s7 + $0x88] sm:$0xff] }
 0x289   : > { %3469 = vmatpush.msra.mxu2 %v2653_v38  ;;  %3488 = vmatpush.msra.mxu3 %v2687_v39  ;;  %v3153_v49 = vpop.f32.mrf.mxu2 }
 0x28a   : > { %3430 = vmatpush.msra.mxu0 %v2587_v41  ;;  %3449 = vmatpush.msra.mxu1 %v2621_v42  ;;  %v3154_v52 = vadd.f32 %v3153_v49, %v3134_v45 }
 0x28b   : > { %3470 = vmatpush.msra.mxu2 %v2651_v43  ;;  %3489 = vmatpush.msra.mxu3 %v2685_v44 }
 0x28c   : > { %3431 = vmatpush.msra.mxu0 %v2585_v46  ;;  %3450 = vmatpush.msra.mxu1 %v2619_v47  ;;  %v3536_v55 = vadd.f32 %v3154_v52, %v2147_v48 }
 0x28d   : > { %3471 = vmatpush.msra.mxu2 %v2649_v50  ;;  %3490 = vmatpush.msra.mxu3 %v2683_v51 }
 0x28e   : > { %3432 = vmatmul.f32.vlgmr.msra.gmra.mxu0 %v3822_v57  ;;  %3472 = vmatmul.f32.vlgmr.msra.gmra.mxu2 %v3823_v58  ;;  %3538 = vst [vmem:[#allocation2] sm:$0xff] %v3536_v55 }
 0x28f   : > { %3496 = vmatpush.msrb.mxu0 %v2743_v53  ;;  %3451 = vmatpush.msra.mxu1 %v2617_v54 }
 0x290   : > { %3491 = vmatpush.msra.mxu3 %v2681_v56  ;;  %3452 = vmatmul.f32.vlgmr.msra.gmra.mxu1 %v3824_v61 }
 0x291   : > { %3492 = vmatmul.f32.vlgmr.msra.gmra.mxu3 %v3825_v63  ;;  %3497 = vmatpush.msrb.mxu0 %v2741_v59 }
 0x292   : > { %3516 = vmatpush.msrb.mxu1 %v2775_v60 }
 0x293   : > { %3498 = vmatpush.msrb.mxu0 %v2739_v62 }
 0x294   : > { %3517 = vmatpush.msrb.mxu1 %v2773_v0 }
 0x295   : > { %3499 = vmatpush.msrb.mxu0 %v2737_v1  ;;  %v2148_v1 = vld [vmem:[#allocation2 + $0x8] sm:$0xff] }
 0x296   : > { %3518 = vmatpush.msrb.mxu1 %v2771_v2 }
 0x297   : > { %3500 = vmatpush.msrb.mxu0 %v2735_v3 }
 0x298   : > { %3519 = vmatpush.msrb.mxu1 %v2769_v4 }
 0x299   : > { %3501 = vmatpush.msrb.mxu0 %v2733_v5 }
 0x29a   : > { %3520 = vmatpush.msrb.mxu1 %v2767_v6 }
 0x29b   : > { %3502 = vmatpush.msrb.mxu0 %v2731_v7 }
 0x29c   : > { %3521 = vmatpush.msrb.mxu1 %v2765_v8 }
 0x29d   : > { %3503 = vmatpush.msrb.mxu0 %v2729_v9 }
 0x29e   : > { %3522 = vmatpush.msrb.mxu1 %v2763_v10 }
 0x29f   : > { %3504 = vmatpush.msrb.mxu0 %v2727_v11 }
 0x2a0   : > { %3523 = vmatpush.msrb.mxu1 %v2761_v12 }
 0x2a1   : > { %3505 = vmatpush.msrb.mxu0 %v2725_v13 }
 0x2a2   : > { %3524 = vmatpush.msrb.mxu1 %v2759_v14 }
 0x2a3   : > { %3506 = vmatpush.msrb.mxu0 %v2723_v15 }
 0x2a4   : > { %3525 = vmatpush.msrb.mxu1 %v2757_v16 }
 0x2a5   : > { %3507 = vmatpush.msrb.mxu0 %v2721_v17 }
 0x2a6   : > { %3526 = vmatpush.msrb.mxu1 %v2755_v18 }
 0x2a7   : > { %3508 = vmatpush.msrb.mxu0 %v2719_v19 }
 0x2a8   : > { %3527 = vmatpush.msrb.mxu1 %v2753_v20 }
 0x2a9   : > { %3509 = vmatpush.msrb.mxu0 %v2717_v21 }
 0x2aa   : > { %3528 = vmatpush.msrb.mxu1 %v2751_v22 }
 0x2ab   : > { %3510 = vmatpush.msrb.mxu0 %v2715_v23 }
 0x2ac   : > { %3529 = vmatpush.msrb.mxu1 %v2749_v24 }
 0x2ad   : > { %3511 = vmatpush.msrb.mxu0 %v2713_v25  ;;  %v3173_v31 = vpop.f32.mrf.mxu3 }
 0x2ae   : > { %3530 = vmatpush.msrb.mxu1 %v2747_v26  ;;  %3512 = vmatmul.f32.vlgmr.msrb.gmra.mxu0 %v3826_v28 }
 0x2b0   : > { %3531 = vmatpush.msrb.mxu1 %v2745_v27 }
 0x2b1   : > { %3532 = vmatmul.f32.vlgmr.msrb.gmra.mxu1 %v3827_v29 }
 0x2c3   : > { %v3193_v30 = vpop.f32.mrf.mxu0 }
 0x2c4   : > { %v3194_v32 = vadd.f32 %v3193_v30, %v3173_v31 }
 0x2c6   : > { %v3213_v33 = vpop.f32.mrf.mxu1 }
 0x2c7   : > { %v3214_v34 = vadd.f32 %v3213_v33, %v3194_v32  ;;  %v3233_v35 = vpop.f32.mrf.mxu2 }
 0x2c9   : > { %v3234_v36 = vadd.f32 %v3233_v35, %v3214_v34 }
 0x2ca   : > { %v3253_v37 = vpop.f32.mrf.mxu3 }
 0x2cb   : > { %v3254_v38 = vadd.f32 %v3253_v37, %v3234_v36 }
 0x2cd   : > { %v3273_v39 = vpop.f32.mrf.mxu0 }
 0x2ce   : > { %v3274_v40 = vadd.f32 %v3273_v39, %v3254_v38 }
 0x2d0   : > { %v3293_v41 = vpop.f32.mrf.mxu1 }
 0x2d1   : > { %v3294_v42 = vadd.f32 %v3293_v41, %v3274_v40  ;;  %v3313_v43 = vpop.f32.mrf.mxu2 }
 0x2d3   : > { %v3314_v44 = vadd.f32 %v3313_v43, %v3294_v42 }
 0x2d4   : > { %v3333_v45 = vpop.f32.mrf.mxu3 }
 0x2d5   : > { %v3334_v47 = vadd.f32 %v3333_v45, %v3314_v44 }
 0x2e9   : > { %v3353_v46 = vpop.f32.mrf.mxu0 }
 0x2ea   : > { %v3354_v48 = vadd.f32 %v3353_v46, %v3334_v47 }
 0x2ec   : > { %v3373_v49 = vpop.f32.mrf.mxu1 }
 0x2ed   : > { %v3374_v51 = vadd.f32 %v3373_v49, %v3354_v48 }
 0x2ef   : > { %v3393_v50 = vpop.f32.mrf.mxu2 }
 0x2f0   : > { %v3394_v52 = vadd.f32 %v3393_v50, %v3374_v51 }
 0x2f2   : > { %v3413_v53 = vpop.f32.mrf.mxu3 }
 0x2f3   : > { %v3414_v55 = vadd.f32 %v3413_v53, %v3394_v52 }
 0x30b   : > { %v3433_v54 = vpop.f32.mrf.mxu0 }
 0x30c   : > { %v3434_v56 = vadd.f32 %v3433_v54, %v3414_v55 }
 0x30d   : > { %v3453_v57 = vpop.f32.mrf.mxu1 }
 0x30e   : > { %v3454_v59 = vadd.f32 %v3453_v57, %v3434_v56 }
 0x311   : > { %v3473_v58 = vpop.f32.mrf.mxu2 }
 0x312   : > { %v3474_v60 = vadd.f32 %v3473_v58, %v3454_v59 }
 0x314   : > { %v3493_v61 = vpop.f32.mrf.mxu3 }
 0x315   : > { %v3494_v62 = vadd.f32 %v3493_v61, %v3474_v60 }
 0x32b   : > { %v3513_v63 = vpop.f32.mrf.mxu0 }
 0x32c   : > { %v3514_v0 = vadd.f32 %v3513_v63, %v3494_v62 }
 0x32e   : > { %v3533_v2 = vpop.f32.mrf.mxu1 }
 0x32f   : > { %v3534_v3 = vadd.f32 %v3533_v2, %v3514_v0  ;;  %3543 = sbr.rel (%p3714_p1) target bundleno = 832 (0x340), region = 77 }
 0x331   : > { %v3537_v4 = vadd.f32 %v3534_v3, %v2148_v1 }
 0x333   : > { %3539 = vst [vmem:[#allocation2 + $0x8] sm:$0xff] %v3537_v4 }
 0x334   : > { %v3544_v5 = vld [vmem:[#allocation2] sm:$0xff] }
 0x335   : > { %v3546_v6 = vld [vmem:[%s2129_s12] sm:$0x3] }
 0x336   : > { %v3548_v8 = vperm.slane %v3546_v6, 0  ;;  %v3549_v9 = vperm.slane %v3546_v6, 1 }
 0x338   : > { %v3552_v10 = vadd.f32 %v3548_v8, %v3544_v5 }
 0x33a   : > { %v3545_v7 = vld [vmem:[#allocation2 + $0x8] sm:$0xff]  ;;  %v3554_v12 = vmax.f32 %v3552_v10, 0.0 }
 0x33b   : > { %v3553_v11 = vadd.f32 %v3549_v9, %v3545_v7 }
 0x33c   : > { %3556 = vst [vmem:[%s4676_s21] sm:$0xff] %v3554_v12 }
 0x33d   : > { %v3555_v13 = vmax.f32 %v3553_v11, 0.0 }
 0x33f   : > { %3557 = vst [vmem:[%s4676_s21 + $0x8] sm:$0xff] %v3555_v13 }
 0x340 PF: > { %s13_s18 = sadd.s32 1, %s3898_s18   ;;  %s5365_s12 = smov %s3878_s13 }
 0x341   : > { %p10_p2 = scmp.ge.s32.totalorder %s13_s18, 8   ;;  %s5366_s13 = smov %s3988_s25 }
 0x342   : > { %s5367_s14 = smov %s3890_s16  ;;  %s5368_s15 = smov %s3894_s17 }
 0x343   : > { %s5369_s16 = smov %s5372_s19  ;;  %s5370_s17 = smov %s5376_s20 }
 0x344   :  { %12 = sbr.rel (!%p10_p2) target bundleno = 4 (0x4), region = 131 }

// kernel: siamese_forward_impl.11
= control target key start
LH: loop header
LB: loop body
LE: loop exit
PB: predicated region body
PF: predicated region fallthrough
CT: control target
= control target key end

     0   :  { %s402_s1 = inlined_call_operand.vmem [shape: f32[512,128], index: 1, kind: input, shape index: {}]   ;;  %s403_s2 = inlined_call_operand.vmem [shape: f32[1,128], index: 2, kind: input, shape index: {}]   ;;  %s404_s0 = inlined_call_operand.vmem [shape: f32[8,512], index: 0, kind: input, shape index: {}]   ;;  %s405_s3 = inlined_call_operand.vmem [shape: f32[8,128], index: 3, kind: output, shape index: {}]  }
   0x1   :  { %v65_v0 = vld [vmem:[%s402_s1 + $0x178] sm:$0xff]  ;;  %v64_v2 = vld [vmem:[%s402_s1 + $0x170] sm:$0xff]  ;;  %v63_v6 = vld [vmem:[%s402_s1 + $0x168] sm:$0xff] }
   0x2   :  { %v33_v1 = vld [vmem:[%s402_s1 + $0x78] sm:$0xff]  ;;  %126 = vmatpush.msra.mxu2 %v65_v0  ;;  %v32_v4 = vld [vmem:[%s402_s1 + $0x70] sm:$0xff]  ;;  %v31_v8 = vld [vmem:[%s402_s1 + $0x68] sm:$0xff] }
   0x3   :  { %86 = vmatpush.msra.mxu0 %v33_v1  ;;  %v81_v3 = vld [vmem:[%s402_s1 + $0x1f8] sm:$0xff]  ;;  %v80_v7 = vld [vmem:[%s402_s1 + $0x1f0] sm:$0xff]  ;;  %v79_v10 = vld [vmem:[%s402_s1 + $0x1e8] sm:$0xff] }
   0x4   :  { %v49_v5 = vld [vmem:[%s402_s1 + $0xf8] sm:$0xff]  ;;  %146 = vmatpush.msra.mxu3 %v81_v3  ;;  %127 = vmatpush.msra.mxu2 %v64_v2  ;;  %v48_v9 = vld [vmem:[%s402_s1 + $0xf0] sm:$0xff]  ;;  %v62_v11 = vld [vmem:[%s402_s1 + $0x160] sm:$0xff] }
   0x5   :  { %106 = vmatpush.msra.mxu1 %v49_v5  ;;  %87 = vmatpush.msra.mxu0 %v32_v4  ;;  %v30_v12 = vld [vmem:[%s402_s1 + $0x60] sm:$0xff]  ;;  %v47_v13 = vld [vmem:[%s402_s1 + $0xe8] sm:$0xff]  ;;  %v61_v16 = vld [vmem:[%s402_s1 + $0x158] sm:$0xff] }
   0x6   :  { %147 = vmatpush.msra.mxu3 %v80_v7  ;;  %128 = vmatpush.msra.mxu2 %v63_v6  ;;  %v78_v14 = vld [vmem:[%s402_s1 + $0x1e0] sm:$0xff]  ;;  %v29_v17 = vld [vmem:[%s402_s1 + $0x58] sm:$0xff]  ;;  %v60_v20 = vld [vmem:[%s402_s1 + $0x150] sm:$0xff] }
   0x7   :  { %107 = vmatpush.msra.mxu1 %v48_v9  ;;  %88 = vmatpush.msra.mxu0 %v31_v8  ;;  %v46_v15 = vld [vmem:[%s402_s1 + $0xe0] sm:$0xff]  ;;  %v77_v18 = vld [vmem:[%s402_s1 + $0x1d8] sm:$0xff]  ;;  %v28_v21 = vld [vmem:[%s402_s1 + $0x50] sm:$0xff] }
   0x8   :  { %148 = vmatpush.msra.mxu3 %v79_v10  ;;  %129 = vmatpush.msra.mxu2 %v62_v11  ;;  %v45_v19 = vld [vmem:[%s402_s1 + $0xd8] sm:$0xff]  ;;  %v76_v22 = vld [vmem:[%s402_s1 + $0x1d0] sm:$0xff]  ;;  %v59_v24 = vld [vmem:[%s402_s1 + $0x148] sm:$0xff] }
   0x9   :  { %108 = vmatpush.msra.mxu1 %v47_v13  ;;  %89 = vmatpush.msra.mxu0 %v30_v12  ;;  %v44_v23 = vld [vmem:[%s402_s1 + $0xd0] sm:$0xff]  ;;  %v27_v25 = vld [vmem:[%s402_s1 + $0x48] sm:$0xff]  ;;  %v58_v28 = vld [vmem:[%s402_s1 + $0x140] sm:$0xff] }
   0xa   :  { %149 = vmatpush.msra.mxu3 %v78_v14  ;;  %130 = vmatpush.msra.mxu2 %v61_v16  ;;  %v75_v26 = vld [vmem:[%s402_s1 + $0x1c8] sm:$0xff]  ;;  %v26_v29 = vld [vmem:[%s402_s1 + $0x40] sm:$0xff]  ;;  %v57_v32 = vld [vmem:[%s402_s1 + $0x138] sm:$0xff] }
   0xb   :  { %109 = vmatpush.msra.mxu1 %v46_v15  ;;  %90 = vmatpush.msra.mxu0 %v29_v17  ;;  %v43_v27 = vld [vmem:[%s402_s1 + $0xc8] sm:$0xff]  ;;  %v74_v30 = vld [vmem:[%s402_s1 + $0x1c0] sm:$0xff]  ;;  %v25_v33 = vld [vmem:[%s402_s1 + $0x38] sm:$0xff] }
   0xc   :  { %150 = vmatpush.msra.mxu3 %v77_v18  ;;  %131 = vmatpush.msra.mxu2 %v60_v20  ;;  %v42_v31 = vld [vmem:[%s402_s1 + $0xc0] sm:$0xff]  ;;  %v73_v34 = vld [vmem:[%s402_s1 + $0x1b8] sm:$0xff]  ;;  %v56_v36 = vld [vmem:[%s402_s1 + $0x130] sm:$0xff] }
   0xd   :  { %110 = vmatpush.msra.mxu1 %v45_v19  ;;  %91 = vmatpush.msra.mxu0 %v28_v21  ;;  %v41_v35 = vld [vmem:[%s402_s1 + $0xb8] sm:$0xff]  ;;  %v24_v37 = vld [vmem:[%s402_s1 + $0x30] sm:$0xff]  ;;  %v55_v40 = vld [vmem:[%s402_s1 + $0x128] sm:$0xff] }
   0xe   :  { %151 = vmatpush.msra.mxu3 %v76_v22  ;;  %132 = vmatpush.msra.mxu2 %v59_v24  ;;  %v72_v38 = vld [vmem:[%s402_s1 + $0x1b0] sm:$0xff]  ;;  %v23_v41 = vld [vmem:[%s402_s1 + $0x28] sm:$0xff]  ;;  %v54_v44 = vld [vmem:[%s402_s1 + $0x120] sm:$0xff] }
   0xf   :  { %111 = vmatpush.msra.mxu1 %v44_v23  ;;  %92 = vmatpush.msra.mxu0 %v27_v25  ;;  %v40_v39 = vld [vmem:[%s402_s1 + $0xb0] sm:$0xff]  ;;  %v71_v42 = vld [vmem:[%s402_s1 + $0x1a8] sm:$0xff]  ;;  %v22_v45 = vld [vmem:[%s402_s1 + $0x20] sm:$0xff] }
  0x10   :  { %152 = vmatpush.msra.mxu3 %v75_v26  ;;  %133 = vmatpush.msra.mxu2 %v58_v28  ;;  %v39_v43 = vld [vmem:[%s402_s1 + $0xa8] sm:$0xff]  ;;  %v70_v46 = vld [vmem:[%s402_s1 + $0x1a0] sm:$0xff]  ;;  %v53_v48 = vld [vmem:[%s402_s1 + $0x118] sm:$0xff] }
  0x11   :  { %112 = vmatpush.msra.mxu1 %v43_v27  ;;  %93 = vmatpush.msra.mxu0 %v26_v29  ;;  %v38_v47 = vld [vmem:[%s402_s1 + $0xa0] sm:$0xff]  ;;  %v21_v49 = vld [vmem:[%s402_s1 + $0x18] sm:$0xff]  ;;  %v52_v52 = vld [vmem:[%s402_s1 + $0x110] sm:$0xff] }
  0x12   :  { %153 = vmatpush.msra.mxu3 %v74_v30  ;;  %134 = vmatpush.msra.mxu2 %v57_v32  ;;  %v69_v50 = vld [vmem:[%s402_s1 + $0x198] sm:$0xff]  ;;  %v20_v53 = vld [vmem:[%s402_s1 + $0x10] sm:$0xff]  ;;  %v51_v56 = vld [vmem:[%s402_s1 + $0x108] sm:$0xff] }
  0x13   :  { %113 = vmatpush.msra.mxu1 %v42_v31  ;;  %94 = vmatpush.msra.mxu0 %v25_v33  ;;  %v37_v51 = vld [vmem:[%s402_s1 + $0x98] sm:$0xff]  ;;  %v68_v54 = vld [vmem:[%s402_s1 + $0x190] sm:$0xff]  ;;  %v19_v57 = vld [vmem:[%s402_s1 + $0x8] sm:$0xff] }
  0x14   :  { %154 = vmatpush.msra.mxu3 %v73_v34  ;;  %135 = vmatpush.msra.mxu2 %v56_v36  ;;  %v36_v55 = vld [vmem:[%s402_s1 + $0x90] sm:$0xff]  ;;  %v67_v58 = vld [vmem:[%s402_s1 + $0x188] sm:$0xff]  ;;  %v50_v60 = vld [vmem:[%s402_s1 + $0x100] sm:$0xff] }
  0x15   :  { %114 = vmatpush.msra.mxu1 %v41_v35  ;;  %95 = vmatpush.msra.mxu0 %v24_v37  ;;  %v35_v59 = vld [vmem:[%s402_s1 + $0x88] sm:$0xff]  ;;  %v18_v61 = vld [vmem:[%s402_s1] sm:$0xff]  ;;  %v16_v62 = vld [vmem:[%s404_s0 + $0x10] sm:$0xff] }
  0x16   :  { %155 = vmatpush.msra.mxu3 %v72_v38  ;;  %136 = vmatpush.msra.mxu2 %v55_v40  ;;  %v66_v63 = vld [vmem:[%s402_s1 + $0x180] sm:$0xff]  ;;  %v17_v1 = vld [vmem:[%s404_s0 + $0x18] sm:$0xff]  ;;  %v15_v3 = vld [vmem:[%s404_s0 + $0x8] sm:$0xff] }
  0x17   :  { %115 = vmatpush.msra.mxu1 %v40_v39  ;;  %96 = vmatpush.msra.mxu0 %v23_v41  ;;  %v14_v0 = vld [vmem:[%s404_s0] sm:$0xff] }
  0x18   :  { %156 = vmatpush.msra.mxu3 %v71_v42  ;;  %137 = vmatpush.msra.mxu2 %v54_v44  ;;  %v34_v2 = vld [vmem:[%s402_s1 + $0x80] sm:$0xff] }
  0x19   :  { %116 = vmatpush.msra.mxu1 %v39_v43  ;;  %97 = vmatpush.msra.mxu0 %v22_v45  ;;  %v171_v4 = vld [vmem:[%s403_s2] ss:$0 sm:$0xff] }
  0x1a   :  { %157 = vmatpush.msra.mxu3 %v70_v46  ;;  %138 = vmatpush.msra.mxu2 %v53_v48 }
  0x1b   :  { %117 = vmatpush.msra.mxu1 %v38_v47  ;;  %98 = vmatpush.msra.mxu0 %v21_v49 }
  0x1c   :  { %158 = vmatpush.msra.mxu3 %v69_v50  ;;  %139 = vmatpush.msra.mxu2 %v52_v52 }
  0x1d   :  { %118 = vmatpush.msra.mxu1 %v37_v51  ;;  %99 = vmatpush.msra.mxu0 %v20_v53 }
  0x1e   :  { %159 = vmatpush.msra.mxu3 %v68_v54  ;;  %140 = vmatpush.msra.mxu2 %v51_v56 }
  0x1f   :  { %119 = vmatpush.msra.mxu1 %v36_v55  ;;  %100 = vmatpush.msra.mxu0 %v19_v57 }
  0x20   :  { %160 = vmatpush.msra.mxu3 %v67_v58  ;;  %141 = vmatpush.msra.mxu2 %v50_v60 }
  0x21   :  { %120 = vmatpush.msra.mxu1 %v35_v59  ;;  %101 = vmatpush.msra.mxu0 %v18_v61 }
  0x22   :  { %142 = vmatmul.f32.vlgmr.msra.gmra.mxu2 %v16_v62  ;;  %161 = vmatpush.msra.mxu3 %v66_v63 }
  0x23   :  { %102 = vmatmul.f32.vlgmr.msra.gmra.mxu0 %v14_v0  ;;  %162 = vmatmul.f32.vlgmr.msra.gmra.mxu3 %v17_v1 }
  0x24   :  { %121 = vmatpush.msra.mxu1 %v34_v2 }
  0x25   :  { %122 = vmatmul.f32.vlgmr.msra.gmra.mxu1 %v15_v3 }
  0xa0   :  { %v103_v5 = vpop.f32.mrf.mxu0 }
  0xa1   :  { %v104_v6 = vadd.f32 %v171_v4, %v103_v5 }
  0xa2   :  { %v123_v7 = vpop.f32.mrf.mxu1 }
  0xa3   :  { %v124_v8 = vadd.f32 %v123_v7, %v104_v6 }
  0xa5   :  { %v143_v9 = vpop.f32.mrf.mxu2 }
  0xa6   :  { %v144_v10 = vadd.f32 %v143_v9, %v124_v8  ;;  %v163_v11 = vpop.f32.mrf.mxu3 }
  0xa8   :  { %v164_v12 = vadd.f32 %v163_v11, %v144_v10 }
  0xaa   :  { %166 = vst [vmem:[%s405_s3] sm:$0xff] %v164_v12 }

// kernel: siamese_forward_impl.10
= control target key start
LH: loop header
LB: loop body
LE: loop exit
PB: predicated region body
PF: predicated region fallthrough
CT: control target
= control target key end

     0   :  { %s1455_s1 = inlined_call_operand.vmem [shape: f32[512,512], index: 1, kind: input, shape index: {}]   ;;  %s1456_s0 = inlined_call_operand.vmem [shape: f32[8,512], index: 0, kind: input, shape index: {}]   ;;  %s1457_s2 = inlined_call_operand.vmem [shape: f32[1,512], index: 2, kind: input, shape index: {}]   ;;  %s1458_s3 = inlined_call_operand.vmem [shape: f32[8,512], index: 3, kind: output, shape index: {}]  }
   0x1   :  { %v206_v0 = vld [vmem:[%s1455_s1 + $0x5e0] sm:$0xff]  ;;  %v207_v62 = vld [vmem:[%s1455_s1 + $0x5e8] sm:$0xff] }
   0x2   :  { %v78_v1 = vld [vmem:[%s1455_s1 + $0x1e0] sm:$0xff]  ;;  %324 = vmatpush.msra.mxu2 %v206_v0  ;;  %v79_v0 = vld [vmem:[%s1455_s1 + $0x1e8] sm:$0xff] }
   0x3   :  { %v202_v2 = vld [vmem:[%s1455_s1 + $0x5c0] sm:$0xff]  ;;  %284 = vmatpush.msra.mxu0 %v78_v1  ;;  %v271_v1 = vld [vmem:[%s1455_s1 + $0x7e8] sm:$0xff] }
   0x4   :  { %v270_v3 = vld [vmem:[%s1455_s1 + $0x7e0] sm:$0xff]  ;;  %325 = vmatpush.msra.mxu2 %v202_v2  ;;  %v203_v2 = vld [vmem:[%s1455_s1 + $0x5c8] sm:$0xff] }
   0x5   :  { %v74_v4 = vld [vmem:[%s1455_s1 + $0x1c0] sm:$0xff]  ;;  %344 = vmatpush.msra.mxu3 %v270_v3 }
   0x6   :  { %v142_v5 = vld [vmem:[%s1455_s1 + $0x3e0] sm:$0xff]  ;;  %285 = vmatpush.msra.mxu0 %v74_v4  ;;  %v75_v4 = vld [vmem:[%s1455_s1 + $0x1c8] sm:$0xff] }
   0x7   :  { %304 = vmatpush.msra.mxu1 %v142_v5  ;;  %v198_v6 = vld [vmem:[%s1455_s1 + $0x5a0] sm:$0xff]  ;;  %v143_v5 = vld [vmem:[%s1455_s1 + $0x3e8] sm:$0xff] }
   0x8   :  { %v266_v7 = vld [vmem:[%s1455_s1 + $0x7c0] sm:$0xff]  ;;  %326 = vmatpush.msra.mxu2 %v198_v6  ;;  %v199_v6 = vld [vmem:[%s1455_s1 + $0x5a8] sm:$0xff] }
   0x9   :  { %v70_v8 = vld [vmem:[%s1455_s1 + $0x1a0] sm:$0xff]  ;;  %345 = vmatpush.msra.mxu3 %v266_v7  ;;  %v267_v7 = vld [vmem:[%s1455_s1 + $0x7c8] sm:$0xff] }
   0xa   :  { %v138_v9 = vld [vmem:[%s1455_s1 + $0x3c0] sm:$0xff]  ;;  %286 = vmatpush.msra.mxu0 %v70_v8  ;;  %v71_v8 = vld [vmem:[%s1455_s1 + $0x1a8] sm:$0xff] }
   0xb   :  { %v262_v10 = vld [vmem:[%s1455_s1 + $0x7a0] sm:$0xff]  ;;  %305 = vmatpush.msra.mxu1 %v138_v9  ;;  %v139_v9 = vld [vmem:[%s1455_s1 + $0x3c8] sm:$0xff] }
   0xc   :  { %v194_v11 = vld [vmem:[%s1455_s1 + $0x580] sm:$0xff]  ;;  %346 = vmatpush.msra.mxu3 %v262_v10  ;;  %v195_v10 = vld [vmem:[%s1455_s1 + $0x588] sm:$0xff] }
   0xd   :  { %v66_v12 = vld [vmem:[%s1455_s1 + $0x180] sm:$0xff]  ;;  %327 = vmatpush.msra.mxu2 %v194_v11  ;;  %v263_v11 = vld [vmem:[%s1455_s1 + $0x7a8] sm:$0xff] }
   0xe   :  { %v134_v13 = vld [vmem:[%s1455_s1 + $0x3a0] sm:$0xff]  ;;  %287 = vmatpush.msra.mxu0 %v66_v12  ;;  %v67_v12 = vld [vmem:[%s1455_s1 + $0x188] sm:$0xff] }
   0xf   :  { %v258_v14 = vld [vmem:[%s1455_s1 + $0x780] sm:$0xff]  ;;  %306 = vmatpush.msra.mxu1 %v134_v13  ;;  %v135_v13 = vld [vmem:[%s1455_s1 + $0x3a8] sm:$0xff] }
  0x10   :  { %v130_v15 = vld [vmem:[%s1455_s1 + $0x380] sm:$0xff]  ;;  %347 = vmatpush.msra.mxu3 %v258_v14  ;;  %v191_v14 = vld [vmem:[%s1455_s1 + $0x568] sm:$0xff] }
  0x11   :  { %v190_v16 = vld [vmem:[%s1455_s1 + $0x560] sm:$0xff]  ;;  %307 = vmatpush.msra.mxu1 %v130_v15  ;;  %v259_v15 = vld [vmem:[%s1455_s1 + $0x788] sm:$0xff] }
  0x12   :  { %v62_v17 = vld [vmem:[%s1455_s1 + $0x160] sm:$0xff]  ;;  %328 = vmatpush.msra.mxu2 %v190_v16  ;;  %v63_v16 = vld [vmem:[%s1455_s1 + $0x168] sm:$0xff] }
  0x13   :  { %v254_v18 = vld [vmem:[%s1455_s1 + $0x760] sm:$0xff]  ;;  %288 = vmatpush.msra.mxu0 %v62_v17  ;;  %v131_v17 = vld [vmem:[%s1455_s1 + $0x388] sm:$0xff] }
  0x14   :  { %v126_v19 = vld [vmem:[%s1455_s1 + $0x360] sm:$0xff]  ;;  %348 = vmatpush.msra.mxu3 %v254_v18  ;;  %v187_v18 = vld [vmem:[%s1455_s1 + $0x548] sm:$0xff] }
  0x15   :  { %v186_v20 = vld [vmem:[%s1455_s1 + $0x540] sm:$0xff]  ;;  %308 = vmatpush.msra.mxu1 %v126_v19  ;;  %v255_v19 = vld [vmem:[%s1455_s1 + $0x768] sm:$0xff] }
  0x16   :  { %v58_v21 = vld [vmem:[%s1455_s1 + $0x140] sm:$0xff]  ;;  %329 = vmatpush.msra.mxu2 %v186_v20  ;;  %v59_v20 = vld [vmem:[%s1455_s1 + $0x148] sm:$0xff] }
  0x17   :  { %v250_v22 = vld [vmem:[%s1455_s1 + $0x740] sm:$0xff]  ;;  %289 = vmatpush.msra.mxu0 %v58_v21  ;;  %v127_v21 = vld [vmem:[%s1455_s1 + $0x368] sm:$0xff] }
  0x18   :  { %v122_v23 = vld [vmem:[%s1455_s1 + $0x340] sm:$0xff]  ;;  %349 = vmatpush.msra.mxu3 %v250_v22  ;;  %v183_v22 = vld [vmem:[%s1455_s1 + $0x528] sm:$0xff] }
  0x19   :  { %v182_v24 = vld [vmem:[%s1455_s1 + $0x520] sm:$0xff]  ;;  %309 = vmatpush.msra.mxu1 %v122_v23  ;;  %v251_v23 = vld [vmem:[%s1455_s1 + $0x748] sm:$0xff] }
  0x1a   :  { %v54_v25 = vld [vmem:[%s1455_s1 + $0x120] sm:$0xff]  ;;  %330 = vmatpush.msra.mxu2 %v182_v24  ;;  %v55_v24 = vld [vmem:[%s1455_s1 + $0x128] sm:$0xff] }
  0x1b   :  { %v246_v26 = vld [vmem:[%s1455_s1 + $0x720] sm:$0xff]  ;;  %290 = vmatpush.msra.mxu0 %v54_v25  ;;  %v123_v25 = vld [vmem:[%s1455_s1 + $0x348] sm:$0xff] }
  0x1c   :  { %v118_v27 = vld [vmem:[%s1455_s1 + $0x320] sm:$0xff]  ;;  %350 = vmatpush.msra.mxu3 %v246_v26  ;;  %v179_v26 = vld [vmem:[%s1455_s1 + $0x508] sm:$0xff] }
  0x1d   :  { %v178_v28 = vld [vmem:[%s1455_s1 + $0x500] sm:$0xff]  ;;  %310 = vmatpush.msra.mxu1 %v118_v27  ;;  %v247_v27 = vld [vmem:[%s1455_s1 + $0x728] sm:$0xff] }
  0x1e   :  { %v50_v29 = vld [vmem:[%s1455_s1 + $0x100] sm:$0xff]  ;;  %331 = vmatpush.msra.mxu2 %v178_v28  ;;  %v51_v28 = vld [vmem:[%s1455_s1 + $0x108] sm:$0xff] }
  0x1f   :  { %v242_v30 = vld [vmem:[%s1455_s1 + $0x700] sm:$0xff]  ;;  %291 = vmatpush.msra.mxu0 %v50_v29  ;;  %v119_v29 = vld [vmem:[%s1455_s1 + $0x328] sm:$0xff] }
  0x20   :  { %v114_v31 = vld [vmem:[%s1455_s1 + $0x300] sm:$0xff]  ;;  %351 = vmatpush.msra.mxu3 %v242_v30  ;;  %v175_v30 = vld [vmem:[%s1455_s1 + $0x4e8] sm:$0xff] }
  0x21   :  { %v174_v32 = vld [vmem:[%s1455_s1 + $0x4e0] sm:$0xff]  ;;  %311 = vmatpush.msra.mxu1 %v114_v31  ;;  %v243_v31 = vld [vmem:[%s1455_s1 + $0x708] sm:$0xff] }
  0x22   :  { %v46_v33 = vld [vmem:[%s1455_s1 + $0xe0] sm:$0xff]  ;;  %332 = vmatpush.msra.mxu2 %v174_v32  ;;  %v47_v32 = vld [vmem:[%s1455_s1 + $0xe8] sm:$0xff] }
  0x23   :  { %v238_v34 = vld [vmem:[%s1455_s1 + $0x6e0] sm:$0xff]  ;;  %292 = vmatpush.msra.mxu0 %v46_v33  ;;  %v115_v33 = vld [vmem:[%s1455_s1 + $0x308] sm:$0xff] }
  0x24   :  { %v110_v35 = vld [vmem:[%s1455_s1 + $0x2e0] sm:$0xff]  ;;  %352 = vmatpush.msra.mxu3 %v238_v34  ;;  %v171_v34 = vld [vmem:[%s1455_s1 + $0x4c8] sm:$0xff] }
  0x25   :  { %v170_v36 = vld [vmem:[%s1455_s1 + $0x4c0] sm:$0xff]  ;;  %312 = vmatpush.msra.mxu1 %v110_v35  ;;  %v239_v35 = vld [vmem:[%s1455_s1 + $0x6e8] sm:$0xff] }
  0x26   :  { %v42_v37 = vld [vmem:[%s1455_s1 + $0xc0] sm:$0xff]  ;;  %333 = vmatpush.msra.mxu2 %v170_v36  ;;  %v43_v36 = vld [vmem:[%s1455_s1 + $0xc8] sm:$0xff] }
  0x27   :  { %v234_v38 = vld [vmem:[%s1455_s1 + $0x6c0] sm:$0xff]  ;;  %293 = vmatpush.msra.mxu0 %v42_v37  ;;  %v111_v37 = vld [vmem:[%s1455_s1 + $0x2e8] sm:$0xff] }
  0x28   :  { %v106_v39 = vld [vmem:[%s1455_s1 + $0x2c0] sm:$0xff]  ;;  %353 = vmatpush.msra.mxu3 %v234_v38  ;;  %v167_v38 = vld [vmem:[%s1455_s1 + $0x4a8] sm:$0xff] }
  0x29   :  { %v166_v40 = vld [vmem:[%s1455_s1 + $0x4a0] sm:$0xff]  ;;  %313 = vmatpush.msra.mxu1 %v106_v39  ;;  %v235_v39 = vld [vmem:[%s1455_s1 + $0x6c8] sm:$0xff] }
  0x2a   :  { %v38_v41 = vld [vmem:[%s1455_s1 + $0xa0] sm:$0xff]  ;;  %334 = vmatpush.msra.mxu2 %v166_v40  ;;  %v39_v40 = vld [vmem:[%s1455_s1 + $0xa8] sm:$0xff] }
  0x2b   :  { %v230_v42 = vld [vmem:[%s1455_s1 + $0x6a0] sm:$0xff]  ;;  %294 = vmatpush.msra.mxu0 %v38_v41  ;;  %v107_v41 = vld [vmem:[%s1455_s1 + $0x2c8] sm:$0xff] }
  0x2c   :  { %v102_v43 = vld [vmem:[%s1455_s1 + $0x2a0] sm:$0xff]  ;;  %354 = vmatpush.msra.mxu3 %v230_v42  ;;  %v163_v42 = vld [vmem:[%s1455_s1 + $0x488] sm:$0xff] }
  0x2d   :  { %v162_v44 = vld [vmem:[%s1455_s1 + $0x480] sm:$0xff]  ;;  %314 = vmatpush.msra.mxu1 %v102_v43  ;;  %v231_v43 = vld [vmem:[%s1455_s1 + $0x6a8] sm:$0xff] }
  0x2e   :  { %v34_v45 = vld [vmem:[%s1455_s1 + $0x80] sm:$0xff]  ;;  %335 = vmatpush.msra.mxu2 %v162_v44  ;;  %v35_v44 = vld [vmem:[%s1455_s1 + $0x88] sm:$0xff] }
  0x2f   :  { %v226_v46 = vld [vmem:[%s1455_s1 + $0x680] sm:$0xff]  ;;  %295 = vmatpush.msra.mxu0 %v34_v45  ;;  %v103_v45 = vld [vmem:[%s1455_s1 + $0x2a8] sm:$0xff] }
  0x30   :  { %v98_v47 = vld [vmem:[%s1455_s1 + $0x280] sm:$0xff]  ;;  %355 = vmatpush.msra.mxu3 %v226_v46  ;;  %v159_v46 = vld [vmem:[%s1455_s1 + $0x468] sm:$0xff] }
  0x31   :  { %v158_v48 = vld [vmem:[%s1455_s1 + $0x460] sm:$0xff]  ;;  %315 = vmatpush.msra.mxu1 %v98_v47  ;;  %v227_v47 = vld [vmem:[%s1455_s1 + $0x688] sm:$0xff] }
  0x32   :  { %v30_v49 = vld [vmem:[%s1455_s1 + $0x60] sm:$0xff]  ;;  %336 = vmatpush.msra.mxu2 %v158_v48  ;;  %v31_v48 = vld [vmem:[%s1455_s1 + $0x68] sm:$0xff] }
  0x33   :  { %v222_v50 = vld [vmem:[%s1455_s1 + $0x660] sm:$0xff]  ;;  %296 = vmatpush.msra.mxu0 %v30_v49  ;;  %v99_v49 = vld [vmem:[%s1455_s1 + $0x288] sm:$0xff] }
  0x34   :  { %v94_v51 = vld [vmem:[%s1455_s1 + $0x260] sm:$0xff]  ;;  %356 = vmatpush.msra.mxu3 %v222_v50  ;;  %v155_v50 = vld [vmem:[%s1455_s1 + $0x448] sm:$0xff] }
  0x35   :  { %v154_v52 = vld [vmem:[%s1455_s1 + $0x440] sm:$0xff]  ;;  %316 = vmatpush.msra.mxu1 %v94_v51  ;;  %v223_v51 = vld [vmem:[%s1455_s1 + $0x668] sm:$0xff] }
  0x36   :  { %v26_v53 = vld [vmem:[%s1455_s1 + $0x40] sm:$0xff]  ;;  %337 = vmatpush.msra.mxu2 %v154_v52  ;;  %v27_v52 = vld [vmem:[%s1455_s1 + $0x48] sm:$0xff] }
  0x37   :  { %v218_v54 = vld [vmem:[%s1455_s1 + $0x640] sm:$0xff]  ;;  %297 = vmatpush.msra.mxu0 %v26_v53  ;;  %v95_v53 = vld [vmem:[%s1455_s1 + $0x268] sm:$0xff] }
  0x38   :  { %v90_v55 = vld [vmem:[%s1455_s1 + $0x240] sm:$0xff]  ;;  %357 = vmatpush.msra.mxu3 %v218_v54  ;;  %v151_v54 = vld [vmem:[%s1455_s1 + $0x428] sm:$0xff] }
  0x39   :  { %v150_v56 = vld [vmem:[%s1455_s1 + $0x420] sm:$0xff]  ;;  %317 = vmatpush.msra.mxu1 %v90_v55  ;;  %v219_v55 = vld [vmem:[%s1455_s1 + $0x648] sm:$0xff] }
  0x3a   :  { %v22_v57 = vld [vmem:[%s1455_s1 + $0x20] sm:$0xff]  ;;  %338 = vmatpush.msra.mxu2 %v150_v56  ;;  %v23_v56 = vld [vmem:[%s1455_s1 + $0x28] sm:$0xff] }
  0x3b   :  { %v214_v58 = vld [vmem:[%s1455_s1 + $0x620] sm:$0xff]  ;;  %298 = vmatpush.msra.mxu0 %v22_v57  ;;  %v91_v57 = vld [vmem:[%s1455_s1 + $0x248] sm:$0xff] }
  0x3c   :  { %v86_v59 = vld [vmem:[%s1455_s1 + $0x220] sm:$0xff]  ;;  %358 = vmatpush.msra.mxu3 %v214_v58  ;;  %v147_v58 = vld [vmem:[%s1455_s1 + $0x408] sm:$0xff] }
  0x3d   :  { %v146_v60 = vld [vmem:[%s1455_s1 + $0x400] sm:$0xff]  ;;  %318 = vmatpush.msra.mxu1 %v86_v59  ;;  %v215_v59 = vld [vmem:[%s1455_s1 + $0x628] sm:$0xff] }
  0x3e   :  { %v18_v61 = vld [vmem:[%s1455_s1] sm:$0xff]  ;;  %339 = vmatpush.msra.mxu2 %v146_v60  ;;  %v1011_v60 = vld [vmem:[%s1456_s0 + $0x10] sm:$0xff] }
  0x3f   :  { %v210_v63 = vld [vmem:[%s1455_s1 + $0x600] sm:$0xff]  ;;  %299 = vmatpush.msra.mxu0 %v18_v61  ;;  %v19_v61 = vld [vmem:[%s1455_s1 + $0x8] sm:$0xff]  ;;  %340 = vmatmul.f32.vlgmr.msra.gmra.mxu2 %v1011_v60 }
  0x40   :  { %v82_v3 = vld [vmem:[%s1455_s1 + $0x200] sm:$0xff]  ;;  %404 = vmatpush.msrb.mxu2 %v207_v62  ;;  %359 = vmatpush.msra.mxu3 %v210_v63  ;;  %v208_v62 = vld [vmem:[%s1455_s1 + $0x5f0] sm:$0xff]  ;;  %v87_v63 = vld [vmem:[%s1455_s1 + $0x228] sm:$0xff] }
  0x41   :  { %364 = vmatpush.msrb.mxu0 %v79_v0  ;;  %319 = vmatpush.msra.mxu1 %v82_v3  ;;  %v211_v0 = vld [vmem:[%s1455_s1 + $0x608] sm:$0xff]  ;;  %v80_v3 = vld [vmem:[%s1455_s1 + $0x1f0] sm:$0xff] }
  0x42   :  { %424 = vmatpush.msrb.mxu3 %v271_v1  ;;  %405 = vmatpush.msrb.mxu2 %v203_v2  ;;  %v1028_v1 = vld [vmem:[%s1456_s0] sm:$0xff]  ;;  %v1034_v2 = vld [vmem:[%s1456_s0 + $0x18] sm:$0xff] }
  0x43   :  { %365 = vmatpush.msrb.mxu0 %v75_v4  ;;  %384 = vmatpush.msrb.mxu1 %v143_v5  ;;  %v204_v4 = vld [vmem:[%s1455_s1 + $0x5d0] sm:$0xff] }
  0x44   :  { %406 = vmatpush.msrb.mxu2 %v199_v6  ;;  %425 = vmatpush.msrb.mxu3 %v267_v7  ;;  %v272_v5 = vld [vmem:[%s1455_s1 + $0x7f0] sm:$0xff]  ;;  %v83_v6 = vld [vmem:[%s1455_s1 + $0x208] sm:$0xff] }
  0x45   :  { %366 = vmatpush.msrb.mxu0 %v71_v8  ;;  %385 = vmatpush.msrb.mxu1 %v139_v9  ;;  %v76_v7 = vld [vmem:[%s1455_s1 + $0x1d0] sm:$0xff]  ;;  %v1056_v8 = vld [vmem:[%s1456_s0 + $0x8] sm:$0xff] }
  0x46   :  { %407 = vmatpush.msrb.mxu2 %v195_v10  ;;  %426 = vmatpush.msrb.mxu3 %v263_v11  ;;  %v200_v9 = vld [vmem:[%s1455_s1 + $0x5b0] sm:$0xff] }
  0x47   :  { %367 = vmatpush.msrb.mxu0 %v67_v12  ;;  %386 = vmatpush.msrb.mxu1 %v135_v13  ;;  %v144_v10 = vld [vmem:[%s1455_s1 + $0x3f0] sm:$0xff] }
  0x48   :  { %408 = vmatpush.msrb.mxu2 %v191_v14  ;;  %427 = vmatpush.msrb.mxu3 %v259_v15  ;;  %v268_v11 = vld [vmem:[%s1455_s1 + $0x7d0] sm:$0xff] }
  0x49   :  { %368 = vmatpush.msrb.mxu0 %v63_v16  ;;  %387 = vmatpush.msrb.mxu1 %v131_v17  ;;  %v72_v12 = vld [vmem:[%s1455_s1 + $0x1b0] sm:$0xff] }
  0x4a   :  { %409 = vmatpush.msrb.mxu2 %v187_v18  ;;  %428 = vmatpush.msrb.mxu3 %v255_v19  ;;  %v196_v13 = vld [vmem:[%s1455_s1 + $0x590] sm:$0xff] }
  0x4b   :  { %369 = vmatpush.msrb.mxu0 %v59_v20  ;;  %388 = vmatpush.msrb.mxu1 %v127_v21  ;;  %v140_v14 = vld [vmem:[%s1455_s1 + $0x3d0] sm:$0xff] }
  0x4c   :  { %410 = vmatpush.msrb.mxu2 %v183_v22  ;;  %429 = vmatpush.msrb.mxu3 %v251_v23  ;;  %v264_v15 = vld [vmem:[%s1455_s1 + $0x7b0] sm:$0xff] }
  0x4d   :  { %370 = vmatpush.msrb.mxu0 %v55_v24  ;;  %389 = vmatpush.msrb.mxu1 %v123_v25  ;;  %v68_v16 = vld [vmem:[%s1455_s1 + $0x190] sm:$0xff] }
  0x4e   :  { %411 = vmatpush.msrb.mxu2 %v179_v26  ;;  %430 = vmatpush.msrb.mxu3 %v247_v27  ;;  %v192_v17 = vld [vmem:[%s1455_s1 + $0x570] sm:$0xff] }
  0x4f   :  { %371 = vmatpush.msrb.mxu0 %v51_v28  ;;  %390 = vmatpush.msrb.mxu1 %v119_v29  ;;  %v136_v18 = vld [vmem:[%s1455_s1 + $0x3b0] sm:$0xff] }
  0x50   :  { %412 = vmatpush.msrb.mxu2 %v175_v30  ;;  %431 = vmatpush.msrb.mxu3 %v243_v31  ;;  %v260_v19 = vld [vmem:[%s1455_s1 + $0x790] sm:$0xff] }
  0x51   :  { %372 = vmatpush.msrb.mxu0 %v47_v32  ;;  %391 = vmatpush.msrb.mxu1 %v115_v33  ;;  %v64_v20 = vld [vmem:[%s1455_s1 + $0x170] sm:$0xff] }
  0x52   :  { %413 = vmatpush.msrb.mxu2 %v171_v34  ;;  %432 = vmatpush.msrb.mxu3 %v239_v35  ;;  %v188_v21 = vld [vmem:[%s1455_s1 + $0x550] sm:$0xff] }
  0x53   :  { %373 = vmatpush.msrb.mxu0 %v43_v36  ;;  %392 = vmatpush.msrb.mxu1 %v111_v37  ;;  %v132_v22 = vld [vmem:[%s1455_s1 + $0x390] sm:$0xff] }
  0x54   :  { %414 = vmatpush.msrb.mxu2 %v167_v38  ;;  %433 = vmatpush.msrb.mxu3 %v235_v39  ;;  %v256_v23 = vld [vmem:[%s1455_s1 + $0x770] sm:$0xff] }
  0x55   :  { %374 = vmatpush.msrb.mxu0 %v39_v40  ;;  %393 = vmatpush.msrb.mxu1 %v107_v41  ;;  %v60_v24 = vld [vmem:[%s1455_s1 + $0x150] sm:$0xff] }
  0x56   :  { %415 = vmatpush.msrb.mxu2 %v163_v42  ;;  %434 = vmatpush.msrb.mxu3 %v231_v43  ;;  %v184_v25 = vld [vmem:[%s1455_s1 + $0x530] sm:$0xff] }
  0x57   :  { %375 = vmatpush.msrb.mxu0 %v35_v44  ;;  %394 = vmatpush.msrb.mxu1 %v103_v45  ;;  %v128_v26 = vld [vmem:[%s1455_s1 + $0x370] sm:$0xff] }
  0x58   :  { %416 = vmatpush.msrb.mxu2 %v159_v46  ;;  %435 = vmatpush.msrb.mxu3 %v227_v47  ;;  %v252_v27 = vld [vmem:[%s1455_s1 + $0x750] sm:$0xff] }
  0x59   :  { %376 = vmatpush.msrb.mxu0 %v31_v48  ;;  %395 = vmatpush.msrb.mxu1 %v99_v49  ;;  %v56_v28 = vld [vmem:[%s1455_s1 + $0x130] sm:$0xff] }
  0x5a   :  { %417 = vmatpush.msrb.mxu2 %v155_v50  ;;  %436 = vmatpush.msrb.mxu3 %v223_v51  ;;  %v180_v29 = vld [vmem:[%s1455_s1 + $0x510] sm:$0xff] }
  0x5b   :  { %377 = vmatpush.msrb.mxu0 %v27_v52  ;;  %396 = vmatpush.msrb.mxu1 %v95_v53  ;;  %v124_v30 = vld [vmem:[%s1455_s1 + $0x350] sm:$0xff] }
  0x5c   :  { %418 = vmatpush.msrb.mxu2 %v151_v54  ;;  %437 = vmatpush.msrb.mxu3 %v219_v55  ;;  %v248_v31 = vld [vmem:[%s1455_s1 + $0x730] sm:$0xff] }
  0x5d   :  { %378 = vmatpush.msrb.mxu0 %v23_v56  ;;  %397 = vmatpush.msrb.mxu1 %v91_v57  ;;  %v52_v32 = vld [vmem:[%s1455_s1 + $0x110] sm:$0xff] }
  0x5e   :  { %419 = vmatpush.msrb.mxu2 %v147_v58  ;;  %438 = vmatpush.msrb.mxu3 %v215_v59  ;;  %v176_v33 = vld [vmem:[%s1455_s1 + $0x4f0] sm:$0xff] }
  0x5f   :  { %379 = vmatpush.msrb.mxu0 %v19_v61  ;;  %398 = vmatpush.msrb.mxu1 %v87_v63  ;;  %v120_v34 = vld [vmem:[%s1455_s1 + $0x330] sm:$0xff] }
  0x60   :  { %484 = vmatpush.msra.mxu2 %v208_v62  ;;  %439 = vmatpush.msrb.mxu3 %v211_v0  ;;  %v244_v35 = vld [vmem:[%s1455_s1 + $0x710] sm:$0xff] }
  0x61   :  { %300 = vmatmul.f32.vlgmr.msra.gmra.mxu0 %v1028_v1  ;;  %360 = vmatmul.f32.vlgmr.msra.gmra.mxu3 %v1034_v2  ;;  %v48_v36 = vld [vmem:[%s1455_s1 + $0xf0] sm:$0xff] }
  0x62   :  { %444 = vmatpush.msra.mxu0 %v80_v3  ;;  %485 = vmatpush.msra.mxu2 %v204_v4  ;;  %v172_v37 = vld [vmem:[%s1455_s1 + $0x4d0] sm:$0xff]  ;;  %v209_v4 = vld [vmem:[%s1455_s1 + $0x5f8] sm:$0xff] }
  0x63   :  { %504 = vmatpush.msra.mxu3 %v272_v5  ;;  %399 = vmatpush.msrb.mxu1 %v83_v6  ;;  %v116_v38 = vld [vmem:[%s1455_s1 + $0x310] sm:$0xff] }
  0x64   :  { %445 = vmatpush.msra.mxu0 %v76_v7  ;;  %320 = vmatmul.f32.vlgmr.msra.gmra.mxu1 %v1056_v8  ;;  %v240_v39 = vld [vmem:[%s1455_s1 + $0x6f0] sm:$0xff]  ;;  %v81_v7 = vld [vmem:[%s1455_s1 + $0x1f8] sm:$0xff] }
  0x65   :  { %486 = vmatpush.msra.mxu2 %v200_v9  ;;  %464 = vmatpush.msra.mxu1 %v144_v10  ;;  %v44_v40 = vld [vmem:[%s1455_s1 + $0xd0] sm:$0xff]  ;;  %v205_v9 = vld [vmem:[%s1455_s1 + $0x5d8] sm:$0xff] }
  0x66   :  { %505 = vmatpush.msra.mxu3 %v268_v11  ;;  %446 = vmatpush.msra.mxu0 %v72_v12  ;;  %v168_v41 = vld [vmem:[%s1455_s1 + $0x4b0] sm:$0xff]  ;;  %v273_v10 = vld [vmem:[%s1455_s1 + $0x7f8] sm:$0xff] }
  0x67   :  { %487 = vmatpush.msra.mxu2 %v196_v13  ;;  %465 = vmatpush.msra.mxu1 %v140_v14  ;;  %v112_v42 = vld [vmem:[%s1455_s1 + $0x2f0] sm:$0xff]  ;;  %v77_v12 = vld [vmem:[%s1455_s1 + $0x1d8] sm:$0xff] }
  0x68   :  { %506 = vmatpush.msra.mxu3 %v264_v15  ;;  %447 = vmatpush.msra.mxu0 %v68_v16  ;;  %v236_v43 = vld [vmem:[%s1455_s1 + $0x6d0] sm:$0xff]  ;;  %v201_v13 = vld [vmem:[%s1455_s1 + $0x5b8] sm:$0xff] }
  0x69   :  { %488 = vmatpush.msra.mxu2 %v192_v17  ;;  %466 = vmatpush.msra.mxu1 %v136_v18  ;;  %v40_v44 = vld [vmem:[%s1455_s1 + $0xb0] sm:$0xff]  ;;  %v145_v14 = vld [vmem:[%s1455_s1 + $0x3f8] sm:$0xff] }
  0x6a   :  { %507 = vmatpush.msra.mxu3 %v260_v19  ;;  %448 = vmatpush.msra.mxu0 %v64_v20  ;;  %v164_v45 = vld [vmem:[%s1455_s1 + $0x490] sm:$0xff]  ;;  %v269_v15 = vld [vmem:[%s1455_s1 + $0x7d8] sm:$0xff] }
  0x6b   :  { %489 = vmatpush.msra.mxu2 %v188_v21  ;;  %467 = vmatpush.msra.mxu1 %v132_v22  ;;  %v108_v46 = vld [vmem:[%s1455_s1 + $0x2d0] sm:$0xff]  ;;  %v73_v16 = vld [vmem:[%s1455_s1 + $0x1b8] sm:$0xff] }
  0x6c   :  { %508 = vmatpush.msra.mxu3 %v256_v23  ;;  %449 = vmatpush.msra.mxu0 %v60_v24  ;;  %v232_v47 = vld [vmem:[%s1455_s1 + $0x6b0] sm:$0xff]  ;;  %v197_v17 = vld [vmem:[%s1455_s1 + $0x598] sm:$0xff] }
  0x6d   :  { %490 = vmatpush.msra.mxu2 %v184_v25  ;;  %468 = vmatpush.msra.mxu1 %v128_v26  ;;  %v36_v48 = vld [vmem:[%s1455_s1 + $0x90] sm:$0xff]  ;;  %v141_v18 = vld [vmem:[%s1455_s1 + $0x3d8] sm:$0xff] }
  0x6e   :  { %509 = vmatpush.msra.mxu3 %v252_v27  ;;  %450 = vmatpush.msra.mxu0 %v56_v28  ;;  %v160_v49 = vld [vmem:[%s1455_s1 + $0x470] sm:$0xff]  ;;  %v265_v19 = vld [vmem:[%s1455_s1 + $0x7b8] sm:$0xff] }
  0x6f   :  { %491 = vmatpush.msra.mxu2 %v180_v29  ;;  %469 = vmatpush.msra.mxu1 %v124_v30  ;;  %v104_v50 = vld [vmem:[%s1455_s1 + $0x2b0] sm:$0xff]  ;;  %v69_v20 = vld [vmem:[%s1455_s1 + $0x198] sm:$0xff] }
  0x70   :  { %510 = vmatpush.msra.mxu3 %v248_v31  ;;  %451 = vmatpush.msra.mxu0 %v52_v32  ;;  %v228_v51 = vld [vmem:[%s1455_s1 + $0x690] sm:$0xff]  ;;  %v193_v21 = vld [vmem:[%s1455_s1 + $0x578] sm:$0xff] }
  0x71   :  { %492 = vmatpush.msra.mxu2 %v176_v33  ;;  %470 = vmatpush.msra.mxu1 %v120_v34  ;;  %v32_v52 = vld [vmem:[%s1455_s1 + $0x70] sm:$0xff]  ;;  %v137_v22 = vld [vmem:[%s1455_s1 + $0x3b8] sm:$0xff] }
  0x72   :  { %511 = vmatpush.msra.mxu3 %v244_v35  ;;  %452 = vmatpush.msra.mxu0 %v48_v36  ;;  %v156_v53 = vld [vmem:[%s1455_s1 + $0x450] sm:$0xff]  ;;  %v261_v23 = vld [vmem:[%s1455_s1 + $0x798] sm:$0xff] }
  0x73   :  { %493 = vmatpush.msra.mxu2 %v172_v37  ;;  %471 = vmatpush.msra.mxu1 %v116_v38  ;;  %v100_v54 = vld [vmem:[%s1455_s1 + $0x290] sm:$0xff]  ;;  %v65_v24 = vld [vmem:[%s1455_s1 + $0x178] sm:$0xff] }
  0x74   :  { %512 = vmatpush.msra.mxu3 %v240_v39  ;;  %453 = vmatpush.msra.mxu0 %v44_v40  ;;  %v224_v55 = vld [vmem:[%s1455_s1 + $0x670] sm:$0xff]  ;;  %v189_v25 = vld [vmem:[%s1455_s1 + $0x558] sm:$0xff] }
  0x75   :  { %494 = vmatpush.msra.mxu2 %v168_v41  ;;  %472 = vmatpush.msra.mxu1 %v112_v42  ;;  %v28_v56 = vld [vmem:[%s1455_s1 + $0x50] sm:$0xff]  ;;  %v133_v26 = vld [vmem:[%s1455_s1 + $0x398] sm:$0xff] }
  0x76   :  { %513 = vmatpush.msra.mxu3 %v236_v43  ;;  %454 = vmatpush.msra.mxu0 %v40_v44  ;;  %v152_v57 = vld [vmem:[%s1455_s1 + $0x430] sm:$0xff]  ;;  %v257_v27 = vld [vmem:[%s1455_s1 + $0x778] sm:$0xff] }
  0x77   :  { %495 = vmatpush.msra.mxu2 %v164_v45  ;;  %473 = vmatpush.msra.mxu1 %v108_v46  ;;  %v96_v58 = vld [vmem:[%s1455_s1 + $0x270] sm:$0xff]  ;;  %v61_v28 = vld [vmem:[%s1455_s1 + $0x158] sm:$0xff] }
  0x78   :  { %514 = vmatpush.msra.mxu3 %v232_v47  ;;  %455 = vmatpush.msra.mxu0 %v36_v48  ;;  %v220_v59 = vld [vmem:[%s1455_s1 + $0x650] sm:$0xff]  ;;  %v185_v29 = vld [vmem:[%s1455_s1 + $0x538] sm:$0xff] }
  0x79   :  { %496 = vmatpush.msra.mxu2 %v160_v49  ;;  %474 = vmatpush.msra.mxu1 %v104_v50  ;;  %v24_v61 = vld [vmem:[%s1455_s1 + $0x30] sm:$0xff]  ;;  %v129_v30 = vld [vmem:[%s1455_s1 + $0x378] sm:$0xff] }
  0x7a   :  { %515 = vmatpush.msra.mxu3 %v228_v51  ;;  %456 = vmatpush.msra.mxu0 %v32_v52  ;;  %v148_v62 = vld [vmem:[%s1455_s1 + $0x410] sm:$0xff]  ;;  %v253_v31 = vld [vmem:[%s1455_s1 + $0x758] sm:$0xff] }
  0x7b   :  { %497 = vmatpush.msra.mxu2 %v156_v53  ;;  %475 = vmatpush.msra.mxu1 %v100_v54  ;;  %v92_v63 = vld [vmem:[%s1455_s1 + $0x250] sm:$0xff]  ;;  %v57_v32 = vld [vmem:[%s1455_s1 + $0x138] sm:$0xff] }
  0x7c   :  { %516 = vmatpush.msra.mxu3 %v224_v55  ;;  %457 = vmatpush.msra.mxu0 %v28_v56  ;;  %v216_v0 = vld [vmem:[%s1455_s1 + $0x630] sm:$0xff]  ;;  %v181_v33 = vld [vmem:[%s1455_s1 + $0x518] sm:$0xff] }
  0x7d   :  { %498 = vmatpush.msra.mxu2 %v152_v57  ;;  %476 = vmatpush.msra.mxu1 %v96_v58  ;;  %v20_v3 = vld [vmem:[%s1455_s1 + $0x10] sm:$0xff]  ;;  %v125_v34 = vld [vmem:[%s1455_s1 + $0x358] sm:$0xff] }
  0x7e   :  { %517 = vmatpush.msra.mxu3 %v220_v59  ;;  %458 = vmatpush.msra.mxu0 %v24_v61  ;;  %v88_v5 = vld [vmem:[%s1455_s1 + $0x230] sm:$0xff]  ;;  %v249_v35 = vld [vmem:[%s1455_s1 + $0x738] sm:$0xff] }
  0x7f   :  { %499 = vmatpush.msra.mxu2 %v148_v62  ;;  %477 = vmatpush.msra.mxu1 %v92_v63  ;;  %v212_v6 = vld [vmem:[%s1455_s1 + $0x610] sm:$0xff]  ;;  %v53_v36 = vld [vmem:[%s1455_s1 + $0x118] sm:$0xff] }
  0x80   :  { %518 = vmatpush.msra.mxu3 %v216_v0  ;;  %420 = vmatmul.f32.vlgmr.msrb.gmra.mxu2 %v1011_v60  ;;  %v84_v11 = vld [vmem:[%s1455_s1 + $0x210] sm:$0xff]  ;;  %v177_v37 = vld [vmem:[%s1455_s1 + $0x4f8] sm:$0xff] }
  0x81   :  { %459 = vmatpush.msra.mxu0 %v20_v3  ;;  %564 = vmatpush.msrb.mxu2 %v209_v4  ;;  %v121_v38 = vld [vmem:[%s1455_s1 + $0x338] sm:$0xff] }
  0x82   :  { %478 = vmatpush.msra.mxu1 %v88_v5  ;;  %519 = vmatpush.msra.mxu3 %v212_v6  ;;  %v245_v39 = vld [vmem:[%s1455_s1 + $0x718] sm:$0xff] }
  0x83   :  { %380 = vmatmul.f32.vlgmr.msrb.gmra.mxu0 %v1028_v1  ;;  %440 = vmatmul.f32.vlgmr.msrb.gmra.mxu3 %v1034_v2  ;;  %v49_v40 = vld [vmem:[%s1455_s1 + $0xf8] sm:$0xff] }
  0x84   :  { %524 = vmatpush.msrb.mxu0 %v81_v7  ;;  %565 = vmatpush.msrb.mxu2 %v205_v9  ;;  %v173_v41 = vld [vmem:[%s1455_s1 + $0x4d8] sm:$0xff] }
  0x85   :  { %584 = vmatpush.msrb.mxu3 %v273_v10  ;;  %479 = vmatpush.msra.mxu1 %v84_v11  ;;  %v117_v42 = vld [vmem:[%s1455_s1 + $0x318] sm:$0xff] }
  0x86   :  { %525 = vmatpush.msrb.mxu0 %v77_v12  ;;  %400 = vmatmul.f32.vlgmr.msrb.gmra.mxu1 %v1056_v8  ;;  %v241_v43 = vld [vmem:[%s1455_s1 + $0x6f8] sm:$0xff]  ;;  %v274_v12 = vld [vmem:[%s1457_s2] sm:$0xf] }
  0x87   :  { %566 = vmatpush.msrb.mxu2 %v201_v13  ;;  %544 = vmatpush.msrb.mxu1 %v145_v14  ;;  %v45_v44 = vld [vmem:[%s1455_s1 + $0xd8] sm:$0xff]  ;;  %v276_v13 = vperm.slane %v274_v12, 0 }
  0x88   :  { %585 = vmatpush.msrb.mxu3 %v269_v15  ;;  %526 = vmatpush.msrb.mxu0 %v73_v16  ;;  %v169_v45 = vld [vmem:[%s1455_s1 + $0x4b8] sm:$0xff] }
  0x89   :  { %567 = vmatpush.msrb.mxu2 %v197_v17  ;;  %545 = vmatpush.msrb.mxu1 %v141_v18  ;;  %v113_v46 = vld [vmem:[%s1455_s1 + $0x2f8] sm:$0xff] }
  0x8a   :  { %586 = vmatpush.msrb.mxu3 %v265_v19  ;;  %527 = vmatpush.msrb.mxu0 %v69_v20  ;;  %v237_v47 = vld [vmem:[%s1455_s1 + $0x6d8] sm:$0xff] }
  0x8b   :  { %568 = vmatpush.msrb.mxu2 %v193_v21  ;;  %546 = vmatpush.msrb.mxu1 %v137_v22  ;;  %v41_v48 = vld [vmem:[%s1455_s1 + $0xb8] sm:$0xff] }
  0x8c   :  { %587 = vmatpush.msrb.mxu3 %v261_v23  ;;  %528 = vmatpush.msrb.mxu0 %v65_v24  ;;  %v165_v49 = vld [vmem:[%s1455_s1 + $0x498] sm:$0xff] }
  0x8d   :  { %569 = vmatpush.msrb.mxu2 %v189_v25  ;;  %547 = vmatpush.msrb.mxu1 %v133_v26  ;;  %v109_v50 = vld [vmem:[%s1455_s1 + $0x2d8] sm:$0xff] }
  0x8e   :  { %588 = vmatpush.msrb.mxu3 %v257_v27  ;;  %529 = vmatpush.msrb.mxu0 %v61_v28  ;;  %v233_v51 = vld [vmem:[%s1455_s1 + $0x6b8] sm:$0xff] }
  0x8f   :  { %570 = vmatpush.msrb.mxu2 %v185_v29  ;;  %548 = vmatpush.msrb.mxu1 %v129_v30  ;;  %v37_v52 = vld [vmem:[%s1455_s1 + $0x98] sm:$0xff]  ;;  %v278_v29 = vperm.slane %v274_v12, 2 }
  0x90   :  { %589 = vmatpush.msrb.mxu3 %v253_v31  ;;  %530 = vmatpush.msrb.mxu0 %v57_v32  ;;  %v105_v53 = vld [vmem:[%s1455_s1 + $0x2b8] sm:$0xff] }
  0x91   :  { %571 = vmatpush.msrb.mxu2 %v181_v33  ;;  %549 = vmatpush.msrb.mxu1 %v125_v34  ;;  %v161_v54 = vld [vmem:[%s1455_s1 + $0x478] sm:$0xff] }
  0x92   :  { %590 = vmatpush.msrb.mxu3 %v249_v35  ;;  %531 = vmatpush.msrb.mxu0 %v53_v36  ;;  %v229_v55 = vld [vmem:[%s1455_s1 + $0x698] sm:$0xff] }
  0x93   :  { %572 = vmatpush.msrb.mxu2 %v177_v37  ;;  %550 = vmatpush.msrb.mxu1 %v121_v38  ;;  %v33_v56 = vld [vmem:[%s1455_s1 + $0x78] sm:$0xff]  ;;  %v279_v37 = vperm.slane %v274_v12, 3 }
  0x94   :  { %591 = vmatpush.msrb.mxu3 %v245_v39  ;;  %532 = vmatpush.msrb.mxu0 %v49_v40  ;;  %v101_v57 = vld [vmem:[%s1455_s1 + $0x298] sm:$0xff] }
  0x95   :  { %573 = vmatpush.msrb.mxu2 %v173_v41  ;;  %551 = vmatpush.msrb.mxu1 %v117_v42  ;;  %v157_v58 = vld [vmem:[%s1455_s1 + $0x458] sm:$0xff] }
  0x96   :  { %592 = vmatpush.msrb.mxu3 %v241_v43  ;;  %533 = vmatpush.msrb.mxu0 %v45_v44  ;;  %v225_v59 = vld [vmem:[%s1455_s1 + $0x678] sm:$0xff] }
  0x97   :  { %574 = vmatpush.msrb.mxu2 %v169_v45  ;;  %552 = vmatpush.msrb.mxu1 %v113_v46  ;;  %v29_v61 = vld [vmem:[%s1455_s1 + $0x58] sm:$0xff] }
  0x98   :  { %593 = vmatpush.msrb.mxu3 %v237_v47  ;;  %534 = vmatpush.msrb.mxu0 %v41_v48  ;;  %v97_v62 = vld [vmem:[%s1455_s1 + $0x278] sm:$0xff] }
  0x99   :  { %575 = vmatpush.msrb.mxu2 %v165_v49  ;;  %553 = vmatpush.msrb.mxu1 %v109_v50  ;;  %v153_v63 = vld [vmem:[%s1455_s1 + $0x438] sm:$0xff] }
  0x9a   :  { %594 = vmatpush.msrb.mxu3 %v233_v51  ;;  %500 = vmatmul.f32.vlgmr.msra.gmra.mxu2 %v1011_v60  ;;  %v221_v0 = vld [vmem:[%s1455_s1 + $0x658] sm:$0xff] }
  0x9b   :  { %535 = vmatpush.msrb.mxu0 %v37_v52  ;;  %554 = vmatpush.msrb.mxu1 %v105_v53  ;;  %v25_v3 = vld [vmem:[%s1455_s1 + $0x38] sm:$0xff] }
  0x9c   :  { %576 = vmatpush.msrb.mxu2 %v161_v54  ;;  %595 = vmatpush.msrb.mxu3 %v229_v55  ;;  %v93_v4 = vld [vmem:[%s1455_s1 + $0x258] sm:$0xff] }
  0x9d   :  { %460 = vmatmul.f32.vlgmr.msra.gmra.mxu0 %v1028_v1  ;;  %520 = vmatmul.f32.vlgmr.msra.gmra.mxu3 %v1034_v2  ;;  %v149_v5 = vld [vmem:[%s1455_s1 + $0x418] sm:$0xff] }
  0x9e   :  { %536 = vmatpush.msrb.mxu0 %v33_v56  ;;  %555 = vmatpush.msrb.mxu1 %v101_v57  ;;  %v217_v6 = vld [vmem:[%s1455_s1 + $0x638] sm:$0xff] }
  0x9f   :  { %577 = vmatpush.msrb.mxu2 %v157_v58  ;;  %596 = vmatpush.msrb.mxu3 %v225_v59  ;;  %v21_v7 = vld [vmem:[%s1455_s1 + $0x18] sm:$0xff] }
  0xa0   :  { %480 = vmatmul.f32.vlgmr.msra.gmra.mxu1 %v1056_v8  ;;  %537 = vmatpush.msrb.mxu0 %v29_v61  ;;  %v89_v9 = vld [vmem:[%s1455_s1 + $0x238] sm:$0xff] }
  0xa1   :  { %556 = vmatpush.msrb.mxu1 %v97_v62  ;;  %578 = vmatpush.msrb.mxu2 %v153_v63  ;;  %v213_v10 = vld [vmem:[%s1455_s1 + $0x618] sm:$0xff] }
  0xa2   :  { %597 = vmatpush.msrb.mxu3 %v221_v0  ;;  %538 = vmatpush.msrb.mxu0 %v25_v3  ;;  %v85_v11 = vld [vmem:[%s1455_s1 + $0x218] sm:$0xff] }
  0xa3   :  { %557 = vmatpush.msrb.mxu1 %v93_v4  ;;  %579 = vmatpush.msrb.mxu2 %v149_v5 }
  0xa4   :  { %598 = vmatpush.msrb.mxu3 %v217_v6  ;;  %580 = vmatmul.f32.vlgmr.msrb.gmra.mxu2 %v1011_v60 }
  0xa5   :  { %539 = vmatpush.msrb.mxu0 %v21_v7  ;;  %558 = vmatpush.msrb.mxu1 %v89_v9 }
  0xa6   :  { %599 = vmatpush.msrb.mxu3 %v213_v10  ;;  %540 = vmatmul.f32.vlgmr.msrb.gmra.mxu0 %v1028_v1  ;;  %v277_v1 = vperm.slane %v274_v12, 1 }
  0xa7   :  { %600 = vmatmul.f32.vlgmr.msrb.gmra.mxu3 %v1034_v2  ;;  %559 = vmatpush.msrb.mxu1 %v85_v11 }
  0xa8   :  { %560 = vmatmul.f32.vlgmr.msrb.gmra.mxu1 %v1056_v8 }
  0xc2   :  { %v341_v16 = vpop.f32.mrf.mxu2 }
  0xde   :  { %v301_v60 = vpop.f32.mrf.mxu0 }
  0xdf   :  { %v302_v14 = vadd.f32 %v301_v60, %v276_v13 }
  0xe1   :  { %v321_v15 = vpop.f32.mrf.mxu1 }
  0xe2   :  { %v322_v17 = vadd.f32 %v321_v15, %v302_v14 }
  0xe4   :  { %v342_v18 = vadd.f32 %v341_v16, %v322_v17  ;;  %v361_v19 = vpop.f32.mrf.mxu3 }
  0xe6   :  { %v362_v20 = vadd.f32 %v361_v19, %v342_v18 }
  0xe8   :  { %v604_v21 = vmax.f32 %v362_v20, 0.0 }
  0xea   :  { %608 = vst [vmem:[%s1458_s3] sm:$0xff] %v604_v21 }
 0x100   :  { %v381_v2 = vpop.f32.mrf.mxu0 }
 0x101   :  { %v382_v8 = vadd.f32 %v381_v2, %v277_v1 }
 0x103   :  { %v401_v22 = vpop.f32.mrf.mxu1  ;;  %v421_v23 = vpop.f32.mrf.mxu2 }
 0x104   :  { %v402_v24 = vadd.f32 %v401_v22, %v382_v8 }
 0x106   :  { %v422_v25 = vadd.f32 %v421_v23, %v402_v24  ;;  %v441_v26 = vpop.f32.mrf.mxu3 }
 0x108   :  { %v442_v27 = vadd.f32 %v441_v26, %v422_v25 }
 0x10a   :  { %v605_v28 = vmax.f32 %v442_v27, 0.0 }
 0x10c   :  { %609 = vst [vmem:[%s1458_s3 + $0x8] sm:$0xff] %v605_v28 }
 0x11a   :  { %v461_v30 = vpop.f32.mrf.mxu0 }
 0x11b   :  { %v462_v31 = vadd.f32 %v461_v30, %v278_v29 }
 0x11d   :  { %v481_v32 = vpop.f32.mrf.mxu1  ;;  %v501_v34 = vpop.f32.mrf.mxu2 }
 0x11e   :  { %v482_v33 = vadd.f32 %v481_v32, %v462_v31 }
 0x120   :  { %v502_v35 = vadd.f32 %v501_v34, %v482_v33  ;;  %v521_v36 = vpop.f32.mrf.mxu3 }
 0x122   :  { %v522_v38 = vadd.f32 %v521_v36, %v502_v35 }
 0x123   :  { %v541_v40 = vpop.f32.mrf.mxu0 }
 0x124   :  { %v606_v39 = vmax.f32 %v522_v38, 0.0  ;;  %v542_v41 = vadd.f32 %v541_v40, %v279_v37 }
 0x125   :  { %v561_v42 = vpop.f32.mrf.mxu1 }
 0x126   :  { %610 = vst [vmem:[%s1458_s3 + $0x10] sm:$0xff] %v606_v39  ;;  %v562_v43 = vadd.f32 %v561_v42, %v542_v41 }
 0x127   :  { %v581_v44 = vpop.f32.mrf.mxu2 }
 0x128   :  { %v582_v45 = vadd.f32 %v581_v44, %v562_v43 }
 0x12a   :  { %v601_v46 = vpop.f32.mrf.mxu3 }
 0x12b   :  { %v602_v47 = vadd.f32 %v601_v46, %v582_v45 }
 0x12d   :  { %v607_v48 = vmax.f32 %v602_v47, 0.0 }
 0x12f   :  { %611 = vst [vmem:[%s1458_s3 + $0x18] sm:$0xff] %v607_v48 }

</bundles_post_ra>
